<compile_context>
chip_gen: v7x
topology: tpu7x:2x2x1
jax: 0.10.0
libtpu: 0.0.40
codegen_flags: <defaults>
</compile_context>

<pallas_src>
import functools

import jax
import jax.numpy as jnp
from jax import lax
from jax.experimental import pallas as pl
from jax.experimental.pallas import tpu as pltpu

BN_EPS = 1e-5


def _inld_level_kernel(x_ref, cw_hbm, cb_ref, ow_ref, ob_ref,
                       den_ref, seg_ref,
                       w_vmem, w_sem, pad_ref, *, dilations, pad):
    # x_ref: (1, H, W, C); pad_ref scratch: (H+2*pad, W+2*pad, C) f32.
    H, W, C = x_ref.shape[1], x_ref.shape[2], x_ref.shape[3]
    Hp, Wp = H + 2 * pad, W + 2 * pad

    # Single-buffered conv weights: start the HBM->VMEM DMA now and overlap it
    # with halo zeroing / input staging below.
    w_copy = pltpu.make_async_copy(cw_hbm, w_vmem, w_sem.at[0])
    w_copy.start()

    # Zero only the halo strips; the interior is overwritten every layer.
    # Done every grid step (not gated on program_id==0) so it stays correct
    # when the batch axis is sharded across TensorCores ("parallel" megacore).
    z_row = jnp.zeros((pad, Wp, C), jnp.float32)
    z_col = jnp.zeros((H, pad, C), jnp.float32)
    pad_ref[0:pad, :, :] = z_row
    pad_ref[pad + H:Hp, :, :] = z_row
    pad_ref[pad:pad + H, 0:pad, :] = z_col
    pad_ref[pad:pad + H, pad + W:Wp, :] = z_col

    orig2d = x_ref[0].reshape(H * W, C).astype(jnp.float32)

    feat = orig2d
    for li, d in enumerate(dilations):
        # Stage the current feature into the interior of the padded buffer.
        # The scratch stays f32: the d in {1,2,4} taps need sub-8 sublane
        # offsets (native for 32-bit rows); operands are cast to bf16 only at
        # the MXU boundary so elementwise math stays f32 (v5e VPU).
        pad_ref[pad:pad + H, pad:pad + W, :] = feat.reshape(H, W, C)
        if li == 0:
            w_copy.wait()   # conv weights (bf16, BN-folded) now resident

        acc = jnp.zeros((H * W, C), jnp.float32)
        for kx in range(3):
            dx = (kx - 1) * d
            if d % 8 == 0:
                # All tap offsets are multiples of 8 -> sublane-aligned slices;
                # read the three dy taps of this kx column directly.
                for ky in range(3):
                    dy = (ky - 1) * d
                    tap = pad_ref[pad + dy:pad + dy + H,
                                  pad + dx:pad + dx + W, :]
                    acc += jnp.dot(tap.reshape(H * W, C).astype(jnp.bfloat16),
                                   w_vmem[li * 9 + ky * 3 + kx],
                                   preferred_element_type=jnp.float32)
            else:
                # Small dilation: one (H+2d)-tall slab per kx shares the single
                # sublane-unaligned (dx) read across the three dy taps; dy
                # shifts are free slices along the untiled major axis.
                tall = pad_ref[pad - d:pad + H + d,
                               pad + dx:pad + dx + W, :]
                for ky in range(3):
                    dy = (ky - 1) * d
                    tap = tall[d + dy:d + dy + H]
                    acc += jnp.dot(tap.reshape(H * W, C).astype(jnp.bfloat16),
                                   w_vmem[li * 9 + ky * 3 + kx],
                                   preferred_element_type=jnp.float32)

        # Folded-BN bias + ReLU (the BN scale already lives in the bf16 weights).
        feat = jnp.maximum(acc + cb_ref[li], 0.0)

    # Fused InLd + segm 1x1 convs: one bf16 matmul over C+NC output channels.
    out = jnp.dot(feat.astype(jnp.bfloat16), ow_ref[...],
                  preferred_element_type=jnp.float32) + ob_ref[...]
    gate = out[:, :C]
    seg = out[:, C:]

    den = orig2d * jax.nn.sigmoid(gate)
    den_ref[0] = den.reshape(H, W, C).astype(den_ref.dtype)
    seg_ref[0] = seg.reshape(H, W, seg_ref.shape[3]).astype(seg_ref.dtype)


def fold_level_params(p):
    """Host-side prep: fold BN into conv weight/bias, fuse the two 1x1 convs,
    and cast MXU operands to bf16."""
    L, _, _, C, _ = p["cw"].shape
    scale = p["gamma"] * lax.rsqrt(p["var"] + BN_EPS)              # (L, 1, C)
    cw = p["cw"] * scale[:, 0, :][:, None, None, None, :]          # scale Cout
    cw = cw.reshape(L * 9, C, C).astype(jnp.bfloat16)
    cb = (p["beta"] - p["mean"] * scale).astype(jnp.float32)       # (L, 1, C)
    ow = jnp.concatenate([p["iw"], p["sw"]], axis=1).astype(jnp.bfloat16)
    ob = jnp.concatenate([p["ib"], p["sb"]], axis=1).astype(jnp.float32)
    return cw, cb, ow, ob


def inld_level_forward(x, p, dilations, max_dilation):
    """One FPN level of InLD_Module.forward_single (train=True)."""
    B, H, W, C = x.shape
    NC = p["sw"].shape[-1]
    L = len(dilations)
    pad = max_dilation
    cw, cb, ow, ob = fold_level_params(p)

    kernel = functools.partial(_inld_level_kernel,
                               dilations=tuple(dilations), pad=pad)

    den, seg = pl.pallas_call(
        kernel,
        out_shape=(jax.ShapeDtypeStruct((B, H, W, C), x.dtype),
                   jax.ShapeDtypeStruct((B, H, W, NC), x.dtype)),
        grid_spec=pltpu.PrefetchScalarGridSpec(
            num_scalar_prefetch=0,
            grid=(B,),
            in_specs=[
                pl.BlockSpec((1, H, W, C), lambda b: (b, 0, 0, 0)),   # x
                pl.BlockSpec(memory_space=pl.ANY),                    # folded conv w (HBM)
                pl.BlockSpec((L, 1, C), lambda b: (0, 0, 0)),         # folded BN bias
                pl.BlockSpec((C, C + NC), lambda b: (0, 0)),          # fused 1x1 weight
                pl.BlockSpec((1, C + NC), lambda b: (0, 0)),          # fused 1x1 bias
            ],
            out_specs=[
                pl.BlockSpec((1, H, W, C), lambda b: (b, 0, 0, 0)),
                pl.BlockSpec((1, H, W, NC), lambda b: (b, 0, 0, 0)),
            ],
            scratch_shapes=[
                pltpu.VMEM((L * 9, C, C), jnp.bfloat16),     # single weight copy
                pltpu.SemaphoreType.DMA((1,)),
                pltpu.VMEM((H + 2 * pad, W + 2 * pad, C), jnp.float32),
            ],
        ),
        compiler_params=pltpu.CompilerParams(
            dimension_semantics=("parallel",),          # shard batch on v7x megacore
            vmem_limit_bytes=64 * 1024 * 1024,
        ),
    )(x, cw, cb, ow, ob)
    return den, seg


def init_level_params(key, C, NC, L):
    """Deterministic parameter init mirroring InLD_Module.init_weights shapes."""
    ks = jax.random.split(key, 8)
    cw = jax.random.normal(ks[0], (L, 3, 3, C, C), jnp.float32) * jnp.sqrt(2.0 / (9 * C))
    gamma = 1.0 + 0.1 * jax.random.normal(ks[1], (L, 1, C), jnp.float32)
    beta = 0.05 * jax.random.normal(ks[2], (L, 1, C), jnp.float32)
    mean = 0.05 * jax.random.normal(ks[3], (L, 1, C), jnp.float32)
    var = 1.0 + 0.1 * jnp.abs(jax.random.normal(ks[4], (L, 1, C), jnp.float32))
    iw = jax.random.normal(ks[5], (C, C), jnp.float32) * jnp.sqrt(2.0 / C)
    ib = jnp.zeros((1, C), jnp.float32)
    sw = jax.random.normal(ks[6], (C, NC), jnp.float32) * jnp.sqrt(2.0 / NC)
    sb = jnp.zeros((1, NC), jnp.float32)
    return dict(cw=cw, gamma=gamma, beta=beta, mean=mean, var=var,
                iw=iw, ib=ib, sw=sw, sb=sb)


def ref_level_forward(x, p, dilations):
    """Pure-JAX f32 reference (NHWC) of forward_single, for correctness check."""
    feat = x
    for li, d in enumerate(dilations):
        y = lax.conv_general_dilated(
            feat, p["cw"][li], window_strides=(1, 1),
            padding=((d, d), (d, d)), rhs_dilation=(d, d),
            dimension_numbers=("NHWC", "HWIO", "NHWC"),
            precision=lax.Precision.HIGHEST)
        inv = lax.rsqrt(p["var"][li] + BN_EPS)
        y = (y - p["mean"][li]) * (inv * p["gamma"][li]) + p["beta"][li]
        feat = jnp.maximum(y, 0.0)
    gate = jnp.einsum("bhwc,cd->bhwd", feat, p["iw"],
                      precision=lax.Precision.HIGHEST) + p["ib"]
    den = x * jax.nn.sigmoid(gate)
    seg = jnp.einsum("bhwc,cd->bhwd", feat, p["sw"],
                     precision=lax.Precision.HIGHEST) + p["sb"]
    return den, seg


if __name__ == "__main__":
    # Small config consistent with the module (in_channels / num_classes shrunk;
    # 2 pyramid levels instead of 5; default dilation schedule kept).
    B, C, NC = 2, 32, 8
    spatial = [16, 8]                       # strides [8, 16] of a 128-px image
    dilations = [1, 1, 2, 4, 8, 16, 1]      # stacked_convs = 7 (module default)
    Dmax = max(dilations)
    L = len(dilations)

    key = jax.random.PRNGKey(0)
    k_feat, k_par = jax.random.split(key)
    feat_keys = jax.random.split(k_feat, len(spatial))
    par_keys = jax.random.split(k_par, len(spatial))

    feats = [jax.random.normal(feat_keys[i], (B, s, s, C), jnp.float32)
             for i, s in enumerate(spatial)]
    params = [init_level_params(par_keys[i], C, NC, L) for i in range(len(spatial))]

    # multi_apply over levels: each level returns (denoise_feat, segm_pred).
    outs = [inld_level_forward(x, p, dilations, Dmax)
            for x, p in zip(feats, params)]
    jax.block_until_ready(outs)

    def rel_err(a, b):
        a = a.astype(jnp.float32)
        b = b.astype(jnp.float32)
        return float(jnp.linalg.norm(a - b) / (jnp.linalg.norm(b) + 1e-12))

    ok = True
    for (den, seg), x, p in zip(outs, feats, params):
        den_r, seg_r = ref_level_forward(x, p, dilations)
        # bf16 MXU operands vs an f32 reference: check relative L2 error.
        ok &= rel_err(den, den_r) < 3e-2
        ok &= rel_err(seg, seg_r) < 3e-2
    assert ok, "Pallas kernel does not match JAX reference"
    print("KERNEL_OK")
</pallas_src>

<mosaic_0001>
module attributes {stable_mosaic.version = 11 : i64} {
  func.func @_inld_level_kernel(%arg0: i32, %arg1: memref<1x16x16x32xf32, #tpu.memory_space<vmem>>, %arg2: memref<63x32x32xbf16, #tpu.memory_space<any>>, %arg3: memref<7x1x32xf32, #tpu.memory_space<vmem>>, %arg4: memref<32x40xbf16, #tpu.memory_space<vmem>>, %arg5: memref<1x40xf32, #tpu.memory_space<vmem>>, %arg6: memref<1x16x16x32xf32, #tpu.memory_space<vmem>>, %arg7: memref<1x16x16x8xf32, #tpu.memory_space<vmem>>, %arg8: memref<63x32x32xbf16, #tpu.memory_space<vmem>>, %arg9: memref<1x!tpu.dma_semaphore, #tpu.memory_space<semaphore_mem>>, %arg10: memref<48x48x32xf32, #tpu.memory_space<vmem>>) attributes {dimension_semantics = [#tpu.dimension_semantics<parallel>], iteration_bounds = array<i64: 2>, scalar_prefetch = 0 : i64, scratch_operands = 3 : i64, tpu.core_type = #tpu.core_type<tc>, window_params = [{transform_indices = @transform_0, window_bounds = array<i64: 1, 16, 16, 32>}, {}, {pipeline_mode = #tpu.pipeline_mode<synchronous>, transform_indices = @transform_2, window_bounds = array<i64: 7, 1, 32>}, {pipeline_mode = #tpu.pipeline_mode<synchronous>, transform_indices = @transform_3, window_bounds = array<i64: 32, 40>}, {pipeline_mode = #tpu.pipeline_mode<synchronous>, transform_indices = @transform_4, window_bounds = array<i64: 1, 40>}, {transform_indices = @transform_5, window_bounds = array<i64: 1, 16, 16, 32>}, {transform_indices = @transform_6, window_bounds = array<i64: 1, 16, 16, 8>}]} {
    %c0_i32 = arith.constant 0 : i32
    %0 = tpu.memref_slice %arg9[%c0_i32] : memref<1x!tpu.dma_semaphore, #tpu.memory_space<semaphore_mem>> -> memref<1x!tpu.dma_semaphore, #tpu.memory_space<semaphore_mem>>
    %1 = tpu.memref_squeeze %0 : memref<1x!tpu.dma_semaphore, #tpu.memory_space<semaphore_mem>> -> memref<!tpu.dma_semaphore, #tpu.memory_space<semaphore_mem>>
    tpu.enqueue_dma source(%arg2 : memref<63x32x32xbf16, #tpu.memory_space<any>>) target(%arg8 : memref<63x32x32xbf16, #tpu.memory_space<vmem>>) target_semaphore(%1 : memref<!tpu.dma_semaphore, #tpu.memory_space<semaphore_mem>>)
    %cst = arith.constant 0.000000e+00 : f32
    %2 = vector.broadcast %cst : f32 to vector<16x48x32xf32>
    %cst_0 = arith.constant 0.000000e+00 : f32
    %3 = vector.broadcast %cst_0 : f32 to vector<16x16x32xf32>
    %c0 = arith.constant 0 : index
    %c0_1 = arith.constant 0 : index
    %c0_2 = arith.constant 0 : index
    %4 = vector.load %arg10[%c0, %c0_1, %c0_2] : memref<48x48x32xf32, #tpu.memory_space<vmem>>, vector<16x48x32xf32>
    tpu.vector_store %arg10[%c0, %c0_1, %c0_2], %2 {strides = array<i32>} : memref<48x48x32xf32, #tpu.memory_space<vmem>>, vector<16x48x32xf32>,
    %c32 = arith.constant 32 : index
    %c0_3 = arith.constant 0 : index
    %c0_4 = arith.constant 0 : index
    %5 = vector.load %arg10[%c32, %c0_3, %c0_4] : memref<48x48x32xf32, #tpu.memory_space<vmem>>, vector<16x48x32xf32>
    tpu.vector_store %arg10[%c32, %c0_3, %c0_4], %2 {strides = array<i32>} : memref<48x48x32xf32, #tpu.memory_space<vmem>>, vector<16x48x32xf32>,
    %c16 = arith.constant 16 : index
    %c0_5 = arith.constant 0 : index
    %c0_6 = arith.constant 0 : index
    %6 = vector.load %arg10[%c16, %c0_5, %c0_6] : memref<48x48x32xf32, #tpu.memory_space<vmem>>, vector<16x16x32xf32>
    tpu.vector_store %arg10[%c16, %c0_5, %c0_6], %3 {strides = array<i32>} : memref<48x48x32xf32, #tpu.memory_space<vmem>>, vector<16x16x32xf32>,
    %c16_7 = arith.constant 16 : index
    %c32_8 = arith.constant 32 : index
    %c0_9 = arith.constant 0 : index
    %7 = vector.load %arg10[%c16_7, %c32_8, %c0_9] : memref<48x48x32xf32, #tpu.memory_space<vmem>>, vector<16x16x32xf32>
    tpu.vector_store %arg10[%c16_7, %c32_8, %c0_9], %3 {strides = array<i32>} : memref<48x48x32xf32, #tpu.memory_space<vmem>>, vector<16x16x32xf32>,
    %c0_10 = arith.constant 0 : index
    %c0_11 = arith.constant 0 : index
    %c0_12 = arith.constant 0 : index
    %c0_13 = arith.constant 0 : index
    %8 = vector.load %arg1[%c0_10, %c0_11, %c0_12, %c0_13] : memref<1x16x16x32xf32, #tpu.memory_space<vmem>>, vector<1x16x16x32xf32>
    %9 = vector.shape_cast %8 : vector<1x16x16x32xf32> to vector<16x16x32xf32>
    %10 = vector.shape_cast %9 : vector<16x16x32xf32> to vector<256x32xf32>
    %11 = vector.shape_cast %10 : vector<256x32xf32> to vector<16x16x32xf32>
    %c16_14 = arith.constant 16 : index
    %c16_15 = arith.constant 16 : index
    %c0_16 = arith.constant 0 : index
    %12 = vector.load %arg10[%c16_14, %c16_15, %c0_16] : memref<48x48x32xf32, #tpu.memory_space<vmem>>, vector<16x16x32xf32>
    tpu.vector_store %arg10[%c16_14, %c16_15, %c0_16], %11 {strides = array<i32>} : memref<48x48x32xf32, #tpu.memory_space<vmem>>, vector<16x16x32xf32>,
    %c0_i32_17 = arith.constant 0 : i32
    %13 = tpu.memref_slice %arg9[%c0_i32_17] : memref<1x!tpu.dma_semaphore, #tpu.memory_space<semaphore_mem>> -> memref<1x!tpu.dma_semaphore, #tpu.memory_space<semaphore_mem>>
    %14 = tpu.memref_squeeze %13 : memref<1x!tpu.dma_semaphore, #tpu.memory_space<semaphore_mem>> -> memref<!tpu.dma_semaphore, #tpu.memory_space<semaphore_mem>>
    tpu.wait_dma2 semaphore(%14 : memref<!tpu.dma_semaphore, #tpu.memory_space<semaphore_mem>>) src(%arg2 : memref<63x32x32xbf16, #tpu.memory_space<any>>) dst(%arg8 : memref<63x32x32xbf16, #tpu.memory_space<vmem>>)
    %cst_18 = arith.constant 0.000000e+00 : f32
    %15 = vector.broadcast %cst_18 : f32 to vector<256x32xf32>
    %c15 = arith.constant 15 : index
    %c15_19 = arith.constant 15 : index
    %c0_20 = arith.constant 0 : index
    %16 = vector.load %arg10[%c15, %c15_19, %c0_20] : memref<48x48x32xf32, #tpu.memory_space<vmem>>, vector<18x16x32xf32>
    %17 = vector.extract_strided_slice %16 {offsets = [0, 0, 0], sizes = [16, 16, 32], strides = [1, 1, 1]} : vector<18x16x32xf32> to vector<16x16x32xf32>
    %18 = vector.shape_cast %17 : vector<16x16x32xf32> to vector<256x32xf32>
    %19 = arith.truncf %18 : vector<256x32xf32> to vector<256x32xbf16>
    %c0_21 = arith.constant 0 : index
    %c0_22 = arith.constant 0 : index
    %c0_23 = arith.constant 0 : index
    %20 = vector.load %arg8[%c0_21, %c0_22, %c0_23] : memref<63x32x32xbf16, #tpu.memory_space<vmem>>, vector<1x32x32xbf16>
    %21 = vector.shape_cast %20 : vector<1x32x32xbf16> to vector<32x32xbf16>
    %cst_24 = arith.constant dense<0.000000e+00> : vector<256x32xf32>
    %22 = tpu.matmul %19, %21, %cst_24 {dimension_numbers = #tpu.dot_dimension_numbers<[1], [0], [0], [1], [0, 0, 1, 1], [], []>} : vector<256x32xbf16>, vector<32x32xbf16>, vector<256x32xf32> -> vector<256x32xf32>
    %23 = arith.addf %15, %22 : vector<256x32xf32>
    %24 = vector.extract_strided_slice %16 {offsets = [1, 0, 0], sizes = [16, 16, 32], strides = [1, 1, 1]} : vector<18x16x32xf32> to vector<16x16x32xf32>
    %25 = vector.shape_cast %24 : vector<16x16x32xf32> to vector<256x32xf32>
    %26 = arith.truncf %25 : vector<256x32xf32> to vector<256x32xbf16>
    %c3 = arith.constant 3 : index
    %c0_25 = arith.constant 0 : index
    %c0_26 = arith.constant 0 : index
    %27 = vector.load %arg8[%c3, %c0_25, %c0_26] : memref<63x32x32xbf16, #tpu.memory_space<vmem>>, vector<1x32x32xbf16>
    %28 = vector.shape_cast %27 : vector<1x32x32xbf16> to vector<32x32xbf16>
    %cst_27 = arith.constant dense<0.000000e+00> : vector<256x32xf32>
    %29 = tpu.matmul %26, %28, %cst_27 {dimension_numbers = #tpu.dot_dimension_numbers<[1], [0], [0], [1], [0, 0, 1, 1], [], []>} : vector<256x32xbf16>, vector<32x32xbf16>, vector<256x32xf32> -> vector<256x32xf32>
    %30 = arith.addf %23, %29 : vector<256x32xf32>
    %31 = vector.extract_strided_slice %16 {offsets = [2, 0, 0], sizes = [16, 16, 32], strides = [1, 1, 1]} : vector<18x16x32xf32> to vector<16x16x32xf32>
    %32 = vector.shape_cast %31 : vector<16x16x32xf32> to vector<256x32xf32>
    %33 = arith.truncf %32 : vector<256x32xf32> to vector<256x32xbf16>
    %c6 = arith.constant 6 : index
    %c0_28 = arith.constant 0 : index
    %c0_29 = arith.constant 0 : index
    %34 = vector.load %arg8[%c6, %c0_28, %c0_29] : memref<63x32x32xbf16, #tpu.memory_space<vmem>>, vector<1x32x32xbf16>
    %35 = vector.shape_cast %34 : vector<1x32x32xbf16> to vector<32x32xbf16>
    %cst_30 = arith.constant dense<0.000000e+00> : vector<256x32xf32>
    %36 = tpu.matmul %33, %35, %cst_30 {dimension_numbers = #tpu.dot_dimension_numbers<[1], [0], [0], [1], [0, 0, 1, 1], [], []>} : vector<256x32xbf16>, vector<32x32xbf16>, vector<256x32xf32> -> vector<256x32xf32>
    %37 = arith.addf %30, %36 : vector<256x32xf32>
    %c15_31 = arith.constant 15 : index
    %c16_32 = arith.constant 16 : index
    %c0_33 = arith.constant 0 : index
    %38 = vector.load %arg10[%c15_31, %c16_32, %c0_33] : memref<48x48x32xf32, #tpu.memory_space<vmem>>, vector<18x16x32xf32>
    %39 = vector.extract_strided_slice %38 {offsets = [0, 0, 0], sizes = [16, 16, 32], strides = [1, 1, 1]} : vector<18x16x32xf32> to vector<16x16x32xf32>
    %40 = vector.shape_cast %39 : vector<16x16x32xf32> to vector<256x32xf32>
    %41 = arith.truncf %40 : vector<256x32xf32> to vector<256x32xbf16>
    %c1 = arith.constant 1 : index
    %c0_34 = arith.constant 0 : index
    %c0_35 = arith.constant 0 : index
    %42 = vector.load %arg8[%c1, %c0_34, %c0_35] : memref<63x32x32xbf16, #tpu.memory_space<vmem>>, vector<1x32x32xbf16>
    %43 = vector.shape_cast %42 : vector<1x32x32xbf16> to vector<32x32xbf16>
    %cst_36 = arith.constant dense<0.000000e+00> : vector<256x32xf32>
    %44 = tpu.matmul %41, %43, %cst_36 {dimension_numbers = #tpu.dot_dimension_numbers<[1], [0], [0], [1], [0, 0, 1, 1], [], []>} : vector<256x32xbf16>, vector<32x32xbf16>, vector<256x32xf32> -> vector<256x32xf32>
    %45 = arith.addf %37, %44 : vector<256x32xf32>
    %46 = vector.extract_strided_slice %38 {offsets = [1, 0, 0], sizes = [16, 16, 32], strides = [1, 1, 1]} : vector<18x16x32xf32> to vector<16x16x32xf32>
    %47 = vector.shape_cast %46 : vector<16x16x32xf32> to vector<256x32xf32>
    %48 = arith.truncf %47 : vector<256x32xf32> to vector<256x32xbf16>
    %c4 = arith.constant 4 : index
    %c0_37 = arith.constant 0 : index
    %c0_38 = arith.constant 0 : index
    %49 = vector.load %arg8[%c4, %c0_37, %c0_38] : memref<63x32x32xbf16, #tpu.memory_space<vmem>>, vector<1x32x32xbf16>
    %50 = vector.shape_cast %49 : vector<1x32x32xbf16> to vector<32x32xbf16>
    %cst_39 = arith.constant dense<0.000000e+00> : vector<256x32xf32>
    %51 = tpu.matmul %48, %50, %cst_39 {dimension_numbers = #tpu.dot_dimension_numbers<[1], [0], [0], [1], [0, 0, 1, 1], [], []>} : vector<256x32xbf16>, vector<32x32xbf16>, vector<256x32xf32> -> vector<256x32xf32>
    %52 = arith.addf %45, %51 : vector<256x32xf32>
    %53 = vector.extract_strided_slice %38 {offsets = [2, 0, 0], sizes = [16, 16, 32], strides = [1, 1, 1]} : vector<18x16x32xf32> to vector<16x16x32xf32>
    %54 = vector.shape_cast %53 : vector<16x16x32xf32> to vector<256x32xf32>
    %55 = arith.truncf %54 : vector<256x32xf32> to vector<256x32xbf16>
    %c7 = arith.constant 7 : index
    %c0_40 = arith.constant 0 : index
    %c0_41 = arith.constant 0 : index
    %56 = vector.load %arg8[%c7, %c0_40, %c0_41] : memref<63x32x32xbf16, #tpu.memory_space<vmem>>, vector<1x32x32xbf16>
    %57 = vector.shape_cast %56 : vector<1x32x32xbf16> to vector<32x32xbf16>
    %cst_42 = arith.constant dense<0.000000e+00> : vector<256x32xf32>
    %58 = tpu.matmul %55, %57, %cst_42 {dimension_numbers = #tpu.dot_dimension_numbers<[1], [0], [0], [1], [0, 0, 1, 1], [], []>} : vector<256x32xbf16>, vector<32x32xbf16>, vector<256x32xf32> -> vector<256x32xf32>
    %59 = arith.addf %52, %58 : vector<256x32xf32>
    %c15_43 = arith.constant 15 : index
    %c17 = arith.constant 17 : index
    %c0_44 = arith.constant 0 : index
    %60 = vector.load %arg10[%c15_43, %c17, %c0_44] : memref<48x48x32xf32, #tpu.memory_space<vmem>>, vector<18x16x32xf32>
    %61 = vector.extract_strided_slice %60 {offsets = [0, 0, 0], sizes = [16, 16, 32], strides = [1, 1, 1]} : vector<18x16x32xf32> to vector<16x16x32xf32>
    %62 = vector.shape_cast %61 : vector<16x16x32xf32> to vector<256x32xf32>
    %63 = arith.truncf %62 : vector<256x32xf32> to vector<256x32xbf16>
    %c2 = arith.constant 2 : index
    %c0_45 = arith.constant 0 : index
    %c0_46 = arith.constant 0 : index
    %64 = vector.load %arg8[%c2, %c0_45, %c0_46] : memref<63x32x32xbf16, #tpu.memory_space<vmem>>, vector<1x32x32xbf16>
    %65 = vector.shape_cast %64 : vector<1x32x32xbf16> to vector<32x32xbf16>
    %cst_47 = arith.constant dense<0.000000e+00> : vector<256x32xf32>
    %66 = tpu.matmul %63, %65, %cst_47 {dimension_numbers = #tpu.dot_dimension_numbers<[1], [0], [0], [1], [0, 0, 1, 1], [], []>} : vector<256x32xbf16>, vector<32x32xbf16>, vector<256x32xf32> -> vector<256x32xf32>
    %67 = arith.addf %59, %66 : vector<256x32xf32>
    %68 = vector.extract_strided_slice %60 {offsets = [1, 0, 0], sizes = [16, 16, 32], strides = [1, 1, 1]} : vector<18x16x32xf32> to vector<16x16x32xf32>
    %69 = vector.shape_cast %68 : vector<16x16x32xf32> to vector<256x32xf32>
    %70 = arith.truncf %69 : vector<256x32xf32> to vector<256x32xbf16>
    %c5 = arith.constant 5 : index
    %c0_48 = arith.constant 0 : index
    %c0_49 = arith.constant 0 : index
    %71 = vector.load %arg8[%c5, %c0_48, %c0_49] : memref<63x32x32xbf16, #tpu.memory_space<vmem>>, vector<1x32x32xbf16>
    %72 = vector.shape_cast %71 : vector<1x32x32xbf16> to vector<32x32xbf16>
    %cst_50 = arith.constant dense<0.000000e+00> : vector<256x32xf32>
    %73 = tpu.matmul %70, %72, %cst_50 {dimension_numbers = #tpu.dot_dimension_numbers<[1], [0], [0], [1], [0, 0, 1, 1], [], []>} : vector<256x32xbf16>, vector<32x32xbf16>, vector<256x32xf32> -> vector<256x32xf32>
    %74 = arith.addf %67, %73 : vector<256x32xf32>
    %75 = vector.extract_strided_slice %60 {offsets = [2, 0, 0], sizes = [16, 16, 32], strides = [1, 1, 1]} : vector<18x16x32xf32> to vector<16x16x32xf32>
    %76 = vector.shape_cast %75 : vector<16x16x32xf32> to vector<256x32xf32>
    %77 = arith.truncf %76 : vector<256x32xf32> to vector<256x32xbf16>
    %c8 = arith.constant 8 : index
    %c0_51 = arith.constant 0 : index
    %c0_52 = arith.constant 0 : index
    %78 = vector.load %arg8[%c8, %c0_51, %c0_52] : memref<63x32x32xbf16, #tpu.memory_space<vmem>>, vector<1x32x32xbf16>
    %79 = vector.shape_cast %78 : vector<1x32x32xbf16> to vector<32x32xbf16>
    %cst_53 = arith.constant dense<0.000000e+00> : vector<256x32xf32>
    %80 = tpu.matmul %77, %79, %cst_53 {dimension_numbers = #tpu.dot_dimension_numbers<[1], [0], [0], [1], [0, 0, 1, 1], [], []>} : vector<256x32xbf16>, vector<32x32xbf16>, vector<256x32xf32> -> vector<256x32xf32>
    %81 = arith.addf %74, %80 : vector<256x32xf32>
    %c0_54 = arith.constant 0 : index
    %c0_55 = arith.constant 0 : index
    %c0_56 = arith.constant 0 : index
    %82 = vector.load %arg3[%c0_54, %c0_55, %c0_56] : memref<7x1x32xf32, #tpu.memory_space<vmem>>, vector<1x1x32xf32>
    %83 = vector.shape_cast %82 : vector<1x1x32xf32> to vector<1x32xf32>
    %84 = vector.broadcast %83 : vector<1x32xf32> to vector<256x32xf32>
    %85 = arith.addf %81, %84 : vector<256x32xf32>
    %cst_57 = arith.constant 0.000000e+00 : f32
    %86 = vector.broadcast %cst_57 : f32 to vector<256x32xf32>
    %87 = arith.maximumf %85, %86 : vector<256x32xf32>
    %88 = vector.shape_cast %87 : vector<256x32xf32> to vector<16x16x32xf32>
    %c16_58 = arith.constant 16 : index
    %c16_59 = arith.constant 16 : index
    %c0_60 = arith.constant 0 : index
    %89 = vector.load %arg10[%c16_58, %c16_59, %c0_60] : memref<48x48x32xf32, #tpu.memory_space<vmem>>, vector<16x16x32xf32>
    tpu.vector_store %arg10[%c16_58, %c16_59, %c0_60], %88 {strides = array<i32>} : memref<48x48x32xf32, #tpu.memory_space<vmem>>, vector<16x16x32xf32>,
    %cst_61 = arith.constant 0.000000e+00 : f32
    %90 = vector.broadcast %cst_61 : f32 to vector<256x32xf32>
    %c15_62 = arith.constant 15 : index
    %c15_63 = arith.constant 15 : index
    %c0_64 = arith.constant 0 : index
    %91 = vector.load %arg10[%c15_62, %c15_63, %c0_64] : memref<48x48x32xf32, #tpu.memory_space<vmem>>, vector<18x16x32xf32>
    %92 = vector.extract_strided_slice %91 {offsets = [0, 0, 0], sizes = [16, 16, 32], strides = [1, 1, 1]} : vector<18x16x32xf32> to vector<16x16x32xf32>
    %93 = vector.shape_cast %92 : vector<16x16x32xf32> to vector<256x32xf32>
    %94 = arith.truncf %93 : vector<256x32xf32> to vector<256x32xbf16>
    %c9 = arith.constant 9 : index
    %c0_65 = arith.constant 0 : index
    %c0_66 = arith.constant 0 : index
    %95 = vector.load %arg8[%c9, %c0_65, %c0_66] : memref<63x32x32xbf16, #tpu.memory_space<vmem>>, vector<1x32x32xbf16>
    %96 = vector.shape_cast %95 : vector<1x32x32xbf16> to vector<32x32xbf16>
    %cst_67 = arith.constant dense<0.000000e+00> : vector<256x32xf32>
    %97 = tpu.matmul %94, %96, %cst_67 {dimension_numbers = #tpu.dot_dimension_numbers<[1], [0], [0], [1], [0, 0, 1, 1], [], []>} : vector<256x32xbf16>, vector<32x32xbf16>, vector<256x32xf32> -> vector<256x32xf32>
    %98 = arith.addf %90, %97 : vector<256x32xf32>
    %99 = vector.extract_strided_slice %91 {offsets = [1, 0, 0], sizes = [16, 16, 32], strides = [1, 1, 1]} : vector<18x16x32xf32> to vector<16x16x32xf32>
    %100 = vector.shape_cast %99 : vector<16x16x32xf32> to vector<256x32xf32>
    %101 = arith.truncf %100 : vector<256x32xf32> to vector<256x32xbf16>
    %c12 = arith.constant 12 : index
    %c0_68 = arith.constant 0 : index
    %c0_69 = arith.constant 0 : index
    %102 = vector.load %arg8[%c12, %c0_68, %c0_69] : memref<63x32x32xbf16, #tpu.memory_space<vmem>>, vector<1x32x32xbf16>
    %103 = vector.shape_cast %102 : vector<1x32x32xbf16> to vector<32x32xbf16>
    %cst_70 = arith.constant dense<0.000000e+00> : vector<256x32xf32>
    %104 = tpu.matmul %101, %103, %cst_70 {dimension_numbers = #tpu.dot_dimension_numbers<[1], [0], [0], [1], [0, 0, 1, 1], [], []>} : vector<256x32xbf16>, vector<32x32xbf16>, vector<256x32xf32> -> vector<256x32xf32>
    %105 = arith.addf %98, %104 : vector<256x32xf32>
    %106 = vector.extract_strided_slice %91 {offsets = [2, 0, 0], sizes = [16, 16, 32], strides = [1, 1, 1]} : vector<18x16x32xf32> to vector<16x16x32xf32>
    %107 = vector.shape_cast %106 : vector<16x16x32xf32> to vector<256x32xf32>
    %108 = arith.truncf %107 : vector<256x32xf32> to vector<256x32xbf16>
    %c15_71 = arith.constant 15 : index
    %c0_72 = arith.constant 0 : index
    %c0_73 = arith.constant 0 : index
    %109 = vector.load %arg8[%c15_71, %c0_72, %c0_73] : memref<63x32x32xbf16, #tpu.memory_space<vmem>>, vector<1x32x32xbf16>
    %110 = vector.shape_cast %109 : vector<1x32x32xbf16> to vector<32x32xbf16>
    %cst_74 = arith.constant dense<0.000000e+00> : vector<256x32xf32>
    %111 = tpu.matmul %108, %110, %cst_74 {dimension_numbers = #tpu.dot_dimension_numbers<[1], [0], [0], [1], [0, 0, 1, 1], [], []>} : vector<256x32xbf16>, vector<32x32xbf16>, vector<256x32xf32> -> vector<256x32xf32>
    %112 = arith.addf %105, %111 : vector<256x32xf32>
    %c15_75 = arith.constant 15 : index
    %c16_76 = arith.constant 16 : index
    %c0_77 = arith.constant 0 : index
    %113 = vector.load %arg10[%c15_75, %c16_76, %c0_77] : memref<48x48x32xf32, #tpu.memory_space<vmem>>, vector<18x16x32xf32>
    %114 = vector.extract_strided_slice %113 {offsets = [0, 0, 0], sizes = [16, 16, 32], strides = [1, 1, 1]} : vector<18x16x32xf32> to vector<16x16x32xf32>
    %115 = vector.shape_cast %114 : vector<16x16x32xf32> to vector<256x32xf32>
    %116 = arith.truncf %115 : vector<256x32xf32> to vector<256x32xbf16>
    %c10 = arith.constant 10 : index
    %c0_78 = arith.constant 0 : index
    %c0_79 = arith.constant 0 : index
    %117 = vector.load %arg8[%c10, %c0_78, %c0_79] : memref<63x32x32xbf16, #tpu.memory_space<vmem>>, vector<1x32x32xbf16>
    %118 = vector.shape_cast %117 : vector<1x32x32xbf16> to vector<32x32xbf16>
    %cst_80 = arith.constant dense<0.000000e+00> : vector<256x32xf32>
    %119 = tpu.matmul %116, %118, %cst_80 {dimension_numbers = #tpu.dot_dimension_numbers<[1], [0], [0], [1], [0, 0, 1, 1], [], []>} : vector<256x32xbf16>, vector<32x32xbf16>, vector<256x32xf32> -> vector<256x32xf32>
    %120 = arith.addf %112, %119 : vector<256x32xf32>
    %121 = vector.extract_strided_slice %113 {offsets = [1, 0, 0], sizes = [16, 16, 32], strides = [1, 1, 1]} : vector<18x16x32xf32> to vector<16x16x32xf32>
    %122 = vector.shape_cast %121 : vector<16x16x32xf32> to vector<256x32xf32>
    %123 = arith.truncf %122 : vector<256x32xf32> to vector<256x32xbf16>
    %c13 = arith.constant 13 : index
    %c0_81 = arith.constant 0 : index
    %c0_82 = arith.constant 0 : index
    %124 = vector.load %arg8[%c13, %c0_81, %c0_82] : memref<63x32x32xbf16, #tpu.memory_space<vmem>>, vector<1x32x32xbf16>
    %125 = vector.shape_cast %124 : vector<1x32x32xbf16> to vector<32x32xbf16>
    %cst_83 = arith.constant dense<0.000000e+00> : vector<256x32xf32>
    %126 = tpu.matmul %123, %125, %cst_83 {dimension_numbers = #tpu.dot_dimension_numbers<[1], [0], [0], [1], [0, 0, 1, 1], [], []>} : vector<256x32xbf16>, vector<32x32xbf16>, vector<256x32xf32> -> vector<256x32xf32>
    %127 = arith.addf %120, %126 : vector<256x32xf32>
    %128 = vector.extract_strided_slice %113 {offsets = [2, 0, 0], sizes = [16, 16, 32], strides = [1, 1, 1]} : vector<18x16x32xf32> to vector<16x16x32xf32>
    %129 = vector.shape_cast %128 : vector<16x16x32xf32> to vector<256x32xf32>
    %130 = arith.truncf %129 : vector<256x32xf32> to vector<256x32xbf16>
    %c16_84 = arith.constant 16 : index
    %c0_85 = arith.constant 0 : index
    %c0_86 = arith.constant 0 : index
    %131 = vector.load %arg8[%c16_84, %c0_85, %c0_86] : memref<63x32x32xbf16, #tpu.memory_space<vmem>>, vector<1x32x32xbf16>
    %132 = vector.shape_cast %131 : vector<1x32x32xbf16> to vector<32x32xbf16>
    %cst_87 = arith.constant dense<0.000000e+00> : vector<256x32xf32>
    %133 = tpu.matmul %130, %132, %cst_87 {dimension_numbers = #tpu.dot_dimension_numbers<[1], [0], [0], [1], [0, 0, 1, 1], [], []>} : vector<256x32xbf16>, vector<32x32xbf16>, vector<256x32xf32> -> vector<256x32xf32>
    %134 = arith.addf %127, %133 : vector<256x32xf32>
    %c15_88 = arith.constant 15 : index
    %c17_89 = arith.constant 17 : index
    %c0_90 = arith.constant 0 : index
    %135 = vector.load %arg10[%c15_88, %c17_89, %c0_90] : memref<48x48x32xf32, #tpu.memory_space<vmem>>, vector<18x16x32xf32>
    %136 = vector.extract_strided_slice %135 {offsets = [0, 0, 0], sizes = [16, 16, 32], strides = [1, 1, 1]} : vector<18x16x32xf32> to vector<16x16x32xf32>
    %137 = vector.shape_cast %136 : vector<16x16x32xf32> to vector<256x32xf32>
    %138 = arith.truncf %137 : vector<256x32xf32> to vector<256x32xbf16>
    %c11 = arith.constant 11 : index
    %c0_91 = arith.constant 0 : index
    %c0_92 = arith.constant 0 : index
    %139 = vector.load %arg8[%c11, %c0_91, %c0_92] : memref<63x32x32xbf16, #tpu.memory_space<vmem>>, vector<1x32x32xbf16>
    %140 = vector.shape_cast %139 : vector<1x32x32xbf16> to vector<32x32xbf16>
    %cst_93 = arith.constant dense<0.000000e+00> : vector<256x32xf32>
    %141 = tpu.matmul %138, %140, %cst_93 {dimension_numbers = #tpu.dot_dimension_numbers<[1], [0], [0], [1], [0, 0, 1, 1], [], []>} : vector<256x32xbf16>, vector<32x32xbf16>, vector<256x32xf32> -> vector<256x32xf32>
    %142 = arith.addf %134, %141 : vector<256x32xf32>
    %143 = vector.extract_strided_slice %135 {offsets = [1, 0, 0], sizes = [16, 16, 32], strides = [1, 1, 1]} : vector<18x16x32xf32> to vector<16x16x32xf32>
    %144 = vector.shape_cast %143 : vector<16x16x32xf32> to vector<256x32xf32>
    %145 = arith.truncf %144 : vector<256x32xf32> to vector<256x32xbf16>
    %c14 = arith.constant 14 : index
    %c0_94 = arith.constant 0 : index
    %c0_95 = arith.constant 0 : index
    %146 = vector.load %arg8[%c14, %c0_94, %c0_95] : memref<63x32x32xbf16, #tpu.memory_space<vmem>>, vector<1x32x32xbf16>
    %147 = vector.shape_cast %146 : vector<1x32x32xbf16> to vector<32x32xbf16>
    %cst_96 = arith.constant dense<0.000000e+00> : vector<256x32xf32>
    %148 = tpu.matmul %145, %147, %cst_96 {dimension_numbers = #tpu.dot_dimension_numbers<[1], [0], [0], [1], [0, 0, 1, 1], [], []>} : vector<256x32xbf16>, vector<32x32xbf16>, vector<256x32xf32> -> vector<256x32xf32>
    %149 = arith.addf %142, %148 : vector<256x32xf32>
    %150 = vector.extract_strided_slice %135 {offsets = [2, 0, 0], sizes = [16, 16, 32], strides = [1, 1, 1]} : vector<18x16x32xf32> to vector<16x16x32xf32>
    %151 = vector.shape_cast %150 : vector<16x16x32xf32> to vector<256x32xf32>
    %152 = arith.truncf %151 : vector<256x32xf32> to vector<256x32xbf16>
    %c17_97 = arith.constant 17 : index
    %c0_98 = arith.constant 0 : index
    %c0_99 = arith.constant 0 : index
    %153 = vector.load %arg8[%c17_97, %c0_98, %c0_99] : memref<63x32x32xbf16, #tpu.memory_space<vmem>>, vector<1x32x32xbf16>
    %154 = vector.shape_cast %153 : vector<1x32x32xbf16> to vector<32x32xbf16>
    %cst_100 = arith.constant dense<0.000000e+00> : vector<256x32xf32>
    %155 = tpu.matmul %152, %154, %cst_100 {dimension_numbers = #tpu.dot_dimension_numbers<[1], [0], [0], [1], [0, 0, 1, 1], [], []>} : vector<256x32xbf16>, vector<32x32xbf16>, vector<256x32xf32> -> vector<256x32xf32>
    %156 = arith.addf %149, %155 : vector<256x32xf32>
    %c1_101 = arith.constant 1 : index
    %c0_102 = arith.constant 0 : index
    %c0_103 = arith.constant 0 : index
    %157 = vector.load %arg3[%c1_101, %c0_102, %c0_103] : memref<7x1x32xf32, #tpu.memory_space<vmem>>, vector<1x1x32xf32>
    %158 = vector.shape_cast %157 : vector<1x1x32xf32> to vector<1x32xf32>
    %159 = vector.broadcast %158 : vector<1x32xf32> to vector<256x32xf32>
    %160 = arith.addf %156, %159 : vector<256x32xf32>
    %cst_104 = arith.constant 0.000000e+00 : f32
    %161 = vector.broadcast %cst_104 : f32 to vector<256x32xf32>
    %162 = arith.maximumf %160, %161 : vector<256x32xf32>
    %163 = vector.shape_cast %162 : vector<256x32xf32> to vector<16x16x32xf32>
    %c16_105 = arith.constant 16 : index
    %c16_106 = arith.constant 16 : index
    %c0_107 = arith.constant 0 : index
    %164 = vector.load %arg10[%c16_105, %c16_106, %c0_107] : memref<48x48x32xf32, #tpu.memory_space<vmem>>, vector<16x16x32xf32>
    tpu.vector_store %arg10[%c16_105, %c16_106, %c0_107], %163 {strides = array<i32>} : memref<48x48x32xf32, #tpu.memory_space<vmem>>, vector<16x16x32xf32>,
    %cst_108 = arith.constant 0.000000e+00 : f32
    %165 = vector.broadcast %cst_108 : f32 to vector<256x32xf32>
    %c14_109 = arith.constant 14 : index
    %c14_110 = arith.constant 14 : index
    %c0_111 = arith.constant 0 : index
    %166 = vector.load %arg10[%c14_109, %c14_110, %c0_111] : memref<48x48x32xf32, #tpu.memory_space<vmem>>, vector<20x16x32xf32>
    %167 = vector.extract_strided_slice %166 {offsets = [0, 0, 0], sizes = [16, 16, 32], strides = [1, 1, 1]} : vector<20x16x32xf32> to vector<16x16x32xf32>
    %168 = vector.shape_cast %167 : vector<16x16x32xf32> to vector<256x32xf32>
    %169 = arith.truncf %168 : vector<256x32xf32> to vector<256x32xbf16>
    %c18 = arith.constant 18 : index
    %c0_112 = arith.constant 0 : index
    %c0_113 = arith.constant 0 : index
    %170 = vector.load %arg8[%c18, %c0_112, %c0_113] : memref<63x32x32xbf16, #tpu.memory_space<vmem>>, vector<1x32x32xbf16>
    %171 = vector.shape_cast %170 : vector<1x32x32xbf16> to vector<32x32xbf16>
    %cst_114 = arith.constant dense<0.000000e+00> : vector<256x32xf32>
    %172 = tpu.matmul %169, %171, %cst_114 {dimension_numbers = #tpu.dot_dimension_numbers<[1], [0], [0], [1], [0, 0, 1, 1], [], []>} : vector<256x32xbf16>, vector<32x32xbf16>, vector<256x32xf32> -> vector<256x32xf32>
    %173 = arith.addf %165, %172 : vector<256x32xf32>
    %174 = vector.extract_strided_slice %166 {offsets = [2, 0, 0], sizes = [16, 16, 32], strides = [1, 1, 1]} : vector<20x16x32xf32> to vector<16x16x32xf32>
    %175 = vector.shape_cast %174 : vector<16x16x32xf32> to vector<256x32xf32>
    %176 = arith.truncf %175 : vector<256x32xf32> to vector<256x32xbf16>
    %c21 = arith.constant 21 : index
    %c0_115 = arith.constant 0 : index
    %c0_116 = arith.constant 0 : index
    %177 = vector.load %arg8[%c21, %c0_115, %c0_116] : memref<63x32x32xbf16, #tpu.memory_space<vmem>>, vector<1x32x32xbf16>
    %178 = vector.shape_cast %177 : vector<1x32x32xbf16> to vector<32x32xbf16>
    %cst_117 = arith.constant dense<0.000000e+00> : vector<256x32xf32>
    %179 = tpu.matmul %176, %178, %cst_117 {dimension_numbers = #tpu.dot_dimension_numbers<[1], [0], [0], [1], [0, 0, 1, 1], [], []>} : vector<256x32xbf16>, vector<32x32xbf16>, vector<256x32xf32> -> vector<256x32xf32>
    %180 = arith.addf %173, %179 : vector<256x32xf32>
    %181 = vector.extract_strided_slice %166 {offsets = [4, 0, 0], sizes = [16, 16, 32], strides = [1, 1, 1]} : vector<20x16x32xf32> to vector<16x16x32xf32>
    %182 = vector.shape_cast %181 : vector<16x16x32xf32> to vector<256x32xf32>
    %183 = arith.truncf %182 : vector<256x32xf32> to vector<256x32xbf16>
    %c24 = arith.constant 24 : index
    %c0_118 = arith.constant 0 : index
    %c0_119 = arith.constant 0 : index
    %184 = vector.load %arg8[%c24, %c0_118, %c0_119] : memref<63x32x32xbf16, #tpu.memory_space<vmem>>, vector<1x32x32xbf16>
    %185 = vector.shape_cast %184 : vector<1x32x32xbf16> to vector<32x32xbf16>
    %cst_120 = arith.constant dense<0.000000e+00> : vector<256x32xf32>
    %186 = tpu.matmul %183, %185, %cst_120 {dimension_numbers = #tpu.dot_dimension_numbers<[1], [0], [0], [1], [0, 0, 1, 1], [], []>} : vector<256x32xbf16>, vector<32x32xbf16>, vector<256x32xf32> -> vector<256x32xf32>
    %187 = arith.addf %180, %186 : vector<256x32xf32>
    %c14_121 = arith.constant 14 : index
    %c16_122 = arith.constant 16 : index
    %c0_123 = arith.constant 0 : index
    %188 = vector.load %arg10[%c14_121, %c16_122, %c0_123] : memref<48x48x32xf32, #tpu.memory_space<vmem>>, vector<20x16x32xf32>
    %189 = vector.extract_strided_slice %188 {offsets = [0, 0, 0], sizes = [16, 16, 32], strides = [1, 1, 1]} : vector<20x16x32xf32> to vector<16x16x32xf32>
    %190 = vector.shape_cast %189 : vector<16x16x32xf32> to vector<256x32xf32>
    %191 = arith.truncf %190 : vector<256x32xf32> to vector<256x32xbf16>
    %c19 = arith.constant 19 : index
    %c0_124 = arith.constant 0 : index
    %c0_125 = arith.constant 0 : index
    %192 = vector.load %arg8[%c19, %c0_124, %c0_125] : memref<63x32x32xbf16, #tpu.memory_space<vmem>>, vector<1x32x32xbf16>
    %193 = vector.shape_cast %192 : vector<1x32x32xbf16> to vector<32x32xbf16>
    %cst_126 = arith.constant dense<0.000000e+00> : vector<256x32xf32>
    %194 = tpu.matmul %191, %193, %cst_126 {dimension_numbers = #tpu.dot_dimension_numbers<[1], [0], [0], [1], [0, 0, 1, 1], [], []>} : vector<256x32xbf16>, vector<32x32xbf16>, vector<256x32xf32> -> vector<256x32xf32>
    %195 = arith.addf %187, %194 : vector<256x32xf32>
    %196 = vector.extract_strided_slice %188 {offsets = [2, 0, 0], sizes = [16, 16, 32], strides = [1, 1, 1]} : vector<20x16x32xf32> to vector<16x16x32xf32>
    %197 = vector.shape_cast %196 : vector<16x16x32xf32> to vector<256x32xf32>
    %198 = arith.truncf %197 : vector<256x32xf32> to vector<256x32xbf16>
    %c22 = arith.constant 22 : index
    %c0_127 = arith.constant 0 : index
    %c0_128 = arith.constant 0 : index
    %199 = vector.load %arg8[%c22, %c0_127, %c0_128] : memref<63x32x32xbf16, #tpu.memory_space<vmem>>, vector<1x32x32xbf16>
    %200 = vector.shape_cast %199 : vector<1x32x32xbf16> to vector<32x32xbf16>
    %cst_129 = arith.constant dense<0.000000e+00> : vector<256x32xf32>
    %201 = tpu.matmul %198, %200, %cst_129 {dimension_numbers = #tpu.dot_dimension_numbers<[1], [0], [0], [1], [0, 0, 1, 1], [], []>} : vector<256x32xbf16>, vector<32x32xbf16>, vector<256x32xf32> -> vector<256x32xf32>
    %202 = arith.addf %195, %201 : vector<256x32xf32>
    %203 = vector.extract_strided_slice %188 {offsets = [4, 0, 0], sizes = [16, 16, 32], strides = [1, 1, 1]} : vector<20x16x32xf32> to vector<16x16x32xf32>
    %204 = vector.shape_cast %203 : vector<16x16x32xf32> to vector<256x32xf32>
    %205 = arith.truncf %204 : vector<256x32xf32> to vector<256x32xbf16>
    %c25 = arith.constant 25 : index
    %c0_130 = arith.constant 0 : index
    %c0_131 = arith.constant 0 : index
    %206 = vector.load %arg8[%c25, %c0_130, %c0_131] : memref<63x32x32xbf16, #tpu.memory_space<vmem>>, vector<1x32x32xbf16>
    %207 = vector.shape_cast %206 : vector<1x32x32xbf16> to vector<32x32xbf16>
    %cst_132 = arith.constant dense<0.000000e+00> : vector<256x32xf32>
    %208 = tpu.matmul %205, %207, %cst_132 {dimension_numbers = #tpu.dot_dimension_numbers<[1], [0], [0], [1], [0, 0, 1, 1], [], []>} : vector<256x32xbf16>, vector<32x32xbf16>, vector<256x32xf32> -> vector<256x32xf32>
    %209 = arith.addf %202, %208 : vector<256x32xf32>
    %c14_133 = arith.constant 14 : index
    %c18_134 = arith.constant 18 : index
    %c0_135 = arith.constant 0 : index
    %210 = vector.load %arg10[%c14_133, %c18_134, %c0_135] : memref<48x48x32xf32, #tpu.memory_space<vmem>>, vector<20x16x32xf32>
    %211 = vector.extract_strided_slice %210 {offsets = [0, 0, 0], sizes = [16, 16, 32], strides = [1, 1, 1]} : vector<20x16x32xf32> to vector<16x16x32xf32>
    %212 = vector.shape_cast %211 : vector<16x16x32xf32> to vector<256x32xf32>
    %213 = arith.truncf %212 : vector<256x32xf32> to vector<256x32xbf16>
    %c20 = arith.constant 20 : index
    %c0_136 = arith.constant 0 : index
    %c0_137 = arith.constant 0 : index
    %214 = vector.load %arg8[%c20, %c0_136, %c0_137] : memref<63x32x32xbf16, #tpu.memory_space<vmem>>, vector<1x32x32xbf16>
    %215 = vector.shape_cast %214 : vector<1x32x32xbf16> to vector<32x32xbf16>
    %cst_138 = arith.constant dense<0.000000e+00> : vector<256x32xf32>
    %216 = tpu.matmul %213, %215, %cst_138 {dimension_numbers = #tpu.dot_dimension_numbers<[1], [0], [0], [1], [0, 0, 1, 1], [], []>} : vector<256x32xbf16>, vector<32x32xbf16>, vector<256x32xf32> -> vector<256x32xf32>
    %217 = arith.addf %209, %216 : vector<256x32xf32>
    %218 = vector.extract_strided_slice %210 {offsets = [2, 0, 0], sizes = [16, 16, 32], strides = [1, 1, 1]} : vector<20x16x32xf32> to vector<16x16x32xf32>
    %219 = vector.shape_cast %218 : vector<16x16x32xf32> to vector<256x32xf32>
    %220 = arith.truncf %219 : vector<256x32xf32> to vector<256x32xbf16>
    %c23 = arith.constant 23 : index
    %c0_139 = arith.constant 0 : index
    %c0_140 = arith.constant 0 : index
    %221 = vector.load %arg8[%c23, %c0_139, %c0_140] : memref<63x32x32xbf16, #tpu.memory_space<vmem>>, vector<1x32x32xbf16>
    %222 = vector.shape_cast %221 : vector<1x32x32xbf16> to vector<32x32xbf16>
    %cst_141 = arith.constant dense<0.000000e+00> : vector<256x32xf32>
    %223 = tpu.matmul %220, %222, %cst_141 {dimension_numbers = #tpu.dot_dimension_numbers<[1], [0], [0], [1], [0, 0, 1, 1], [], []>} : vector<256x32xbf16>, vector<32x32xbf16>, vector<256x32xf32> -> vector<256x32xf32>
    %224 = arith.addf %217, %223 : vector<256x32xf32>
    %225 = vector.extract_strided_slice %210 {offsets = [4, 0, 0], sizes = [16, 16, 32], strides = [1, 1, 1]} : vector<20x16x32xf32> to vector<16x16x32xf32>
    %226 = vector.shape_cast %225 : vector<16x16x32xf32> to vector<256x32xf32>
    %227 = arith.truncf %226 : vector<256x32xf32> to vector<256x32xbf16>
    %c26 = arith.constant 26 : index
    %c0_142 = arith.constant 0 : index
    %c0_143 = arith.constant 0 : index
    %228 = vector.load %arg8[%c26, %c0_142, %c0_143] : memref<63x32x32xbf16, #tpu.memory_space<vmem>>, vector<1x32x32xbf16>
    %229 = vector.shape_cast %228 : vector<1x32x32xbf16> to vector<32x32xbf16>
    %cst_144 = arith.constant dense<0.000000e+00> : vector<256x32xf32>
    %230 = tpu.matmul %227, %229, %cst_144 {dimension_numbers = #tpu.dot_dimension_numbers<[1], [0], [0], [1], [0, 0, 1, 1], [], []>} : vector<256x32xbf16>, vector<32x32xbf16>, vector<256x32xf32> -> vector<256x32xf32>
    %231 = arith.addf %224, %230 : vector<256x32xf32>
    %c2_145 = arith.constant 2 : index
    %c0_146 = arith.constant 0 : index
    %c0_147 = arith.constant 0 : index
    %232 = vector.load %arg3[%c2_145, %c0_146, %c0_147] : memref<7x1x32xf32, #tpu.memory_space<vmem>>, vector<1x1x32xf32>
    %233 = vector.shape_cast %232 : vector<1x1x32xf32> to vector<1x32xf32>
    %234 = vector.broadcast %233 : vector<1x32xf32> to vector<256x32xf32>
    %235 = arith.addf %231, %234 : vector<256x32xf32>
    %cst_148 = arith.constant 0.000000e+00 : f32
    %236 = vector.broadcast %cst_148 : f32 to vector<256x32xf32>
    %237 = arith.maximumf %235, %236 : vector<256x32xf32>
    %238 = vector.shape_cast %237 : vector<256x32xf32> to vector<16x16x32xf32>
    %c16_149 = arith.constant 16 : index
    %c16_150 = arith.constant 16 : index
    %c0_151 = arith.constant 0 : index
    %239 = vector.load %arg10[%c16_149, %c16_150, %c0_151] : memref<48x48x32xf32, #tpu.memory_space<vmem>>, vector<16x16x32xf32>
    tpu.vector_store %arg10[%c16_149, %c16_150, %c0_151], %238 {strides = array<i32>} : memref<48x48x32xf32, #tpu.memory_space<vmem>>, vector<16x16x32xf32>,
    %cst_152 = arith.constant 0.000000e+00 : f32
    %240 = vector.broadcast %cst_152 : f32 to vector<256x32xf32>
    %c12_153 = arith.constant 12 : index
    %c12_154 = arith.constant 12 : index
    %c0_155 = arith.constant 0 : index
    %241 = vector.load %arg10[%c12_153, %c12_154, %c0_155] : memref<48x48x32xf32, #tpu.memory_space<vmem>>, vector<24x16x32xf32>
    %242 = vector.extract_strided_slice %241 {offsets = [0, 0, 0], sizes = [16, 16, 32], strides = [1, 1, 1]} : vector<24x16x32xf32> to vector<16x16x32xf32>
    %243 = vector.shape_cast %242 : vector<16x16x32xf32> to vector<256x32xf32>
    %244 = arith.truncf %243 : vector<256x32xf32> to vector<256x32xbf16>
    %c27 = arith.constant 27 : index
    %c0_156 = arith.constant 0 : index
    %c0_157 = arith.constant 0 : index
    %245 = vector.load %arg8[%c27, %c0_156, %c0_157] : memref<63x32x32xbf16, #tpu.memory_space<vmem>>, vector<1x32x32xbf16>
    %246 = vector.shape_cast %245 : vector<1x32x32xbf16> to vector<32x32xbf16>
    %cst_158 = arith.constant dense<0.000000e+00> : vector<256x32xf32>
    %247 = tpu.matmul %244, %246, %cst_158 {dimension_numbers = #tpu.dot_dimension_numbers<[1], [0], [0], [1], [0, 0, 1, 1], [], []>} : vector<256x32xbf16>, vector<32x32xbf16>, vector<256x32xf32> -> vector<256x32xf32>
    %248 = arith.addf %240, %247 : vector<256x32xf32>
    %249 = vector.extract_strided_slice %241 {offsets = [4, 0, 0], sizes = [16, 16, 32], strides = [1, 1, 1]} : vector<24x16x32xf32> to vector<16x16x32xf32>
    %250 = vector.shape_cast %249 : vector<16x16x32xf32> to vector<256x32xf32>
    %251 = arith.truncf %250 : vector<256x32xf32> to vector<256x32xbf16>
    %c30 = arith.constant 30 : index
    %c0_159 = arith.constant 0 : index
    %c0_160 = arith.constant 0 : index
    %252 = vector.load %arg8[%c30, %c0_159, %c0_160] : memref<63x32x32xbf16, #tpu.memory_space<vmem>>, vector<1x32x32xbf16>
    %253 = vector.shape_cast %252 : vector<1x32x32xbf16> to vector<32x32xbf16>
    %cst_161 = arith.constant dense<0.000000e+00> : vector<256x32xf32>
    %254 = tpu.matmul %251, %253, %cst_161 {dimension_numbers = #tpu.dot_dimension_numbers<[1], [0], [0], [1], [0, 0, 1, 1], [], []>} : vector<256x32xbf16>, vector<32x32xbf16>, vector<256x32xf32> -> vector<256x32xf32>
    %255 = arith.addf %248, %254 : vector<256x32xf32>
    %256 = vector.extract_strided_slice %241 {offsets = [8, 0, 0], sizes = [16, 16, 32], strides = [1, 1, 1]} : vector<24x16x32xf32> to vector<16x16x32xf32>
    %257 = vector.shape_cast %256 : vector<16x16x32xf32> to vector<256x32xf32>
    %258 = arith.truncf %257 : vector<256x32xf32> to vector<256x32xbf16>
    %c33 = arith.constant 33 : index
    %c0_162 = arith.constant 0 : index
    %c0_163 = arith.constant 0 : index
    %259 = vector.load %arg8[%c33, %c0_162, %c0_163] : memref<63x32x32xbf16, #tpu.memory_space<vmem>>, vector<1x32x32xbf16>
    %260 = vector.shape_cast %259 : vector<1x32x32xbf16> to vector<32x32xbf16>
    %cst_164 = arith.constant dense<0.000000e+00> : vector<256x32xf32>
    %261 = tpu.matmul %258, %260, %cst_164 {dimension_numbers = #tpu.dot_dimension_numbers<[1], [0], [0], [1], [0, 0, 1, 1], [], []>} : vector<256x32xbf16>, vector<32x32xbf16>, vector<256x32xf32> -> vector<256x32xf32>
    %262 = arith.addf %255, %261 : vector<256x32xf32>
    %c12_165 = arith.constant 12 : index
    %c16_166 = arith.constant 16 : index
    %c0_167 = arith.constant 0 : index
    %263 = vector.load %arg10[%c12_165, %c16_166, %c0_167] : memref<48x48x32xf32, #tpu.memory_space<vmem>>, vector<24x16x32xf32>
    %264 = vector.extract_strided_slice %263 {offsets = [0, 0, 0], sizes = [16, 16, 32], strides = [1, 1, 1]} : vector<24x16x32xf32> to vector<16x16x32xf32>
    %265 = vector.shape_cast %264 : vector<16x16x32xf32> to vector<256x32xf32>
    %266 = arith.truncf %265 : vector<256x32xf32> to vector<256x32xbf16>
    %c28 = arith.constant 28 : index
    %c0_168 = arith.constant 0 : index
    %c0_169 = arith.constant 0 : index
    %267 = vector.load %arg8[%c28, %c0_168, %c0_169] : memref<63x32x32xbf16, #tpu.memory_space<vmem>>, vector<1x32x32xbf16>
    %268 = vector.shape_cast %267 : vector<1x32x32xbf16> to vector<32x32xbf16>
    %cst_170 = arith.constant dense<0.000000e+00> : vector<256x32xf32>
    %269 = tpu.matmul %266, %268, %cst_170 {dimension_numbers = #tpu.dot_dimension_numbers<[1], [0], [0], [1], [0, 0, 1, 1], [], []>} : vector<256x32xbf16>, vector<32x32xbf16>, vector<256x32xf32> -> vector<256x32xf32>
    %270 = arith.addf %262, %269 : vector<256x32xf32>
    %271 = vector.extract_strided_slice %263 {offsets = [4, 0, 0], sizes = [16, 16, 32], strides = [1, 1, 1]} : vector<24x16x32xf32> to vector<16x16x32xf32>
    %272 = vector.shape_cast %271 : vector<16x16x32xf32> to vector<256x32xf32>
    %273 = arith.truncf %272 : vector<256x32xf32> to vector<256x32xbf16>
    %c31 = arith.constant 31 : index
    %c0_171 = arith.constant 0 : index
    %c0_172 = arith.constant 0 : index
    %274 = vector.load %arg8[%c31, %c0_171, %c0_172] : memref<63x32x32xbf16, #tpu.memory_space<vmem>>, vector<1x32x32xbf16>
    %275 = vector.shape_cast %274 : vector<1x32x32xbf16> to vector<32x32xbf16>
    %cst_173 = arith.constant dense<0.000000e+00> : vector<256x32xf32>
    %276 = tpu.matmul %273, %275, %cst_173 {dimension_numbers = #tpu.dot_dimension_numbers<[1], [0], [0], [1], [0, 0, 1, 1], [], []>} : vector<256x32xbf16>, vector<32x32xbf16>, vector<256x32xf32> -> vector<256x32xf32>
    %277 = arith.addf %270, %276 : vector<256x32xf32>
    %278 = vector.extract_strided_slice %263 {offsets = [8, 0, 0], sizes = [16, 16, 32], strides = [1, 1, 1]} : vector<24x16x32xf32> to vector<16x16x32xf32>
    %279 = vector.shape_cast %278 : vector<16x16x32xf32> to vector<256x32xf32>
    %280 = arith.truncf %279 : vector<256x32xf32> to vector<256x32xbf16>
    %c34 = arith.constant 34 : index
    %c0_174 = arith.constant 0 : index
    %c0_175 = arith.constant 0 : index
    %281 = vector.load %arg8[%c34, %c0_174, %c0_175] : memref<63x32x32xbf16, #tpu.memory_space<vmem>>, vector<1x32x32xbf16>
    %282 = vector.shape_cast %281 : vector<1x32x32xbf16> to vector<32x32xbf16>
    %cst_176 = arith.constant dense<0.000000e+00> : vector<256x32xf32>
    %283 = tpu.matmul %280, %282, %cst_176 {dimension_numbers = #tpu.dot_dimension_numbers<[1], [0], [0], [1], [0, 0, 1, 1], [], []>} : vector<256x32xbf16>, vector<32x32xbf16>, vector<256x32xf32> -> vector<256x32xf32>
    %284 = arith.addf %277, %283 : vector<256x32xf32>
    %c12_177 = arith.constant 12 : index
    %c20_178 = arith.constant 20 : index
    %c0_179 = arith.constant 0 : index
    %285 = vector.load %arg10[%c12_177, %c20_178, %c0_179] : memref<48x48x32xf32, #tpu.memory_space<vmem>>, vector<24x16x32xf32>
    %286 = vector.extract_strided_slice %285 {offsets = [0, 0, 0], sizes = [16, 16, 32], strides = [1, 1, 1]} : vector<24x16x32xf32> to vector<16x16x32xf32>
    %287 = vector.shape_cast %286 : vector<16x16x32xf32> to vector<256x32xf32>
    %288 = arith.truncf %287 : vector<256x32xf32> to vector<256x32xbf16>
    %c29 = arith.constant 29 : index
    %c0_180 = arith.constant 0 : index
    %c0_181 = arith.constant 0 : index
    %289 = vector.load %arg8[%c29, %c0_180, %c0_181] : memref<63x32x32xbf16, #tpu.memory_space<vmem>>, vector<1x32x32xbf16>
    %290 = vector.shape_cast %289 : vector<1x32x32xbf16> to vector<32x32xbf16>
    %cst_182 = arith.constant dense<0.000000e+00> : vector<256x32xf32>
    %291 = tpu.matmul %288, %290, %cst_182 {dimension_numbers = #tpu.dot_dimension_numbers<[1], [0], [0], [1], [0, 0, 1, 1], [], []>} : vector<256x32xbf16>, vector<32x32xbf16>, vector<256x32xf32> -> vector<256x32xf32>
    %292 = arith.addf %284, %291 : vector<256x32xf32>
    %293 = vector.extract_strided_slice %285 {offsets = [4, 0, 0], sizes = [16, 16, 32], strides = [1, 1, 1]} : vector<24x16x32xf32> to vector<16x16x32xf32>
    %294 = vector.shape_cast %293 : vector<16x16x32xf32> to vector<256x32xf32>
    %295 = arith.truncf %294 : vector<256x32xf32> to vector<256x32xbf16>
    %c32_183 = arith.constant 32 : index
    %c0_184 = arith.constant 0 : index
    %c0_185 = arith.constant 0 : index
    %296 = vector.load %arg8[%c32_183, %c0_184, %c0_185] : memref<63x32x32xbf16, #tpu.memory_space<vmem>>, vector<1x32x32xbf16>
    %297 = vector.shape_cast %296 : vector<1x32x32xbf16> to vector<32x32xbf16>
    %cst_186 = arith.constant dense<0.000000e+00> : vector<256x32xf32>
    %298 = tpu.matmul %295, %297, %cst_186 {dimension_numbers = #tpu.dot_dimension_numbers<[1], [0], [0], [1], [0, 0, 1, 1], [], []>} : vector<256x32xbf16>, vector<32x32xbf16>, vector<256x32xf32> -> vector<256x32xf32>
    %299 = arith.addf %292, %298 : vector<256x32xf32>
    %300 = vector.extract_strided_slice %285 {offsets = [8, 0, 0], sizes = [16, 16, 32], strides = [1, 1, 1]} : vector<24x16x32xf32> to vector<16x16x32xf32>
    %301 = vector.shape_cast %300 : vector<16x16x32xf32> to vector<256x32xf32>
    %302 = arith.truncf %301 : vector<256x32xf32> to vector<256x32xbf16>
    %c35 = arith.constant 35 : index
    %c0_187 = arith.constant 0 : index
    %c0_188 = arith.constant 0 : index
    %303 = vector.load %arg8[%c35, %c0_187, %c0_188] : memref<63x32x32xbf16, #tpu.memory_space<vmem>>, vector<1x32x32xbf16>
    %304 = vector.shape_cast %303 : vector<1x32x32xbf16> to vector<32x32xbf16>
    %cst_189 = arith.constant dense<0.000000e+00> : vector<256x32xf32>
    %305 = tpu.matmul %302, %304, %cst_189 {dimension_numbers = #tpu.dot_dimension_numbers<[1], [0], [0], [1], [0, 0, 1, 1], [], []>} : vector<256x32xbf16>, vector<32x32xbf16>, vector<256x32xf32> -> vector<256x32xf32>
    %306 = arith.addf %299, %305 : vector<256x32xf32>
    %c3_190 = arith.constant 3 : index
    %c0_191 = arith.constant 0 : index
    %c0_192 = arith.constant 0 : index
    %307 = vector.load %arg3[%c3_190, %c0_191, %c0_192] : memref<7x1x32xf32, #tpu.memory_space<vmem>>, vector<1x1x32xf32>
    %308 = vector.shape_cast %307 : vector<1x1x32xf32> to vector<1x32xf32>
    %309 = vector.broadcast %308 : vector<1x32xf32> to vector<256x32xf32>
    %310 = arith.addf %306, %309 : vector<256x32xf32>
    %cst_193 = arith.constant 0.000000e+00 : f32
    %311 = vector.broadcast %cst_193 : f32 to vector<256x32xf32>
    %312 = arith.maximumf %310, %311 : vector<256x32xf32>
    %313 = vector.shape_cast %312 : vector<256x32xf32> to vector<16x16x32xf32>
    %c16_194 = arith.constant 16 : index
    %c16_195 = arith.constant 16 : index
    %c0_196 = arith.constant 0 : index
    %314 = vector.load %arg10[%c16_194, %c16_195, %c0_196] : memref<48x48x32xf32, #tpu.memory_space<vmem>>, vector<16x16x32xf32>
    tpu.vector_store %arg10[%c16_194, %c16_195, %c0_196], %313 {strides = array<i32>} : memref<48x48x32xf32, #tpu.memory_space<vmem>>, vector<16x16x32xf32>,
    %cst_197 = arith.constant 0.000000e+00 : f32
    %315 = vector.broadcast %cst_197 : f32 to vector<256x32xf32>
    %c8_198 = arith.constant 8 : index
    %c8_199 = arith.constant 8 : index
    %c0_200 = arith.constant 0 : index
    %316 = vector.load %arg10[%c8_198, %c8_199, %c0_200] : memref<48x48x32xf32, #tpu.memory_space<vmem>>, vector<16x16x32xf32>
    %317 = vector.shape_cast %316 : vector<16x16x32xf32> to vector<256x32xf32>
    %318 = arith.truncf %317 : vector<256x32xf32> to vector<256x32xbf16>
    %c36 = arith.constant 36 : index
    %c0_201 = arith.constant 0 : index
    %c0_202 = arith.constant 0 : index
    %319 = vector.load %arg8[%c36, %c0_201, %c0_202] : memref<63x32x32xbf16, #tpu.memory_space<vmem>>, vector<1x32x32xbf16>
    %320 = vector.shape_cast %319 : vector<1x32x32xbf16> to vector<32x32xbf16>
    %cst_203 = arith.constant dense<0.000000e+00> : vector<256x32xf32>
    %321 = tpu.matmul %318, %320, %cst_203 {dimension_numbers = #tpu.dot_dimension_numbers<[1], [0], [0], [1], [0, 0, 1, 1], [], []>} : vector<256x32xbf16>, vector<32x32xbf16>, vector<256x32xf32> -> vector<256x32xf32>
    %322 = arith.addf %315, %321 : vector<256x32xf32>
    %c16_204 = arith.constant 16 : index
    %c8_205 = arith.constant 8 : index
    %c0_206 = arith.constant 0 : index
    %323 = vector.load %arg10[%c16_204, %c8_205, %c0_206] : memref<48x48x32xf32, #tpu.memory_space<vmem>>, vector<16x16x32xf32>
    %324 = vector.shape_cast %323 : vector<16x16x32xf32> to vector<256x32xf32>
    %325 = arith.truncf %324 : vector<256x32xf32> to vector<256x32xbf16>
    %c39 = arith.constant 39 : index
    %c0_207 = arith.constant 0 : index
    %c0_208 = arith.constant 0 : index
    %326 = vector.load %arg8[%c39, %c0_207, %c0_208] : memref<63x32x32xbf16, #tpu.memory_space<vmem>>, vector<1x32x32xbf16>
    %327 = vector.shape_cast %326 : vector<1x32x32xbf16> to vector<32x32xbf16>
    %cst_209 = arith.constant dense<0.000000e+00> : vector<256x32xf32>
    %328 = tpu.matmul %325, %327, %cst_209 {dimension_numbers = #tpu.dot_dimension_numbers<[1], [0], [0], [1], [0, 0, 1, 1], [], []>} : vector<256x32xbf16>, vector<32x32xbf16>, vector<256x32xf32> -> vector<256x32xf32>
    %329 = arith.addf %322, %328 : vector<256x32xf32>
    %c24_210 = arith.constant 24 : index
    %c8_211 = arith.constant 8 : index
    %c0_212 = arith.constant 0 : index
    %330 = vector.load %arg10[%c24_210, %c8_211, %c0_212] : memref<48x48x32xf32, #tpu.memory_space<vmem>>, vector<16x16x32xf32>
    %331 = vector.shape_cast %330 : vector<16x16x32xf32> to vector<256x32xf32>
    %332 = arith.truncf %331 : vector<256x32xf32> to vector<256x32xbf16>
    %c42 = arith.constant 42 : index
    %c0_213 = arith.constant 0 : index
    %c0_214 = arith.constant 0 : index
    %333 = vector.load %arg8[%c42, %c0_213, %c0_214] : memref<63x32x32xbf16, #tpu.memory_space<vmem>>, vector<1x32x32xbf16>
    %334 = vector.shape_cast %333 : vector<1x32x32xbf16> to vector<32x32xbf16>
    %cst_215 = arith.constant dense<0.000000e+00> : vector<256x32xf32>
    %335 = tpu.matmul %332, %334, %cst_215 {dimension_numbers = #tpu.dot_dimension_numbers<[1], [0], [0], [1], [0, 0, 1, 1], [], []>} : vector<256x32xbf16>, vector<32x32xbf16>, vector<256x32xf32> -> vector<256x32xf32>
    %336 = arith.addf %329, %335 : vector<256x32xf32>
    %c8_216 = arith.constant 8 : index
    %c16_217 = arith.constant 16 : index
    %c0_218 = arith.constant 0 : index
    %337 = vector.load %arg10[%c8_216, %c16_217, %c0_218] : memref<48x48x32xf32, #tpu.memory_space<vmem>>, vector<16x16x32xf32>
    %338 = vector.shape_cast %337 : vector<16x16x32xf32> to vector<256x32xf32>
    %339 = arith.truncf %338 : vector<256x32xf32> to vector<256x32xbf16>
    %c37 = arith.constant 37 : index
    %c0_219 = arith.constant 0 : index
    %c0_220 = arith.constant 0 : index
    %340 = vector.load %arg8[%c37, %c0_219, %c0_220] : memref<63x32x32xbf16, #tpu.memory_space<vmem>>, vector<1x32x32xbf16>
    %341 = vector.shape_cast %340 : vector<1x32x32xbf16> to vector<32x32xbf16>
    %cst_221 = arith.constant dense<0.000000e+00> : vector<256x32xf32>
    %342 = tpu.matmul %339, %341, %cst_221 {dimension_numbers = #tpu.dot_dimension_numbers<[1], [0], [0], [1], [0, 0, 1, 1], [], []>} : vector<256x32xbf16>, vector<32x32xbf16>, vector<256x32xf32> -> vector<256x32xf32>
    %343 = arith.addf %336, %342 : vector<256x32xf32>
    %c16_222 = arith.constant 16 : index
    %c16_223 = arith.constant 16 : index
    %c0_224 = arith.constant 0 : index
    %344 = vector.load %arg10[%c16_222, %c16_223, %c0_224] : memref<48x48x32xf32, #tpu.memory_space<vmem>>, vector<16x16x32xf32>
    %345 = vector.shape_cast %344 : vector<16x16x32xf32> to vector<256x32xf32>
    %346 = arith.truncf %345 : vector<256x32xf32> to vector<256x32xbf16>
    %c40 = arith.constant 40 : index
    %c0_225 = arith.constant 0 : index
    %c0_226 = arith.constant 0 : index
    %347 = vector.load %arg8[%c40, %c0_225, %c0_226] : memref<63x32x32xbf16, #tpu.memory_space<vmem>>, vector<1x32x32xbf16>
    %348 = vector.shape_cast %347 : vector<1x32x32xbf16> to vector<32x32xbf16>
    %cst_227 = arith.constant dense<0.000000e+00> : vector<256x32xf32>
    %349 = tpu.matmul %346, %348, %cst_227 {dimension_numbers = #tpu.dot_dimension_numbers<[1], [0], [0], [1], [0, 0, 1, 1], [], []>} : vector<256x32xbf16>, vector<32x32xbf16>, vector<256x32xf32> -> vector<256x32xf32>
    %350 = arith.addf %343, %349 : vector<256x32xf32>
    %c24_228 = arith.constant 24 : index
    %c16_229 = arith.constant 16 : index
    %c0_230 = arith.constant 0 : index
    %351 = vector.load %arg10[%c24_228, %c16_229, %c0_230] : memref<48x48x32xf32, #tpu.memory_space<vmem>>, vector<16x16x32xf32>
    %352 = vector.shape_cast %351 : vector<16x16x32xf32> to vector<256x32xf32>
    %353 = arith.truncf %352 : vector<256x32xf32> to vector<256x32xbf16>
    %c43 = arith.constant 43 : index
    %c0_231 = arith.constant 0 : index
    %c0_232 = arith.constant 0 : index
    %354 = vector.load %arg8[%c43, %c0_231, %c0_232] : memref<63x32x32xbf16, #tpu.memory_space<vmem>>, vector<1x32x32xbf16>
    %355 = vector.shape_cast %354 : vector<1x32x32xbf16> to vector<32x32xbf16>
    %cst_233 = arith.constant dense<0.000000e+00> : vector<256x32xf32>
    %356 = tpu.matmul %353, %355, %cst_233 {dimension_numbers = #tpu.dot_dimension_numbers<[1], [0], [0], [1], [0, 0, 1, 1], [], []>} : vector<256x32xbf16>, vector<32x32xbf16>, vector<256x32xf32> -> vector<256x32xf32>
    %357 = arith.addf %350, %356 : vector<256x32xf32>
    %c8_234 = arith.constant 8 : index
    %c24_235 = arith.constant 24 : index
    %c0_236 = arith.constant 0 : index
    %358 = vector.load %arg10[%c8_234, %c24_235, %c0_236] : memref<48x48x32xf32, #tpu.memory_space<vmem>>, vector<16x16x32xf32>
    %359 = vector.shape_cast %358 : vector<16x16x32xf32> to vector<256x32xf32>
    %360 = arith.truncf %359 : vector<256x32xf32> to vector<256x32xbf16>
    %c38 = arith.constant 38 : index
    %c0_237 = arith.constant 0 : index
    %c0_238 = arith.constant 0 : index
    %361 = vector.load %arg8[%c38, %c0_237, %c0_238] : memref<63x32x32xbf16, #tpu.memory_space<vmem>>, vector<1x32x32xbf16>
    %362 = vector.shape_cast %361 : vector<1x32x32xbf16> to vector<32x32xbf16>
    %cst_239 = arith.constant dense<0.000000e+00> : vector<256x32xf32>
    %363 = tpu.matmul %360, %362, %cst_239 {dimension_numbers = #tpu.dot_dimension_numbers<[1], [0], [0], [1], [0, 0, 1, 1], [], []>} : vector<256x32xbf16>, vector<32x32xbf16>, vector<256x32xf32> -> vector<256x32xf32>
    %364 = arith.addf %357, %363 : vector<256x32xf32>
    %c16_240 = arith.constant 16 : index
    %c24_241 = arith.constant 24 : index
    %c0_242 = arith.constant 0 : index
    %365 = vector.load %arg10[%c16_240, %c24_241, %c0_242] : memref<48x48x32xf32, #tpu.memory_space<vmem>>, vector<16x16x32xf32>
    %366 = vector.shape_cast %365 : vector<16x16x32xf32> to vector<256x32xf32>
    %367 = arith.truncf %366 : vector<256x32xf32> to vector<256x32xbf16>
    %c41 = arith.constant 41 : index
    %c0_243 = arith.constant 0 : index
    %c0_244 = arith.constant 0 : index
    %368 = vector.load %arg8[%c41, %c0_243, %c0_244] : memref<63x32x32xbf16, #tpu.memory_space<vmem>>, vector<1x32x32xbf16>
    %369 = vector.shape_cast %368 : vector<1x32x32xbf16> to vector<32x32xbf16>
    %cst_245 = arith.constant dense<0.000000e+00> : vector<256x32xf32>
    %370 = tpu.matmul %367, %369, %cst_245 {dimension_numbers = #tpu.dot_dimension_numbers<[1], [0], [0], [1], [0, 0, 1, 1], [], []>} : vector<256x32xbf16>, vector<32x32xbf16>, vector<256x32xf32> -> vector<256x32xf32>
    %371 = arith.addf %364, %370 : vector<256x32xf32>
    %c24_246 = arith.constant 24 : index
    %c24_247 = arith.constant 24 : index
    %c0_248 = arith.constant 0 : index
    %372 = vector.load %arg10[%c24_246, %c24_247, %c0_248] : memref<48x48x32xf32, #tpu.memory_space<vmem>>, vector<16x16x32xf32>
    %373 = vector.shape_cast %372 : vector<16x16x32xf32> to vector<256x32xf32>
    %374 = arith.truncf %373 : vector<256x32xf32> to vector<256x32xbf16>
    %c44 = arith.constant 44 : index
    %c0_249 = arith.constant 0 : index
    %c0_250 = arith.constant 0 : index
    %375 = vector.load %arg8[%c44, %c0_249, %c0_250] : memref<63x32x32xbf16, #tpu.memory_space<vmem>>, vector<1x32x32xbf16>
    %376 = vector.shape_cast %375 : vector<1x32x32xbf16> to vector<32x32xbf16>
    %cst_251 = arith.constant dense<0.000000e+00> : vector<256x32xf32>
    %377 = tpu.matmul %374, %376, %cst_251 {dimension_numbers = #tpu.dot_dimension_numbers<[1], [0], [0], [1], [0, 0, 1, 1], [], []>} : vector<256x32xbf16>, vector<32x32xbf16>, vector<256x32xf32> -> vector<256x32xf32>
    %378 = arith.addf %371, %377 : vector<256x32xf32>
    %c4_252 = arith.constant 4 : index
    %c0_253 = arith.constant 0 : index
    %c0_254 = arith.constant 0 : index
    %379 = vector.load %arg3[%c4_252, %c0_253, %c0_254] : memref<7x1x32xf32, #tpu.memory_space<vmem>>, vector<1x1x32xf32>
    %380 = vector.shape_cast %379 : vector<1x1x32xf32> to vector<1x32xf32>
    %381 = vector.broadcast %380 : vector<1x32xf32> to vector<256x32xf32>
    %382 = arith.addf %378, %381 : vector<256x32xf32>
    %cst_255 = arith.constant 0.000000e+00 : f32
    %383 = vector.broadcast %cst_255 : f32 to vector<256x32xf32>
    %384 = arith.maximumf %382, %383 : vector<256x32xf32>
    %385 = vector.shape_cast %384 : vector<256x32xf32> to vector<16x16x32xf32>
    %c16_256 = arith.constant 16 : index
    %c16_257 = arith.constant 16 : index
    %c0_258 = arith.constant 0 : index
    %386 = vector.load %arg10[%c16_256, %c16_257, %c0_258] : memref<48x48x32xf32, #tpu.memory_space<vmem>>, vector<16x16x32xf32>
    tpu.vector_store %arg10[%c16_256, %c16_257, %c0_258], %385 {strides = array<i32>} : memref<48x48x32xf32, #tpu.memory_space<vmem>>, vector<16x16x32xf32>,
    %cst_259 = arith.constant 0.000000e+00 : f32
    %387 = vector.broadcast %cst_259 : f32 to vector<256x32xf32>
    %c0_260 = arith.constant 0 : index
    %c0_261 = arith.constant 0 : index
    %c0_262 = arith.constant 0 : index
    %388 = vector.load %arg10[%c0_260, %c0_261, %c0_262] : memref<48x48x32xf32, #tpu.memory_space<vmem>>, vector<16x16x32xf32>
    %389 = vector.shape_cast %388 : vector<16x16x32xf32> to vector<256x32xf32>
    %390 = arith.truncf %389 : vector<256x32xf32> to vector<256x32xbf16>
    %c45 = arith.constant 45 : index
    %c0_263 = arith.constant 0 : index
    %c0_264 = arith.constant 0 : index
    %391 = vector.load %arg8[%c45, %c0_263, %c0_264] : memref<63x32x32xbf16, #tpu.memory_space<vmem>>, vector<1x32x32xbf16>
    %392 = vector.shape_cast %391 : vector<1x32x32xbf16> to vector<32x32xbf16>
    %cst_265 = arith.constant dense<0.000000e+00> : vector<256x32xf32>
    %393 = tpu.matmul %390, %392, %cst_265 {dimension_numbers = #tpu.dot_dimension_numbers<[1], [0], [0], [1], [0, 0, 1, 1], [], []>} : vector<256x32xbf16>, vector<32x32xbf16>, vector<256x32xf32> -> vector<256x32xf32>
    %394 = arith.addf %387, %393 : vector<256x32xf32>
    %c16_266 = arith.constant 16 : index
    %c0_267 = arith.constant 0 : index
    %c0_268 = arith.constant 0 : index
    %395 = vector.load %arg10[%c16_266, %c0_267, %c0_268] : memref<48x48x32xf32, #tpu.memory_space<vmem>>, vector<16x16x32xf32>
    %396 = vector.shape_cast %395 : vector<16x16x32xf32> to vector<256x32xf32>
    %397 = arith.truncf %396 : vector<256x32xf32> to vector<256x32xbf16>
    %c48 = arith.constant 48 : index
    %c0_269 = arith.constant 0 : index
    %c0_270 = arith.constant 0 : index
    %398 = vector.load %arg8[%c48, %c0_269, %c0_270] : memref<63x32x32xbf16, #tpu.memory_space<vmem>>, vector<1x32x32xbf16>
    %399 = vector.shape_cast %398 : vector<1x32x32xbf16> to vector<32x32xbf16>
    %cst_271 = arith.constant dense<0.000000e+00> : vector<256x32xf32>
    %400 = tpu.matmul %397, %399, %cst_271 {dimension_numbers = #tpu.dot_dimension_numbers<[1], [0], [0], [1], [0, 0, 1, 1], [], []>} : vector<256x32xbf16>, vector<32x32xbf16>, vector<256x32xf32> -> vector<256x32xf32>
    %401 = arith.addf %394, %400 : vector<256x32xf32>
    %c32_272 = arith.constant 32 : index
    %c0_273 = arith.constant 0 : index
    %c0_274 = arith.constant 0 : index
    %402 = vector.load %arg10[%c32_272, %c0_273, %c0_274] : memref<48x48x32xf32, #tpu.memory_space<vmem>>, vector<16x16x32xf32>
    %403 = vector.shape_cast %402 : vector<16x16x32xf32> to vector<256x32xf32>
    %404 = arith.truncf %403 : vector<256x32xf32> to vector<256x32xbf16>
    %c51 = arith.constant 51 : index
    %c0_275 = arith.constant 0 : index
    %c0_276 = arith.constant 0 : index
    %405 = vector.load %arg8[%c51, %c0_275, %c0_276] : memref<63x32x32xbf16, #tpu.memory_space<vmem>>, vector<1x32x32xbf16>
    %406 = vector.shape_cast %405 : vector<1x32x32xbf16> to vector<32x32xbf16>
    %cst_277 = arith.constant dense<0.000000e+00> : vector<256x32xf32>
    %407 = tpu.matmul %404, %406, %cst_277 {dimension_numbers = #tpu.dot_dimension_numbers<[1], [0], [0], [1], [0, 0, 1, 1], [], []>} : vector<256x32xbf16>, vector<32x32xbf16>, vector<256x32xf32> -> vector<256x32xf32>
    %408 = arith.addf %401, %407 : vector<256x32xf32>
    %c0_278 = arith.constant 0 : index
    %c16_279 = arith.constant 16 : index
    %c0_280 = arith.constant 0 : index
    %409 = vector.load %arg10[%c0_278, %c16_279, %c0_280] : memref<48x48x32xf32, #tpu.memory_space<vmem>>, vector<16x16x32xf32>
    %410 = vector.shape_cast %409 : vector<16x16x32xf32> to vector<256x32xf32>
    %411 = arith.truncf %410 : vector<256x32xf32> to vector<256x32xbf16>
    %c46 = arith.constant 46 : index
    %c0_281 = arith.constant 0 : index
    %c0_282 = arith.constant 0 : index
    %412 = vector.load %arg8[%c46, %c0_281, %c0_282] : memref<63x32x32xbf16, #tpu.memory_space<vmem>>, vector<1x32x32xbf16>
    %413 = vector.shape_cast %412 : vector<1x32x32xbf16> to vector<32x32xbf16>
    %cst_283 = arith.constant dense<0.000000e+00> : vector<256x32xf32>
    %414 = tpu.matmul %411, %413, %cst_283 {dimension_numbers = #tpu.dot_dimension_numbers<[1], [0], [0], [1], [0, 0, 1, 1], [], []>} : vector<256x32xbf16>, vector<32x32xbf16>, vector<256x32xf32> -> vector<256x32xf32>
    %415 = arith.addf %408, %414 : vector<256x32xf32>
    %c16_284 = arith.constant 16 : index
    %c16_285 = arith.constant 16 : index
    %c0_286 = arith.constant 0 : index
    %416 = vector.load %arg10[%c16_284, %c16_285, %c0_286] : memref<48x48x32xf32, #tpu.memory_space<vmem>>, vector<16x16x32xf32>
    %417 = vector.shape_cast %416 : vector<16x16x32xf32> to vector<256x32xf32>
    %418 = arith.truncf %417 : vector<256x32xf32> to vector<256x32xbf16>
    %c49 = arith.constant 49 : index
    %c0_287 = arith.constant 0 : index
    %c0_288 = arith.constant 0 : index
    %419 = vector.load %arg8[%c49, %c0_287, %c0_288] : memref<63x32x32xbf16, #tpu.memory_space<vmem>>, vector<1x32x32xbf16>
    %420 = vector.shape_cast %419 : vector<1x32x32xbf16> to vector<32x32xbf16>
    %cst_289 = arith.constant dense<0.000000e+00> : vector<256x32xf32>
    %421 = tpu.matmul %418, %420, %cst_289 {dimension_numbers = #tpu.dot_dimension_numbers<[1], [0], [0], [1], [0, 0, 1, 1], [], []>} : vector<256x32xbf16>, vector<32x32xbf16>, vector<256x32xf32> -> vector<256x32xf32>
    %422 = arith.addf %415, %421 : vector<256x32xf32>
    %c32_290 = arith.constant 32 : index
    %c16_291 = arith.constant 16 : index
    %c0_292 = arith.constant 0 : index
    %423 = vector.load %arg10[%c32_290, %c16_291, %c0_292] : memref<48x48x32xf32, #tpu.memory_space<vmem>>, vector<16x16x32xf32>
    %424 = vector.shape_cast %423 : vector<16x16x32xf32> to vector<256x32xf32>
    %425 = arith.truncf %424 : vector<256x32xf32> to vector<256x32xbf16>
    %c52 = arith.constant 52 : index
    %c0_293 = arith.constant 0 : index
    %c0_294 = arith.constant 0 : index
    %426 = vector.load %arg8[%c52, %c0_293, %c0_294] : memref<63x32x32xbf16, #tpu.memory_space<vmem>>, vector<1x32x32xbf16>
    %427 = vector.shape_cast %426 : vector<1x32x32xbf16> to vector<32x32xbf16>
    %cst_295 = arith.constant dense<0.000000e+00> : vector<256x32xf32>
    %428 = tpu.matmul %425, %427, %cst_295 {dimension_numbers = #tpu.dot_dimension_numbers<[1], [0], [0], [1], [0, 0, 1, 1], [], []>} : vector<256x32xbf16>, vector<32x32xbf16>, vector<256x32xf32> -> vector<256x32xf32>
    %429 = arith.addf %422, %428 : vector<256x32xf32>
    %c0_296 = arith.constant 0 : index
    %c32_297 = arith.constant 32 : index
    %c0_298 = arith.constant 0 : index
    %430 = vector.load %arg10[%c0_296, %c32_297, %c0_298] : memref<48x48x32xf32, #tpu.memory_space<vmem>>, vector<16x16x32xf32>
    %431 = vector.shape_cast %430 : vector<16x16x32xf32> to vector<256x32xf32>
    %432 = arith.truncf %431 : vector<256x32xf32> to vector<256x32xbf16>
    %c47 = arith.constant 47 : index
    %c0_299 = arith.constant 0 : index
    %c0_300 = arith.constant 0 : index
    %433 = vector.load %arg8[%c47, %c0_299, %c0_300] : memref<63x32x32xbf16, #tpu.memory_space<vmem>>, vector<1x32x32xbf16>
    %434 = vector.shape_cast %433 : vector<1x32x32xbf16> to vector<32x32xbf16>
    %cst_301 = arith.constant dense<0.000000e+00> : vector<256x32xf32>
    %435 = tpu.matmul %432, %434, %cst_301 {dimension_numbers = #tpu.dot_dimension_numbers<[1], [0], [0], [1], [0, 0, 1, 1], [], []>} : vector<256x32xbf16>, vector<32x32xbf16>, vector<256x32xf32> -> vector<256x32xf32>
    %436 = arith.addf %429, %435 : vector<256x32xf32>
    %c16_302 = arith.constant 16 : index
    %c32_303 = arith.constant 32 : index
    %c0_304 = arith.constant 0 : index
    %437 = vector.load %arg10[%c16_302, %c32_303, %c0_304] : memref<48x48x32xf32, #tpu.memory_space<vmem>>, vector<16x16x32xf32>
    %438 = vector.shape_cast %437 : vector<16x16x32xf32> to vector<256x32xf32>
    %439 = arith.truncf %438 : vector<256x32xf32> to vector<256x32xbf16>
    %c50 = arith.constant 50 : index
    %c0_305 = arith.constant 0 : index
    %c0_306 = arith.constant 0 : index
    %440 = vector.load %arg8[%c50, %c0_305, %c0_306] : memref<63x32x32xbf16, #tpu.memory_space<vmem>>, vector<1x32x32xbf16>
    %441 = vector.shape_cast %440 : vector<1x32x32xbf16> to vector<32x32xbf16>
    %cst_307 = arith.constant dense<0.000000e+00> : vector<256x32xf32>
    %442 = tpu.matmul %439, %441, %cst_307 {dimension_numbers = #tpu.dot_dimension_numbers<[1], [0], [0], [1], [0, 0, 1, 1], [], []>} : vector<256x32xbf16>, vector<32x32xbf16>, vector<256x32xf32> -> vector<256x32xf32>
    %443 = arith.addf %436, %442 : vector<256x32xf32>
    %c32_308 = arith.constant 32 : index
    %c32_309 = arith.constant 32 : index
    %c0_310 = arith.constant 0 : index
    %444 = vector.load %arg10[%c32_308, %c32_309, %c0_310] : memref<48x48x32xf32, #tpu.memory_space<vmem>>, vector<16x16x32xf32>
    %445 = vector.shape_cast %444 : vector<16x16x32xf32> to vector<256x32xf32>
    %446 = arith.truncf %445 : vector<256x32xf32> to vector<256x32xbf16>
    %c53 = arith.constant 53 : index
    %c0_311 = arith.constant 0 : index
    %c0_312 = arith.constant 0 : index
    %447 = vector.load %arg8[%c53, %c0_311, %c0_312] : memref<63x32x32xbf16, #tpu.memory_space<vmem>>, vector<1x32x32xbf16>
    %448 = vector.shape_cast %447 : vector<1x32x32xbf16> to vector<32x32xbf16>
    %cst_313 = arith.constant dense<0.000000e+00> : vector<256x32xf32>
    %449 = tpu.matmul %446, %448, %cst_313 {dimension_numbers = #tpu.dot_dimension_numbers<[1], [0], [0], [1], [0, 0, 1, 1], [], []>} : vector<256x32xbf16>, vector<32x32xbf16>, vector<256x32xf32> -> vector<256x32xf32>
    %450 = arith.addf %443, %449 : vector<256x32xf32>
    %c5_314 = arith.constant 5 : index
    %c0_315 = arith.constant 0 : index
    %c0_316 = arith.constant 0 : index
    %451 = vector.load %arg3[%c5_314, %c0_315, %c0_316] : memref<7x1x32xf32, #tpu.memory_space<vmem>>, vector<1x1x32xf32>
    %452 = vector.shape_cast %451 : vector<1x1x32xf32> to vector<1x32xf32>
    %453 = vector.broadcast %452 : vector<1x32xf32> to vector<256x32xf32>
    %454 = arith.addf %450, %453 : vector<256x32xf32>
    %cst_317 = arith.constant 0.000000e+00 : f32
    %455 = vector.broadcast %cst_317 : f32 to vector<256x32xf32>
    %456 = arith.maximumf %454, %455 : vector<256x32xf32>
    %457 = vector.shape_cast %456 : vector<256x32xf32> to vector<16x16x32xf32>
    %c16_318 = arith.constant 16 : index
    %c16_319 = arith.constant 16 : index
    %c0_320 = arith.constant 0 : index
    %458 = vector.load %arg10[%c16_318, %c16_319, %c0_320] : memref<48x48x32xf32, #tpu.memory_space<vmem>>, vector<16x16x32xf32>
    tpu.vector_store %arg10[%c16_318, %c16_319, %c0_320], %457 {strides = array<i32>} : memref<48x48x32xf32, #tpu.memory_space<vmem>>, vector<16x16x32xf32>,
    %cst_321 = arith.constant 0.000000e+00 : f32
    %459 = vector.broadcast %cst_321 : f32 to vector<256x32xf32>
    %c15_322 = arith.constant 15 : index
    %c15_323 = arith.constant 15 : index
    %c0_324 = arith.constant 0 : index
    %460 = vector.load %arg10[%c15_322, %c15_323, %c0_324] : memref<48x48x32xf32, #tpu.memory_space<vmem>>, vector<18x16x32xf32>
    %461 = vector.extract_strided_slice %460 {offsets = [0, 0, 0], sizes = [16, 16, 32], strides = [1, 1, 1]} : vector<18x16x32xf32> to vector<16x16x32xf32>
    %462 = vector.shape_cast %461 : vector<16x16x32xf32> to vector<256x32xf32>
    %463 = arith.truncf %462 : vector<256x32xf32> to vector<256x32xbf16>
    %c54 = arith.constant 54 : index
    %c0_325 = arith.constant 0 : index
    %c0_326 = arith.constant 0 : index
    %464 = vector.load %arg8[%c54, %c0_325, %c0_326] : memref<63x32x32xbf16, #tpu.memory_space<vmem>>, vector<1x32x32xbf16>
    %465 = vector.shape_cast %464 : vector<1x32x32xbf16> to vector<32x32xbf16>
    %cst_327 = arith.constant dense<0.000000e+00> : vector<256x32xf32>
    %466 = tpu.matmul %463, %465, %cst_327 {dimension_numbers = #tpu.dot_dimension_numbers<[1], [0], [0], [1], [0, 0, 1, 1], [], []>} : vector<256x32xbf16>, vector<32x32xbf16>, vector<256x32xf32> -> vector<256x32xf32>
    %467 = arith.addf %459, %466 : vector<256x32xf32>
    %468 = vector.extract_strided_slice %460 {offsets = [1, 0, 0], sizes = [16, 16, 32], strides = [1, 1, 1]} : vector<18x16x32xf32> to vector<16x16x32xf32>
    %469 = vector.shape_cast %468 : vector<16x16x32xf32> to vector<256x32xf32>
    %470 = arith.truncf %469 : vector<256x32xf32> to vector<256x32xbf16>
    %c57 = arith.constant 57 : index
    %c0_328 = arith.constant 0 : index
    %c0_329 = arith.constant 0 : index
    %471 = vector.load %arg8[%c57, %c0_328, %c0_329] : memref<63x32x32xbf16, #tpu.memory_space<vmem>>, vector<1x32x32xbf16>
    %472 = vector.shape_cast %471 : vector<1x32x32xbf16> to vector<32x32xbf16>
    %cst_330 = arith.constant dense<0.000000e+00> : vector<256x32xf32>
    %473 = tpu.matmul %470, %472, %cst_330 {dimension_numbers = #tpu.dot_dimension_numbers<[1], [0], [0], [1], [0, 0, 1, 1], [], []>} : vector<256x32xbf16>, vector<32x32xbf16>, vector<256x32xf32> -> vector<256x32xf32>
    %474 = arith.addf %467, %473 : vector<256x32xf32>
    %475 = vector.extract_strided_slice %460 {offsets = [2, 0, 0], sizes = [16, 16, 32], strides = [1, 1, 1]} : vector<18x16x32xf32> to vector<16x16x32xf32>
    %476 = vector.shape_cast %475 : vector<16x16x32xf32> to vector<256x32xf32>
    %477 = arith.truncf %476 : vector<256x32xf32> to vector<256x32xbf16>
    %c60 = arith.constant 60 : index
    %c0_331 = arith.constant 0 : index
    %c0_332 = arith.constant 0 : index
    %478 = vector.load %arg8[%c60, %c0_331, %c0_332] : memref<63x32x32xbf16, #tpu.memory_space<vmem>>, vector<1x32x32xbf16>
    %479 = vector.shape_cast %478 : vector<1x32x32xbf16> to vector<32x32xbf16>
    %cst_333 = arith.constant dense<0.000000e+00> : vector<256x32xf32>
    %480 = tpu.matmul %477, %479, %cst_333 {dimension_numbers = #tpu.dot_dimension_numbers<[1], [0], [0], [1], [0, 0, 1, 1], [], []>} : vector<256x32xbf16>, vector<32x32xbf16>, vector<256x32xf32> -> vector<256x32xf32>
    %481 = arith.addf %474, %480 : vector<256x32xf32>
    %c15_334 = arith.constant 15 : index
    %c16_335 = arith.constant 16 : index
    %c0_336 = arith.constant 0 : index
    %482 = vector.load %arg10[%c15_334, %c16_335, %c0_336] : memref<48x48x32xf32, #tpu.memory_space<vmem>>, vector<18x16x32xf32>
    %483 = vector.extract_strided_slice %482 {offsets = [0, 0, 0], sizes = [16, 16, 32], strides = [1, 1, 1]} : vector<18x16x32xf32> to vector<16x16x32xf32>
    %484 = vector.shape_cast %483 : vector<16x16x32xf32> to vector<256x32xf32>
    %485 = arith.truncf %484 : vector<256x32xf32> to vector<256x32xbf16>
    %c55 = arith.constant 55 : index
    %c0_337 = arith.constant 0 : index
    %c0_338 = arith.constant 0 : index
    %486 = vector.load %arg8[%c55, %c0_337, %c0_338] : memref<63x32x32xbf16, #tpu.memory_space<vmem>>, vector<1x32x32xbf16>
    %487 = vector.shape_cast %486 : vector<1x32x32xbf16> to vector<32x32xbf16>
    %cst_339 = arith.constant dense<0.000000e+00> : vector<256x32xf32>
    %488 = tpu.matmul %485, %487, %cst_339 {dimension_numbers = #tpu.dot_dimension_numbers<[1], [0], [0], [1], [0, 0, 1, 1], [], []>} : vector<256x32xbf16>, vector<32x32xbf16>, vector<256x32xf32> -> vector<256x32xf32>
    %489 = arith.addf %481, %488 : vector<256x32xf32>
    %490 = vector.extract_strided_slice %482 {offsets = [1, 0, 0], sizes = [16, 16, 32], strides = [1, 1, 1]} : vector<18x16x32xf32> to vector<16x16x32xf32>
    %491 = vector.shape_cast %490 : vector<16x16x32xf32> to vector<256x32xf32>
    %492 = arith.truncf %491 : vector<256x32xf32> to vector<256x32xbf16>
    %c58 = arith.constant 58 : index
    %c0_340 = arith.constant 0 : index
    %c0_341 = arith.constant 0 : index
    %493 = vector.load %arg8[%c58, %c0_340, %c0_341] : memref<63x32x32xbf16, #tpu.memory_space<vmem>>, vector<1x32x32xbf16>
    %494 = vector.shape_cast %493 : vector<1x32x32xbf16> to vector<32x32xbf16>
    %cst_342 = arith.constant dense<0.000000e+00> : vector<256x32xf32>
    %495 = tpu.matmul %492, %494, %cst_342 {dimension_numbers = #tpu.dot_dimension_numbers<[1], [0], [0], [1], [0, 0, 1, 1], [], []>} : vector<256x32xbf16>, vector<32x32xbf16>, vector<256x32xf32> -> vector<256x32xf32>
    %496 = arith.addf %489, %495 : vector<256x32xf32>
    %497 = vector.extract_strided_slice %482 {offsets = [2, 0, 0], sizes = [16, 16, 32], strides = [1, 1, 1]} : vector<18x16x32xf32> to vector<16x16x32xf32>
    %498 = vector.shape_cast %497 : vector<16x16x32xf32> to vector<256x32xf32>
    %499 = arith.truncf %498 : vector<256x32xf32> to vector<256x32xbf16>
    %c61 = arith.constant 61 : index
    %c0_343 = arith.constant 0 : index
    %c0_344 = arith.constant 0 : index
    %500 = vector.load %arg8[%c61, %c0_343, %c0_344] : memref<63x32x32xbf16, #tpu.memory_space<vmem>>, vector<1x32x32xbf16>
    %501 = vector.shape_cast %500 : vector<1x32x32xbf16> to vector<32x32xbf16>
    %cst_345 = arith.constant dense<0.000000e+00> : vector<256x32xf32>
    %502 = tpu.matmul %499, %501, %cst_345 {dimension_numbers = #tpu.dot_dimension_numbers<[1], [0], [0], [1], [0, 0, 1, 1], [], []>} : vector<256x32xbf16>, vector<32x32xbf16>, vector<256x32xf32> -> vector<256x32xf32>
    %503 = arith.addf %496, %502 : vector<256x32xf32>
    %c15_346 = arith.constant 15 : index
    %c17_347 = arith.constant 17 : index
    %c0_348 = arith.constant 0 : index
    %504 = vector.load %arg10[%c15_346, %c17_347, %c0_348] : memref<48x48x32xf32, #tpu.memory_space<vmem>>, vector<18x16x32xf32>
    %505 = vector.extract_strided_slice %504 {offsets = [0, 0, 0], sizes = [16, 16, 32], strides = [1, 1, 1]} : vector<18x16x32xf32> to vector<16x16x32xf32>
    %506 = vector.shape_cast %505 : vector<16x16x32xf32> to vector<256x32xf32>
    %507 = arith.truncf %506 : vector<256x32xf32> to vector<256x32xbf16>
    %c56 = arith.constant 56 : index
    %c0_349 = arith.constant 0 : index
    %c0_350 = arith.constant 0 : index
    %508 = vector.load %arg8[%c56, %c0_349, %c0_350] : memref<63x32x32xbf16, #tpu.memory_space<vmem>>, vector<1x32x32xbf16>
    %509 = vector.shape_cast %508 : vector<1x32x32xbf16> to vector<32x32xbf16>
    %cst_351 = arith.constant dense<0.000000e+00> : vector<256x32xf32>
    %510 = tpu.matmul %507, %509, %cst_351 {dimension_numbers = #tpu.dot_dimension_numbers<[1], [0], [0], [1], [0, 0, 1, 1], [], []>} : vector<256x32xbf16>, vector<32x32xbf16>, vector<256x32xf32> -> vector<256x32xf32>
    %511 = arith.addf %503, %510 : vector<256x32xf32>
    %512 = vector.extract_strided_slice %504 {offsets = [1, 0, 0], sizes = [16, 16, 32], strides = [1, 1, 1]} : vector<18x16x32xf32> to vector<16x16x32xf32>
    %513 = vector.shape_cast %512 : vector<16x16x32xf32> to vector<256x32xf32>
    %514 = arith.truncf %513 : vector<256x32xf32> to vector<256x32xbf16>
    %c59 = arith.constant 59 : index
    %c0_352 = arith.constant 0 : index
    %c0_353 = arith.constant 0 : index
    %515 = vector.load %arg8[%c59, %c0_352, %c0_353] : memref<63x32x32xbf16, #tpu.memory_space<vmem>>, vector<1x32x32xbf16>
    %516 = vector.shape_cast %515 : vector<1x32x32xbf16> to vector<32x32xbf16>
    %cst_354 = arith.constant dense<0.000000e+00> : vector<256x32xf32>
    %517 = tpu.matmul %514, %516, %cst_354 {dimension_numbers = #tpu.dot_dimension_numbers<[1], [0], [0], [1], [0, 0, 1, 1], [], []>} : vector<256x32xbf16>, vector<32x32xbf16>, vector<256x32xf32> -> vector<256x32xf32>
    %518 = arith.addf %511, %517 : vector<256x32xf32>
    %519 = vector.extract_strided_slice %504 {offsets = [2, 0, 0], sizes = [16, 16, 32], strides = [1, 1, 1]} : vector<18x16x32xf32> to vector<16x16x32xf32>
    %520 = vector.shape_cast %519 : vector<16x16x32xf32> to vector<256x32xf32>
    %521 = arith.truncf %520 : vector<256x32xf32> to vector<256x32xbf16>
    %c62 = arith.constant 62 : index
    %c0_355 = arith.constant 0 : index
    %c0_356 = arith.constant 0 : index
    %522 = vector.load %arg8[%c62, %c0_355, %c0_356] : memref<63x32x32xbf16, #tpu.memory_space<vmem>>, vector<1x32x32xbf16>
    %523 = vector.shape_cast %522 : vector<1x32x32xbf16> to vector<32x32xbf16>
    %cst_357 = arith.constant dense<0.000000e+00> : vector<256x32xf32>
    %524 = tpu.matmul %521, %523, %cst_357 {dimension_numbers = #tpu.dot_dimension_numbers<[1], [0], [0], [1], [0, 0, 1, 1], [], []>} : vector<256x32xbf16>, vector<32x32xbf16>, vector<256x32xf32> -> vector<256x32xf32>
    %525 = arith.addf %518, %524 : vector<256x32xf32>
    %c6_358 = arith.constant 6 : index
    %c0_359 = arith.constant 0 : index
    %c0_360 = arith.constant 0 : index
    %526 = vector.load %arg3[%c6_358, %c0_359, %c0_360] : memref<7x1x32xf32, #tpu.memory_space<vmem>>, vector<1x1x32xf32>
    %527 = vector.shape_cast %526 : vector<1x1x32xf32> to vector<1x32xf32>
    %528 = vector.broadcast %527 : vector<1x32xf32> to vector<256x32xf32>
    %529 = arith.addf %525, %528 : vector<256x32xf32>
    %cst_361 = arith.constant 0.000000e+00 : f32
    %530 = vector.broadcast %cst_361 : f32 to vector<256x32xf32>
    %531 = arith.maximumf %529, %530 : vector<256x32xf32>
    %532 = arith.truncf %531 : vector<256x32xf32> to vector<256x32xbf16>
    %c0_362 = arith.constant 0 : index
    %c0_363 = arith.constant 0 : index
    %533 = vector.load %arg4[%c0_362, %c0_363] : memref<32x40xbf16, #tpu.memory_space<vmem>>, vector<32x40xbf16>
    %cst_364 = arith.constant dense<0.000000e+00> : vector<256x40xf32>
    %534 = tpu.matmul %532, %533, %cst_364 {dimension_numbers = #tpu.dot_dimension_numbers<[1], [0], [0], [1], [0, 0, 1, 1], [], []>} : vector<256x32xbf16>, vector<32x40xbf16>, vector<256x40xf32> -> vector<256x40xf32>
    %c0_365 = arith.constant 0 : index
    %c0_366 = arith.constant 0 : index
    %535 = vector.load %arg5[%c0_365, %c0_366] : memref<1x40xf32, #tpu.memory_space<vmem>>, vector<1x40xf32>
    %536 = vector.broadcast %535 : vector<1x40xf32> to vector<256x40xf32>
    %537 = arith.addf %534, %536 : vector<256x40xf32>
    %538 = vector.extract_strided_slice %537 {offsets = [0, 0], sizes = [256, 32], strides = [1, 1]} : vector<256x40xf32> to vector<256x32xf32>
    %539 = vector.extract_strided_slice %537 {offsets = [0, 32], sizes = [256, 8], strides = [1, 1]} : vector<256x40xf32> to vector<256x8xf32>
    %540 = arith.negf %538 : vector<256x32xf32>
    %541 = math.exp %540 : vector<256x32xf32>
    %cst_367 = arith.constant 1.000000e+00 : f32
    %542 = vector.broadcast %cst_367 : f32 to vector<256x32xf32>
    %543 = arith.addf %542, %541 : vector<256x32xf32>
    %544 = arith.divf %542, %543 : vector<256x32xf32>
    %545 = arith.mulf %10, %544 : vector<256x32xf32>
    %546 = vector.shape_cast %545 : vector<256x32xf32> to vector<16x16x32xf32>
    %c0_368 = arith.constant 0 : index
    %c0_369 = arith.constant 0 : index
    %c0_370 = arith.constant 0 : index
    %c0_371 = arith.constant 0 : index
    %547 = vector.load %arg6[%c0_368, %c0_369, %c0_370, %c0_371] : memref<1x16x16x32xf32, #tpu.memory_space<vmem>>, vector<1x16x16x32xf32>
    %548 = vector.shape_cast %547 : vector<1x16x16x32xf32> to vector<16x16x32xf32>
    %549 = vector.shape_cast %546 : vector<16x16x32xf32> to vector<1x16x16x32xf32>
    tpu.vector_store %arg6[%c0_368, %c0_369, %c0_370, %c0_371], %549 {strides = array<i32>} : memref<1x16x16x32xf32, #tpu.memory_space<vmem>>, vector<1x16x16x32xf32>,
    %550 = vector.shape_cast %539 : vector<256x8xf32> to vector<16x16x8xf32>
    %c0_372 = arith.constant 0 : index
    %c0_373 = arith.constant 0 : index
    %c0_374 = arith.constant 0 : index
    %c0_375 = arith.constant 0 : index
    %551 = vector.load %arg7[%c0_372, %c0_373, %c0_374, %c0_375] : memref<1x16x16x8xf32, #tpu.memory_space<vmem>>, vector<1x16x16x8xf32>
    %552 = vector.shape_cast %551 : vector<1x16x16x8xf32> to vector<16x16x8xf32>
    %553 = vector.shape_cast %550 : vector<16x16x8xf32> to vector<1x16x16x8xf32>
    tpu.vector_store %arg7[%c0_372, %c0_373, %c0_374, %c0_375], %553 {strides = array<i32>} : memref<1x16x16x8xf32, #tpu.memory_space<vmem>>, vector<1x16x16x8xf32>,
    return
  }
  func.func @transform_0(%arg0: i32) -> (i32, i32, i32, i32) {
    %c0_i32 = arith.constant 0 : i32
    %c0_i32_0 = arith.constant 0 : i32
    %c0_i32_1 = arith.constant 0 : i32
    %c0_i32_2 = arith.constant 0 : i32
    return %arg0, %c0_i32, %c0_i32_0, %c0_i32_1 : i32, i32, i32, i32
  }
  func.func @transform_2(%arg0: i32) -> (i32, i32, i32) {
    %c0_i32 = arith.constant 0 : i32
    %c0_i32_0 = arith.constant 0 : i32
    %c0_i32_1 = arith.constant 0 : i32
    %c0_i32_2 = arith.constant 0 : i32
    return %c0_i32, %c0_i32_0, %c0_i32_1 : i32, i32, i32
  }
  func.func @transform_3(%arg0: i32) -> (i32, i32) {
    %c0_i32 = arith.constant 0 : i32
    %c0_i32_0 = arith.constant 0 : i32
    %c0_i32_1 = arith.constant 0 : i32
    return %c0_i32, %c0_i32_0 : i32, i32
  }
  func.func @transform_4(%arg0: i32) -> (i32, i32) {
    %c0_i32 = arith.constant 0 : i32
    %c0_i32_0 = arith.constant 0 : i32
    %c0_i32_1 = arith.constant 0 : i32
    return %c0_i32, %c0_i32_0 : i32, i32
  }
  func.func @transform_5(%arg0: i32) -> (i32, i32, i32, i32) {
    %c0_i32 = arith.constant 0 : i32
    %c0_i32_0 = arith.constant 0 : i32
    %c0_i32_1 = arith.constant 0 : i32
    %c0_i32_2 = arith.constant 0 : i32
    return %arg0, %c0_i32, %c0_i32_0, %c0_i32_1 : i32, i32, i32, i32
  }
  func.func @transform_6(%arg0: i32) -> (i32, i32, i32, i32) {
    %c0_i32 = arith.constant 0 : i32
    %c0_i32_0 = arith.constant 0 : i32
    %c0_i32_1 = arith.constant 0 : i32
    %c0_i32_2 = arith.constant 0 : i32
    return %arg0, %c0_i32, %c0_i32_0, %c0_i32_1 : i32, i32, i32, i32
  }
}

</mosaic_0001>

<bundles_post_ra>
// kernel: tpu_custom_call.1
= control target key start
LH: loop header
LB: loop body
LE: loop exit
PB: predicated region body
PF: predicated region fallthrough
CT: control target
= control target key end

     0   :  { %s28386_s0 = inlined_call_operand.hbm [shape: f32[2,16,16,32], index: 0, kind: input, shape index: {}]   ;;  %s28387_s1 = inlined_call_operand.hbm [shape: bf16[63,32,32], index: 1, kind: input, shape index: {}]   ;;  %s28388_s2 = inlined_call_operand.hbm [shape: f32[7,1,32], index: 2, kind: input, shape index: {}]   ;;  %s28389_s3 = inlined_call_operand.hbm [shape: bf16[32,40], index: 3, kind: input, shape index: {}]   ;;  %s28390_s4 = inlined_call_operand.hbm [shape: f32[1,40], index: 4, kind: input, shape index: {}]   ;;  %s28391_s5 = inlined_call_operand.hbm [shape: f32[2,16,16,32], index: 5, kind: output, shape index: {0}]   ;;  %s28392_s6 = inlined_call_operand.hbm [shape: f32[2,16,16,8], index: 6, kind: output, shape index: {1}]  }
   0x1   :  { %28419 = sst [smem:[#allocation49_spill]] %s28388_s2 }
   0x2   :  { %12 = vsyncpa [#allocation6], 0 }
   0x3   :  { %14 = vsyncpa [#allocation6 + $0x1], 0 }
   0x4   :  { %15 = vsyncpa [#allocation9], 0 }
   0x5   :  { %16 = vsyncpa [#allocation12], 0 }
   0x6   :  { %17 = vsyncpa [#allocation7], 0 }
   0x7   :  { %19 = vsyncpa [#allocation7 + $0x1], 0 }
   0x8   :  { %20 = vsyncpa [#allocation15], 0 }
   0x9   :  { %22 = vsyncpa [#allocation15 + $0x1], 0  ;;  %s24431_s21 = smov 0   ;;  %s24433_s22 = smov 0  }
   0xa   :  { %s24435_s23 = smov 0   ;;  %s24437_s24 = smov 0  }
   0xb LB: > { %s24452_s25 = sadd.s32 4294967295, %s24377_s24   ;;  %s17568_s26 = sadd.s32 4294967294, %s24377_s24   ;;  %s24377_s24 = sphi %s24437_s24, %s28486_s24   ;;  %s24373_s23 = sphi %s24435_s23, %s28485_s23   ;;  %s24369_s22 = sphi %s24433_s22, %s28484_s22   ;;  %s24365_s21 = sphi %s24431_s21, %s28483_s21  }
   0xc   : > { %p48_p0 = scmp.ne.s32.totalorder %s24369_s22, %s24365_s21  ;;  %p28393_p1 = scmp.eq.s32.totalorder %s24452_s25, 0 }
   0xd   : > { %p141_p3 = scmp.eq.s32.totalorder %s17568_s26, 1  ;;  %p17569_p5 = scmp.ge.s32.totalorder %s24377_s24, 1 }
   0xe   : > { %p24461_p4 = por %p28393_p1, %p48_p0  ;;  %p174_p7 = scmp.lt.s32.totalorder %s24377_s24, 3 }
   0xf   : > { %p24466_p6 = por %p141_p3, %p48_p0  ;;  %s24379_s30 = smov [#allocation8]  }
  0x10   : > { %s28420_s27 = scalar_select %p24461_p4, 1, 0 }
  0x11   : > { %s28421_s28 = scalar_select %p24466_p6, 1, 0 }
  0x12   : > { %p24471_p8 = pnand %p17569_p5, %p174_p7  ;;  %s186_s7 = sshll.u32 %s24379_s30, 4  ;;  %s24475_s7 = int_to_ptr.vmem [resolvable:$true] %s186_s7 }
  0x13   : > { %s24380_s9 = smov [#allocation10]   ;;  %s28424_s2 = sld [smem:[#allocation49_spill]] }
  0x14   : > { %s28422_s29 = scalar_select %p24471_p8, 1, 0 }
  0x15   : > { %p23928_p9 = pneg %p24471_p8  ;;  %s199_s10 = sshll.u32 %s24380_s9, 4  ;;  %s24486_s10 = int_to_ptr.vmem [resolvable:$true] %s199_s10 }
  0x17   : > { %p24482_p11 = pnand %p23928_p9, %p28393_p1 }
  0x19   : > { %s24133_s13 = scalar_lea.hbm %s28424_s2, 112  ;;  %p24496_p13 = pneg %p24482_p11 }
  0x1a   : > { %p24134_p12 = scmp.ne.s32.totalorder %s28424_s2, %s24133_s13  ;;  %p24140_p5 = scmp.lt.u32.totalorder %s24133_s13, %s28424_s2 }
  0x1c   : > { %p24136_p0 = pnand %p24496_p13, %p24134_p12 }
  0x1e   : > { %p24137_p3 = pneg %p24136_p0 }
  0x20   : > { %p24142_p7 = pnand %p24140_p5, %p24137_p3 }
  0x22   : > { %24145 = shalt.err (!%p24142_p7)
}
  0x23   : > { %s24146_s19 = scalar_lea.vmem %s24475_s7, 112  ;;  %s24153_s20 = scalar_lea.vmem %s24475_s7, 128 }
  0x24   : > { %p24147_p9 = scmp.ne.s32.totalorder %s24475_s7, %s24146_s19  ;;  %p24154_p12 = scmp.lt.s32.totalorder %s24475_s7, %s24475_s7 }
  0x25   : > { %p24155_p0 = scmp.lt.s32.totalorder %s24153_s20, %s24146_s19 }
  0x26   : > { %p24149_p10 = pnand %p24147_p9, %p24496_p13 }
  0x27   : > { %p24156_p2 = por %p24155_p0, %p24154_p12 }
  0x28   : > { %p24150_p1 = pneg %p24149_p10 }
  0x2a   : > { %p24157_p6 = pnand %p24156_p2, %p24150_p1 }
  0x2c   : > { %24160 = shalt.err (!%p24157_p6)
}
  0x2d   : > { %s24381_s26 = smov 16   ;;  %s24382_s30 = smov 1  }
  0x2e   : > { %23931 = dma.hbm_to_vmem [thread:$0]  (!%p24482_p11), %s28424_s2, 112, %s24475_s7, [#allocation9], %s24381_s26, %s24381_s26, %s24382_s30  }
  0x2f   : > { %s24161_s14 = scalar_lea.hbm %s28389_s3, 256 }
  0x30   : > { %p24162_p10 = scmp.ne.s32.totalorder %s28389_s3, %s24161_s14  ;;  %p24168_p6 = scmp.lt.u32.totalorder %s24161_s14, %s28389_s3 }
  0x32   : > { %p24164_p1 = pnand %p24162_p10, %p24496_p13 }
  0x34   : > { %p24165_p2 = pneg %p24164_p1 }
  0x36   : > { %p24170_p3 = pnand %p24168_p6, %p24165_p2 }
  0x38   : > { %24173 = shalt.err (!%p24170_p3)
}
  0x39   : > { %s24174_s7 = scalar_lea.vmem %s24486_s10, 256  ;;  %p24182_p12 = scmp.lt.s32.totalorder %s24486_s10, %s24486_s10 }
  0x3a   : > { %p24175_p5 = scmp.ne.s32.totalorder %s24486_s10, %s24174_s7  ;;  %p24183_p0 = scmp.lt.s32.totalorder %s24174_s7, %s24174_s7 }
  0x3c   : > { %p24177_p7 = pnand %p24175_p5, %p24496_p13  ;;  %p24184_p10 = por %p24183_p0, %p24182_p12 }
  0x3e   : > { %p24178_p9 = pneg %p24177_p7 }
  0x40   : > { %p24185_p1 = pnand %p24184_p10, %p24178_p9 }
  0x42   : > { %24188 = shalt.err (!%p24185_p1)
}
  0x43   : > { %s24383_s20 = smov 64   ;;  %s24384_s26 = smov 4  }
  0x44   : > { %23934 = dma.hbm_to_vmem [thread:$0]  (!%p24482_p11), %s28389_s3, 256, %s24486_s10, [#allocation9], %s24383_s20, %s24383_s20, %s24384_s26  }
  0x45   : > { %s24385_s11 = smov [#allocation11]   ;;  %s24542_s13 = sadd.s32 1, %s24377_s24  }
  0x46   : > { %s213_s12 = sshll.u32 %s24385_s11, 4  ;;  %s24189_s17 = scalar_lea.hbm %s28390_s4, 16  ;;  %s214_s12 = int_to_ptr.vmem [resolvable:$true] %s213_s12 }
  0x47   : > { %p24190_p2 = scmp.ne.s32.totalorder %s28390_s4, %s24189_s17  ;;  %p24196_p5 = scmp.lt.u32.totalorder %s24189_s17, %s28390_s4 }
  0x49   : > { %p24192_p6 = pnand %p24190_p2, %p24496_p13 }
  0x4b   : > { %p24193_p3 = pneg %p24192_p6 }
  0x4d   : > { %p24198_p7 = pnand %p24196_p5, %p24193_p3 }
  0x4f   : > { %24201 = shalt.err (!%p24198_p7)
}
  0x50   : > { %s24202_s10 = scalar_lea.vmem %s214_s12, 16  ;;  %s24209_s20 = scalar_lea.vmem %s214_s12, 32 }
  0x51   : > { %p24203_p9 = scmp.ne.s32.totalorder %s214_s12, %s24202_s10  ;;  %p24210_p10 = scmp.lt.s32.totalorder %s214_s12, %s214_s12 }
  0x52   : > { %p24211_p1 = scmp.lt.s32.totalorder %s24209_s20, %s24202_s10 }
  0x53   : > { %p24205_p12 = pnand %p24203_p9, %p24496_p13 }
  0x54   : > { %p24212_p4 = por %p24211_p1, %p24210_p10 }
  0x55   : > { %p24206_p0 = pneg %p24205_p12 }
  0x57   : > { %p24213_p8 = pnand %p24212_p4, %p24206_p0 }
  0x59   : > { %24216 = shalt.err (!%p24213_p8)
}
  0x5a   : > { %23937 = dma.hbm_to_vmem [thread:$0]  (!%p24482_p11), %s28390_s4, 16, %s214_s12, [#allocation12]  }
  0x5b   : > { %s32_s2 = ssub.s32 %s24377_s24, %s24542_s13  ;;  %s35_s16 = sadd.s32 1, %s24373_s23 }
  0x5c   : > { %p33_p4 = scmp.eq.s32.totalorder %s32_s2, 0  ;;  %p42_p8 = scmp.ne.s32.totalorder %s24373_s23, %s24369_s22 }
  0x5d   : > { %p43_p13 = scmp.eq.s32.totalorder %s24377_s24, 0  ;;  %p23952_p2 = scmp.lt.s32.totalorder %s24377_s24, 2 }
  0x5e   : > { %s24570_s8 = scalar_select %p33_p4, %s24373_s23, %s35_s16  }
  0x5f   : > { %p44_p6 = por %p43_p13, %p42_p8  ;;  %p28426_p3 = scmp.eq.s32.totalorder %s24452_s25, 1 }
  0x60   : > { %s224_s11 = sand.u32 1, %s24373_s23   ;;  %s18659_s14 = sshll.u32 %s24377_s24, 12 }
  0x61   : > { %p24574_p5 = por %p28426_p3, %p42_p8  ;;  %s17574_s15 = sshll.u32 %s224_s11, 8 }
  0x62   : > { %s24583_s12 = scalar_lea.hbm %s28386_s0, %s18659_s14  ;;  %s228_s19 = scalar_lea.vmem [#allocation5], %s17574_s15 }
  0x63   : > { %s235_s7 = sshll.u32 %s228_s19, 4  ;;  %p24585_p11 = pnand %p23952_p2, %p44_p6  ;;  %s24589_s7 = int_to_ptr.vmem [resolvable:$true] %s235_s7 }
  0x64   : > { %s24591_s20 = scalar_lea.sflag [#allocation6], %s224_s11  ;;  %s24217_s26 = scalar_lea.hbm %s24583_s12, 4096 }
  0x65   : > { %p24218_p7 = scmp.ne.s32.totalorder %s24583_s12, %s24217_s26  ;;  %p24219_p9 = pneg %p24585_p11 }
  0x66   : > { %s24222_s16 = scalar_lea.hbm %s28386_s0, 8192  ;;  %p24223_p10 = scmp.lt.u32.totalorder %s24583_s12, %s28386_s0 }
  0x67   : > { %p24220_p12 = pnand %p24219_p9, %p24218_p7  ;;  %p24224_p1 = scmp.lt.u32.totalorder %s24222_s16, %s24217_s26 }
  0x68   : > { %p24226_p8 = scmp.lt.u32.totalorder %s24217_s26, %s24583_s12 }
  0x69   : > { %p24221_p0 = pneg %p24220_p12  ;;  %p24225_p4 = por %p24224_p1, %p24223_p10 }
  0x6b   : > { %p24227_p13 = por %p24226_p8, %p24225_p4 }
  0x6d   : > { %p24228_p2 = pnand %p24227_p13, %p24221_p0 }
  0x6f   : > { %24231 = shalt.err (!%p24228_p2)
}
  0x70   : > { %s24232_s11 = scalar_lea.vmem %s24589_s7, 4096  ;;  %s24386_s17 = smov [#allocation5]  }
  0x71   : > { %p24233_p6 = scmp.ne.s32.totalorder %s24589_s7, %s24232_s11  ;;  %s24237_s18 = sshll.u32 %s24386_s17, 4  ;;  %s24238_s18 = int_to_ptr.vmem [resolvable:$false] %s24237_s18 }
  0x72   : > { %s24239_s19 = scalar_lea.vmem %s24238_s18, 8192  ;;  %p24240_p12 = scmp.lt.s32.totalorder %s24589_s7, %s24238_s18 }
  0x73   : > { %p24235_p3 = pnand %p24233_p6, %p24219_p9  ;;  %p24241_p10 = scmp.lt.s32.totalorder %s24239_s19, %s24232_s11 }
  0x75   : > { %p24236_p7 = pneg %p24235_p3  ;;  %p24242_p1 = por %p24241_p10, %p24240_p12 }
  0x77   : > { %p24243_p4 = pnand %p24242_p1, %p24236_p7 }
  0x79   : > { %24246 = shalt.err (!%p24243_p4)
}
  0x7a   : > { %s24387_s26 = smov 128   ;;  %s24388_s30 = smov 8  }
  0x7b   : > { %23941 = dma.hbm_to_vmem [thread:$0]  (!%p24585_p11), %s24583_s12, 4096, %s24589_s7, %s24591_s20, %s24387_s26, %s24387_s26, %s24388_s30  }
  0x7c   : > { %p28429_p9 = scmp.ne.s32.totalorder %s28422_s29, 0 }
  0x7e   : > { %247 = sbr.rel (%p28429_p9) target bundleno = 5402 (0x151a), region = 36 }
  0x85   : > { %s24622_s2 = sand.u32 1, %s24369_s22   ;;  %p28430_p0 = scmp.ne.s32.totalorder %s28420_s27, 0 }
  0x86   : > { %s24625_s16 = sshll.u32 %s24622_s2, 8  ;;  %s250_s14 = scalar_lea.sflag [#allocation6], %s24622_s2 }
  0x87   : > { %s24629_s15 = scalar_lea.vmem [#allocation5], %s24625_s16 }
  0x88   : > { %24342 = dma.done.wait (%p28430_p0), %s250_s14, 4096  }
  0x89   : > { %24344 = vsyncadd (%p28430_p0), %s250_s14, 4294963200  ;;  %p28431_p11 = scmp.eq.s32.totalorder %s24452_s25, 0 }
  0x8b   : > { %24346 = dma.done.wait (%p28431_p11), [#allocation9], 368   ;;  %p28432_p8 = pmov %p28431_p11 }
  0x8d   : > { %24348 = vsyncadd (%p28432_p8), [#allocation9], 4294966928  ;;  %p28433_p13 = pmov %p28432_p8 }
  0x8e   : > { %p28434_p2 = pmov %p28432_p8 }
  0x8f   : > { %24350 = dma.done.wait (%p28433_p13), [#allocation12], 16  }
  0x90   : > { %24352 = vsyncadd (%p28434_p2), [#allocation12], 4294967280  ;;  %vm309_vm0 = vcmask 261120   ;;  %v24389_v0 = vmov 0.0   ;;  %s24390_s27 = smov [#allocation2]   ;;  %s24247_s10 = scalar_lea.hbm %s28387_s1, 16128 }
  0x91   : > { %310 = vst.msk [vmem:[#allocation4] sm:$0xff] %vm309_vm0, %v24389_v0  ;;  %311 = vst.msk [vmem:[#allocation4 + $0x8] sm:$0xff] %vm309_vm0, %v24389_v0  ;;  %s305_s29 = sshll.u32 %s24390_s27, 4  ;;  %p24248_p6 = scmp.ne.s32.totalorder %s28387_s1, %s24247_s10  ;;  %s306_s29 = int_to_ptr.vmem [resolvable:$true] %s305_s29 }
  0x92   : > { %312 = vst.msk [vmem:[#allocation4 + $0x10] sm:$0xff] %vm309_vm0, %v24389_v0  ;;  %313 = vst.msk [vmem:[#allocation4 + $0x18] sm:$0xff] %vm309_vm0, %v24389_v0  ;;  %p24251_p3 = scmp.lt.u32.totalorder %s24247_s10, %s28387_s1 }
  0x93   : > { %314 = vst.msk [vmem:[#allocation4 + $0x20] sm:$0xff] %vm309_vm0, %v24389_v0  ;;  %315 = vst.msk [vmem:[#allocation4 + $0x28] sm:$0xff] %vm309_vm0, %v24389_v0 }
  0x94   : > { %316 = vst.msk [vmem:[#allocation4 + $0x30] sm:$0xff] %vm309_vm0, %v24389_v0  ;;  %317 = vst.msk [vmem:[#allocation4 + $0x38] sm:$0xff] %vm309_vm0, %v24389_v0  ;;  %p24253_p7 = pnand %p24251_p3, %p24248_p6 }
  0x95   : > { %318 = vst.msk [vmem:[#allocation4 + $0x40] sm:$0xff] %vm309_vm0, %v24389_v0  ;;  %319 = vst.msk [vmem:[#allocation4 + $0x48] sm:$0xff] %vm309_vm0, %v24389_v0 }
  0x96   : > { %320 = vst.msk [vmem:[#allocation4 + $0x50] sm:$0xff] %vm309_vm0, %v24389_v0  ;;  %321 = vst.msk [vmem:[#allocation4 + $0x58] sm:$0xff] %vm309_vm0, %v24389_v0 }
  0x97   : > { %322 = vst.msk [vmem:[#allocation4 + $0x60] sm:$0xff] %vm309_vm0, %v24389_v0  ;;  %323 = vst.msk [vmem:[#allocation4 + $0x68] sm:$0xff] %vm309_vm0, %v24389_v0 }
  0x98   : > { %324 = vst.msk [vmem:[#allocation4 + $0x70] sm:$0xff] %vm309_vm0, %v24389_v0  ;;  %325 = vst.msk [vmem:[#allocation4 + $0x78] sm:$0xff] %vm309_vm0, %v24389_v0 }
  0x99   : > { %326 = vst.msk [vmem:[#allocation4 + $0x80] sm:$0xff] %vm309_vm0, %v24389_v0  ;;  %327 = vst.msk [vmem:[#allocation4 + $0x88] sm:$0xff] %vm309_vm0, %v24389_v0 }
  0x9a   : > { %328 = vst.msk [vmem:[#allocation4 + $0x90] sm:$0xff] %vm309_vm0, %v24389_v0  ;;  %329 = vst.msk [vmem:[#allocation4 + $0x98] sm:$0xff] %vm309_vm0, %v24389_v0 }
  0x9b   : > { %330 = vst.msk [vmem:[#allocation4 + $0xa0] sm:$0xff] %vm309_vm0, %v24389_v0  ;;  %331 = vst.msk [vmem:[#allocation4 + $0xa8] sm:$0xff] %vm309_vm0, %v24389_v0 }
  0x9c   : > { %332 = vst.msk [vmem:[#allocation4 + $0xb0] sm:$0xff] %vm309_vm0, %v24389_v0  ;;  %333 = vst.msk [vmem:[#allocation4 + $0xb8] sm:$0xff] %vm309_vm0, %v24389_v0 }
  0x9d   : > { %334 = vst.msk [vmem:[#allocation4 + $0xc0] sm:$0xff] %vm309_vm0, %v24389_v0  ;;  %335 = vst.msk [vmem:[#allocation4 + $0xc8] sm:$0xff] %vm309_vm0, %v24389_v0 }
  0x9e   : > { %336 = vst.msk [vmem:[#allocation4 + $0xd0] sm:$0xff] %vm309_vm0, %v24389_v0  ;;  %337 = vst.msk [vmem:[#allocation4 + $0xd8] sm:$0xff] %vm309_vm0, %v24389_v0 }
  0x9f   : > { %338 = vst.msk [vmem:[#allocation4 + $0xe0] sm:$0xff] %vm309_vm0, %v24389_v0  ;;  %339 = vst.msk [vmem:[#allocation4 + $0xe8] sm:$0xff] %vm309_vm0, %v24389_v0 }
  0xa0   : > { %340 = vst.msk [vmem:[#allocation4 + $0xf0] sm:$0xff] %vm309_vm0, %v24389_v0  ;;  %341 = vst.msk [vmem:[#allocation4 + $0xf8] sm:$0xff] %vm309_vm0, %v24389_v0 }
  0xa1   : > { %342 = vst.msk [vmem:[#allocation4 + $0x100] sm:$0xff] %vm309_vm0, %v24389_v0  ;;  %343 = vst.msk [vmem:[#allocation4 + $0x108] sm:$0xff] %vm309_vm0, %v24389_v0 }
  0xa2   : > { %344 = vst.msk [vmem:[#allocation4 + $0x110] sm:$0xff] %vm309_vm0, %v24389_v0  ;;  %345 = vst.msk [vmem:[#allocation4 + $0x118] sm:$0xff] %vm309_vm0, %v24389_v0 }
  0xa3   : > { %346 = vst.msk [vmem:[#allocation4 + $0x120] sm:$0xff] %vm309_vm0, %v24389_v0  ;;  %347 = vst.msk [vmem:[#allocation4 + $0x128] sm:$0xff] %vm309_vm0, %v24389_v0 }
  0xa4   : > { %348 = vst.msk [vmem:[#allocation4 + $0x130] sm:$0xff] %vm309_vm0, %v24389_v0  ;;  %349 = vst.msk [vmem:[#allocation4 + $0x138] sm:$0xff] %vm309_vm0, %v24389_v0 }
  0xa5   : > { %350 = vst.msk [vmem:[#allocation4 + $0x140] sm:$0xff] %vm309_vm0, %v24389_v0  ;;  %351 = vst.msk [vmem:[#allocation4 + $0x148] sm:$0xff] %vm309_vm0, %v24389_v0 }
  0xa6   : > { %352 = vst.msk [vmem:[#allocation4 + $0x150] sm:$0xff] %vm309_vm0, %v24389_v0  ;;  %353 = vst.msk [vmem:[#allocation4 + $0x158] sm:$0xff] %vm309_vm0, %v24389_v0 }
  0xa7   : > { %354 = vst.msk [vmem:[#allocation4 + $0x160] sm:$0xff] %vm309_vm0, %v24389_v0  ;;  %355 = vst.msk [vmem:[#allocation4 + $0x168] sm:$0xff] %vm309_vm0, %v24389_v0 }
  0xa8   : > { %356 = vst.msk [vmem:[#allocation4 + $0x170] sm:$0xff] %vm309_vm0, %v24389_v0  ;;  %357 = vst.msk [vmem:[#allocation4 + $0x178] sm:$0xff] %vm309_vm0, %v24389_v0 }
  0xa9   : > { %358 = vst.msk [vmem:[#allocation4 + $0x180] sm:$0xff] %vm309_vm0, %v24389_v0  ;;  %359 = vst.msk [vmem:[#allocation4 + $0x188] sm:$0xff] %vm309_vm0, %v24389_v0 }
  0xaa   : > { %360 = vst.msk [vmem:[#allocation4 + $0x190] sm:$0xff] %vm309_vm0, %v24389_v0  ;;  %361 = vst.msk [vmem:[#allocation4 + $0x198] sm:$0xff] %vm309_vm0, %v24389_v0 }
  0xab   : > { %362 = vst.msk [vmem:[#allocation4 + $0x1a0] sm:$0xff] %vm309_vm0, %v24389_v0  ;;  %363 = vst.msk [vmem:[#allocation4 + $0x1a8] sm:$0xff] %vm309_vm0, %v24389_v0 }
  0xac   : > { %364 = vst.msk [vmem:[#allocation4 + $0x1b0] sm:$0xff] %vm309_vm0, %v24389_v0  ;;  %365 = vst.msk [vmem:[#allocation4 + $0x1b8] sm:$0xff] %vm309_vm0, %v24389_v0 }
  0xad   : > { %366 = vst.msk [vmem:[#allocation4 + $0x1c0] sm:$0xff] %vm309_vm0, %v24389_v0  ;;  %367 = vst.msk [vmem:[#allocation4 + $0x1c8] sm:$0xff] %vm309_vm0, %v24389_v0 }
  0xae   : > { %368 = vst.msk [vmem:[#allocation4 + $0x1d0] sm:$0xff] %vm309_vm0, %v24389_v0  ;;  %369 = vst.msk [vmem:[#allocation4 + $0x1d8] sm:$0xff] %vm309_vm0, %v24389_v0 }
  0xaf   : > { %370 = vst.msk [vmem:[#allocation4 + $0x1e0] sm:$0xff] %vm309_vm0, %v24389_v0  ;;  %371 = vst.msk [vmem:[#allocation4 + $0x1e8] sm:$0xff] %vm309_vm0, %v24389_v0 }
  0xb0   : > { %372 = vst.msk [vmem:[#allocation4 + $0x1f0] sm:$0xff] %vm309_vm0, %v24389_v0  ;;  %373 = vst.msk [vmem:[#allocation4 + $0x1f8] sm:$0xff] %vm309_vm0, %v24389_v0 }
  0xb1   : > { %374 = vst.msk [vmem:[#allocation4 + $0x200] sm:$0xff] %vm309_vm0, %v24389_v0  ;;  %375 = vst.msk [vmem:[#allocation4 + $0x208] sm:$0xff] %vm309_vm0, %v24389_v0 }
  0xb2   : > { %376 = vst.msk [vmem:[#allocation4 + $0x210] sm:$0xff] %vm309_vm0, %v24389_v0  ;;  %377 = vst.msk [vmem:[#allocation4 + $0x218] sm:$0xff] %vm309_vm0, %v24389_v0 }
  0xb3   : > { %378 = vst.msk [vmem:[#allocation4 + $0x220] sm:$0xff] %vm309_vm0, %v24389_v0  ;;  %379 = vst.msk [vmem:[#allocation4 + $0x228] sm:$0xff] %vm309_vm0, %v24389_v0 }
  0xb4   : > { %380 = vst.msk [vmem:[#allocation4 + $0x230] sm:$0xff] %vm309_vm0, %v24389_v0  ;;  %381 = vst.msk [vmem:[#allocation4 + $0x238] sm:$0xff] %vm309_vm0, %v24389_v0 }
  0xb5   : > { %382 = vst.msk [vmem:[#allocation4 + $0x240] sm:$0xff] %vm309_vm0, %v24389_v0  ;;  %383 = vst.msk [vmem:[#allocation4 + $0x248] sm:$0xff] %vm309_vm0, %v24389_v0 }
  0xb6   : > { %384 = vst.msk [vmem:[#allocation4 + $0x250] sm:$0xff] %vm309_vm0, %v24389_v0  ;;  %385 = vst.msk [vmem:[#allocation4 + $0x258] sm:$0xff] %vm309_vm0, %v24389_v0 }
  0xb7   : > { %386 = vst.msk [vmem:[#allocation4 + $0x260] sm:$0xff] %vm309_vm0, %v24389_v0  ;;  %387 = vst.msk [vmem:[#allocation4 + $0x268] sm:$0xff] %vm309_vm0, %v24389_v0 }
  0xb8   : > { %388 = vst.msk [vmem:[#allocation4 + $0x270] sm:$0xff] %vm309_vm0, %v24389_v0  ;;  %389 = vst.msk [vmem:[#allocation4 + $0x278] sm:$0xff] %vm309_vm0, %v24389_v0 }
  0xb9   : > { %390 = vst.msk [vmem:[#allocation4 + $0x280] sm:$0xff] %vm309_vm0, %v24389_v0  ;;  %391 = vst.msk [vmem:[#allocation4 + $0x288] sm:$0xff] %vm309_vm0, %v24389_v0 }
  0xba   : > { %392 = vst.msk [vmem:[#allocation4 + $0x290] sm:$0xff] %vm309_vm0, %v24389_v0  ;;  %393 = vst.msk [vmem:[#allocation4 + $0x298] sm:$0xff] %vm309_vm0, %v24389_v0 }
  0xbb   : > { %394 = vst.msk [vmem:[#allocation4 + $0x2a0] sm:$0xff] %vm309_vm0, %v24389_v0  ;;  %395 = vst.msk [vmem:[#allocation4 + $0x2a8] sm:$0xff] %vm309_vm0, %v24389_v0 }
  0xbc   : > { %396 = vst.msk [vmem:[#allocation4 + $0x2b0] sm:$0xff] %vm309_vm0, %v24389_v0  ;;  %397 = vst.msk [vmem:[#allocation4 + $0x2b8] sm:$0xff] %vm309_vm0, %v24389_v0 }
  0xbd   : > { %398 = vst.msk [vmem:[#allocation4 + $0x2c0] sm:$0xff] %vm309_vm0, %v24389_v0  ;;  %399 = vst.msk [vmem:[#allocation4 + $0x2c8] sm:$0xff] %vm309_vm0, %v24389_v0 }
  0xbe   : > { %400 = vst.msk [vmem:[#allocation4 + $0x2d0] sm:$0xff] %vm309_vm0, %v24389_v0  ;;  %401 = vst.msk [vmem:[#allocation4 + $0x2d8] sm:$0xff] %vm309_vm0, %v24389_v0 }
  0xbf   : > { %402 = vst.msk [vmem:[#allocation4 + $0x2e0] sm:$0xff] %vm309_vm0, %v24389_v0  ;;  %403 = vst.msk [vmem:[#allocation4 + $0x2e8] sm:$0xff] %vm309_vm0, %v24389_v0 }
  0xc0   : > { %404 = vst.msk [vmem:[#allocation4 + $0x2f0] sm:$0xff] %vm309_vm0, %v24389_v0  ;;  %405 = vst.msk [vmem:[#allocation4 + $0x2f8] sm:$0xff] %vm309_vm0, %v24389_v0 }
  0xc1   : > { %407 = vst.msk [vmem:[#allocation4 + $0x600] sm:$0xff] %vm309_vm0, %v24389_v0  ;;  %408 = vst.msk [vmem:[#allocation4 + $0x608] sm:$0xff] %vm309_vm0, %v24389_v0 }
  0xc2   : > { %409 = vst.msk [vmem:[#allocation4 + $0x610] sm:$0xff] %vm309_vm0, %v24389_v0  ;;  %410 = vst.msk [vmem:[#allocation4 + $0x618] sm:$0xff] %vm309_vm0, %v24389_v0 }
  0xc3   : > { %411 = vst.msk [vmem:[#allocation4 + $0x620] sm:$0xff] %vm309_vm0, %v24389_v0  ;;  %412 = vst.msk [vmem:[#allocation4 + $0x628] sm:$0xff] %vm309_vm0, %v24389_v0 }
  0xc4   : > { %413 = vst.msk [vmem:[#allocation4 + $0x630] sm:$0xff] %vm309_vm0, %v24389_v0  ;;  %414 = vst.msk [vmem:[#allocation4 + $0x638] sm:$0xff] %vm309_vm0, %v24389_v0 }
  0xc5   : > { %415 = vst.msk [vmem:[#allocation4 + $0x640] sm:$0xff] %vm309_vm0, %v24389_v0  ;;  %416 = vst.msk [vmem:[#allocation4 + $0x648] sm:$0xff] %vm309_vm0, %v24389_v0 }
  0xc6   : > { %417 = vst.msk [vmem:[#allocation4 + $0x650] sm:$0xff] %vm309_vm0, %v24389_v0  ;;  %418 = vst.msk [vmem:[#allocation4 + $0x658] sm:$0xff] %vm309_vm0, %v24389_v0 }
  0xc7   : > { %419 = vst.msk [vmem:[#allocation4 + $0x660] sm:$0xff] %vm309_vm0, %v24389_v0  ;;  %420 = vst.msk [vmem:[#allocation4 + $0x668] sm:$0xff] %vm309_vm0, %v24389_v0 }
  0xc8   : > { %421 = vst.msk [vmem:[#allocation4 + $0x670] sm:$0xff] %vm309_vm0, %v24389_v0  ;;  %422 = vst.msk [vmem:[#allocation4 + $0x678] sm:$0xff] %vm309_vm0, %v24389_v0 }
  0xc9   : > { %423 = vst.msk [vmem:[#allocation4 + $0x680] sm:$0xff] %vm309_vm0, %v24389_v0  ;;  %424 = vst.msk [vmem:[#allocation4 + $0x688] sm:$0xff] %vm309_vm0, %v24389_v0 }
  0xca   : > { %425 = vst.msk [vmem:[#allocation4 + $0x690] sm:$0xff] %vm309_vm0, %v24389_v0  ;;  %426 = vst.msk [vmem:[#allocation4 + $0x698] sm:$0xff] %vm309_vm0, %v24389_v0 }
  0xcb   : > { %427 = vst.msk [vmem:[#allocation4 + $0x6a0] sm:$0xff] %vm309_vm0, %v24389_v0  ;;  %428 = vst.msk [vmem:[#allocation4 + $0x6a8] sm:$0xff] %vm309_vm0, %v24389_v0 }
  0xcc   : > { %429 = vst.msk [vmem:[#allocation4 + $0x6b0] sm:$0xff] %vm309_vm0, %v24389_v0  ;;  %430 = vst.msk [vmem:[#allocation4 + $0x6b8] sm:$0xff] %vm309_vm0, %v24389_v0 }
  0xcd   : > { %431 = vst.msk [vmem:[#allocation4 + $0x6c0] sm:$0xff] %vm309_vm0, %v24389_v0  ;;  %432 = vst.msk [vmem:[#allocation4 + $0x6c8] sm:$0xff] %vm309_vm0, %v24389_v0 }
  0xce   : > { %433 = vst.msk [vmem:[#allocation4 + $0x6d0] sm:$0xff] %vm309_vm0, %v24389_v0  ;;  %434 = vst.msk [vmem:[#allocation4 + $0x6d8] sm:$0xff] %vm309_vm0, %v24389_v0 }
  0xcf   : > { %435 = vst.msk [vmem:[#allocation4 + $0x6e0] sm:$0xff] %vm309_vm0, %v24389_v0  ;;  %436 = vst.msk [vmem:[#allocation4 + $0x6e8] sm:$0xff] %vm309_vm0, %v24389_v0 }
  0xd0   : > { %437 = vst.msk [vmem:[#allocation4 + $0x6f0] sm:$0xff] %vm309_vm0, %v24389_v0  ;;  %438 = vst.msk [vmem:[#allocation4 + $0x6f8] sm:$0xff] %vm309_vm0, %v24389_v0 }
  0xd1   : > { %439 = vst.msk [vmem:[#allocation4 + $0x700] sm:$0xff] %vm309_vm0, %v24389_v0  ;;  %440 = vst.msk [vmem:[#allocation4 + $0x708] sm:$0xff] %vm309_vm0, %v24389_v0 }
  0xd2   : > { %441 = vst.msk [vmem:[#allocation4 + $0x710] sm:$0xff] %vm309_vm0, %v24389_v0  ;;  %442 = vst.msk [vmem:[#allocation4 + $0x718] sm:$0xff] %vm309_vm0, %v24389_v0 }
  0xd3   : > { %443 = vst.msk [vmem:[#allocation4 + $0x720] sm:$0xff] %vm309_vm0, %v24389_v0  ;;  %444 = vst.msk [vmem:[#allocation4 + $0x728] sm:$0xff] %vm309_vm0, %v24389_v0 }
  0xd4   : > { %445 = vst.msk [vmem:[#allocation4 + $0x730] sm:$0xff] %vm309_vm0, %v24389_v0  ;;  %446 = vst.msk [vmem:[#allocation4 + $0x738] sm:$0xff] %vm309_vm0, %v24389_v0 }
  0xd5   : > { %447 = vst.msk [vmem:[#allocation4 + $0x740] sm:$0xff] %vm309_vm0, %v24389_v0  ;;  %448 = vst.msk [vmem:[#allocation4 + $0x748] sm:$0xff] %vm309_vm0, %v24389_v0 }
  0xd6   : > { %449 = vst.msk [vmem:[#allocation4 + $0x750] sm:$0xff] %vm309_vm0, %v24389_v0  ;;  %450 = vst.msk [vmem:[#allocation4 + $0x758] sm:$0xff] %vm309_vm0, %v24389_v0 }
  0xd7   : > { %451 = vst.msk [vmem:[#allocation4 + $0x760] sm:$0xff] %vm309_vm0, %v24389_v0  ;;  %452 = vst.msk [vmem:[#allocation4 + $0x768] sm:$0xff] %vm309_vm0, %v24389_v0 }
  0xd8   : > { %453 = vst.msk [vmem:[#allocation4 + $0x770] sm:$0xff] %vm309_vm0, %v24389_v0  ;;  %454 = vst.msk [vmem:[#allocation4 + $0x778] sm:$0xff] %vm309_vm0, %v24389_v0 }
  0xd9   : > { %455 = vst.msk [vmem:[#allocation4 + $0x780] sm:$0xff] %vm309_vm0, %v24389_v0  ;;  %456 = vst.msk [vmem:[#allocation4 + $0x788] sm:$0xff] %vm309_vm0, %v24389_v0 }
  0xda   : > { %457 = vst.msk [vmem:[#allocation4 + $0x790] sm:$0xff] %vm309_vm0, %v24389_v0  ;;  %458 = vst.msk [vmem:[#allocation4 + $0x798] sm:$0xff] %vm309_vm0, %v24389_v0 }
  0xdb   : > { %459 = vst.msk [vmem:[#allocation4 + $0x7a0] sm:$0xff] %vm309_vm0, %v24389_v0  ;;  %460 = vst.msk [vmem:[#allocation4 + $0x7a8] sm:$0xff] %vm309_vm0, %v24389_v0 }
  0xdc   : > { %461 = vst.msk [vmem:[#allocation4 + $0x7b0] sm:$0xff] %vm309_vm0, %v24389_v0  ;;  %462 = vst.msk [vmem:[#allocation4 + $0x7b8] sm:$0xff] %vm309_vm0, %v24389_v0 }
  0xdd   : > { %463 = vst.msk [vmem:[#allocation4 + $0x7c0] sm:$0xff] %vm309_vm0, %v24389_v0  ;;  %464 = vst.msk [vmem:[#allocation4 + $0x7c8] sm:$0xff] %vm309_vm0, %v24389_v0 }
  0xde   : > { %465 = vst.msk [vmem:[#allocation4 + $0x7d0] sm:$0xff] %vm309_vm0, %v24389_v0  ;;  %466 = vst.msk [vmem:[#allocation4 + $0x7d8] sm:$0xff] %vm309_vm0, %v24389_v0 }
  0xdf   : > { %467 = vst.msk [vmem:[#allocation4 + $0x7e0] sm:$0xff] %vm309_vm0, %v24389_v0  ;;  %468 = vst.msk [vmem:[#allocation4 + $0x7e8] sm:$0xff] %vm309_vm0, %v24389_v0 }
  0xe0   : > { %469 = vst.msk [vmem:[#allocation4 + $0x7f0] sm:$0xff] %vm309_vm0, %v24389_v0  ;;  %470 = vst.msk [vmem:[#allocation4 + $0x7f8] sm:$0xff] %vm309_vm0, %v24389_v0 }
  0xe1   : > { %471 = vst.msk [vmem:[#allocation4 + $0x800] sm:$0xff] %vm309_vm0, %v24389_v0  ;;  %472 = vst.msk [vmem:[#allocation4 + $0x808] sm:$0xff] %vm309_vm0, %v24389_v0 }
  0xe2   : > { %473 = vst.msk [vmem:[#allocation4 + $0x810] sm:$0xff] %vm309_vm0, %v24389_v0  ;;  %474 = vst.msk [vmem:[#allocation4 + $0x818] sm:$0xff] %vm309_vm0, %v24389_v0 }
  0xe3   : > { %475 = vst.msk [vmem:[#allocation4 + $0x820] sm:$0xff] %vm309_vm0, %v24389_v0  ;;  %476 = vst.msk [vmem:[#allocation4 + $0x828] sm:$0xff] %vm309_vm0, %v24389_v0 }
  0xe4   : > { %477 = vst.msk [vmem:[#allocation4 + $0x830] sm:$0xff] %vm309_vm0, %v24389_v0  ;;  %478 = vst.msk [vmem:[#allocation4 + $0x838] sm:$0xff] %vm309_vm0, %v24389_v0 }
  0xe5   : > { %479 = vst.msk [vmem:[#allocation4 + $0x840] sm:$0xff] %vm309_vm0, %v24389_v0  ;;  %480 = vst.msk [vmem:[#allocation4 + $0x848] sm:$0xff] %vm309_vm0, %v24389_v0 }
  0xe6   : > { %481 = vst.msk [vmem:[#allocation4 + $0x850] sm:$0xff] %vm309_vm0, %v24389_v0  ;;  %482 = vst.msk [vmem:[#allocation4 + $0x858] sm:$0xff] %vm309_vm0, %v24389_v0 }
  0xe7   : > { %483 = vst.msk [vmem:[#allocation4 + $0x860] sm:$0xff] %vm309_vm0, %v24389_v0  ;;  %484 = vst.msk [vmem:[#allocation4 + $0x868] sm:$0xff] %vm309_vm0, %v24389_v0 }
  0xe8   : > { %485 = vst.msk [vmem:[#allocation4 + $0x870] sm:$0xff] %vm309_vm0, %v24389_v0  ;;  %486 = vst.msk [vmem:[#allocation4 + $0x878] sm:$0xff] %vm309_vm0, %v24389_v0 }
  0xe9   : > { %487 = vst.msk [vmem:[#allocation4 + $0x880] sm:$0xff] %vm309_vm0, %v24389_v0  ;;  %488 = vst.msk [vmem:[#allocation4 + $0x888] sm:$0xff] %vm309_vm0, %v24389_v0 }
  0xea   : > { %489 = vst.msk [vmem:[#allocation4 + $0x890] sm:$0xff] %vm309_vm0, %v24389_v0  ;;  %490 = vst.msk [vmem:[#allocation4 + $0x898] sm:$0xff] %vm309_vm0, %v24389_v0 }
  0xeb   : > { %491 = vst.msk [vmem:[#allocation4 + $0x8a0] sm:$0xff] %vm309_vm0, %v24389_v0  ;;  %492 = vst.msk [vmem:[#allocation4 + $0x8a8] sm:$0xff] %vm309_vm0, %v24389_v0 }
  0xec   : > { %493 = vst.msk [vmem:[#allocation4 + $0x8b0] sm:$0xff] %vm309_vm0, %v24389_v0  ;;  %494 = vst.msk [vmem:[#allocation4 + $0x8b8] sm:$0xff] %vm309_vm0, %v24389_v0 }
  0xed   : > { %495 = vst.msk [vmem:[#allocation4 + $0x8c0] sm:$0xff] %vm309_vm0, %v24389_v0  ;;  %496 = vst.msk [vmem:[#allocation4 + $0x8c8] sm:$0xff] %vm309_vm0, %v24389_v0 }
  0xee   : > { %497 = vst.msk [vmem:[#allocation4 + $0x8d0] sm:$0xff] %vm309_vm0, %v24389_v0  ;;  %498 = vst.msk [vmem:[#allocation4 + $0x8d8] sm:$0xff] %vm309_vm0, %v24389_v0 }
  0xef   : > { %499 = vst.msk [vmem:[#allocation4 + $0x8e0] sm:$0xff] %vm309_vm0, %v24389_v0  ;;  %500 = vst.msk [vmem:[#allocation4 + $0x8e8] sm:$0xff] %vm309_vm0, %v24389_v0 }
  0xf0   : > { %501 = vst.msk [vmem:[#allocation4 + $0x8f0] sm:$0xff] %vm309_vm0, %v24389_v0  ;;  %502 = vst.msk [vmem:[#allocation4 + $0x8f8] sm:$0xff] %vm309_vm0, %v24389_v0 }
  0xf1   : > { %504 = vst.msk [vmem:[#allocation4 + $0x300] sm:$0xff] %vm309_vm0, %v24389_v0  ;;  %505 = vst.msk [vmem:[#allocation4 + $0x308] sm:$0xff] %vm309_vm0, %v24389_v0 }
  0xf2   : > { %506 = vst.msk [vmem:[#allocation4 + $0x330] sm:$0xff] %vm309_vm0, %v24389_v0  ;;  %507 = vst.msk [vmem:[#allocation4 + $0x338] sm:$0xff] %vm309_vm0, %v24389_v0 }
  0xf3   : > { %508 = vst.msk [vmem:[#allocation4 + $0x360] sm:$0xff] %vm309_vm0, %v24389_v0  ;;  %509 = vst.msk [vmem:[#allocation4 + $0x368] sm:$0xff] %vm309_vm0, %v24389_v0 }
  0xf4   : > { %510 = vst.msk [vmem:[#allocation4 + $0x390] sm:$0xff] %vm309_vm0, %v24389_v0  ;;  %511 = vst.msk [vmem:[#allocation4 + $0x398] sm:$0xff] %vm309_vm0, %v24389_v0 }
  0xf5   : > { %512 = vst.msk [vmem:[#allocation4 + $0x3c0] sm:$0xff] %vm309_vm0, %v24389_v0  ;;  %513 = vst.msk [vmem:[#allocation4 + $0x3c8] sm:$0xff] %vm309_vm0, %v24389_v0 }
  0xf6   : > { %514 = vst.msk [vmem:[#allocation4 + $0x3f0] sm:$0xff] %vm309_vm0, %v24389_v0  ;;  %515 = vst.msk [vmem:[#allocation4 + $0x3f8] sm:$0xff] %vm309_vm0, %v24389_v0 }
  0xf7   : > { %516 = vst.msk [vmem:[#allocation4 + $0x420] sm:$0xff] %vm309_vm0, %v24389_v0  ;;  %517 = vst.msk [vmem:[#allocation4 + $0x428] sm:$0xff] %vm309_vm0, %v24389_v0 }
  0xf8   : > { %518 = vst.msk [vmem:[#allocation4 + $0x450] sm:$0xff] %vm309_vm0, %v24389_v0  ;;  %519 = vst.msk [vmem:[#allocation4 + $0x458] sm:$0xff] %vm309_vm0, %v24389_v0 }
  0xf9   : > { %520 = vst.msk [vmem:[#allocation4 + $0x480] sm:$0xff] %vm309_vm0, %v24389_v0  ;;  %521 = vst.msk [vmem:[#allocation4 + $0x488] sm:$0xff] %vm309_vm0, %v24389_v0 }
  0xfa   : > { %522 = vst.msk [vmem:[#allocation4 + $0x4b0] sm:$0xff] %vm309_vm0, %v24389_v0  ;;  %523 = vst.msk [vmem:[#allocation4 + $0x4b8] sm:$0xff] %vm309_vm0, %v24389_v0 }
  0xfb   : > { %524 = vst.msk [vmem:[#allocation4 + $0x4e0] sm:$0xff] %vm309_vm0, %v24389_v0  ;;  %525 = vst.msk [vmem:[#allocation4 + $0x4e8] sm:$0xff] %vm309_vm0, %v24389_v0 }
  0xfc   : > { %526 = vst.msk [vmem:[#allocation4 + $0x510] sm:$0xff] %vm309_vm0, %v24389_v0  ;;  %527 = vst.msk [vmem:[#allocation4 + $0x518] sm:$0xff] %vm309_vm0, %v24389_v0 }
  0xfd   : > { %528 = vst.msk [vmem:[#allocation4 + $0x540] sm:$0xff] %vm309_vm0, %v24389_v0  ;;  %529 = vst.msk [vmem:[#allocation4 + $0x548] sm:$0xff] %vm309_vm0, %v24389_v0 }
  0xfe   : > { %530 = vst.msk [vmem:[#allocation4 + $0x570] sm:$0xff] %vm309_vm0, %v24389_v0  ;;  %531 = vst.msk [vmem:[#allocation4 + $0x578] sm:$0xff] %vm309_vm0, %v24389_v0 }
  0xff   : > { %532 = vst.msk [vmem:[#allocation4 + $0x5a0] sm:$0xff] %vm309_vm0, %v24389_v0  ;;  %533 = vst.msk [vmem:[#allocation4 + $0x5a8] sm:$0xff] %vm309_vm0, %v24389_v0 }
 0x100   : > { %534 = vst.msk [vmem:[#allocation4 + $0x5d0] sm:$0xff] %vm309_vm0, %v24389_v0  ;;  %535 = vst.msk [vmem:[#allocation4 + $0x5d8] sm:$0xff] %vm309_vm0, %v24389_v0 }
 0x101   : > { %536 = vst.msk [vmem:[#allocation4 + $0x320] sm:$0xff] %vm309_vm0, %v24389_v0  ;;  %537 = vst.msk [vmem:[#allocation4 + $0x328] sm:$0xff] %vm309_vm0, %v24389_v0 }
 0x102   : > { %538 = vst.msk [vmem:[#allocation4 + $0x350] sm:$0xff] %vm309_vm0, %v24389_v0  ;;  %539 = vst.msk [vmem:[#allocation4 + $0x358] sm:$0xff] %vm309_vm0, %v24389_v0 }
 0x103   : > { %540 = vst.msk [vmem:[#allocation4 + $0x380] sm:$0xff] %vm309_vm0, %v24389_v0  ;;  %541 = vst.msk [vmem:[#allocation4 + $0x388] sm:$0xff] %vm309_vm0, %v24389_v0 }
 0x104   : > { %542 = vst.msk [vmem:[#allocation4 + $0x3b0] sm:$0xff] %vm309_vm0, %v24389_v0  ;;  %543 = vst.msk [vmem:[#allocation4 + $0x3b8] sm:$0xff] %vm309_vm0, %v24389_v0 }
 0x105   : > { %544 = vst.msk [vmem:[#allocation4 + $0x3e0] sm:$0xff] %vm309_vm0, %v24389_v0  ;;  %545 = vst.msk [vmem:[#allocation4 + $0x3e8] sm:$0xff] %vm309_vm0, %v24389_v0 }
 0x106   : > { %546 = vst.msk [vmem:[#allocation4 + $0x410] sm:$0xff] %vm309_vm0, %v24389_v0  ;;  %547 = vst.msk [vmem:[#allocation4 + $0x418] sm:$0xff] %vm309_vm0, %v24389_v0 }
 0x107   : > { %548 = vst.msk [vmem:[#allocation4 + $0x440] sm:$0xff] %vm309_vm0, %v24389_v0  ;;  %549 = vst.msk [vmem:[#allocation4 + $0x448] sm:$0xff] %vm309_vm0, %v24389_v0 }
 0x108   : > { %550 = vst.msk [vmem:[#allocation4 + $0x470] sm:$0xff] %vm309_vm0, %v24389_v0  ;;  %551 = vst.msk [vmem:[#allocation4 + $0x478] sm:$0xff] %vm309_vm0, %v24389_v0 }
 0x109   : > { %552 = vst.msk [vmem:[#allocation4 + $0x4a0] sm:$0xff] %vm309_vm0, %v24389_v0  ;;  %553 = vst.msk [vmem:[#allocation4 + $0x4a8] sm:$0xff] %vm309_vm0, %v24389_v0 }
 0x10a   : > { %554 = vst.msk [vmem:[#allocation4 + $0x4d0] sm:$0xff] %vm309_vm0, %v24389_v0  ;;  %555 = vst.msk [vmem:[#allocation4 + $0x4d8] sm:$0xff] %vm309_vm0, %v24389_v0 }
 0x10b   : > { %556 = vst.msk [vmem:[#allocation4 + $0x500] sm:$0xff] %vm309_vm0, %v24389_v0  ;;  %557 = vst.msk [vmem:[#allocation4 + $0x508] sm:$0xff] %vm309_vm0, %v24389_v0 }
 0x10c   : > { %558 = vst.msk [vmem:[#allocation4 + $0x530] sm:$0xff] %vm309_vm0, %v24389_v0  ;;  %559 = vst.msk [vmem:[#allocation4 + $0x538] sm:$0xff] %vm309_vm0, %v24389_v0 }
 0x10d   : > { %560 = vst.msk [vmem:[#allocation4 + $0x560] sm:$0xff] %vm309_vm0, %v24389_v0  ;;  %561 = vst.msk [vmem:[#allocation4 + $0x568] sm:$0xff] %vm309_vm0, %v24389_v0 }
 0x10e   : > { %562 = vst.msk [vmem:[#allocation4 + $0x590] sm:$0xff] %vm309_vm0, %v24389_v0  ;;  %563 = vst.msk [vmem:[#allocation4 + $0x598] sm:$0xff] %vm309_vm0, %v24389_v0 }
 0x10f   : > { %564 = vst.msk [vmem:[#allocation4 + $0x5c0] sm:$0xff] %vm309_vm0, %v24389_v0  ;;  %565 = vst.msk [vmem:[#allocation4 + $0x5c8] sm:$0xff] %vm309_vm0, %v24389_v0 }
 0x110   : > { %566 = vst.msk [vmem:[#allocation4 + $0x5f0] sm:$0xff] %vm309_vm0, %v24389_v0  ;;  %567 = vst.msk [vmem:[#allocation4 + $0x5f8] sm:$0xff] %vm309_vm0, %v24389_v0 }
 0x111   : > { %24256 = shalt.err (!%p24253_p7)  }
 0x112   : > { %s24257_s19 = scalar_lea.vmem %s306_s29, 16128  ;;  %p24262_p10 = scmp.lt.s32.totalorder %s306_s29, %s306_s29 }
 0x113   : > { %p24258_p12 = scmp.ne.s32.totalorder %s306_s29, %s24257_s19  ;;  %p24263_p1 = scmp.lt.s32.totalorder %s24257_s19, %s24257_s19 }
 0x115   : > { %p24264_p4 = por %p24263_p1, %p24262_p10 }
 0x117   : > { %p24265_p9 = pnand %p24264_p4, %p24258_p12 }
 0x119   : > { %24268 = shalt.err (!%p24265_p9)  }
 0x11a   : > { %308 = dma.hbm_to_vmem [thread:$0]  %s28387_s1, 16128, %s306_s29, [#allocation3]  ;;  %v25168_v1 = vld [vmem:[%s24629_s15] sm:$0xff]  ;;  %v25171_v2 = vld [vmem:[%s24629_s15 + $0x8] sm:$0xff]  ;;  %v25174_v3 = vld [vmem:[%s24629_s15 + $0x10] sm:$0xff] }
 0x11b   : > { %600 = vst.msk [vmem:[#allocation4 + $0x310] sm:$0xff] %vm309_vm0, %v25168_v1  ;;  %601 = vst.msk [vmem:[#allocation4 + $0x318] sm:$0xff] %vm309_vm0, %v25171_v2  ;;  %v25183_v4 = vld [vmem:[%s24629_s15 + $0x18] sm:$0xff]  ;;  %v25186_v5 = vld [vmem:[%s24629_s15 + $0x20] sm:$0xff]  ;;  %s25328_s14 = scalar_lea.vmem [#allocation13], %s24625_s16  ;;  %s25331_s27 = scalar_lea.vmem [#allocation14], %s24625_s16 }
 0x11c   : > { %602 = vst.msk [vmem:[#allocation4 + $0x340] sm:$0xff] %vm309_vm0, %v25174_v3  ;;  %v25189_v6 = vld [vmem:[%s24629_s15 + $0x28] sm:$0xff]  ;;  %603 = vst.msk [vmem:[#allocation4 + $0x348] sm:$0xff] %vm309_vm0, %v25183_v4  ;;  %v25198_v7 = vld [vmem:[%s24629_s15 + $0x30] sm:$0xff] }
 0x11d   : > { %604 = vst.msk [vmem:[#allocation4 + $0x370] sm:$0xff] %vm309_vm0, %v25186_v5  ;;  %605 = vst.msk [vmem:[#allocation4 + $0x378] sm:$0xff] %vm309_vm0, %v25189_v6  ;;  %v25201_v8 = vld [vmem:[%s24629_s15 + $0x38] sm:$0xff]  ;;  %v25204_v9 = vld [vmem:[%s24629_s15 + $0x40] sm:$0xff] }
 0x11e   : > { %28435 = vst [vmem:[#allocation26_spill] sm:$0xff] %v25204_v9  ;;  %606 = vst.msk [vmem:[#allocation4 + $0x3a0] sm:$0xff] %vm309_vm0, %v25198_v7  ;;  %v25213_v10 = vld [vmem:[%s24629_s15 + $0x48] sm:$0xff]  ;;  %v25216_v11 = vld [vmem:[%s24629_s15 + $0x50] sm:$0xff] }
 0x11f   : > { %607 = vst.msk [vmem:[#allocation4 + $0x3a8] sm:$0xff] %vm309_vm0, %v25201_v8  ;;  %608 = vst.msk [vmem:[#allocation4 + $0x3d0] sm:$0xff] %vm309_vm0, %v25204_v9  ;;  %v25219_v12 = vld [vmem:[%s24629_s15 + $0x58] sm:$0xff]  ;;  %v25228_v13 = vld [vmem:[%s24629_s15 + $0x60] sm:$0xff] }
 0x120   : > { %28436 = vst [vmem:[#allocation27_spill] sm:$0xff] %v25213_v10  ;;  %28437 = vst [vmem:[#allocation28_spill] sm:$0xff] %v25219_v12  ;;  %v25231_v14 = vld [vmem:[%s24629_s15 + $0x68] sm:$0xff]  ;;  %v25234_v15 = vld [vmem:[%s24629_s15 + $0x70] sm:$0xff] }
 0x121   : > { %609 = vst.msk [vmem:[#allocation4 + $0x3d8] sm:$0xff] %vm309_vm0, %v25213_v10  ;;  %610 = vst.msk [vmem:[#allocation4 + $0x400] sm:$0xff] %vm309_vm0, %v25216_v11  ;;  %v25243_v16 = vld [vmem:[%s24629_s15 + $0x78] sm:$0xff]  ;;  %v25246_v17 = vld [vmem:[%s24629_s15 + $0x80] sm:$0xff] }
 0x122   : > { %611 = vst.msk [vmem:[#allocation4 + $0x408] sm:$0xff] %vm309_vm0, %v25219_v12  ;;  %28438 = vst [vmem:[#allocation29_spill] sm:$0xff] %v25228_v13  ;;  %v25249_v18 = vld [vmem:[%s24629_s15 + $0x88] sm:$0xff]  ;;  %v25258_v19 = vld [vmem:[%s24629_s15 + $0x90] sm:$0xff] }
 0x123   : > { %28439 = vst [vmem:[#allocation30_spill] sm:$0xff] %v25231_v14  ;;  %28440 = vst [vmem:[#allocation31_spill] sm:$0xff] %v25234_v15  ;;  %v25261_v20 = vld [vmem:[%s24629_s15 + $0x98] sm:$0xff]  ;;  %v25264_v21 = vld [vmem:[%s24629_s15 + $0xa0] sm:$0xff] }
 0x124   : > { %612 = vst.msk [vmem:[#allocation4 + $0x430] sm:$0xff] %vm309_vm0, %v25228_v13  ;;  %613 = vst.msk [vmem:[#allocation4 + $0x438] sm:$0xff] %vm309_vm0, %v25231_v14  ;;  %v25273_v22 = vld [vmem:[%s24629_s15 + $0xa8] sm:$0xff]  ;;  %v25276_v23 = vld [vmem:[%s24629_s15 + $0xb0] sm:$0xff] }
 0x125   : > { %614 = vst.msk [vmem:[#allocation4 + $0x460] sm:$0xff] %vm309_vm0, %v25234_v15  ;;  %28441 = vst [vmem:[#allocation32_spill] sm:$0xff] %v25243_v16  ;;  %v25279_v24 = vld [vmem:[%s24629_s15 + $0xb8] sm:$0xff]  ;;  %v25288_v25 = vld [vmem:[%s24629_s15 + $0xc0] sm:$0xff] }
 0x126   : > { %28442 = vst [vmem:[#allocation33_spill] sm:$0xff] %v25246_v17  ;;  %28443 = vst [vmem:[#allocation34_spill] sm:$0xff] %v25249_v18  ;;  %v25291_v26 = vld [vmem:[%s24629_s15 + $0xc8] sm:$0xff]  ;;  %v25294_v27 = vld [vmem:[%s24629_s15 + $0xd0] sm:$0xff] }
 0x127   : > { %615 = vst.msk [vmem:[#allocation4 + $0x468] sm:$0xff] %vm309_vm0, %v25243_v16  ;;  %616 = vst.msk [vmem:[#allocation4 + $0x490] sm:$0xff] %vm309_vm0, %v25246_v17  ;;  %v25303_v28 = vld [vmem:[%s24629_s15 + $0xd8] sm:$0xff]  ;;  %v25306_v29 = vld [vmem:[%s24629_s15 + $0xe0] sm:$0xff] }
 0x128   : > { %617 = vst.msk [vmem:[#allocation4 + $0x498] sm:$0xff] %vm309_vm0, %v25249_v18  ;;  %28444 = vst [vmem:[#allocation35_spill] sm:$0xff] %v25258_v19  ;;  %v25309_v30 = vld [vmem:[%s24629_s15 + $0xe8] sm:$0xff]  ;;  %v25318_v31 = vld [vmem:[%s24629_s15 + $0xf0] sm:$0xff] }
 0x129   : > { %28445 = vst [vmem:[#allocation36_spill] sm:$0xff] %v25261_v20  ;;  %28446 = vst [vmem:[#allocation37_spill] sm:$0xff] %v25264_v21  ;;  %v25321_v32 = vld [vmem:[%s24629_s15 + $0xf8] sm:$0xff] }
 0x12a   : > { %618 = vst.msk [vmem:[#allocation4 + $0x4c0] sm:$0xff] %vm309_vm0, %v25258_v19  ;;  %619 = vst.msk [vmem:[#allocation4 + $0x4c8] sm:$0xff] %vm309_vm0, %v25261_v20 }
 0x12b   : > { %620 = vst.msk [vmem:[#allocation4 + $0x4f0] sm:$0xff] %vm309_vm0, %v25264_v21  ;;  %28447 = vst [vmem:[#allocation38_spill] sm:$0xff] %v25273_v22 }
 0x12c   : > { %28448 = vst [vmem:[#allocation39_spill] sm:$0xff] %v25276_v23  ;;  %28449 = vst [vmem:[#allocation40_spill] sm:$0xff] %v25279_v24 }
 0x12d   : > { %621 = vst.msk [vmem:[#allocation4 + $0x4f8] sm:$0xff] %vm309_vm0, %v25273_v22  ;;  %622 = vst.msk [vmem:[#allocation4 + $0x520] sm:$0xff] %vm309_vm0, %v25276_v23 }
 0x12e   : > { %623 = vst.msk [vmem:[#allocation4 + $0x528] sm:$0xff] %vm309_vm0, %v25279_v24  ;;  %28450 = vst [vmem:[#allocation41_spill] sm:$0xff] %v25288_v25 }
 0x12f   : > { %28451 = vst [vmem:[#allocation42_spill] sm:$0xff] %v25291_v26  ;;  %28452 = vst [vmem:[#allocation43_spill] sm:$0xff] %v25294_v27 }
 0x130   : > { %624 = vst.msk [vmem:[#allocation4 + $0x550] sm:$0xff] %vm309_vm0, %v25288_v25  ;;  %625 = vst.msk [vmem:[#allocation4 + $0x558] sm:$0xff] %vm309_vm0, %v25291_v26 }
 0x131   : > { %626 = vst.msk [vmem:[#allocation4 + $0x580] sm:$0xff] %vm309_vm0, %v25294_v27  ;;  %28453 = vst [vmem:[#allocation44_spill] sm:$0xff] %v25303_v28 }
 0x132   : > { %28454 = vst [vmem:[#allocation45_spill] sm:$0xff] %v25306_v29  ;;  %28455 = vst [vmem:[#allocation46_spill] sm:$0xff] %v25309_v30 }
 0x133   : > { %627 = vst.msk [vmem:[#allocation4 + $0x588] sm:$0xff] %vm309_vm0, %v25303_v28  ;;  %628 = vst.msk [vmem:[#allocation4 + $0x5b0] sm:$0xff] %vm309_vm0, %v25306_v29 }
 0x134   : > { %629 = vst.msk [vmem:[#allocation4 + $0x5b8] sm:$0xff] %vm309_vm0, %v25309_v30  ;;  %28456 = vst [vmem:[#allocation47_spill] sm:$0xff] %v25318_v31 }
 0x135   : > { %28457 = vst [vmem:[#allocation48_spill] sm:$0xff] %v25321_v32  ;;  %630 = vst.msk [vmem:[#allocation4 + $0x5e0] sm:$0xff] %vm309_vm0, %v25318_v31 }
 0x136   : > { %631 = vst.msk [vmem:[#allocation4 + $0x5e8] sm:$0xff] %vm309_vm0, %v25321_v32 }
 0x137   : > { %24353 = dma.done.wait [#allocation3], 16128 }
 0x138   : > { %24354 = vsyncadd [#allocation3], 4294951168  ;;  %v694_v33 = vld [vmem:[#allocation2 + $0x30] sm:$0xff]  ;;  %v1567_v34 = vld [vmem:[#allocation2 + $0x40] sm:$0xff]  ;;  %s24391_s16 = smov 96   ;;  %s18660_s15 = sshll.u32 %s24452_s25, 12 }
 0x139   : > { %v695_v35 = vld [vmem:[#allocation2 + $0x38] sm:$0xff]  ;;  %19814 = vmatprep.subr.bf16.mxu1 %v694_v33  ;;  %19958 = vmatprep.subr.bf16.mxu0 %v1567_v34  ;;  %v1568_v36 = vld [vmem:[#allocation2 + $0x48] sm:$0xff]  ;;  %v1271_v40 = vld [vmem:[#allocation4 + $0x310] sm:$0xff]  ;;  %s17412_s29 = sshll.u32 %s25328_s14, 4  ;;  %s28229_s10 = scalar_lea.hbm %s28391_s5, %s18660_s15  ;;  %s28231_s29 = int_to_ptr.vmem [resolvable:$true] %s17412_s29 }
 0x13a   : > { %v640_v37 = vld [vmem:[#allocation4 + $0x30f] sm:$0xff]  ;;  %v641_v38 = vld [vmem:[#allocation4 + $0x317] sm:$0xff]  ;;  %19815 = vmatpush3.bf16.msra.mxu1 %v694_v33  ;;  %19959 = vmatpush3.bf16.msra.mxu0 %v1567_v34  ;;  %v642_v42 = vld [vmem:[#allocation4 + $0x33f] sm:$0xff]  ;;  %s17394_s20 = scalar_lea.sflag [#allocation7], %s24622_s2  ;;  %s24269_s11 = scalar_lea.vmem %s28231_s29, 4096 }
 0x13b   : > { %v25333_v39 = vpack.c.bf16 %v641_v38, %v640_v37  ;;  %v1272_v41 = vld [vmem:[#allocation4 + $0x318] sm:$0xff]  ;;  %19816 = vmatprep.subr.bf16.mxu1 %v695_v35  ;;  %19960 = vmatprep.subr.bf16.mxu0 %v1568_v36  ;;  %v643_v44 = vld [vmem:[#allocation4 + $0x347] sm:$0xff]  ;;  %v644_v48 = vld [vmem:[#allocation4 + $0x36f] sm:$0xff]  ;;  %p24270_p0 = scmp.ne.s32.totalorder %s28231_s29, %s24269_s11  ;;  %s24392_s17 = smov [#allocation13]  }
 0x13c   : > { %v25335_v43 = vpack.c.bf16 %v1272_v41, %v1271_v40  ;;  %v1273_v45 = vld [vmem:[#allocation4 + $0x340] sm:$0xff]  ;;  %v1274_v46 = vld [vmem:[#allocation4 + $0x348] sm:$0xff]  ;;  %v645_v49 = vld [vmem:[#allocation4 + $0x377] sm:$0xff]  ;;  %v25341_v50 = vpack.c.bf16 %v643_v44, %v642_v42  ;;  %s24273_s18 = sshll.u32 %s24392_s17, 4  ;;  %s24274_s18 = int_to_ptr.vmem [resolvable:$false] %s24273_s18 }
 0x13d   : > { %19818 = vmatprep.mubr.msk.bf16.mxu1 %vm309_vm0, %v25333_v39  ;;  %v1767_v47 = vld [vmem:[#allocation2 + $0x70] sm:$0xff]  ;;  %v25343_v51 = vpack.c.bf16 %v1274_v46, %v1273_v45  ;;  %v1275_v52 = vld [vmem:[#allocation4 + $0x370] sm:$0xff]  ;;  %v1276_v53 = vld [vmem:[#allocation4 + $0x378] sm:$0xff]  ;;  %v25345_v54 = vpack.c.bf16 %v645_v49, %v644_v48  ;;  %p24271_p11 = pnand %p24270_p0, %p24574_p5  ;;  %s24275_s19 = scalar_lea.vmem %s24274_s18, 8192 }
 0x13e   : > { %19962 = vmatprep.mubr.msk.bf16.mxu0 %vm309_vm0, %v25335_v43  ;;  %19817 = vmatpush3.bf16.msra.mxu1 %v695_v35  ;;  %v25347_v55 = vpack.c.bf16 %v1276_v53, %v1275_v52  ;;  %v646_v56 = vld [vmem:[#allocation4 + $0x39f] sm:$0xff]  ;;  %v647_v57 = vld [vmem:[#allocation4 + $0x3a7] sm:$0xff]  ;;  %v648_v60 = vld [vmem:[#allocation4 + $0x3cf] sm:$0xff]  ;;  %p24276_p13 = scmp.lt.s32.totalorder %s28231_s29, %s24274_s18  ;;  %p24277_p2 = scmp.lt.s32.totalorder %s24275_s19, %s24269_s11 }
 0x13f   : > { %19961 = vmatpush3.bf16.msra.mxu0 %v1568_v36  ;;  %v1277_v58 = vld [vmem:[#allocation4 + $0x3a0] sm:$0xff]  ;;  %v1278_v59 = vld [vmem:[#allocation4 + $0x3a8] sm:$0xff]  ;;  %v649_v61 = vld [vmem:[#allocation4 + $0x3d7] sm:$0xff]  ;;  %v25357_v0 = vpack.c.bf16 %v647_v57, %v646_v56  ;;  %p24272_p8 = pneg %p24271_p11 }
 0x140   : > { %19994 = vmatprep.subr.bf16.mxu0 %v1767_v47  ;;  %v1279_v62 = vld [vmem:[#allocation4 + $0x3d0] sm:$0xff]  ;;  %v1280_v63 = vld [vmem:[#allocation4 + $0x3d8] sm:$0xff]  ;;  %v25359_v33 = vpack.c.bf16 %v1278_v59, %v1277_v58  ;;  %v25361_v34 = vpack.c.bf16 %v649_v61, %v648_v60  ;;  %v1768_v36 = vld [vmem:[#allocation2 + $0x78] sm:$0xff]  ;;  %p24278_p6 = por %p24277_p2, %p24276_p13 }
 0x141   : > { %19819 = vmatmul.mubr.msk.bf16.vlgmr.msra.gmra.mrb[0].mxu1 %vm309_vm0, %v25341_v50  ;;  %v25363_v35 = vpack.c.bf16 %v1280_v63, %v1279_v62  ;;  %v650_v37 = vld [vmem:[#allocation4 + $0x3ff] sm:$0xff]  ;;  %v651_v38 = vld [vmem:[#allocation4 + $0x407] sm:$0xff]  ;;  %v652_v42 = vld [vmem:[#allocation4 + $0x42f] sm:$0xff] }
 0x142   : > { %19963 = vmatmul.mubr.msk.bf16.vlgmr.msra.gmra.mrb[0].mxu0 %vm309_vm0, %v25343_v51  ;;  %19822 = vmatprep.mubr.msk.bf16.mxu1 %vm309_vm0, %v25345_v54  ;;  %v1281_v40 = vld [vmem:[#allocation4 + $0x400] sm:$0xff]  ;;  %v1282_v41 = vld [vmem:[#allocation4 + $0x408] sm:$0xff]  ;;  %v653_v44 = vld [vmem:[#allocation4 + $0x437] sm:$0xff]  ;;  %p24279_p3 = pnand %p24278_p6, %p24272_p8 }
 0x143   : > { %19995 = vmatpush3.bf16.msra.mxu0 %v1767_v47  ;;  %19966 = vmatprep.mubr.msk.bf16.mxu0 %vm309_vm0, %v25347_v55  ;;  %v1283_v45 = vld [vmem:[#allocation4 + $0x430] sm:$0xff]  ;;  %v1284_v46 = vld [vmem:[#allocation4 + $0x438] sm:$0xff]  ;;  %v25373_v47 = vpack.c.bf16 %v651_v38, %v650_v37  ;;  %v25375_v48 = vpack.c.bf16 %v1282_v41, %v1281_v40  ;;  %v25377_v49 = vpack.c.bf16 %v653_v44, %v652_v42  ;;  %v655_v59 = vld [vmem:[#allocation4 + $0x467] sm:$0xff] }
 0x144   : > { %19996 = vmatprep.subr.bf16.mxu0 %v1768_v36  ;;  %v25379_v52 = vpack.c.bf16 %v1284_v46, %v1283_v45  ;;  %v690_v53 = vld [vmem:[#allocation2] sm:$0xff]  ;;  %v691_v56 = vld [vmem:[#allocation2 + $0x8] sm:$0xff]  ;;  %v1285_v60 = vld [vmem:[#allocation4 + $0x460] sm:$0xff] }
 0x145   : > { %19850 = vmatprep.subr.bf16.mxu1 %v690_v53  ;;  %v25381_v57 = vld [vmem:[#allocation2 + $0x20] sm:$0xff]  ;;  %v654_v58 = vld [vmem:[#allocation4 + $0x45f] sm:$0xff]  ;;  %v1286_v61 = vld [vmem:[#allocation4 + $0x468] sm:$0xff] }
 0x146   : > { %19851 = vmatpush3.bf16.msra.mxu1 %v690_v53  ;;  %v656_v62 = vld [vmem:[#allocation4 + $0x48f] sm:$0xff]  ;;  %v1288_v38 = vld [vmem:[#allocation4 + $0x498] sm:$0xff]  ;;  %v25394_v40 = vpack.c.bf16 %v655_v59, %v654_v58  ;;  %v25396_v41 = vpack.c.bf16 %v1286_v61, %v1285_v60  ;;  %v659_v46 = vld [vmem:[#allocation4 + $0x4c7] sm:$0xff] }
 0x147   : > { %19997 = vmatpush3.bf16.msra.mxu0 %v1768_v36  ;;  %v25391_v63 = vld [vmem:[#allocation2 + $0x60] sm:$0xff]  ;;  %19852 = vmatprep.subr.bf16.mxu1 %v691_v56  ;;  %v658_v45 = vld [vmem:[#allocation4 + $0x4bf] sm:$0xff]  ;;  %v663_v32 = vld [vmem:[#allocation4 + $0x527] sm:$0xff] }
 0x148   : > { %v657_v36 = vld [vmem:[#allocation4 + $0x497] sm:$0xff]  ;;  %20030 = vmatprep.subr.bf16.mxu0 %v25381_v57  ;;  %v1289_v53 = vld [vmem:[#allocation4 + $0x4c0] sm:$0xff]  ;;  %v660_v58 = vld [vmem:[#allocation4 + $0x4ef] sm:$0xff] }
 0x149   : > { %19823 = vmatmul.mubr.msk.bf16.gmra.mrb[4].mxu1 %vm309_vm0, %v25357_v0  ;;  %v1287_v37 = vld [vmem:[#allocation4 + $0x490] sm:$0xff]  ;;  %v25399_v42 = vpack.c.bf16 %v657_v36, %v656_v62  ;;  %v1292_v61 = vld [vmem:[#allocation4 + $0x4f8] sm:$0xff]  ;;  %v25411_v62 = vpack.c.bf16 %v659_v46, %v658_v45  ;;  %v1293_v45 = vld [vmem:[#allocation4 + $0x520] sm:$0xff] }
 0x14a   : > { %19967 = vmatmul.mubr.msk.bf16.gmra.mrb[4].mxu0 %vm309_vm0, %v25359_v33  ;;  %19826 = vmatprep.mubr.msk.bf16.mxu1 %vm309_vm0, %v25361_v34  ;;  %v25401_v44 = vpack.c.bf16 %v1288_v38, %v1287_v37  ;;  %v661_v59 = vld [vmem:[#allocation4 + $0x4f7] sm:$0xff]  ;;  %v662_v30 = vld [vmem:[#allocation4 + $0x51f] sm:$0xff]  ;;  %v1294_v46 = vld [vmem:[#allocation4 + $0x528] sm:$0xff] }
 0x14b   : > { %19970 = vmatprep.mubr.msk.bf16.mxu0 %vm309_vm0, %v25363_v35  ;;  %19853 = vmatpush3.bf16.msra.mxu1 %v691_v56  ;;  %v1290_v56 = vld [vmem:[#allocation4 + $0x4c8] sm:$0xff]  ;;  %v1291_v60 = vld [vmem:[#allocation4 + $0x4f0] sm:$0xff]  ;;  %v25415_v37 = vpack.c.bf16 %v661_v59, %v660_v58  ;;  %v1296_v59 = vld [vmem:[#allocation4 + $0x558] sm:$0xff] }
 0x14c   : > { %19886 = vmatprep.subr.bf16.mxu1 %v25391_v63  ;;  %v25413_v36 = vpack.c.bf16 %v1290_v56, %v1289_v53  ;;  %v25417_v38 = vpack.c.bf16 %v1292_v61, %v1291_v60  ;;  %v664_v53 = vld [vmem:[#allocation4 + $0x54f] sm:$0xff]  ;;  %v665_v56 = vld [vmem:[#allocation4 + $0x557] sm:$0xff]  ;;  %v25427_v60 = vpack.c.bf16 %v663_v32, %v662_v30  ;;  %v25429_v61 = vpack.c.bf16 %v1294_v46, %v1293_v45  ;;  %v666_v26 = vld [vmem:[#allocation4 + $0x57f] sm:$0xff] }
 0x14d   : > { %v1295_v58 = vld [vmem:[#allocation4 + $0x550] sm:$0xff]  ;;  %v25431_v29 = vpack.c.bf16 %v665_v56, %v664_v53  ;;  %v667_v28 = vld [vmem:[#allocation4 + $0x587] sm:$0xff]  ;;  %v1300_v56 = vld [vmem:[#allocation4 + $0x5b8] sm:$0xff] }
 0x14e   : > { %v25433_v31 = vpack.c.bf16 %v1296_v59, %v1295_v58  ;;  %v1297_v30 = vld [vmem:[#allocation4 + $0x580] sm:$0xff]  ;;  %v1298_v32 = vld [vmem:[#allocation4 + $0x588] sm:$0xff]  ;;  %v669_v46 = vld [vmem:[#allocation4 + $0x5b7] sm:$0xff]  ;;  %v25443_v58 = vpack.c.bf16 %v667_v28, %v666_v26 }
 0x14f   : > { %v668_v45 = vld [vmem:[#allocation4 + $0x5af] sm:$0xff]  ;;  %v25445_v59 = vpack.c.bf16 %v1298_v32, %v1297_v30  ;;  %v670_v22 = vld [vmem:[#allocation4 + $0x5df] sm:$0xff]  ;;  %v671_v26 = vld [vmem:[#allocation4 + $0x5e7] sm:$0xff] }
 0x150   : > { %v1299_v53 = vld [vmem:[#allocation4 + $0x5b0] sm:$0xff]  ;;  %v25447_v25 = vpack.c.bf16 %v669_v46, %v668_v45  ;;  %v1301_v28 = vld [vmem:[#allocation4 + $0x5e0] sm:$0xff]  ;;  %v1302_v30 = vld [vmem:[#allocation4 + $0x5e8] sm:$0xff]  ;;  %v25459_v46 = vpack.c.bf16 %v671_v26, %v670_v22 }
 0x151   : > { %19827 = vmatmul.mubr.msk.bf16.gmra.mrb[8].mxu1 %vm309_vm0, %v25373_v47  ;;  %v25449_v27 = vpack.c.bf16 %v1300_v56, %v1299_v53  ;;  %v638_v32 = vld [vmem:[#allocation4 + $0x2df] sm:$0xff]  ;;  %v639_v45 = vld [vmem:[#allocation4 + $0x2e7] sm:$0xff]  ;;  %v1565_v53 = vpack.c.bf16 %v1302_v30, %v1301_v28 }
 0x152   : > { %19971 = vmatmul.mubr.msk.bf16.gmra.mrb[8].mxu0 %vm309_vm0, %v25375_v48  ;;  %19830 = vmatprep.mubr.msk.bf16.mxu1 %vm309_vm0, %v25377_v49  ;;  %v25461_v56 = vpack.c.bf16 %v639_v45, %v638_v32  ;;  %v2019_v24 = vld [vmem:[#allocation2 + $0x28] sm:$0xff]  ;;  %v2263_v26 = vld [vmem:[#allocation2 + $0x50] sm:$0xff]  ;;  %v1966_v28 = vld [vmem:[#allocation4 + $0x2e9] sm:$0xff] }
 0x153   : > { %19974 = vmatprep.mubr.msk.bf16.mxu0 %vm309_vm0, %v25379_v52  ;;  %v1072_v22 = vld [vmem:[#allocation2 + $0x68] sm:$0xff]  ;;  %v1969_v21 = vld [vmem:[#allocation4 + $0x341] sm:$0xff] }
 0x154   : > { %v1967_v45 = vld [vmem:[#allocation4 + $0x311] sm:$0xff]  ;;  %v10157_v10 = vld [vmem:[#allocation2 + $0x250] sm:$0xff] }
 0x159   : > { %19831 = vmatmul.mubr.msk.bf16.gmra.mrb[12].mxu1 %vm309_vm0, %v25394_v40 }
 0x15a   : > { %19975 = vmatmul.mubr.msk.bf16.gmra.mrb[12].mxu0 %vm309_vm0, %v25396_v41  ;;  %19834 = vmatprep.mubr.msk.bf16.mxu1 %vm309_vm0, %v25399_v42 }
 0x15b   : > { %19978 = vmatprep.mubr.msk.bf16.mxu0 %vm309_vm0, %v25401_v44 }
 0x161   : > { %19835 = vmatmul.mubr.msk.bf16.gmra.mrb[16].mxu1 %vm309_vm0, %v25411_v62 }
 0x162   : > { %19979 = vmatmul.mubr.msk.bf16.gmra.mrb[16].mxu0 %vm309_vm0, %v25413_v36  ;;  %19838 = vmatprep.mubr.msk.bf16.mxu1 %vm309_vm0, %v25415_v37 }
 0x163   : > { %19982 = vmatprep.mubr.msk.bf16.mxu0 %vm309_vm0, %v25417_v38 }
 0x169   : > { %19839 = vmatmul.mubr.msk.bf16.gmra.mrb[20].mxu1 %vm309_vm0, %v25427_v60 }
 0x16a   : > { %19983 = vmatmul.mubr.msk.bf16.gmra.mrb[20].mxu0 %vm309_vm0, %v25429_v61  ;;  %19842 = vmatprep.mubr.msk.bf16.mxu1 %vm309_vm0, %v25431_v29 }
 0x16b   : > { %19986 = vmatprep.mubr.msk.bf16.mxu0 %vm309_vm0, %v25433_v31 }
 0x171   : > { %19843 = vmatmul.mubr.msk.bf16.gmra.mrb[24].mxu1 %vm309_vm0, %v25443_v58 }
 0x172   : > { %19987 = vmatmul.mubr.msk.bf16.gmra.mrb[24].mxu0 %vm309_vm0, %v25445_v59  ;;  %19846 = vmatprep.mubr.msk.bf16.mxu1 %vm309_vm0, %v25447_v25 }
 0x173   : > { %19990 = vmatprep.mubr.msk.bf16.mxu0 %vm309_vm0, %v25449_v27 }
 0x179   : > { %19847 = vmatmul.mubr.msk.bf16.gmra.mrb[28].mxu1 %vm309_vm0, %v25459_v46 }
 0x17a   : > { %19991 = vmatmul.mubr.msk.bf16.gmra.mrb[28].mxu0 %vm309_vm0, %v1565_v53  ;;  %19854 = vmatprep.mubr.msk.bf16.mxu1 %vm309_vm0, %v25461_v56 }
 0x17b   : > { %19998 = vmatprep.mubr.msk.bf16.mxu0 %vm309_vm0, %v25343_v51 }
 0x181   : > { %19855 = vmatmul.mubr.msk.bf16.vlgmr.msra.gmra.mrb[0].mxu1 %vm309_vm0, %v25333_v39  ;;  %v1322_v39 = vld [vmem:[#allocation2 + $0x10] sm:$0xff] }
 0x182   : > { %19999 = vmatmul.mubr.msk.bf16.vlgmr.msra.gmra.mrb[0].mxu0 %vm309_vm0, %v25347_v55  ;;  %19858 = vmatprep.mubr.msk.bf16.mxu1 %vm309_vm0, %v25341_v50 }
 0x183   : > { %20031 = vmatpush3.bf16.msra.mxu0 %v25381_v57  ;;  %20002 = vmatprep.mubr.msk.bf16.mxu0 %vm309_vm0, %v25359_v33  ;;  %v1304_v57 = vld [vmem:[#allocation4 + $0x618] sm:$0xff] }
 0x184   : > { %20032 = vmatprep.subr.bf16.mxu0 %v2019_v24  ;;  %19887 = vmatpush3.bf16.msra.mxu1 %v25391_v63  ;;  %v1965_v63 = vld [vmem:[#allocation4 + $0x2e1] sm:$0xff] }
 0x185   : > { %19888 = vmatprep.subr.bf16.mxu1 %v1072_v22  ;;  %v2001_v32 = vpack.c.bf16 %v1966_v28, %v1965_v63  ;;  %v1323_v63 = vld [vmem:[#allocation2 + $0x18] sm:$0xff] }
 0x186   : > { %v1973_v28 = vld [vmem:[#allocation4 + $0x3a1] sm:$0xff] }
 0x187   : > { %20033 = vmatpush3.bf16.msra.mxu0 %v2019_v24  ;;  %v1303_v24 = vld [vmem:[#allocation4 + $0x610] sm:$0xff] }
 0x188   : > { %20066 = vmatprep.subr.bf16.mxu0 %v2263_v26  ;;  %19889 = vmatpush3.bf16.msra.mxu1 %v1072_v22  ;;  %v1765_v30 = vpack.c.bf16 %v1304_v57, %v1303_v24  ;;  %v1968_v22 = vld [vmem:[#allocation4 + $0x319] sm:$0xff]  ;;  %v2264_v24 = vld [vmem:[#allocation2 + $0x58] sm:$0xff] }
 0x189   : > { %19859 = vmatmul.mubr.msk.bf16.gmra.mrb[4].mxu1 %vm309_vm0, %v25345_v54  ;;  %19922 = vmatprep.subr.bf16.mxu1 %v1322_v39  ;;  %v25533_v23 = vpack.c.bf16 %v1968_v22, %v1967_v45  ;;  %v1972_v57 = vld [vmem:[#allocation4 + $0x379] sm:$0xff]  ;;  %v1978_v45 = vld [vmem:[#allocation4 + $0x409] sm:$0xff] }
 0x18a   : > { %20003 = vmatmul.mubr.msk.bf16.gmra.mrb[4].mxu0 %vm309_vm0, %v25363_v35  ;;  %19862 = vmatprep.mubr.msk.bf16.mxu1 %vm309_vm0, %v25357_v0 }
 0x18b   : > { %20006 = vmatprep.mubr.msk.bf16.mxu0 %vm309_vm0, %v25375_v48 }
 0x191   : > { %19863 = vmatmul.mubr.msk.bf16.gmra.mrb[8].mxu1 %vm309_vm0, %v25361_v34 }
 0x192   : > { %20007 = vmatmul.mubr.msk.bf16.gmra.mrb[8].mxu0 %vm309_vm0, %v25379_v52  ;;  %19866 = vmatprep.mubr.msk.bf16.mxu1 %vm309_vm0, %v25373_v47 }
 0x193   : > { %20010 = vmatprep.mubr.msk.bf16.mxu0 %vm309_vm0, %v25396_v41 }
 0x199   : > { %19867 = vmatmul.mubr.msk.bf16.gmra.mrb[12].mxu1 %vm309_vm0, %v25377_v49 }
 0x19a   : > { %20011 = vmatmul.mubr.msk.bf16.gmra.mrb[12].mxu0 %vm309_vm0, %v25401_v44  ;;  %19870 = vmatprep.mubr.msk.bf16.mxu1 %vm309_vm0, %v25394_v40 }
 0x19b   : > { %20014 = vmatprep.mubr.msk.bf16.mxu0 %vm309_vm0, %v25413_v36 }
 0x1a1   : > { %19871 = vmatmul.mubr.msk.bf16.gmra.mrb[16].mxu1 %vm309_vm0, %v25399_v42 }
 0x1a2   : > { %20015 = vmatmul.mubr.msk.bf16.gmra.mrb[16].mxu0 %vm309_vm0, %v25417_v38  ;;  %19874 = vmatprep.mubr.msk.bf16.mxu1 %vm309_vm0, %v25411_v62 }
 0x1a3   : > { %20018 = vmatprep.mubr.msk.bf16.mxu0 %vm309_vm0, %v25429_v61 }
 0x1a9   : > { %19875 = vmatmul.mubr.msk.bf16.gmra.mrb[20].mxu1 %vm309_vm0, %v25415_v37 }
 0x1aa   : > { %20019 = vmatmul.mubr.msk.bf16.gmra.mrb[20].mxu0 %vm309_vm0, %v25433_v31  ;;  %19878 = vmatprep.mubr.msk.bf16.mxu1 %vm309_vm0, %v25427_v60 }
 0x1ab   : > { %20022 = vmatprep.mubr.msk.bf16.mxu0 %vm309_vm0, %v25445_v59 }
 0x1b1   : > { %19879 = vmatmul.mubr.msk.bf16.gmra.mrb[24].mxu1 %vm309_vm0, %v25431_v29 }
 0x1b2   : > { %20023 = vmatmul.mubr.msk.bf16.gmra.mrb[24].mxu0 %vm309_vm0, %v25449_v27  ;;  %19882 = vmatprep.mubr.msk.bf16.mxu1 %vm309_vm0, %v25443_v58 }
 0x1b3   : > { %20026 = vmatprep.mubr.msk.bf16.mxu0 %vm309_vm0, %v1565_v53  ;;  %v1970_v53 = vld [vmem:[#allocation4 + $0x349] sm:$0xff] }
 0x1b4   : > { %v25535_v18 = vpack.c.bf16 %v1970_v53, %v1969_v21  ;;  %v1974_v21 = vld [vmem:[#allocation4 + $0x3a9] sm:$0xff] }
 0x1b9   : > { %19883 = vmatmul.mubr.msk.bf16.gmra.mrb[28].mxu1 %vm309_vm0, %v25447_v25 }
 0x1ba   : > { %20027 = vmatmul.mubr.msk.bf16.gmra.mrb[28].mxu0 %vm309_vm0, %v1765_v30  ;;  %19890 = vmatprep.mubr.msk.bf16.mxu1 %vm309_vm0, %v25341_v50  ;;  %v1971_v50 = vld [vmem:[#allocation4 + $0x371] sm:$0xff] }
 0x1bb   : > { %20034 = vmatprep.mubr.msk.bf16.mxu0 %vm309_vm0, %v2001_v32  ;;  %v25545_v30 = vld [vmem:[#allocation2 + $0x80] sm:$0xff]  ;;  %v25549_v32 = vpack.c.bf16 %v1974_v21, %v1973_v28  ;;  %v1985_v28 = vld [vmem:[#allocation4 + $0x4c1] sm:$0xff] }
 0x1bc   : > { %v1986_v21 = vld [vmem:[#allocation4 + $0x4c9] sm:$0xff] }
 0x1c1   : > { %19891 = vmatmul.mubr.msk.bf16.vlgmr.msra.gmra.mrb[0].mxu1 %vm309_vm0, %v25345_v54  ;;  %v25547_v54 = vpack.c.bf16 %v1972_v57, %v1971_v50  ;;  %v1982_v50 = vld [vmem:[#allocation4 + $0x469] sm:$0xff] }
 0x1c2   : > { %20035 = vmatmul.mubr.msk.bf16.vlgmr.msra.gmra.mrb[0].mxu0 %vm309_vm0, %v25533_v23  ;;  %19894 = vmatprep.mubr.msk.bf16.mxu1 %vm309_vm0, %v25357_v0  ;;  %v1975_v0 = vld [vmem:[#allocation4 + $0x3d1] sm:$0xff] }
 0x1c3   : > { %20067 = vmatpush3.bf16.msra.mxu0 %v2263_v26  ;;  %20038 = vmatprep.mubr.msk.bf16.mxu0 %vm309_vm0, %v25535_v18  ;;  %v1976_v26 = vld [vmem:[#allocation4 + $0x3d9] sm:$0xff] }
 0x1c4   : > { %20068 = vmatprep.subr.bf16.mxu0 %v2264_v24  ;;  %19923 = vmatpush3.bf16.msra.mxu1 %v1322_v39  ;;  %v1977_v39 = vld [vmem:[#allocation4 + $0x401] sm:$0xff]  ;;  %v25560_v22 = vpack.c.bf16 %v1976_v26, %v1975_v0  ;;  %v25586_v26 = vpack.c.bf16 %v1986_v21, %v1985_v28  ;;  %v1995_v28 = vld [vmem:[#allocation4 + $0x5b1] sm:$0xff]  ;;  %v1996_v21 = vld [vmem:[#allocation4 + $0x5b9] sm:$0xff] }
 0x1c5   : > { %19924 = vmatprep.subr.bf16.mxu1 %v1323_v63  ;;  %v25562_v53 = vpack.c.bf16 %v1978_v45, %v1977_v39  ;;  %v1989_v39 = vld [vmem:[#allocation4 + $0x521] sm:$0xff]  ;;  %v1990_v45 = vld [vmem:[#allocation4 + $0x529] sm:$0xff] }
 0x1c7   : > { %20069 = vmatpush3.bf16.msra.mxu0 %v2264_v24  ;;  %v1981_v24 = vld [vmem:[#allocation4 + $0x461] sm:$0xff] }
 0x1c8   : > { %20102 = vmatprep.subr.bf16.mxu0 %v25545_v30  ;;  %19925 = vmatpush3.bf16.msra.mxu1 %v1323_v63  ;;  %v25574_v63 = vpack.c.bf16 %v1982_v50, %v1981_v24  ;;  %v1993_v24 = vld [vmem:[#allocation4 + $0x581] sm:$0xff]  ;;  %v1994_v50 = vld [vmem:[#allocation4 + $0x589] sm:$0xff] }
 0x1c9   : > { %19895 = vmatmul.mubr.msk.bf16.gmra.mrb[4].mxu1 %vm309_vm0, %v25361_v34  ;;  %v1979_v34 = vld [vmem:[#allocation4 + $0x431] sm:$0xff] }
 0x1ca   : > { %20039 = vmatmul.mubr.msk.bf16.gmra.mrb[4].mxu0 %vm309_vm0, %v25547_v54  ;;  %19898 = vmatprep.mubr.msk.bf16.mxu1 %vm309_vm0, %v25373_v47  ;;  %v1980_v47 = vld [vmem:[#allocation4 + $0x439] sm:$0xff] }
 0x1cb   : > { %20042 = vmatprep.mubr.msk.bf16.mxu0 %vm309_vm0, %v25549_v32  ;;  %v25572_v57 = vpack.c.bf16 %v1980_v47, %v1979_v34  ;;  %v25598_v47 = vpack.c.bf16 %v1990_v45, %v1989_v39  ;;  %v2016_v45 = vpack.c.bf16 %v1996_v21, %v1995_v28 }
 0x1d1   : > { %19899 = vmatmul.mubr.msk.bf16.gmra.mrb[8].mxu1 %vm309_vm0, %v25377_v49  ;;  %v1983_v49 = vld [vmem:[#allocation4 + $0x491] sm:$0xff] }
 0x1d2   : > { %20043 = vmatmul.mubr.msk.bf16.gmra.mrb[8].mxu0 %vm309_vm0, %v25560_v22  ;;  %19902 = vmatprep.mubr.msk.bf16.mxu1 %vm309_vm0, %v25394_v40  ;;  %v1984_v40 = vld [vmem:[#allocation4 + $0x499] sm:$0xff] }
 0x1d3   : > { %20046 = vmatprep.mubr.msk.bf16.mxu0 %vm309_vm0, %v25562_v53  ;;  %v25584_v0 = vpack.c.bf16 %v1984_v40, %v1983_v49  ;;  %v25610_v40 = vpack.c.bf16 %v1994_v50, %v1993_v24 }
 0x1d9   : > { %19903 = vmatmul.mubr.msk.bf16.gmra.mrb[12].mxu1 %vm309_vm0, %v25399_v42  ;;  %v1987_v42 = vld [vmem:[#allocation4 + $0x4f1] sm:$0xff] }
 0x1da   : > { %20047 = vmatmul.mubr.msk.bf16.gmra.mrb[12].mxu0 %vm309_vm0, %v25572_v57  ;;  %19906 = vmatprep.mubr.msk.bf16.mxu1 %vm309_vm0, %v25411_v62  ;;  %v1988_v62 = vld [vmem:[#allocation4 + $0x4f9] sm:$0xff] }
 0x1db   : > { %20050 = vmatprep.mubr.msk.bf16.mxu0 %vm309_vm0, %v25574_v63  ;;  %v25596_v34 = vpack.c.bf16 %v1988_v62, %v1987_v42  ;;  %v1269_v42 = vld [vmem:[#allocation4 + $0x2e0] sm:$0xff]  ;;  %v1270_v62 = vld [vmem:[#allocation4 + $0x2e8] sm:$0xff] }
 0x1e1   : > { %19907 = vmatmul.mubr.msk.bf16.gmra.mrb[16].mxu1 %vm309_vm0, %v25415_v37  ;;  %v1991_v37 = vld [vmem:[#allocation4 + $0x551] sm:$0xff] }
 0x1e2   : > { %20051 = vmatmul.mubr.msk.bf16.gmra.mrb[16].mxu0 %vm309_vm0, %v25584_v0  ;;  %19910 = vmatprep.mubr.msk.bf16.mxu1 %vm309_vm0, %v25427_v60  ;;  %v1992_v60 = vld [vmem:[#allocation4 + $0x559] sm:$0xff] }
 0x1e3   : > { %20054 = vmatprep.mubr.msk.bf16.mxu0 %vm309_vm0, %v25586_v26  ;;  %v25608_v49 = vpack.c.bf16 %v1992_v60, %v1991_v37  ;;  %v25622_v37 = vpack.c.bf16 %v1270_v62, %v1269_v42 }
 0x1e9   : > { %19911 = vmatmul.mubr.msk.bf16.gmra.mrb[20].mxu1 %vm309_vm0, %v25431_v29  ;;  %v672_v29 = vld [vmem:[#allocation4 + $0x60f] sm:$0xff] }
 0x1ea   : > { %20055 = vmatmul.mubr.msk.bf16.gmra.mrb[20].mxu0 %vm309_vm0, %v25596_v34  ;;  %19914 = vmatprep.mubr.msk.bf16.mxu1 %vm309_vm0, %v25443_v58  ;;  %v673_v58 = vld [vmem:[#allocation4 + $0x617] sm:$0xff] }
 0x1eb   : > { %20058 = vmatprep.mubr.msk.bf16.mxu0 %vm309_vm0, %v25598_v47  ;;  %v25620_v39 = vpack.c.bf16 %v673_v58, %v672_v29 }
 0x1f1   : > { %19915 = vmatmul.mubr.msk.bf16.gmra.mrb[24].mxu1 %vm309_vm0, %v25447_v25  ;;  %v2464_v25 = vld [vmem:[#allocation2 + $0x88] sm:$0xff] }
 0x1f2   : > { %20059 = vmatmul.mubr.msk.bf16.gmra.mrb[24].mxu0 %vm309_vm0, %v25608_v49  ;;  %19918 = vmatprep.mubr.msk.bf16.mxu1 %vm309_vm0, %v25459_v46 }
 0x1f3   : > { %20062 = vmatprep.mubr.msk.bf16.mxu0 %vm309_vm0, %v25610_v40 }
 0x1f9   : > { %19919 = vmatmul.mubr.msk.bf16.gmra.mrb[28].mxu1 %vm309_vm0, %v25620_v39 }
 0x1fa   : > { %20063 = vmatmul.mubr.msk.bf16.gmra.mrb[28].mxu0 %vm309_vm0, %v2016_v45  ;;  %19926 = vmatprep.mubr.msk.bf16.mxu1 %vm309_vm0, %v25622_v37 }
 0x1fb   : > { %20070 = vmatprep.mubr.msk.bf16.mxu0 %vm309_vm0, %v25533_v23  ;;  %v1997_v23 = vld [vmem:[#allocation4 + $0x5e1] sm:$0xff] }
 0x201   : > { %19927 = vmatmul.mubr.msk.bf16.vlgmr.msra.gmra.mrb[0].mxu1 %vm309_vm0, %v25335_v43  ;;  %v1998_v43 = vld [vmem:[#allocation4 + $0x5e9] sm:$0xff] }
 0x202   : > { %20071 = vmatmul.mubr.msk.bf16.vlgmr.msra.gmra.mrb[0].mxu0 %vm309_vm0, %v25535_v18  ;;  %19930 = vmatprep.mubr.msk.bf16.mxu1 %vm309_vm0, %v25343_v51  ;;  %v2261_v51 = vpack.c.bf16 %v1998_v43, %v1997_v23  ;;  %v25770_v23 = vld [vmem:[#allocation8] ss:$0 sm:$0xff] }
 0x203   : > { %20103 = vmatpush3.bf16.msra.mxu0 %v25545_v30  ;;  %20074 = vmatprep.mubr.msk.bf16.mxu0 %vm309_vm0, %v25547_v54 }
 0x204   : > { %20104 = vmatprep.subr.bf16.mxu0 %v2464_v25 }
 0x207   : > { %20105 = vmatpush3.bf16.msra.mxu0 %v2464_v25 }
 0x209   : > { %19931 = vmatmul.mubr.msk.bf16.gmra.mrb[4].mxu1 %vm309_vm0, %v25347_v55 }
 0x20a   : > { %20075 = vmatmul.mubr.msk.bf16.gmra.mrb[4].mxu0 %vm309_vm0, %v25549_v32  ;;  %19934 = vmatprep.mubr.msk.bf16.mxu1 %vm309_vm0, %v25359_v33  ;;  %v2822_v33 = vld [vmem:[#allocation2 + $0xc8] sm:$0xff] }
 0x20b   : > { %20078 = vmatprep.mubr.msk.bf16.mxu0 %vm309_vm0, %v25560_v22 }
 0x211   : > { %19935 = vmatmul.mubr.msk.bf16.gmra.mrb[8].mxu1 %vm309_vm0, %v25363_v35  ;;  %v25719_v35 = vld [vmem:[#allocation2 + $0x90] sm:$0xff] }
 0x212   : > { %20079 = vmatmul.mubr.msk.bf16.gmra.mrb[8].mxu0 %vm309_vm0, %v25562_v53  ;;  %19938 = vmatprep.mubr.msk.bf16.mxu1 %vm309_vm0, %v25375_v48 }
 0x213   : > { %20082 = vmatprep.mubr.msk.bf16.mxu0 %vm309_vm0, %v25572_v57 }
 0x219   : > { %19939 = vmatmul.mubr.msk.bf16.gmra.mrb[12].mxu1 %vm309_vm0, %v25379_v52 }
 0x21a   : > { %20083 = vmatmul.mubr.msk.bf16.gmra.mrb[12].mxu0 %vm309_vm0, %v25574_v63  ;;  %19942 = vmatprep.mubr.msk.bf16.mxu1 %vm309_vm0, %v25396_v41 }
 0x21b   : > { %20086 = vmatprep.mubr.msk.bf16.mxu0 %vm309_vm0, %v25584_v0 }
 0x221   : > { %19943 = vmatmul.mubr.msk.bf16.gmra.mrb[16].mxu1 %vm309_vm0, %v25401_v44 }
 0x222   : > { %20087 = vmatmul.mubr.msk.bf16.gmra.mrb[16].mxu0 %vm309_vm0, %v25586_v26  ;;  %19946 = vmatprep.mubr.msk.bf16.mxu1 %vm309_vm0, %v25413_v36 }
 0x223   : > { %20090 = vmatprep.mubr.msk.bf16.mxu0 %vm309_vm0, %v25596_v34 }
 0x229   : > { %19947 = vmatmul.mubr.msk.bf16.gmra.mrb[20].mxu1 %vm309_vm0, %v25417_v38 }
 0x22a   : > { %20091 = vmatmul.mubr.msk.bf16.gmra.mrb[20].mxu0 %vm309_vm0, %v25598_v47  ;;  %19950 = vmatprep.mubr.msk.bf16.mxu1 %vm309_vm0, %v25429_v61 }
 0x22b   : > { %20094 = vmatprep.mubr.msk.bf16.mxu0 %vm309_vm0, %v25608_v49 }
 0x231   : > { %19951 = vmatmul.mubr.msk.bf16.gmra.mrb[24].mxu1 %vm309_vm0, %v25433_v31  ;;  %v2000_v31 = vld [vmem:[#allocation4 + $0x619] sm:$0xff] }
 0x232   : > { %20095 = vmatmul.mubr.msk.bf16.gmra.mrb[24].mxu0 %vm309_vm0, %v25610_v40  ;;  %19954 = vmatprep.mubr.msk.bf16.mxu1 %vm309_vm0, %v25445_v59 }
 0x233   : > { %20098 = vmatprep.mubr.msk.bf16.mxu0 %vm309_vm0, %v2016_v45 }
 0x239   : > { %19955 = vmatmul.mubr.msk.bf16.gmra.mrb[28].mxu1 %vm309_vm0, %v25449_v27  ;;  %v1999_v27 = vld [vmem:[#allocation4 + $0x611] sm:$0xff] }
 0x23a   : > { %20099 = vmatmul.mubr.msk.bf16.gmra.mrb[28].mxu0 %vm309_vm0, %v2261_v51  ;;  %v2461_v55 = vpack.c.bf16 %v2000_v31, %v1999_v27 }
 0x23b   : > { %20106 = vmatprep.mubr.msk.bf16.mxu0 %vm309_vm0, %v25535_v18  ;;  %v2821_v18 = vld [vmem:[#allocation2 + $0xc0] sm:$0xff] }
 0x23c   : > { %20138 = vmatprep.subr.bf16.mxu1 %v2821_v18 }
 0x23d   : > { %20139 = vmatpush3.bf16.msra.mxu1 %v2821_v18 }
 0x23e   : > { %20140 = vmatprep.subr.bf16.mxu1 %v2822_v33 }
 0x241   : > { %20141 = vmatpush3.bf16.msra.mxu1 %v2822_v33 }
 0x242   : > { %20107 = vmatmul.mubr.msk.bf16.vlgmr.msra.gmra.mrb[0].mxu0 %vm309_vm0, %v25547_v54  ;;  %20174 = vmatprep.subr.bf16.mxu1 %v25719_v35 }
 0x243   : > { %20110 = vmatprep.mubr.msk.bf16.mxu0 %vm309_vm0, %v25549_v32 }
 0x24a   : > { %20111 = vmatmul.mubr.msk.bf16.gmra.mrb[4].mxu0 %vm309_vm0, %v25560_v22 }
 0x24b   : > { %20114 = vmatprep.mubr.msk.bf16.mxu0 %vm309_vm0, %v25562_v53 }
 0x252   : > { %20115 = vmatmul.mubr.msk.bf16.gmra.mrb[8].mxu0 %vm309_vm0, %v25572_v57 }
 0x253   : > { %20118 = vmatprep.mubr.msk.bf16.mxu0 %vm309_vm0, %v25574_v63 }
 0x25a   : > { %20119 = vmatmul.mubr.msk.bf16.gmra.mrb[12].mxu0 %vm309_vm0, %v25584_v0 }
 0x25b   : > { %20122 = vmatprep.mubr.msk.bf16.mxu0 %vm309_vm0, %v25586_v26 }
 0x262   : > { %20123 = vmatmul.mubr.msk.bf16.gmra.mrb[16].mxu0 %vm309_vm0, %v25596_v34 }
 0x263   : > { %20126 = vmatprep.mubr.msk.bf16.mxu0 %vm309_vm0, %v25598_v47 }
 0x26a   : > { %20127 = vmatmul.mubr.msk.bf16.gmra.mrb[20].mxu0 %vm309_vm0, %v25608_v49 }
 0x26b   : > { %20130 = vmatprep.mubr.msk.bf16.mxu0 %vm309_vm0, %v25610_v40 }
 0x272   : > { %20131 = vmatmul.mubr.msk.bf16.gmra.mrb[24].mxu0 %vm309_vm0, %v2016_v45 }
 0x273   : > { %20134 = vmatprep.mubr.msk.bf16.mxu0 %vm309_vm0, %v2261_v51 }
 0x27a   : > { %20135 = vmatmul.mubr.msk.bf16.gmra.mrb[28].mxu0 %vm309_vm0, %v2461_v55 }
 0x2d4   : > { %v19928_v48 = vpop.f32.mrb[0].mxu1 }
 0x2d5   : > { %v1406_v52 = vpop.f32.mrb[1].mxu1 }
 0x2d6   : > { %v19929_v41 = vpop.f32.mrb[2].mxu1 }
 0x2d7   : > { %v1409_v44 = vpop.f32.mrb[3].mxu1 }
 0x2dc   : > { %v19932_v36 = vpop.f32.mrb[4].mxu1 }
 0x2dd   : > { %v1422_v38 = vpop.f32.mrb[5].mxu1 }
 0x2de   : > { %v19933_v61 = vpop.f32.mrb[6].mxu1 }
 0x2df   : > { %v1425_v59 = vpop.f32.mrb[7].mxu1 }
 0x2e4   : > { %v25722_v46 = vpop.f32.mrb[8].mxu1 }
 0x2e5   : > { %v25724_v30 = vpop.f32.mrb[9].mxu1 }
 0x2e6   : > { %v25726_v54 = vpop.f32.mrb[10].mxu1 }
 0x2e7   : > { %v25728_v32 = vpop.f32.mrb[11].mxu1 }
 0x2ec   : > { %v25730_v22 = vpop.f32.mrb[12].mxu1 }
 0x2ed   : > { %v25732_v53 = vpop.f32.mrb[13].mxu1 }
 0x2ee   : > { %v25734_v57 = vpop.f32.mrb[14].mxu1 }
 0x2ef   : > { %v25736_v63 = vpop.f32.mrb[15].mxu1 }
 0x2f4   : > { %v25738_v0 = vpop.f32.mrb[16].mxu1 }
 0x2f5   : > { %v25740_v26 = vpop.f32.mrb[17].mxu1 }
 0x2f6   : > { %v25742_v34 = vpop.f32.mrb[18].mxu1 }
 0x2f7   : > { %v25744_v47 = vpop.f32.mrb[19].mxu1 }
 0x2fc   : > { %v25746_v60 = vpop.f32.mrb[20].mxu1 }
 0x2fd   : > { %v25748_v24 = vpop.f32.mrb[21].mxu1 }
 0x2fe   : > { %v25750_v50 = vpop.f32.mrb[22].mxu1 }
 0x2ff   : > { %v25752_v49 = vpop.f32.mrb[23].mxu1 }
 0x304   : > { %v25754_v40 = vpop.f32.mrb[24].mxu1 }
 0x305   : > { %v25756_v29 = vpop.f32.mrb[25].mxu1 }
 0x306   : > { %v25758_v58 = vpop.f32.mrb[26].mxu1 }
 0x307   : > { %v25760_v28 = vpop.f32.mrb[27].mxu1 }
 0x30c   : > { %v25762_v21 = vpop.f32.mrb[28].mxu1 }
 0x30d   : > { %v25764_v42 = vpop.f32.mrb[29].mxu1 }
 0x30e   : > { %v25766_v62 = vpop.f32.mrb[30].mxu1 }
 0x30f   : > { %v25768_v45 = vpop.f32.mrb[31].mxu1 }
 0x315   : > { %v20108_v25 = vpop.f32.mrb[0].mxu0 }
 0x316   : > { %v22118_v43 = vadd.f32 %v20108_v25, %v19928_v48  ;;  %v2502_v51 = vpop.f32.mrb[1].mxu0 }
 0x317   : > { %v22119_v18 = vadd.f32 %v2502_v51, %v1406_v52  ;;  %v20109_v27 = vpop.f32.mrb[2].mxu0 }
 0x318   : > { %v2670_v31 = vadd.f32 %v22118_v43, %v25770_v23  ;;  %v22120_v55 = vadd.f32 %v20109_v27, %v19929_v41  ;;  %v2505_v33 = vpop.f32.mrb[3].mxu0 }
 0x319   : > { %v2668_v20 = vadd.f32 %v22119_v18, %v25770_v23  ;;  %v22121_v17 = vadd.f32 %v2505_v33, %v1409_v44 }
 0x31a   : > { %v2702_v19 = vmax.f32 %v2670_v31, 0.0  ;;  %v2671_v14 = vadd.f32 %v22120_v55, %v25770_v23 }
 0x31b   : > { %v2700_v16 = vmax.f32 %v2668_v20, 0.0  ;;  %v2669_v13 = vadd.f32 %v22121_v17, %v25770_v23 }
 0x31c   : > { %2734 = vst.msk [vmem:[#allocation4 + $0x340] sm:$0xff] %vm309_vm0, %v2702_v19  ;;  %v2703_v15 = vmax.f32 %v2671_v14, 0.0 }
 0x31d   : > { %2732 = vst.msk [vmem:[#allocation4 + $0x310] sm:$0xff] %vm309_vm0, %v2700_v16  ;;  %v2701_v48 = vmax.f32 %v2669_v13, 0.0  ;;  %v20112_v52 = vpop.f32.mrb[4].mxu0 }
 0x31e   : > { %2735 = vst.msk [vmem:[#allocation4 + $0x348] sm:$0xff] %vm309_vm0, %v2703_v15  ;;  %v22122_v41 = vadd.f32 %v20112_v52, %v19932_v36  ;;  %v2518_v25 = vpop.f32.mrb[5].mxu0 }
 0x31f   : > { %2733 = vst.msk [vmem:[#allocation4 + $0x318] sm:$0xff] %vm309_vm0, %v2701_v48  ;;  %v22123_v44 = vadd.f32 %v2518_v25, %v1422_v38  ;;  %v20113_v43 = vpop.f32.mrb[6].mxu0 }
 0x320   : > { %v2674_v51 = vadd.f32 %v22122_v41, %v25770_v23  ;;  %v22124_v20 = vadd.f32 %v20113_v43, %v19933_v61  ;;  %v2521_v18 = vpop.f32.mrb[7].mxu0 }
 0x321   : > { %v2672_v17 = vadd.f32 %v22123_v44, %v25770_v23  ;;  %v22125_v19 = vadd.f32 %v2521_v18, %v1425_v59 }
 0x322   : > { %v2706_v14 = vmax.f32 %v2674_v51, 0.0  ;;  %v2675_v16 = vadd.f32 %v22124_v20, %v25770_v23 }
 0x323   : > { %v2704_v13 = vmax.f32 %v2672_v17, 0.0  ;;  %v2673_v27 = vadd.f32 %v22125_v19, %v25770_v23  ;;  %v2768_v25 = vld [vmem:[#allocation4 + $0x33f] sm:$0xff]  ;;  %v2818_v17 = vld [vmem:[#allocation2 + $0x98] sm:$0xff] }
 0x324   : > { %2738 = vst.msk [vmem:[#allocation4 + $0x3a0] sm:$0xff] %vm309_vm0, %v2706_v14  ;;  %v2707_v15 = vmax.f32 %v2675_v16, 0.0  ;;  %v2766_v59 = vld [vmem:[#allocation4 + $0x30f] sm:$0xff] }
 0x325   : > { %2736 = vst.msk [vmem:[#allocation4 + $0x370] sm:$0xff] %vm309_vm0, %v2704_v13  ;;  %v2705_v36 = vmax.f32 %v2673_v27, 0.0  ;;  %v20116_v38 = vpop.f32.mrb[8].mxu0  ;;  %v2769_v31 = vld [vmem:[#allocation4 + $0x347] sm:$0xff] }
 0x326   : > { %2739 = vst.msk [vmem:[#allocation4 + $0x3a8] sm:$0xff] %vm309_vm0, %v2707_v15  ;;  %v22126_v61 = vadd.f32 %v20116_v38, %v25722_v46  ;;  %v2534_v55 = vpop.f32.mrb[9].mxu0  ;;  %v2767_v33 = vld [vmem:[#allocation4 + $0x317] sm:$0xff]  ;;  %v25794_v20 = vpack.c.bf16 %v2769_v31, %v2768_v25  ;;  %v25807_v15 = vld [vmem:[#allocation2 + $0xf0] sm:$0xff] }
 0x327   : > { %2737 = vst.msk [vmem:[#allocation4 + $0x378] sm:$0xff] %vm309_vm0, %v2705_v36  ;;  %v22127_v48 = vadd.f32 %v2534_v55, %v25724_v30  ;;  %v20117_v52 = vpop.f32.mrb[10].mxu0  ;;  %v25790_v41 = vpack.c.bf16 %v2767_v33, %v2766_v59 }
 0x328   : > { %v2678_v44 = vadd.f32 %v22126_v61, %v25770_v23  ;;  %v22128_v43 = vadd.f32 %v20117_v52, %v25726_v54  ;;  %v2537_v51 = vpop.f32.mrb[11].mxu0 }
 0x329   : > { %v2676_v46 = vadd.f32 %v22127_v48, %v25770_v23  ;;  %v22129_v18 = vadd.f32 %v2537_v51, %v25728_v32  ;;  %20142 = vmatprep.mubr.msk.bf16.mxu1 %vm309_vm0, %v25790_v41 }
 0x32a   : > { %v2710_v30 = vmax.f32 %v2678_v44, 0.0  ;;  %v2679_v19 = vadd.f32 %v22128_v43, %v25770_v23  ;;  %20143 = vmatmul.mubr.msk.bf16.vlgmr.msra.gmra.mrb[32].mxu1 %vm309_vm0, %v25794_v20 }
 0x32b   : > { %v2708_v14 = vmax.f32 %v2676_v46, 0.0  ;;  %v2677_v54 = vadd.f32 %v22129_v18, %v25770_v23  ;;  %20175 = vmatpush3.bf16.msra.mxu1 %v25719_v35  ;;  %v2772_v33 = vld [vmem:[#allocation4 + $0x39f] sm:$0xff] }
 0x32c   : > { %2742 = vst.msk [vmem:[#allocation4 + $0x400] sm:$0xff] %vm309_vm0, %v2710_v30  ;;  %v2711_v16 = vmax.f32 %v2679_v19, 0.0  ;;  %20176 = vmatprep.subr.bf16.mxu1 %v2818_v17  ;;  %v2770_v31 = vld [vmem:[#allocation4 + $0x36f] sm:$0xff] }
 0x32d   : > { %2740 = vst.msk [vmem:[#allocation4 + $0x3d0] sm:$0xff] %vm309_vm0, %v2708_v14  ;;  %v2709_v32 = vmax.f32 %v2677_v54, 0.0  ;;  %v20120_v13 = vpop.f32.mrb[12].mxu0  ;;  %v2773_v27 = vld [vmem:[#allocation4 + $0x3a7] sm:$0xff] }
 0x32e   : > { %2743 = vst.msk [vmem:[#allocation4 + $0x408] sm:$0xff] %vm309_vm0, %v2711_v16  ;;  %v22130_v36 = vadd.f32 %v20120_v13, %v25730_v22  ;;  %v2550_v38 = vpop.f32.mrb[13].mxu0  ;;  %v2771_v61 = vld [vmem:[#allocation4 + $0x377] sm:$0xff]  ;;  %v25817_v44 = vpack.c.bf16 %v2773_v27, %v2772_v33 }
 0x32f   : > { %2741 = vst.msk [vmem:[#allocation4 + $0x3d8] sm:$0xff] %vm309_vm0, %v2709_v32  ;;  %v22131_v35 = vadd.f32 %v2550_v38, %v25732_v53  ;;  %v20121_v55 = vpop.f32.mrb[14].mxu0  ;;  %v25813_v59 = vpack.c.bf16 %v2771_v61, %v2770_v31  ;;  %20177 = vmatpush3.bf16.msra.mxu1 %v2818_v17 }
 0x330   : > { %v2682_v48 = vadd.f32 %v22130_v36, %v25770_v23  ;;  %v22132_v52 = vadd.f32 %v20121_v55, %v25734_v57  ;;  %v2553_v25 = vpop.f32.mrb[15].mxu0  ;;  %20210 = vmatprep.subr.bf16.mxu1 %v25807_v15 }
 0x331   : > { %v2680_v22 = vadd.f32 %v22131_v35, %v25770_v23  ;;  %v22133_v43 = vadd.f32 %v2553_v25, %v25736_v63  ;;  %20146 = vmatprep.mubr.msk.bf16.mxu1 %vm309_vm0, %v25813_v59 }
 0x332   : > { %v2714_v53 = vmax.f32 %v2682_v48, 0.0  ;;  %v2683_v51 = vadd.f32 %v22132_v52, %v25770_v23  ;;  %20147 = vmatmul.mubr.msk.bf16.gmra.mrb[36].mxu1 %vm309_vm0, %v25817_v44 }
 0x333   : > { %v2712_v46 = vmax.f32 %v2680_v22, 0.0  ;;  %v2681_v57 = vadd.f32 %v22133_v43, %v25770_v23  ;;  %v2776_v36 = vld [vmem:[#allocation4 + $0x3ff] sm:$0xff] }
 0x334   : > { %2746 = vst.msk [vmem:[#allocation4 + $0x460] sm:$0xff] %vm309_vm0, %v2714_v53  ;;  %v2715_v18 = vmax.f32 %v2683_v51, 0.0  ;;  %v2774_v54 = vld [vmem:[#allocation4 + $0x3cf] sm:$0xff] }
 0x335   : > { %2744 = vst.msk [vmem:[#allocation4 + $0x430] sm:$0xff] %vm309_vm0, %v2712_v46  ;;  %v2713_v17 = vmax.f32 %v2681_v57, 0.0  ;;  %v20124_v30 = vpop.f32.mrb[16].mxu0  ;;  %v2777_v63 = vld [vmem:[#allocation4 + $0x407] sm:$0xff] }
 0x336   : > { %2747 = vst.msk [vmem:[#allocation4 + $0x468] sm:$0xff] %vm309_vm0, %v2715_v18  ;;  %v22134_v19 = vadd.f32 %v20124_v30, %v25738_v0  ;;  %v2566_v14 = vpop.f32.mrb[17].mxu0  ;;  %v2775_v16 = vld [vmem:[#allocation4 + $0x3d7] sm:$0xff]  ;;  %v25838_v35 = vpack.c.bf16 %v2777_v63, %v2776_v36 }
 0x337   : > { %2745 = vst.msk [vmem:[#allocation4 + $0x438] sm:$0xff] %vm309_vm0, %v2713_v17  ;;  %v22135_v32 = vadd.f32 %v2566_v14, %v25740_v26  ;;  %v20125_v13 = vpop.f32.mrb[18].mxu0  ;;  %v25834_v27 = vpack.c.bf16 %v2775_v16, %v2774_v54 }
 0x338   : > { %v2686_v38 = vadd.f32 %v22134_v19, %v25770_v23  ;;  %v22136_v31 = vadd.f32 %v20125_v13, %v25742_v34  ;;  %v2569_v61 = vpop.f32.mrb[19].mxu0 }
 0x339   : > { %v2684_v0 = vadd.f32 %v22135_v32, %v25770_v23  ;;  %v22137_v55 = vadd.f32 %v2569_v61, %v25744_v47  ;;  %20150 = vmatprep.mubr.msk.bf16.mxu1 %vm309_vm0, %v25834_v27 }
 0x33a   : > { %v2718_v33 = vmax.f32 %v2686_v38, 0.0  ;;  %v2687_v26 = vadd.f32 %v22136_v31, %v25770_v23  ;;  %20151 = vmatmul.mubr.msk.bf16.gmra.mrb[40].mxu1 %vm309_vm0, %v25838_v35 }
 0x33b   : > { %v2716_v48 = vmax.f32 %v2684_v0, 0.0  ;;  %v2685_v52 = vadd.f32 %v22137_v55, %v25770_v23  ;;  %v2780_v30 = vld [vmem:[#allocation4 + $0x45f] sm:$0xff] }
 0x33c   : > { %2750 = vst.msk [vmem:[#allocation4 + $0x4c0] sm:$0xff] %vm309_vm0, %v2718_v33  ;;  %v2719_v34 = vmax.f32 %v2687_v26, 0.0  ;;  %v2778_v51 = vld [vmem:[#allocation4 + $0x42f] sm:$0xff] }
 0x33d   : > { %2748 = vst.msk [vmem:[#allocation4 + $0x490] sm:$0xff] %vm309_vm0, %v2716_v48  ;;  %v2717_v25 = vmax.f32 %v2685_v52, 0.0  ;;  %v20128_v22 = vpop.f32.mrb[20].mxu0  ;;  %v2781_v47 = vld [vmem:[#allocation4 + $0x467] sm:$0xff] }
 0x33e   : > { %2751 = vst.msk [vmem:[#allocation4 + $0x4c8] sm:$0xff] %vm309_vm0, %v2719_v34  ;;  %v22138_v43 = vadd.f32 %v20128_v22, %v25746_v60  ;;  %v2582_v53 = vpop.f32.mrb[21].mxu0  ;;  %v2779_v46 = vld [vmem:[#allocation4 + $0x437] sm:$0xff]  ;;  %v25858_v54 = vpack.c.bf16 %v2781_v47, %v2780_v30 }
 0x33f   : > { %2749 = vst.msk [vmem:[#allocation4 + $0x498] sm:$0xff] %vm309_vm0, %v2717_v25  ;;  %v22139_v57 = vadd.f32 %v2582_v53, %v25748_v24  ;;  %v20129_v18 = vpop.f32.mrb[22].mxu0  ;;  %v25854_v17 = vpack.c.bf16 %v2779_v46, %v2778_v51 }
 0x340   : > { %v2690_v63 = vadd.f32 %v22138_v43, %v25770_v23  ;;  %v22140_v19 = vadd.f32 %v20129_v18, %v25750_v50  ;;  %v2585_v14 = vpop.f32.mrb[23].mxu0 }
 0x341   : > { %v2688_v60 = vadd.f32 %v22139_v57, %v25770_v23  ;;  %v22141_v16 = vadd.f32 %v2585_v14, %v25752_v49  ;;  %20154 = vmatprep.mubr.msk.bf16.mxu1 %vm309_vm0, %v25854_v17 }
 0x342   : > { %v2722_v32 = vmax.f32 %v2690_v63, 0.0  ;;  %v2691_v24 = vadd.f32 %v22140_v19, %v25770_v23  ;;  %20155 = vmatmul.mubr.msk.bf16.gmra.mrb[44].mxu1 %vm309_vm0, %v25858_v54 }
 0x343   : > { %v2720_v13 = vmax.f32 %v2688_v60, 0.0  ;;  %v2689_v36 = vadd.f32 %v22141_v16, %v25770_v23  ;;  %v2784_v34 = vld [vmem:[#allocation4 + $0x4bf] sm:$0xff] }
 0x344   : > { %2754 = vst.msk [vmem:[#allocation4 + $0x520] sm:$0xff] %vm309_vm0, %v2722_v32  ;;  %v2723_v50 = vmax.f32 %v2691_v24, 0.0  ;;  %v2782_v55 = vld [vmem:[#allocation4 + $0x48f] sm:$0xff] }
 0x345   : > { %2752 = vst.msk [vmem:[#allocation4 + $0x4f0] sm:$0xff] %vm309_vm0, %v2720_v13  ;;  %v2721_v38 = vmax.f32 %v2689_v36, 0.0  ;;  %v20132_v31 = vpop.f32.mrb[24].mxu0  ;;  %v2785_v49 = vld [vmem:[#allocation4 + $0x4c7] sm:$0xff] }
 0x346   : > { %2755 = vst.msk [vmem:[#allocation4 + $0x528] sm:$0xff] %vm309_vm0, %v2723_v50  ;;  %v22142_v61 = vadd.f32 %v20132_v31, %v25754_v40  ;;  %v2598_v0 = vpop.f32.mrb[25].mxu0  ;;  %v2783_v33 = vld [vmem:[#allocation4 + $0x497] sm:$0xff]  ;;  %v25878_v43 = vpack.c.bf16 %v2785_v49, %v2784_v34 }
 0x347   : > { %2753 = vst.msk [vmem:[#allocation4 + $0x4f8] sm:$0xff] %vm309_vm0, %v2721_v38  ;;  %v22143_v26 = vadd.f32 %v2598_v0, %v25756_v29  ;;  %v20133_v48 = vpop.f32.mrb[26].mxu0  ;;  %v25874_v52 = vpack.c.bf16 %v2783_v33, %v2782_v55 }
 0x348   : > { %v2694_v25 = vadd.f32 %v22142_v61, %v25770_v23  ;;  %v22144_v22 = vadd.f32 %v20133_v48, %v25758_v58  ;;  %v2601_v47 = vpop.f32.mrb[27].mxu0 }
 0x349   : > { %v2692_v40 = vadd.f32 %v22143_v26, %v25770_v23  ;;  %v22145_v53 = vadd.f32 %v2601_v47, %v25760_v28  ;;  %20158 = vmatprep.mubr.msk.bf16.mxu1 %vm309_vm0, %v25874_v52 }
 0x34a   : > { %v2726_v51 = vmax.f32 %v2694_v25, 0.0  ;;  %v2695_v29 = vadd.f32 %v22144_v22, %v25770_v23  ;;  %20159 = vmatmul.mubr.msk.bf16.gmra.mrb[48].mxu1 %vm309_vm0, %v25878_v43 }
 0x34b   : > { %v2724_v46 = vmax.f32 %v2692_v40, 0.0  ;;  %v2693_v57 = vadd.f32 %v22145_v53, %v25770_v23  ;;  %v2788_v13 = vld [vmem:[#allocation4 + $0x51f] sm:$0xff] }
 0x34c   : > { %2758 = vst.msk [vmem:[#allocation4 + $0x580] sm:$0xff] %vm309_vm0, %v2726_v51  ;;  %v2727_v58 = vmax.f32 %v2695_v29, 0.0  ;;  %v2786_v14 = vld [vmem:[#allocation4 + $0x4ef] sm:$0xff] }
 0x34d   : > { %2756 = vst.msk [vmem:[#allocation4 + $0x550] sm:$0xff] %vm309_vm0, %v2724_v46  ;;  %v2725_v18 = vmax.f32 %v2693_v57, 0.0  ;;  %v20136_v30 = vpop.f32.mrb[28].mxu0  ;;  %v2789_v28 = vld [vmem:[#allocation4 + $0x527] sm:$0xff]  ;;  %v3449_v57 = vld [vmem:[#allocation2 + $0xa0] sm:$0xff] }
 0x34e   : > { %2759 = vst.msk [vmem:[#allocation4 + $0x588] sm:$0xff] %vm309_vm0, %v2727_v58  ;;  %v22146_v63 = vadd.f32 %v20136_v30, %v25762_v21  ;;  %v2614_v19 = vpop.f32.mrb[29].mxu0  ;;  %v2787_v60 = vld [vmem:[#allocation4 + $0x4f7] sm:$0xff]  ;;  %v25898_v31 = vpack.c.bf16 %v2789_v28, %v2788_v13  ;;  %v3199_v46 = vld [vmem:[#allocation2 + $0xf8] sm:$0xff]  ;;  %v3404_v58 = vld [vmem:[#allocation4 + $0x3a0] sm:$0xff] }
 0x34f   : > { %2757 = vst.msk [vmem:[#allocation4 + $0x558] sm:$0xff] %vm309_vm0, %v2725_v18  ;;  %v22147_v16 = vadd.f32 %v2614_v19, %v25764_v42  ;;  %v20137_v32 = vpop.f32.mrb[30].mxu0  ;;  %v25894_v24 = vpack.c.bf16 %v2787_v60, %v2786_v14  ;;  %v3407_v30 = vld [vmem:[#allocation4 + $0x3d8] sm:$0xff]  ;;  %v3409_v28 = vld [vmem:[#allocation4 + $0x408] sm:$0xff]  ;;  %v3408_v14 = vld [vmem:[#allocation4 + $0x400] sm:$0xff] }
 0x350   : > { %v2698_v36 = vadd.f32 %v22146_v63, %v25770_v23  ;;  %v22148_v50 = vadd.f32 %v20137_v32, %v25766_v62  ;;  %v2617_v38 = vpop.f32.mrb[31].mxu0  ;;  %v3406_v63 = vld [vmem:[#allocation4 + $0x3d0] sm:$0xff]  ;;  %v25994_v60 = vpack.c.bf16 %v3409_v28, %v3408_v14  ;;  %v3413_v32 = vld [vmem:[#allocation4 + $0x468] sm:$0xff] }
 0x351   : > { %v2696_v21 = vadd.f32 %v22147_v16, %v25770_v23  ;;  %v22149_v49 = vadd.f32 %v2617_v38, %v25768_v45  ;;  %20162 = vmatprep.mubr.msk.bf16.mxu1 %vm309_vm0, %v25894_v24  ;;  %v25992_v19 = vpack.c.bf16 %v3407_v30, %v3406_v63  ;;  %v3411_v16 = vld [vmem:[#allocation4 + $0x438] sm:$0xff]  ;;  %v4100_v14 = vld [vmem:[#allocation4 + $0x3a1] sm:$0xff] }
 0x352   : > { %v2730_v61 = vmax.f32 %v2698_v36, 0.0  ;;  %v2699_v42 = vadd.f32 %v22148_v50, %v25770_v23  ;;  %20163 = vmatmul.mubr.msk.bf16.gmra.mrb[52].mxu1 %vm309_vm0, %v25898_v31  ;;  %v3412_v36 = vld [vmem:[#allocation4 + $0x460] sm:$0xff]  ;;  %v3415_v38 = vld [vmem:[#allocation4 + $0x498] sm:$0xff] }
 0x353   : > { %v2728_v0 = vmax.f32 %v2696_v21, 0.0  ;;  %v2697_v55 = vadd.f32 %v22149_v49, %v25770_v23  ;;  %v2792_v25 = vld [vmem:[#allocation4 + $0x57f] sm:$0xff]  ;;  %v26002_v50 = vpack.c.bf16 %v3413_v32, %v3412_v36  ;;  %v3414_v21 = vld [vmem:[#allocation4 + $0x490] sm:$0xff] }
 0x354   : > { %2762 = vst.msk [vmem:[#allocation4 + $0x5e0] sm:$0xff] %vm309_vm0, %v2730_v61  ;;  %v2731_v62 = vmax.f32 %v2699_v42, 0.0  ;;  %v2790_v45 = vld [vmem:[#allocation4 + $0x54f] sm:$0xff]  ;;  %v26008_v49 = vpack.c.bf16 %v3415_v38, %v3414_v21  ;;  %v3416_v61 = vld [vmem:[#allocation4 + $0x4c0] sm:$0xff]  ;;  %v4391_v30 = vld [vmem:[#allocation2 + $0xe8] sm:$0xff] }
 0x355   : > { %2760 = vst.msk [vmem:[#allocation4 + $0x5b0] sm:$0xff] %vm309_vm0, %v2728_v0  ;;  %v2729_v33 = vmax.f32 %v2697_v55, 0.0  ;;  %v2793_v26 = vld [vmem:[#allocation4 + $0x587] sm:$0xff]  ;;  %v3419_v0 = vld [vmem:[#allocation4 + $0x4f8] sm:$0xff] }
 0x356   : > { %2763 = vst.msk [vmem:[#allocation4 + $0x5e8] sm:$0xff] %vm309_vm0, %v2731_v62  ;;  %v2791_v48 = vld [vmem:[#allocation4 + $0x557] sm:$0xff]  ;;  %v2814_v22 = vpack.c.bf16 %v2793_v26, %v2792_v25  ;;  %v3421_v55 = vld [vmem:[#allocation4 + $0x528] sm:$0xff]  ;;  %v3420_v26 = vld [vmem:[#allocation4 + $0x520] sm:$0xff] }
 0x357   : > { %2761 = vst.msk [vmem:[#allocation4 + $0x5b8] sm:$0xff] %vm309_vm0, %v2729_v33  ;;  %v2813_v34 = vpack.c.bf16 %v2791_v48, %v2790_v45  ;;  %v3418_v62 = vld [vmem:[#allocation4 + $0x4f0] sm:$0xff]  ;;  %v3444_v45 = vpack.c.bf16 %v3421_v55, %v3420_v26  ;;  %v3423_v48 = vld [vmem:[#allocation4 + $0x558] sm:$0xff]  ;;  %v4104_v36 = vld [vmem:[#allocation4 + $0x401] sm:$0xff] }
 0x358   : > { %v3443_v33 = vpack.c.bf16 %v3419_v0, %v3418_v62  ;;  %v3422_v25 = vld [vmem:[#allocation4 + $0x550] sm:$0xff]  ;;  %v4099_v63 = vld [vmem:[#allocation4 + $0x379] sm:$0xff]  ;;  %v4112_v26 = vld [vmem:[#allocation4 + $0x4c1] sm:$0xff] }
 0x359   : > { %20166 = vmatprep.mubr.msk.bf16.mxu1 %vm309_vm0, %v2813_v34  ;;  %v4098_v28 = vld [vmem:[#allocation4 + $0x371] sm:$0xff] }
 0x35a   : > { %20167 = vmatmul.mubr.msk.bf16.gmra.mrb[56].mxu1 %vm309_vm0, %v2814_v22  ;;  %v4106_v21 = vld [vmem:[#allocation4 + $0x431] sm:$0xff] }
 0x35b   : > { %v2796_v51 = vld [vmem:[#allocation4 + $0x5df] sm:$0xff]  ;;  %v4110_v62 = vld [vmem:[#allocation4 + $0x491] sm:$0xff] }
 0x35c   : > { %v2794_v47 = vld [vmem:[#allocation4 + $0x5af] sm:$0xff] }
 0x35d   : > { %v2797_v23 = vld [vmem:[#allocation4 + $0x5e7] sm:$0xff] }
 0x35e   : > { %v2795_v40 = vld [vmem:[#allocation4 + $0x5b7] sm:$0xff]  ;;  %v2819_v29 = vpack.c.bf16 %v2797_v23, %v2796_v51  ;;  %v3424_v23 = vld [vmem:[#allocation4 + $0x580] sm:$0xff] }
 0x35f   : > { %v2815_v53 = vpack.c.bf16 %v2795_v40, %v2794_v47  ;;  %v3427_v40 = vld [vmem:[#allocation4 + $0x5b8] sm:$0xff] }
 0x361   : > { %20170 = vmatprep.mubr.msk.bf16.mxu1 %vm309_vm0, %v2815_v53 }
 0x362   : > { %20171 = vmatmul.mubr.msk.bf16.gmra.mrb[60].mxu1 %vm309_vm0, %v2819_v29 }
 0x363   : > { %20178 = vmatprep.mubr.msk.bf16.mxu1 %vm309_vm0, %v25461_v56  ;;  %v3450_v56 = vld [vmem:[#allocation2 + $0xa8] sm:$0xff] }
 0x36a   : > { %20179 = vmatmul.mubr.msk.bf16.vlgmr.msra.gmra.mrb[32].mxu1 %vm309_vm0, %v25790_v41  ;;  %v3694_v41 = vld [vmem:[#allocation2 + $0xd0] sm:$0xff] }
 0x36b   : > { %20182 = vmatprep.mubr.msk.bf16.mxu1 %vm309_vm0, %v25794_v20  ;;  %20211 = vmatpush3.bf16.msra.mxu1 %v25807_v15  ;;  %v3401_v15 = vld [vmem:[#allocation4 + $0x348] sm:$0xff] }
 0x36c   : > { %20212 = vmatprep.subr.bf16.mxu1 %v3199_v46 }
 0x36f   : > { %20213 = vmatpush3.bf16.msra.mxu1 %v3199_v46  ;;  %v4145_v46 = vld [vmem:[#allocation2 + $0xb0] sm:$0xff] }
 0x370   : > { %20246 = vmatprep.subr.bf16.mxu1 %v3449_v57 }
 0x372   : > { %20183 = vmatmul.mubr.msk.bf16.gmra.mrb[36].mxu1 %vm309_vm0, %v25813_v59 }
 0x373   : > { %20186 = vmatprep.mubr.msk.bf16.mxu1 %vm309_vm0, %v25817_v44 }
 0x37a   : > { %20187 = vmatmul.mubr.msk.bf16.gmra.mrb[40].mxu1 %vm309_vm0, %v25834_v27 }
 0x37b   : > { %20190 = vmatprep.mubr.msk.bf16.mxu1 %vm309_vm0, %v25838_v35 }
 0x382   : > { %20191 = vmatmul.mubr.msk.bf16.gmra.mrb[44].mxu1 %vm309_vm0, %v25854_v17 }
 0x383   : > { %20194 = vmatprep.mubr.msk.bf16.mxu1 %vm309_vm0, %v25858_v54 }
 0x38a   : > { %20195 = vmatmul.mubr.msk.bf16.gmra.mrb[48].mxu1 %vm309_vm0, %v25874_v52 }
 0x38b   : > { %20198 = vmatprep.mubr.msk.bf16.mxu1 %vm309_vm0, %v25878_v43 }
 0x392   : > { %20199 = vmatmul.mubr.msk.bf16.gmra.mrb[52].mxu1 %vm309_vm0, %v25894_v24 }
 0x393   : > { %20202 = vmatprep.mubr.msk.bf16.mxu1 %vm309_vm0, %v25898_v31 }
 0x39a   : > { %20203 = vmatmul.mubr.msk.bf16.gmra.mrb[56].mxu1 %vm309_vm0, %v2813_v34 }
 0x39b   : > { %20206 = vmatprep.mubr.msk.bf16.mxu1 %vm309_vm0, %v2814_v22 }
 0x3a2   : > { %20207 = vmatmul.mubr.msk.bf16.gmra.mrb[60].mxu1 %vm309_vm0, %v2815_v53 }
 0x3a3   : > { %20214 = vmatprep.mubr.msk.bf16.mxu1 %vm309_vm0, %v25794_v20  ;;  %v3399_v20 = vld [vmem:[#allocation4 + $0x318] sm:$0xff] }
 0x3aa   : > { %20215 = vmatmul.mubr.msk.bf16.vlgmr.msra.gmra.mrb[32].mxu1 %vm309_vm0, %v25813_v59  ;;  %v3398_v59 = vld [vmem:[#allocation4 + $0x310] sm:$0xff] }
 0x3ab   : > { %20218 = vmatprep.mubr.msk.bf16.mxu1 %vm309_vm0, %v25817_v44  ;;  %20247 = vmatpush3.bf16.msra.mxu1 %v3449_v57  ;;  %v25976_v44 = vpack.c.bf16 %v3399_v20, %v3398_v59  ;;  %v3429_v57 = vld [vmem:[#allocation4 + $0x5e8] sm:$0xff]  ;;  %v3430_v59 = vld [vmem:[#allocation4 + $0x610] sm:$0xff] }
 0x3ac   : > { %20248 = vmatprep.subr.bf16.mxu1 %v3450_v56  ;;  %v4146_v20 = vld [vmem:[#allocation2 + $0xb8] sm:$0xff] }
 0x3af   : > { %20249 = vmatpush3.bf16.msra.mxu1 %v3450_v56  ;;  %v3428_v56 = vld [vmem:[#allocation4 + $0x5e0] sm:$0xff] }
 0x3b0   : > { %20282 = vmatprep.subr.bf16.mxu1 %v3694_v41 }
 0x3b2   : > { %20219 = vmatmul.mubr.msk.bf16.gmra.mrb[36].mxu1 %vm309_vm0, %v25834_v27  ;;  %v3400_v27 = vld [vmem:[#allocation4 + $0x340] sm:$0xff] }
 0x3b3   : > { %20222 = vmatprep.mubr.msk.bf16.mxu1 %vm309_vm0, %v25838_v35  ;;  %v25978_v35 = vpack.c.bf16 %v3401_v15, %v3400_v27  ;;  %v4390_v15 = vld [vmem:[#allocation2 + $0xe0] sm:$0xff]  ;;  %v4092_v27 = vld [vmem:[#allocation4 + $0x2e1] sm:$0xff] }
 0x3ba   : > { %20223 = vmatmul.mubr.msk.bf16.gmra.mrb[40].mxu1 %vm309_vm0, %v25854_v17  ;;  %v3695_v17 = vld [vmem:[#allocation2 + $0xd8] sm:$0xff] }
 0x3bb   : > { %20226 = vmatprep.mubr.msk.bf16.mxu1 %vm309_vm0, %v25858_v54  ;;  %v3894_v54 = vld [vmem:[#allocation2 + $0x100] sm:$0xff] }
 0x3c2   : > { %20227 = vmatmul.mubr.msk.bf16.gmra.mrb[44].mxu1 %vm309_vm0, %v25874_v52  ;;  %v3402_v52 = vld [vmem:[#allocation4 + $0x370] sm:$0xff] }
 0x3c3   : > { %20230 = vmatprep.mubr.msk.bf16.mxu1 %vm309_vm0, %v25878_v43 }
 0x3ca   : > { %20231 = vmatmul.mubr.msk.bf16.gmra.mrb[48].mxu1 %vm309_vm0, %v25894_v24  ;;  %v3410_v24 = vld [vmem:[#allocation4 + $0x430] sm:$0xff] }
 0x3cb   : > { %20234 = vmatprep.mubr.msk.bf16.mxu1 %vm309_vm0, %v25898_v31  ;;  %v26000_v13 = vpack.c.bf16 %v3411_v16, %v3410_v24  ;;  %v3417_v31 = vld [vmem:[#allocation4 + $0x4c8] sm:$0xff]  ;;  %v26081_v16 = vpack.c.bf16 %v4099_v63, %v4098_v28  ;;  %v4102_v24 = vld [vmem:[#allocation4 + $0x3d1] sm:$0xff] }
 0x3cc   : > { %v3442_v42 = vpack.c.bf16 %v3417_v31, %v3416_v61  ;;  %v4108_v61 = vld [vmem:[#allocation4 + $0x461] sm:$0xff] }
 0x3d2   : > { %20235 = vmatmul.mubr.msk.bf16.gmra.mrb[52].mxu1 %vm309_vm0, %v2813_v34  ;;  %v3425_v34 = vld [vmem:[#allocation4 + $0x588] sm:$0xff] }
 0x3d3   : > { %20238 = vmatprep.mubr.msk.bf16.mxu1 %vm309_vm0, %v2814_v22  ;;  %v3445_v22 = vpack.c.bf16 %v3423_v48, %v3422_v25  ;;  %v3446_v47 = vpack.c.bf16 %v3425_v34, %v3424_v23  ;;  %v4114_v25 = vld [vmem:[#allocation4 + $0x4f1] sm:$0xff]  ;;  %v4116_v23 = vld [vmem:[#allocation4 + $0x521] sm:$0xff] }
 0x3da   : > { %20239 = vmatmul.mubr.msk.bf16.gmra.mrb[56].mxu1 %vm309_vm0, %v2815_v53  ;;  %v3426_v53 = vld [vmem:[#allocation4 + $0x5b0] sm:$0xff] }
 0x3db   : > { %20242 = vmatprep.mubr.msk.bf16.mxu1 %vm309_vm0, %v2819_v29  ;;  %v3447_v51 = vpack.c.bf16 %v3427_v40, %v3426_v53  ;;  %v3895_v29 = vld [vmem:[#allocation2 + $0x108] sm:$0xff] }
 0x3e2   : > { %20243 = vmatmul.mubr.msk.bf16.gmra.mrb[60].mxu1 %vm309_vm0, %v25620_v39  ;;  %v3403_v39 = vld [vmem:[#allocation4 + $0x378] sm:$0xff] }
 0x3e3   : > { %20250 = vmatprep.mubr.msk.bf16.mxu1 %vm309_vm0, %v25622_v37  ;;  %v3405_v37 = vld [vmem:[#allocation4 + $0x3a8] sm:$0xff]  ;;  %v25984_v43 = vpack.c.bf16 %v3403_v39, %v3402_v52 }
 0x3e4   : > { %v25986_v18 = vpack.c.bf16 %v3405_v37, %v3404_v58  ;;  %v4095_v37 = vld [vmem:[#allocation4 + $0x319] sm:$0xff]  ;;  %v4096_v52 = vld [vmem:[#allocation4 + $0x341] sm:$0xff] }
 0x3ea   : > { %20251 = vmatmul.mubr.msk.bf16.vlgmr.msra.gmra.mrb[32].mxu1 %vm309_vm0, %v25976_v44 }
 0x3eb   : > { %20254 = vmatprep.mubr.msk.bf16.mxu1 %vm309_vm0, %v25978_v35  ;;  %20283 = vmatpush3.bf16.msra.mxu1 %v3694_v41  ;;  %v3692_v41 = vpack.c.bf16 %v3429_v57, %v3428_v56  ;;  %v4121_v57 = vld [vmem:[#allocation4 + $0x589] sm:$0xff] }
 0x3ec   : > { %20284 = vmatprep.subr.bf16.mxu1 %v3695_v17 }
 0x3ef   : > { %20285 = vmatpush3.bf16.msra.mxu1 %v3695_v17 }
 0x3f0   : > { %20318 = vmatprep.subr.bf16.mxu1 %v3894_v54 }
 0x3f2   : > { %20255 = vmatmul.mubr.msk.bf16.gmra.mrb[36].mxu1 %vm309_vm0, %v25984_v43 }
 0x3f3   : > { %20258 = vmatprep.mubr.msk.bf16.mxu1 %vm309_vm0, %v25986_v18 }
 0x3fa   : > { %20259 = vmatmul.mubr.msk.bf16.gmra.mrb[40].mxu1 %vm309_vm0, %v25992_v19 }
 0x3fb   : > { %20262 = vmatprep.mubr.msk.bf16.mxu1 %vm309_vm0, %v25994_v60 }
 0x402   : > { %20263 = vmatmul.mubr.msk.bf16.gmra.mrb[44].mxu1 %vm309_vm0, %v26000_v13 }
 0x403   : > { %20266 = vmatprep.mubr.msk.bf16.mxu1 %vm309_vm0, %v26002_v50 }
 0x40a   : > { %20267 = vmatmul.mubr.msk.bf16.gmra.mrb[48].mxu1 %vm309_vm0, %v26008_v49 }
 0x40b   : > { %20270 = vmatprep.mubr.msk.bf16.mxu1 %vm309_vm0, %v3442_v42 }
 0x412   : > { %20271 = vmatmul.mubr.msk.bf16.gmra.mrb[52].mxu1 %vm309_vm0, %v3443_v33 }
 0x413   : > { %20274 = vmatprep.mubr.msk.bf16.mxu1 %vm309_vm0, %v3444_v45 }
 0x41a   : > { %20275 = vmatmul.mubr.msk.bf16.gmra.mrb[56].mxu1 %vm309_vm0, %v3445_v22 }
 0x41b   : > { %20278 = vmatprep.mubr.msk.bf16.mxu1 %vm309_vm0, %v3446_v47 }
 0x422   : > { %20279 = vmatmul.mubr.msk.bf16.gmra.mrb[60].mxu1 %vm309_vm0, %v3447_v51 }
 0x423   : > { %20286 = vmatprep.mubr.msk.bf16.mxu1 %vm309_vm0, %v25976_v44  ;;  %v3431_v44 = vld [vmem:[#allocation4 + $0x618] sm:$0xff] }
 0x424   : > { %v26066_v17 = vpack.c.bf16 %v3431_v44, %v3430_v59  ;;  %v4955_v44 = vld [vmem:[#allocation2 + $0x150] sm:$0xff] }
 0x425   : > { %20462 = vmatprep.subr.bf16.mxu0 %v4955_v44 }
 0x426   : > { %20463 = vmatpush3.bf16.msra.mxu0 %v4955_v44 }
 0x42a   : > { %20287 = vmatmul.mubr.msk.bf16.vlgmr.msra.gmra.mrb[32].mxu1 %vm309_vm0, %v25978_v35 }
 0x42b   : > { %20290 = vmatprep.mubr.msk.bf16.mxu1 %vm309_vm0, %v25984_v43  ;;  %20319 = vmatpush3.bf16.msra.mxu1 %v3894_v54  ;;  %v4094_v54 = vld [vmem:[#allocation4 + $0x311] sm:$0xff] }
 0x42c   : > { %20320 = vmatprep.subr.bf16.mxu1 %v3895_v29  ;;  %v26071_v58 = vpack.c.bf16 %v4095_v37, %v4094_v54  ;;  %v4125_v54 = vld [vmem:[#allocation4 + $0x5e9] sm:$0xff] }
 0x42f   : > { %20321 = vmatpush3.bf16.msra.mxu1 %v3895_v29  ;;  %v4119_v29 = vld [vmem:[#allocation4 + $0x559] sm:$0xff] }
 0x430   : > { %20354 = vmatprep.subr.bf16.mxu1 %v4145_v46 }
 0x432   : > { %20291 = vmatmul.mubr.msk.bf16.gmra.mrb[36].mxu1 %vm309_vm0, %v25986_v18 }
 0x433   : > { %20294 = vmatprep.mubr.msk.bf16.mxu1 %vm309_vm0, %v25992_v19 }
 0x43a   : > { %20295 = vmatmul.mubr.msk.bf16.gmra.mrb[40].mxu1 %vm309_vm0, %v25994_v60 }
 0x43b   : > { %20298 = vmatprep.mubr.msk.bf16.mxu1 %vm309_vm0, %v26000_v13 }
 0x442   : > { %20299 = vmatmul.mubr.msk.bf16.gmra.mrb[44].mxu1 %vm309_vm0, %v26002_v50 }
 0x443   : > { %20302 = vmatprep.mubr.msk.bf16.mxu1 %vm309_vm0, %v26008_v49 }
 0x44a   : > { %20303 = vmatmul.mubr.msk.bf16.gmra.mrb[48].mxu1 %vm309_vm0, %v3442_v42 }
 0x44b   : > { %20306 = vmatprep.mubr.msk.bf16.mxu1 %vm309_vm0, %v3443_v33 }
 0x452   : > { %20307 = vmatmul.mubr.msk.bf16.gmra.mrb[52].mxu1 %vm309_vm0, %v3444_v45 }
 0x453   : > { %20310 = vmatprep.mubr.msk.bf16.mxu1 %vm309_vm0, %v3445_v22 }
 0x45a   : > { %20311 = vmatmul.mubr.msk.bf16.gmra.mrb[56].mxu1 %vm309_vm0, %v3446_v47 }
 0x45b   : > { %20314 = vmatprep.mubr.msk.bf16.mxu1 %vm309_vm0, %v3447_v51 }
 0x462   : > { %20315 = vmatmul.mubr.msk.bf16.gmra.mrb[60].mxu1 %vm309_vm0, %v3692_v41 }
 0x463   : > { %20322 = vmatprep.mubr.msk.bf16.mxu1 %vm309_vm0, %v25978_v35  ;;  %v4093_v35 = vld [vmem:[#allocation4 + $0x2e9] sm:$0xff] }
 0x464   : > { %v4128_v39 = vpack.c.bf16 %v4093_v35, %v4092_v27  ;;  %v4956_v27 = vld [vmem:[#allocation2 + $0x158] sm:$0xff] }
 0x465   : > { %20464 = vmatprep.subr.bf16.mxu0 %v4956_v27  ;;  %v4591_v35 = vld [vmem:[#allocation2 + $0x118] sm:$0xff] }
 0x466   : > { %20465 = vmatpush3.bf16.msra.mxu0 %v4956_v27 }
 0x46a   : > { %20323 = vmatmul.mubr.msk.bf16.vlgmr.msra.gmra.mrb[32].mxu1 %vm309_vm0, %v25984_v43  ;;  %v4097_v43 = vld [vmem:[#allocation4 + $0x349] sm:$0xff] }
 0x46b   : > { %20326 = vmatprep.mubr.msk.bf16.mxu1 %vm309_vm0, %v25986_v18  ;;  %20355 = vmatpush3.bf16.msra.mxu1 %v4145_v46  ;;  %v26073_v18 = vpack.c.bf16 %v4097_v43, %v4096_v52  ;;  %v4120_v46 = vld [vmem:[#allocation4 + $0x581] sm:$0xff]  ;;  %v4126_v52 = vld [vmem:[#allocation4 + $0x611] sm:$0xff]  ;;  %v4127_v43 = vld [vmem:[#allocation4 + $0x619] sm:$0xff] }
 0x46c   : > { %20356 = vmatprep.subr.bf16.mxu1 %v4146_v20 }
 0x46f   : > { %20357 = vmatpush3.bf16.msra.mxu1 %v4146_v20  ;;  %v4122_v20 = vld [vmem:[#allocation4 + $0x5b1] sm:$0xff] }
 0x470   : > { %20390 = vmatprep.subr.bf16.mxu1 %v4390_v15 }
 0x472   : > { %20327 = vmatmul.mubr.msk.bf16.gmra.mrb[36].mxu1 %vm309_vm0, %v25992_v19  ;;  %v26079_v19 = vld [vmem:[#allocation2 + $0x110] sm:$0xff] }
 0x473   : > { %20330 = vmatprep.mubr.msk.bf16.mxu1 %vm309_vm0, %v25994_v60  ;;  %v4101_v60 = vld [vmem:[#allocation4 + $0x3a9] sm:$0xff] }
 0x474   : > { %v26084_v32 = vpack.c.bf16 %v4101_v60, %v4100_v14 }
 0x47a   : > { %20331 = vmatmul.mubr.msk.bf16.gmra.mrb[40].mxu1 %vm309_vm0, %v26000_v13  ;;  %v4103_v13 = vld [vmem:[#allocation4 + $0x3d9] sm:$0xff] }
 0x47b   : > { %20334 = vmatprep.mubr.msk.bf16.mxu1 %vm309_vm0, %v26002_v50  ;;  %v4105_v50 = vld [vmem:[#allocation4 + $0x409] sm:$0xff]  ;;  %v26090_v38 = vpack.c.bf16 %v4103_v13, %v4102_v24 }
 0x47c   : > { %v26092_v31 = vpack.c.bf16 %v4105_v50, %v4104_v36 }
 0x482   : > { %20335 = vmatmul.mubr.msk.bf16.gmra.mrb[44].mxu1 %vm309_vm0, %v26008_v49  ;;  %v4107_v49 = vld [vmem:[#allocation4 + $0x439] sm:$0xff] }
 0x483   : > { %20338 = vmatprep.mubr.msk.bf16.mxu1 %vm309_vm0, %v3442_v42  ;;  %v4109_v42 = vld [vmem:[#allocation4 + $0x469] sm:$0xff]  ;;  %v26098_v0 = vpack.c.bf16 %v4107_v49, %v4106_v21 }
 0x484   : > { %v26100_v55 = vpack.c.bf16 %v4109_v42, %v4108_v61 }
 0x48a   : > { %20339 = vmatmul.mubr.msk.bf16.gmra.mrb[48].mxu1 %vm309_vm0, %v3443_v33  ;;  %v4111_v33 = vld [vmem:[#allocation4 + $0x499] sm:$0xff] }
 0x48b   : > { %20342 = vmatprep.mubr.msk.bf16.mxu1 %vm309_vm0, %v3444_v45  ;;  %v4113_v45 = vld [vmem:[#allocation4 + $0x4c9] sm:$0xff]  ;;  %v4137_v48 = vpack.c.bf16 %v4111_v33, %v4110_v62 }
 0x48c   : > { %v4138_v34 = vpack.c.bf16 %v4113_v45, %v4112_v26 }
 0x492   : > { %20343 = vmatmul.mubr.msk.bf16.gmra.mrb[52].mxu1 %vm309_vm0, %v3445_v22  ;;  %v4115_v22 = vld [vmem:[#allocation4 + $0x4f9] sm:$0xff] }
 0x493   : > { %20346 = vmatprep.mubr.msk.bf16.mxu1 %vm309_vm0, %v3446_v47  ;;  %v4117_v47 = vld [vmem:[#allocation4 + $0x529] sm:$0xff]  ;;  %v4139_v40 = vpack.c.bf16 %v4115_v22, %v4114_v25 }
 0x494   : > { %v4140_v53 = vpack.c.bf16 %v4117_v47, %v4116_v23 }
 0x49a   : > { %20347 = vmatmul.mubr.msk.bf16.gmra.mrb[56].mxu1 %vm309_vm0, %v3447_v51  ;;  %v4118_v51 = vld [vmem:[#allocation4 + $0x551] sm:$0xff] }
 0x49b   : > { %20350 = vmatprep.mubr.msk.bf16.mxu1 %vm309_vm0, %v3692_v41  ;;  %v4141_v56 = vpack.c.bf16 %v4119_v29, %v4118_v51  ;;  %v4142_v41 = vpack.c.bf16 %v4121_v57, %v4120_v46 }
 0x4a2   : > { %20351 = vmatmul.mubr.msk.bf16.gmra.mrb[60].mxu1 %vm309_vm0, %v26066_v17 }
 0x4a3   : > { %20358 = vmatprep.mubr.msk.bf16.mxu1 %vm309_vm0, %v4128_v39  ;;  %v4124_v39 = vld [vmem:[#allocation4 + $0x5e1] sm:$0xff] }
 0x4a4   : > { %v4388_v37 = vpack.c.bf16 %v4125_v54, %v4124_v39  ;;  %v26193_v54 = vld [vmem:[#allocation2 + $0x180] sm:$0xff] }
 0x4aa   : > { %20359 = vmatmul.mubr.msk.bf16.vlgmr.msra.gmra.mrb[32].mxu1 %vm309_vm0, %v26071_v58 }
 0x4ab   : > { %20362 = vmatprep.mubr.msk.bf16.mxu1 %vm309_vm0, %v26073_v18  ;;  %20391 = vmatpush3.bf16.msra.mxu1 %v4390_v15  ;;  %v4123_v15 = vld [vmem:[#allocation4 + $0x5b9] sm:$0xff] }
 0x4ac   : > { %20392 = vmatprep.subr.bf16.mxu1 %v4391_v30  ;;  %v4143_v59 = vpack.c.bf16 %v4123_v15, %v4122_v20 }
 0x4af   : > { %20393 = vmatpush3.bf16.msra.mxu1 %v4391_v30  ;;  %v26161_v30 = vld [vmem:[#allocation8 + $0x1] ss:$0 sm:$0xff] }
 0x4b0   : > { %20426 = vmatprep.subr.bf16.mxu1 %v26079_v19 }
 0x4b2   : > { %20363 = vmatmul.mubr.msk.bf16.gmra.mrb[36].mxu1 %vm309_vm0, %v26081_v16 }
 0x4b3   : > { %20366 = vmatprep.mubr.msk.bf16.mxu1 %vm309_vm0, %v26084_v32 }
 0x4ba   : > { %20367 = vmatmul.mubr.msk.bf16.gmra.mrb[40].mxu1 %vm309_vm0, %v26090_v38 }
 0x4bb   : > { %20370 = vmatprep.mubr.msk.bf16.mxu1 %vm309_vm0, %v26092_v31 }
 0x4c2   : > { %20371 = vmatmul.mubr.msk.bf16.gmra.mrb[44].mxu1 %vm309_vm0, %v26098_v0 }
 0x4c3   : > { %20374 = vmatprep.mubr.msk.bf16.mxu1 %vm309_vm0, %v26100_v55 }
 0x4ca   : > { %20375 = vmatmul.mubr.msk.bf16.gmra.mrb[48].mxu1 %vm309_vm0, %v4137_v48 }
 0x4cb   : > { %20378 = vmatprep.mubr.msk.bf16.mxu1 %vm309_vm0, %v4138_v34 }
 0x4d2   : > { %20379 = vmatmul.mubr.msk.bf16.gmra.mrb[52].mxu1 %vm309_vm0, %v4139_v40 }
 0x4d3   : > { %20382 = vmatprep.mubr.msk.bf16.mxu1 %vm309_vm0, %v4140_v53 }
 0x4da   : > { %20383 = vmatmul.mubr.msk.bf16.gmra.mrb[56].mxu1 %vm309_vm0, %v4141_v56 }
 0x4db   : > { %20386 = vmatprep.mubr.msk.bf16.mxu1 %vm309_vm0, %v4142_v41 }
 0x4e2   : > { %20387 = vmatmul.mubr.msk.bf16.gmra.mrb[60].mxu1 %vm309_vm0, %v4143_v59 }
 0x4e3   : > { %20394 = vmatprep.mubr.msk.bf16.mxu1 %vm309_vm0, %v26071_v58  ;;  %v4588_v58 = vpack.c.bf16 %v4127_v43, %v4126_v52 }
 0x4ea   : > { %20395 = vmatmul.mubr.msk.bf16.vlgmr.msra.gmra.mrb[32].mxu1 %vm309_vm0, %v26073_v18 }
 0x4eb   : > { %20398 = vmatprep.mubr.msk.bf16.mxu1 %vm309_vm0, %v26081_v16  ;;  %20427 = vmatpush3.bf16.msra.mxu1 %v26079_v19 }
 0x4ec   : > { %20428 = vmatprep.subr.bf16.mxu1 %v4591_v35 }
 0x4ef   : > { %20429 = vmatpush3.bf16.msra.mxu1 %v4591_v35 }
 0x4f2   : > { %20399 = vmatmul.mubr.msk.bf16.gmra.mrb[36].mxu1 %vm309_vm0, %v26084_v32 }
 0x4f3   : > { %20402 = vmatprep.mubr.msk.bf16.mxu1 %vm309_vm0, %v26090_v38 }
 0x4fa   : > { %20403 = vmatmul.mubr.msk.bf16.gmra.mrb[40].mxu1 %vm309_vm0, %v26092_v31 }
 0x4fb   : > { %20406 = vmatprep.mubr.msk.bf16.mxu1 %vm309_vm0, %v26098_v0 }
 0x502   : > { %20407 = vmatmul.mubr.msk.bf16.gmra.mrb[44].mxu1 %vm309_vm0, %v26100_v55 }
 0x503   : > { %20410 = vmatprep.mubr.msk.bf16.mxu1 %vm309_vm0, %v4137_v48 }
 0x50a   : > { %20411 = vmatmul.mubr.msk.bf16.gmra.mrb[48].mxu1 %vm309_vm0, %v4138_v34 }
 0x50b   : > { %20414 = vmatprep.mubr.msk.bf16.mxu1 %vm309_vm0, %v4139_v40 }
 0x512   : > { %20415 = vmatmul.mubr.msk.bf16.gmra.mrb[52].mxu1 %vm309_vm0, %v4140_v53 }
 0x513   : > { %20418 = vmatprep.mubr.msk.bf16.mxu1 %vm309_vm0, %v4141_v56 }
 0x51a   : > { %20419 = vmatmul.mubr.msk.bf16.gmra.mrb[56].mxu1 %vm309_vm0, %v4142_v41 }
 0x51b   : > { %20422 = vmatprep.mubr.msk.bf16.mxu1 %vm309_vm0, %v4143_v59 }
 0x522   : > { %20423 = vmatmul.mubr.msk.bf16.gmra.mrb[60].mxu1 %vm309_vm0, %v4388_v37 }
 0x523   : > { %20430 = vmatprep.mubr.msk.bf16.mxu1 %vm309_vm0, %v26073_v18  ;;  %v4950_v18 = vld [vmem:[#allocation2 + $0x120] sm:$0xff] }
 0x524   : > { %20498 = vmatprep.subr.bf16.mxu0 %v4950_v18 }
 0x52a   : > { %20431 = vmatmul.mubr.msk.bf16.vlgmr.msra.gmra.mrb[32].mxu1 %vm309_vm0, %v26081_v16 }
 0x52b   : > { %20434 = vmatprep.mubr.msk.bf16.mxu1 %vm309_vm0, %v26084_v32 }
 0x532   : > { %20435 = vmatmul.mubr.msk.bf16.gmra.mrb[36].mxu1 %vm309_vm0, %v26090_v38 }
 0x533   : > { %20438 = vmatprep.mubr.msk.bf16.mxu1 %vm309_vm0, %v26092_v31 }
 0x53a   : > { %20439 = vmatmul.mubr.msk.bf16.gmra.mrb[40].mxu1 %vm309_vm0, %v26098_v0 }
 0x53b   : > { %20442 = vmatprep.mubr.msk.bf16.mxu1 %vm309_vm0, %v26100_v55 }
 0x542   : > { %20443 = vmatmul.mubr.msk.bf16.gmra.mrb[44].mxu1 %vm309_vm0, %v4137_v48 }
 0x543   : > { %20446 = vmatprep.mubr.msk.bf16.mxu1 %vm309_vm0, %v4138_v34 }
 0x54a   : > { %20447 = vmatmul.mubr.msk.bf16.gmra.mrb[48].mxu1 %vm309_vm0, %v4139_v40 }
 0x54b   : > { %20450 = vmatprep.mubr.msk.bf16.mxu1 %vm309_vm0, %v4140_v53 }
 0x552   : > { %20451 = vmatmul.mubr.msk.bf16.gmra.mrb[52].mxu1 %vm309_vm0, %v4141_v56  ;;  %v4951_v56 = vld [vmem:[#allocation2 + $0x128] sm:$0xff] }
 0x553   : > { %20454 = vmatprep.mubr.msk.bf16.mxu1 %vm309_vm0, %v4142_v41 }
 0x55a   : > { %20455 = vmatmul.mubr.msk.bf16.gmra.mrb[56].mxu1 %vm309_vm0, %v4143_v59 }
 0x55b   : > { %20458 = vmatprep.mubr.msk.bf16.mxu1 %vm309_vm0, %v4388_v37 }
 0x562   : > { %20459 = vmatmul.mubr.msk.bf16.gmra.mrb[60].mxu1 %vm309_vm0, %v4588_v58 }
 0x5fd   : > { %v20432_v28 = vpop.f32.mrb[32].mxu1 }
 0x5fe   : > { %v4798_v63 = vadd.f32 %v20432_v28, %v26161_v30  ;;  %v4629_v19 = vpop.f32.mrb[33].mxu1 }
 0x5ff   : > { %v4796_v14 = vadd.f32 %v26161_v30, %v4629_v19  ;;  %v20433_v60 = vpop.f32.mrb[34].mxu1 }
 0x600   : > { %v4830_v16 = vmax.f32 %v4798_v63, 0.0  ;;  %v4799_v32 = vadd.f32 %v20433_v60, %v26161_v30  ;;  %v4632_v24 = vpop.f32.mrb[35].mxu1 }
 0x601   : > { %v4828_v13 = vmax.f32 %v4796_v14, 0.0  ;;  %v4797_v36 = vadd.f32 %v26161_v30, %v4632_v24 }
 0x602   : > { %4862 = vst.msk [vmem:[#allocation4 + $0x340] sm:$0xff] %vm309_vm0, %v4830_v16  ;;  %v4831_v50 = vmax.f32 %v4799_v32, 0.0 }
 0x603   : > { %4860 = vst.msk [vmem:[#allocation4 + $0x310] sm:$0xff] %vm309_vm0, %v4828_v13  ;;  %v4829_v38 = vmax.f32 %v4797_v36, 0.0 }
 0x604   : > { %4863 = vst.msk [vmem:[#allocation4 + $0x348] sm:$0xff] %vm309_vm0, %v4831_v50 }
 0x605   : > { %4861 = vst.msk [vmem:[#allocation4 + $0x318] sm:$0xff] %vm309_vm0, %v4829_v38  ;;  %v20436_v31 = vpop.f32.mrb[36].mxu1 }
 0x606   : > { %v4802_v21 = vadd.f32 %v20436_v31, %v26161_v30  ;;  %v4645_v49 = vpop.f32.mrb[37].mxu1 }
 0x607   : > { %v4800_v61 = vadd.f32 %v26161_v30, %v4645_v49  ;;  %v20437_v42 = vpop.f32.mrb[38].mxu1 }
 0x608   : > { %v4834_v0 = vmax.f32 %v4802_v21, 0.0  ;;  %v4803_v55 = vadd.f32 %v20437_v42, %v26161_v30  ;;  %v4648_v62 = vpop.f32.mrb[39].mxu1 }
 0x609   : > { %v4832_v33 = vmax.f32 %v4800_v61, 0.0  ;;  %v4801_v26 = vadd.f32 %v26161_v30, %v4648_v62  ;;  %v4899_v40 = vld [vmem:[#allocation4 + $0x33e] sm:$0xff] }
 0x60a   : > { %4866 = vst.msk [vmem:[#allocation4 + $0x3a0] sm:$0xff] %vm309_vm0, %v4834_v0  ;;  %v4835_v45 = vmax.f32 %v4803_v55, 0.0  ;;  %v4897_v25 = vld [vmem:[#allocation4 + $0x30e] sm:$0xff] }
 0x60b   : > { %4864 = vst.msk [vmem:[#allocation4 + $0x370] sm:$0xff] %vm309_vm0, %v4832_v33  ;;  %v4833_v48 = vmax.f32 %v4801_v26, 0.0  ;;  %v4900_v34 = vld [vmem:[#allocation4 + $0x346] sm:$0xff] }
 0x60c   : > { %4867 = vst.msk [vmem:[#allocation4 + $0x3a8] sm:$0xff] %vm309_vm0, %v4835_v45  ;;  %v4898_v22 = vld [vmem:[#allocation4 + $0x316] sm:$0xff]  ;;  %v26182_v29 = vpack.c.bf16 %v4900_v34, %v4899_v40 }
 0x60d   : > { %4865 = vst.msk [vmem:[#allocation4 + $0x378] sm:$0xff] %vm309_vm0, %v4833_v48  ;;  %v20440_v23 = vpop.f32.mrb[40].mxu1  ;;  %v26179_v47 = vpack.c.bf16 %v4898_v22, %v4897_v25 }
 0x60e   : > { %v4806_v53 = vadd.f32 %v20440_v23, %v26161_v30  ;;  %v4661_v51 = vpop.f32.mrb[41].mxu1 }
 0x60f   : > { %v4804_v46 = vadd.f32 %v26161_v30, %v4661_v51  ;;  %v20441_v57 = vpop.f32.mrb[42].mxu1  ;;  %20466 = vmatprep.mubr.msk.bf16.mxu0 %vm309_vm0, %v26179_v47 }
 0x610   : > { %v4838_v41 = vmax.f32 %v4806_v53, 0.0  ;;  %v4807_v20 = vadd.f32 %v20441_v57, %v26161_v30  ;;  %v4664_v15 = vpop.f32.mrb[43].mxu1  ;;  %20467 = vmatmul.mubr.msk.bf16.vlgmr.msra.gmra.mrb[32].mxu0 %vm309_vm0, %v26182_v29 }
 0x611   : > { %v4836_v59 = vmax.f32 %v4804_v46, 0.0  ;;  %v4805_v44 = vadd.f32 %v26161_v30, %v4664_v15  ;;  %20499 = vmatpush3.bf16.msra.mxu0 %v4950_v18  ;;  %v4903_v18 = vld [vmem:[#allocation4 + $0x39e] sm:$0xff] }
 0x612   : > { %4870 = vst.msk [vmem:[#allocation4 + $0x400] sm:$0xff] %vm309_vm0, %v4838_v41  ;;  %v4839_v27 = vmax.f32 %v4807_v20, 0.0  ;;  %20500 = vmatprep.subr.bf16.mxu0 %v4951_v56  ;;  %v4901_v37 = vld [vmem:[#allocation4 + $0x36e] sm:$0xff] }
 0x613   : > { %4868 = vst.msk [vmem:[#allocation4 + $0x3d0] sm:$0xff] %vm309_vm0, %v4836_v59  ;;  %v4837_v35 = vmax.f32 %v4805_v44, 0.0  ;;  %v4904_v39 = vld [vmem:[#allocation4 + $0x3a6] sm:$0xff] }
 0x614   : > { %4871 = vst.msk [vmem:[#allocation4 + $0x408] sm:$0xff] %vm309_vm0, %v4839_v27  ;;  %v4902_v52 = vld [vmem:[#allocation4 + $0x376] sm:$0xff]  ;;  %v26200_v19 = vpack.c.bf16 %v4904_v39, %v4903_v18 }
 0x615   : > { %4869 = vst.msk [vmem:[#allocation4 + $0x3d8] sm:$0xff] %vm309_vm0, %v4837_v35  ;;  %v20444_v43 = vpop.f32.mrb[44].mxu1  ;;  %v26197_v58 = vpack.c.bf16 %v4902_v52, %v4901_v37  ;;  %20501 = vmatpush3.bf16.msra.mxu0 %v4951_v56 }
 0x616   : > { %v4810_v28 = vadd.f32 %v20444_v43, %v26161_v30  ;;  %v4677_v63 = vpop.f32.mrb[45].mxu1  ;;  %20534 = vmatprep.subr.bf16.mxu0 %v26193_v54 }
 0x617   : > { %v4808_v14 = vadd.f32 %v26161_v30, %v4677_v63  ;;  %v20445_v60 = vpop.f32.mrb[46].mxu1  ;;  %20470 = vmatprep.mubr.msk.bf16.mxu0 %vm309_vm0, %v26197_v58 }
 0x618   : > { %v4842_v16 = vmax.f32 %v4810_v28, 0.0  ;;  %v4811_v32 = vadd.f32 %v20445_v60, %v26161_v30  ;;  %v4680_v24 = vpop.f32.mrb[47].mxu1  ;;  %20471 = vmatmul.mubr.msk.bf16.gmra.mrb[36].mxu0 %vm309_vm0, %v26200_v19 }
 0x619   : > { %v4840_v13 = vmax.f32 %v4808_v14, 0.0  ;;  %v4809_v36 = vadd.f32 %v26161_v30, %v4680_v24  ;;  %v4907_v0 = vld [vmem:[#allocation4 + $0x3fe] sm:$0xff] }
 0x61a   : > { %4874 = vst.msk [vmem:[#allocation4 + $0x460] sm:$0xff] %vm309_vm0, %v4842_v16  ;;  %v4843_v50 = vmax.f32 %v4811_v32, 0.0  ;;  %v4905_v21 = vld [vmem:[#allocation4 + $0x3ce] sm:$0xff] }
 0x61b   : > { %4872 = vst.msk [vmem:[#allocation4 + $0x430] sm:$0xff] %vm309_vm0, %v4840_v13  ;;  %v4841_v38 = vmax.f32 %v4809_v36, 0.0  ;;  %v4908_v31 = vld [vmem:[#allocation4 + $0x406] sm:$0xff] }
 0x61c   : > { %4875 = vst.msk [vmem:[#allocation4 + $0x468] sm:$0xff] %vm309_vm0, %v4843_v50  ;;  %v4906_v49 = vld [vmem:[#allocation4 + $0x3d6] sm:$0xff]  ;;  %v26217_v33 = vpack.c.bf16 %v4908_v31, %v4907_v0 }
 0x61d   : > { %4873 = vst.msk [vmem:[#allocation4 + $0x438] sm:$0xff] %vm309_vm0, %v4841_v38  ;;  %v20448_v61 = vpop.f32.mrb[48].mxu1  ;;  %v26214_v42 = vpack.c.bf16 %v4906_v49, %v4905_v21 }
 0x61e   : > { %v4814_v55 = vadd.f32 %v20448_v61, %v26161_v30  ;;  %v4693_v62 = vpop.f32.mrb[49].mxu1 }
 0x61f   : > { %v4812_v26 = vadd.f32 %v26161_v30, %v4693_v62  ;;  %v20449_v45 = vpop.f32.mrb[50].mxu1  ;;  %20474 = vmatprep.mubr.msk.bf16.mxu0 %vm309_vm0, %v26214_v42 }
 0x620   : > { %v4846_v48 = vmax.f32 %v4814_v55, 0.0  ;;  %v4815_v34 = vadd.f32 %v20449_v45, %v26161_v30  ;;  %v4696_v25 = vpop.f32.mrb[51].mxu1  ;;  %20475 = vmatmul.mubr.msk.bf16.gmra.mrb[40].mxu0 %vm309_vm0, %v26217_v33 }
 0x621   : > { %v4844_v22 = vmax.f32 %v4812_v26, 0.0  ;;  %v4813_v23 = vadd.f32 %v26161_v30, %v4696_v25  ;;  %v4911_v20 = vld [vmem:[#allocation4 + $0x45e] sm:$0xff] }
 0x622   : > { %4878 = vst.msk [vmem:[#allocation4 + $0x4c0] sm:$0xff] %vm309_vm0, %v4846_v48  ;;  %v4847_v40 = vmax.f32 %v4815_v34, 0.0  ;;  %v4909_v46 = vld [vmem:[#allocation4 + $0x42e] sm:$0xff] }
 0x623   : > { %4876 = vst.msk [vmem:[#allocation4 + $0x490] sm:$0xff] %vm309_vm0, %v4844_v22  ;;  %v4845_v53 = vmax.f32 %v4813_v23, 0.0  ;;  %v4912_v51 = vld [vmem:[#allocation4 + $0x466] sm:$0xff] }
 0x624   : > { %4879 = vst.msk [vmem:[#allocation4 + $0x4c8] sm:$0xff] %vm309_vm0, %v4847_v40  ;;  %v4910_v57 = vld [vmem:[#allocation4 + $0x436] sm:$0xff]  ;;  %v26233_v44 = vpack.c.bf16 %v4912_v51, %v4911_v20 }
 0x625   : > { %4877 = vst.msk [vmem:[#allocation4 + $0x498] sm:$0xff] %vm309_vm0, %v4845_v53  ;;  %v20452_v56 = vpop.f32.mrb[52].mxu1  ;;  %v26230_v41 = vpack.c.bf16 %v4910_v57, %v4909_v46 }
 0x626   : > { %v4818_v15 = vadd.f32 %v20452_v56, %v26161_v30  ;;  %v4709_v59 = vpop.f32.mrb[53].mxu1 }
 0x627   : > { %v4816_v27 = vadd.f32 %v26161_v30, %v4709_v59  ;;  %v20453_v35 = vpop.f32.mrb[54].mxu1  ;;  %20478 = vmatprep.mubr.msk.bf16.mxu0 %vm309_vm0, %v26230_v41 }
 0x628   : > { %v4850_v39 = vmax.f32 %v4818_v15, 0.0  ;;  %v4819_v37 = vadd.f32 %v20453_v35, %v26161_v30  ;;  %v4712_v52 = vpop.f32.mrb[55].mxu1  ;;  %20479 = vmatmul.mubr.msk.bf16.gmra.mrb[44].mxu0 %vm309_vm0, %v26233_v44 }
 0x629   : > { %v4848_v43 = vmax.f32 %v4816_v27, 0.0  ;;  %v4817_v18 = vadd.f32 %v26161_v30, %v4712_v52  ;;  %v4915_v13 = vld [vmem:[#allocation4 + $0x4be] sm:$0xff] }
 0x62a   : > { %4882 = vst.msk [vmem:[#allocation4 + $0x520] sm:$0xff] %vm309_vm0, %v4850_v39  ;;  %v4851_v28 = vmax.f32 %v4819_v37, 0.0  ;;  %v4913_v60 = vld [vmem:[#allocation4 + $0x48e] sm:$0xff] }
 0x62b   : > { %4880 = vst.msk [vmem:[#allocation4 + $0x4f0] sm:$0xff] %vm309_vm0, %v4848_v43  ;;  %v4849_v63 = vmax.f32 %v4817_v18, 0.0  ;;  %v4916_v14 = vld [vmem:[#allocation4 + $0x4c6] sm:$0xff] }
 0x62c   : > { %4883 = vst.msk [vmem:[#allocation4 + $0x528] sm:$0xff] %vm309_vm0, %v4851_v28  ;;  %v4914_v16 = vld [vmem:[#allocation4 + $0x496] sm:$0xff]  ;;  %v26249_v38 = vpack.c.bf16 %v4916_v14, %v4915_v13 }
 0x62d   : > { %4881 = vst.msk [vmem:[#allocation4 + $0x4f8] sm:$0xff] %vm309_vm0, %v4849_v63  ;;  %v20456_v32 = vpop.f32.mrb[56].mxu1  ;;  %v26246_v24 = vpack.c.bf16 %v4914_v16, %v4913_v60  ;;  %v4894_v60 = vld [vmem:[#allocation4 + $0x2b6] sm:$0xff] }
 0x62e   : > { %v4822_v36 = vadd.f32 %v20456_v32, %v26161_v30  ;;  %v4725_v50 = vpop.f32.mrb[57].mxu1 }
 0x62f   : > { %v4820_v31 = vadd.f32 %v26161_v30, %v4725_v50  ;;  %v20457_v21 = vpop.f32.mrb[58].mxu1  ;;  %20482 = vmatprep.mubr.msk.bf16.mxu0 %vm309_vm0, %v26246_v24 }
 0x630   : > { %v4854_v49 = vmax.f32 %v4822_v36, 0.0  ;;  %v4823_v61 = vadd.f32 %v20457_v21, %v26161_v30  ;;  %v4728_v0 = vpop.f32.mrb[59].mxu1  ;;  %20483 = vmatmul.mubr.msk.bf16.gmra.mrb[48].mxu0 %vm309_vm0, %v26249_v38 }
 0x631   : > { %v4852_v55 = vmax.f32 %v4820_v31, 0.0  ;;  %v4821_v62 = vadd.f32 %v26161_v30, %v4728_v0  ;;  %v4919_v40 = vld [vmem:[#allocation4 + $0x51e] sm:$0xff] }
 0x632   : > { %4886 = vst.msk [vmem:[#allocation4 + $0x580] sm:$0xff] %vm309_vm0, %v4854_v49  ;;  %v4855_v26 = vmax.f32 %v4823_v61, 0.0  ;;  %v4917_v34 = vld [vmem:[#allocation4 + $0x4ee] sm:$0xff]  ;;  %v4895_v49 = vld [vmem:[#allocation4 + $0x2de] sm:$0xff]  ;;  %v4896_v61 = vld [vmem:[#allocation4 + $0x2e6] sm:$0xff] }
 0x633   : > { %4884 = vst.msk [vmem:[#allocation4 + $0x550] sm:$0xff] %vm309_vm0, %v4852_v55  ;;  %v4853_v45 = vmax.f32 %v4821_v62, 0.0  ;;  %v4920_v48 = vld [vmem:[#allocation4 + $0x526] sm:$0xff]  ;;  %v4934_v0 = vpack.c.bf16 %v4896_v61, %v4895_v49  ;;  %v5337_v55 = vld [vmem:[#allocation2 + $0x188] sm:$0xff]  ;;  %v5561_v61 = vld [vmem:[#allocation4 + $0x4f0] sm:$0xff] }
 0x634   : > { %4887 = vst.msk [vmem:[#allocation4 + $0x588] sm:$0xff] %vm309_vm0, %v4855_v26  ;;  %v4918_v25 = vld [vmem:[#allocation4 + $0x4f6] sm:$0xff]  ;;  %v26265_v46 = vpack.c.bf16 %v4920_v48, %v4919_v40  ;;  %v5594_v62 = vld [vmem:[#allocation2 + $0x130] sm:$0xff]  ;;  %v5544_v40 = vld [vmem:[#allocation4 + $0x348] sm:$0xff] }
 0x635   : > { %4885 = vst.msk [vmem:[#allocation4 + $0x558] sm:$0xff] %vm309_vm0, %v4853_v45  ;;  %v20460_v22 = vpop.f32.mrb[60].mxu1  ;;  %v26262_v23 = vpack.c.bf16 %v4918_v25, %v4917_v34  ;;  %v5539_v26 = vld [vmem:[#allocation4 + $0x2e0] sm:$0xff]  ;;  %v5540_v45 = vld [vmem:[#allocation4 + $0x2e8] sm:$0xff]  ;;  %v5542_v34 = vld [vmem:[#allocation4 + $0x318] sm:$0xff] }
 0x636   : > { %v4826_v53 = vadd.f32 %v20460_v22, %v26161_v30  ;;  %v4741_v51 = vpop.f32.mrb[61].mxu1  ;;  %v5578_v48 = vpack.c.bf16 %v5540_v45, %v5539_v26  ;;  %v5541_v25 = vld [vmem:[#allocation4 + $0x310] sm:$0xff] }
 0x637   : > { %v4824_v57 = vadd.f32 %v26161_v30, %v4741_v51  ;;  %v20461_v56 = vpop.f32.mrb[62].mxu1  ;;  %20486 = vmatprep.mubr.msk.bf16.mxu0 %vm309_vm0, %v26262_v23  ;;  %v5579_v22 = vpack.c.bf16 %v5542_v34, %v5541_v25  ;;  %v5546_v51 = vld [vmem:[#allocation4 + $0x378] sm:$0xff] }
 0x638   : > { %v4858_v20 = vmax.f32 %v4826_v53, 0.0  ;;  %v4827_v15 = vadd.f32 %v20461_v56, %v26161_v30  ;;  %v4744_v59 = vpop.f32.mrb[63].mxu1  ;;  %20487 = vmatmul.mubr.msk.bf16.gmra.mrb[52].mxu0 %vm309_vm0, %v26265_v46  ;;  %v6044_v53 = vld [vmem:[#allocation2 + $0x190] sm:$0xff]  ;;  %v5545_v56 = vld [vmem:[#allocation4 + $0x370] sm:$0xff]  ;;  %v6303_v25 = vld [vmem:[#allocation2 + $0x148] sm:$0xff] }
 0x639   : > { %v4856_v27 = vmax.f32 %v4824_v57, 0.0  ;;  %v4825_v35 = vadd.f32 %v26161_v30, %v4744_v59  ;;  %v4923_v63 = vld [vmem:[#allocation4 + $0x57e] sm:$0xff]  ;;  %v4893_v30 = vld [vmem:[#allocation4 + $0x2ae] sm:$0xff] }
 0x63a   : > { %4890 = vst.msk [vmem:[#allocation4 + $0x5e0] sm:$0xff] %vm309_vm0, %v4858_v20  ;;  %v4859_v39 = vmax.f32 %v4827_v15, 0.0  ;;  %v4921_v43 = vld [vmem:[#allocation4 + $0x54e] sm:$0xff]  ;;  %v4933_v31 = vpack.c.bf16 %v4894_v60, %v4893_v30  ;;  %v26340_v20 = vpack.c.bf16 %v5546_v51, %v5545_v56  ;;  %v5550_v59 = vld [vmem:[#allocation4 + $0x3d8] sm:$0xff]  ;;  %v6247_v56 = vld [vmem:[#allocation4 + $0x2e2] sm:$0xff] }
 0x63b   : > { %4888 = vst.msk [vmem:[#allocation4 + $0x5b0] sm:$0xff] %vm309_vm0, %v4856_v27  ;;  %v4857_v37 = vmax.f32 %v4825_v35, 0.0  ;;  %v4924_v52 = vld [vmem:[#allocation4 + $0x586] sm:$0xff]  ;;  %v5558_v60 = vld [vmem:[#allocation4 + $0x498] sm:$0xff] }
 0x63c   : > { %4891 = vst.msk [vmem:[#allocation4 + $0x5e8] sm:$0xff] %vm309_vm0, %v4859_v39  ;;  %v4922_v18 = vld [vmem:[#allocation4 + $0x556] sm:$0xff]  ;;  %v4948_v14 = vpack.c.bf16 %v4924_v52, %v4923_v63  ;;  %v5548_v15 = vld [vmem:[#allocation4 + $0x3a8] sm:$0xff]  ;;  %v5547_v27 = vld [vmem:[#allocation4 + $0x3a0] sm:$0xff] }
 0x63d   : > { %4889 = vst.msk [vmem:[#allocation4 + $0x5b8] sm:$0xff] %vm309_vm0, %v4857_v37  ;;  %v4947_v28 = vpack.c.bf16 %v4922_v18, %v4921_v43  ;;  %v26345_v35 = vpack.c.bf16 %v5548_v15, %v5547_v27  ;;  %v5549_v39 = vld [vmem:[#allocation4 + $0x3d0] sm:$0xff]  ;;  %v5552_v52 = vld [vmem:[#allocation4 + $0x408] sm:$0xff]  ;;  %v5554_v43 = vld [vmem:[#allocation4 + $0x438] sm:$0xff] }
 0x63e   : > { %v26347_v37 = vpack.c.bf16 %v5550_v59, %v5549_v39  ;;  %v5551_v18 = vld [vmem:[#allocation4 + $0x400] sm:$0xff]  ;;  %v5553_v63 = vld [vmem:[#allocation4 + $0x430] sm:$0xff]  ;;  %v5556_v30 = vld [vmem:[#allocation4 + $0x468] sm:$0xff] }
 0x63f   : > { %20490 = vmatprep.mubr.msk.bf16.mxu0 %vm309_vm0, %v4947_v28  ;;  %v6246_v51 = vld [vmem:[#allocation4 + $0x2ba] sm:$0xff]  ;;  %v6249_v59 = vld [vmem:[#allocation4 + $0x312] sm:$0xff]  ;;  %v6549_v39 = vld [vmem:[#allocation2 + $0x178] sm:$0xff] }
 0x640   : > { %20491 = vmatmul.mubr.msk.bf16.gmra.mrb[56].mxu0 %vm309_vm0, %v4948_v14  ;;  %v6250_v27 = vld [vmem:[#allocation4 + $0x31a] sm:$0xff] }
 0x641   : > { %v4927_v50 = vld [vmem:[#allocation4 + $0x5de] sm:$0xff] }
 0x642   : > { %v4925_v32 = vld [vmem:[#allocation4 + $0x5ae] sm:$0xff] }
 0x643   : > { %v4928_v16 = vld [vmem:[#allocation4 + $0x5e6] sm:$0xff] }
 0x644   : > { %v4926_v13 = vld [vmem:[#allocation4 + $0x5b6] sm:$0xff]  ;;  %v4953_v21 = vpack.c.bf16 %v4928_v16, %v4927_v50  ;;  %v5555_v16 = vld [vmem:[#allocation4 + $0x460] sm:$0xff]  ;;  %v5560_v50 = vld [vmem:[#allocation4 + $0x4c8] sm:$0xff] }
 0x645   : > { %v4952_v36 = vpack.c.bf16 %v4926_v13, %v4925_v32  ;;  %v26361_v32 = vpack.c.bf16 %v5556_v30, %v5555_v16  ;;  %v5557_v13 = vld [vmem:[#allocation4 + $0x490] sm:$0xff]  ;;  %v5572_v45 = vld [vmem:[#allocation4 + $0x5e8] sm:$0xff]  ;;  %v6258_v16 = vld [vmem:[#allocation4 + $0x3da] sm:$0xff] }
 0x646   : > { %v6256_v30 = vld [vmem:[#allocation4 + $0x3aa] sm:$0xff] }
 0x647   : > { %20494 = vmatprep.mubr.msk.bf16.mxu0 %vm309_vm0, %v4952_v36 }
 0x648   : > { %20495 = vmatmul.mubr.msk.bf16.gmra.mrb[60].mxu0 %vm309_vm0, %v4953_v21 }
 0x649   : > { %20502 = vmatprep.mubr.msk.bf16.mxu0 %vm309_vm0, %v4933_v31  ;;  %v5562_v31 = vld [vmem:[#allocation4 + $0x4f8] sm:$0xff] }
 0x650   : > { %20503 = vmatmul.mubr.msk.bf16.vlgmr.msra.gmra.mrb[32].mxu0 %vm309_vm0, %v4934_v0  ;;  %v5589_v0 = vpack.c.bf16 %v5562_v31, %v5561_v61  ;;  %v6261_v31 = vld [vmem:[#allocation4 + $0x432] sm:$0xff] }
 0x651   : > { %20506 = vmatprep.mubr.msk.bf16.mxu0 %vm309_vm0, %v26179_v47  ;;  %20535 = vmatpush3.bf16.msra.mxu0 %v26193_v54  ;;  %v5595_v47 = vld [vmem:[#allocation2 + $0x138] sm:$0xff] }
 0x652   : > { %20536 = vmatprep.subr.bf16.mxu0 %v5337_v55  ;;  %v4929_v54 = vld [vmem:[#allocation4 + $0x60e] sm:$0xff] }
 0x655   : > { %20537 = vmatpush3.bf16.msra.mxu0 %v5337_v55  ;;  %v5564_v55 = vld [vmem:[#allocation4 + $0x528] sm:$0xff] }
 0x656   : > { %20570 = vmatprep.subr.bf16.mxu0 %v5594_v62 }
 0x658   : > { %20507 = vmatmul.mubr.msk.bf16.gmra.mrb[36].mxu0 %vm309_vm0, %v26182_v29  ;;  %v5840_v29 = vld [vmem:[#allocation2 + $0x160] sm:$0xff] }
 0x659   : > { %20510 = vmatprep.mubr.msk.bf16.mxu0 %vm309_vm0, %v26197_v58 }
 0x660   : > { %20511 = vmatmul.mubr.msk.bf16.gmra.mrb[40].mxu0 %vm309_vm0, %v26200_v19 }
 0x661   : > { %20514 = vmatprep.mubr.msk.bf16.mxu0 %vm309_vm0, %v26214_v42 }
 0x668   : > { %20515 = vmatmul.mubr.msk.bf16.gmra.mrb[44].mxu0 %vm309_vm0, %v26217_v33 }
 0x669   : > { %20518 = vmatprep.mubr.msk.bf16.mxu0 %vm309_vm0, %v26230_v41 }
 0x670   : > { %20519 = vmatmul.mubr.msk.bf16.gmra.mrb[48].mxu0 %vm309_vm0, %v26233_v44 }
 0x671   : > { %20522 = vmatprep.mubr.msk.bf16.mxu0 %vm309_vm0, %v26246_v24 }
 0x678   : > { %20523 = vmatmul.mubr.msk.bf16.gmra.mrb[52].mxu0 %vm309_vm0, %v26249_v38 }
 0x679   : > { %20526 = vmatprep.mubr.msk.bf16.mxu0 %vm309_vm0, %v26262_v23 }
 0x680   : > { %20527 = vmatmul.mubr.msk.bf16.gmra.mrb[56].mxu0 %vm309_vm0, %v26265_v46 }
 0x681   : > { %20530 = vmatprep.mubr.msk.bf16.mxu0 %vm309_vm0, %v4947_v28 }
 0x688   : > { %20531 = vmatmul.mubr.msk.bf16.gmra.mrb[60].mxu0 %vm309_vm0, %v4948_v14 }
 0x689   : > { %20538 = vmatprep.mubr.msk.bf16.mxu0 %vm309_vm0, %v26197_v58  ;;  %v4930_v58 = vld [vmem:[#allocation4 + $0x616] sm:$0xff] }
 0x690   : > { %20539 = vmatmul.mubr.msk.bf16.vlgmr.msra.gmra.mrb[32].mxu0 %vm309_vm0, %v26200_v19  ;;  %v5333_v19 = vpack.c.bf16 %v4930_v58, %v4929_v54  ;;  %v5565_v54 = vld [vmem:[#allocation4 + $0x550] sm:$0xff] }
 0x691   : > { %20542 = vmatprep.mubr.msk.bf16.mxu0 %vm309_vm0, %v26214_v42  ;;  %20571 = vmatpush3.bf16.msra.mxu0 %v5594_v62  ;;  %v4931_v42 = vld [vmem:[#allocation4 + $0x63e] sm:$0xff] }
 0x692   : > { %20572 = vmatprep.subr.bf16.mxu0 %v5595_v47  ;;  %v5566_v62 = vld [vmem:[#allocation4 + $0x558] sm:$0xff] }
 0x693   : > { %v5591_v58 = vpack.c.bf16 %v5566_v62, %v5565_v54  ;;  %v6265_v62 = vld [vmem:[#allocation4 + $0x492] sm:$0xff] }
 0x695   : > { %20573 = vmatpush3.bf16.msra.mxu0 %v5595_v47  ;;  %v5563_v47 = vld [vmem:[#allocation4 + $0x520] sm:$0xff] }
 0x696   : > { %20606 = vmatprep.subr.bf16.mxu0 %v5840_v29 }
 0x698   : > { %20543 = vmatmul.mubr.msk.bf16.gmra.mrb[36].mxu0 %vm309_vm0, %v26217_v33  ;;  %v4932_v33 = vld [vmem:[#allocation4 + $0x646] sm:$0xff] }
 0x699   : > { %20546 = vmatprep.mubr.msk.bf16.mxu0 %vm309_vm0, %v26230_v41  ;;  %v5537_v41 = vld [vmem:[#allocation4 + $0x2b0] sm:$0xff] }
 0x6a0   : > { %20547 = vmatmul.mubr.msk.bf16.gmra.mrb[40].mxu0 %vm309_vm0, %v26233_v44  ;;  %v5538_v44 = vld [vmem:[#allocation4 + $0x2b8] sm:$0xff] }
 0x6a1   : > { %20550 = vmatprep.mubr.msk.bf16.mxu0 %vm309_vm0, %v26246_v24  ;;  %v5334_v24 = vpack.c.bf16 %v4932_v33, %v4931_v42  ;;  %v5567_v42 = vld [vmem:[#allocation4 + $0x580] sm:$0xff] }
 0x6a8   : > { %20551 = vmatmul.mubr.msk.bf16.gmra.mrb[44].mxu0 %vm309_vm0, %v26249_v38  ;;  %v5577_v38 = vpack.c.bf16 %v5538_v44, %v5537_v41  ;;  %v6045_v41 = vld [vmem:[#allocation2 + $0x198] sm:$0xff]  ;;  %v6302_v44 = vld [vmem:[#allocation2 + $0x140] sm:$0xff] }
 0x6a9   : > { %20554 = vmatprep.mubr.msk.bf16.mxu0 %vm309_vm0, %v26262_v23  ;;  %v5841_v23 = vld [vmem:[#allocation2 + $0x168] sm:$0xff] }
 0x6b0   : > { %20555 = vmatmul.mubr.msk.bf16.gmra.mrb[48].mxu0 %vm309_vm0, %v26265_v46  ;;  %v5543_v46 = vld [vmem:[#allocation4 + $0x340] sm:$0xff] }
 0x6b1   : > { %20558 = vmatprep.mubr.msk.bf16.mxu0 %vm309_vm0, %v4947_v28  ;;  %v5580_v57 = vpack.c.bf16 %v5544_v40, %v5543_v46  ;;  %v26353_v28 = vpack.c.bf16 %v5552_v52, %v5551_v18  ;;  %v5576_v40 = vld [vmem:[#allocation4 + $0x648] sm:$0xff]  ;;  %v26427_v52 = vld [vmem:[#allocation2 + $0x1a0] sm:$0xff]  ;;  %v6254_v18 = vld [vmem:[#allocation4 + $0x37a] sm:$0xff] }
 0x6b8   : > { %20559 = vmatmul.mubr.msk.bf16.gmra.mrb[52].mxu0 %vm309_vm0, %v4948_v14  ;;  %v26355_v14 = vpack.c.bf16 %v5554_v43, %v5553_v63  ;;  %v6253_v43 = vld [vmem:[#allocation4 + $0x372] sm:$0xff] }
 0x6b9   : > { %20562 = vmatprep.mubr.msk.bf16.mxu0 %vm309_vm0, %v4952_v36  ;;  %v26363_v36 = vpack.c.bf16 %v5558_v60, %v5557_v13  ;;  %v26430_v63 = vpack.c.bf16 %v6254_v18, %v6253_v43  ;;  %v6257_v60 = vld [vmem:[#allocation4 + $0x3d2] sm:$0xff]  ;;  %v7123_v43 = vld [vmem:[#allocation2 + $0x1b0] sm:$0xff] }
 0x6ba   : > { %v26437_v13 = vpack.c.bf16 %v6258_v16, %v6257_v60  ;;  %v26502_v18 = vld [vmem:[#allocation8 + $0x2] ss:$0 sm:$0xff] }
 0x6c0   : > { %20563 = vmatmul.mubr.msk.bf16.gmra.mrb[56].mxu0 %vm309_vm0, %v4953_v21  ;;  %v5559_v21 = vld [vmem:[#allocation4 + $0x4c0] sm:$0xff] }
 0x6c1   : > { %20566 = vmatprep.mubr.msk.bf16.mxu0 %vm309_vm0, %v5333_v19  ;;  %v5588_v49 = vpack.c.bf16 %v5560_v50, %v5559_v21  ;;  %v5568_v19 = vld [vmem:[#allocation4 + $0x588] sm:$0xff]  ;;  %v6262_v21 = vld [vmem:[#allocation4 + $0x43a] sm:$0xff] }
 0x6c2   : > { %v5592_v33 = vpack.c.bf16 %v5568_v19, %v5567_v42  ;;  %v6260_v50 = vld [vmem:[#allocation4 + $0x40a] sm:$0xff]  ;;  %v26445_v61 = vpack.c.bf16 %v6262_v21, %v6261_v31  ;;  %v6269_v42 = vld [vmem:[#allocation4 + $0x4f2] sm:$0xff] }
 0x6c3   : > { %v6268_v19 = vld [vmem:[#allocation4 + $0x4ca] sm:$0xff] }
 0x6c8   : > { %20567 = vmatmul.mubr.msk.bf16.gmra.mrb[60].mxu0 %vm309_vm0, %v5334_v24  ;;  %v5570_v24 = vld [vmem:[#allocation4 + $0x5b8] sm:$0xff] }
 0x6c9   : > { %20574 = vmatprep.mubr.msk.bf16.mxu0 %vm309_vm0, %v5577_v38  ;;  %v5569_v38 = vld [vmem:[#allocation4 + $0x5b0] sm:$0xff] }
 0x6ca   : > { %v5837_v26 = vpack.c.bf16 %v5570_v24, %v5569_v38  ;;  %v6271_v24 = vld [vmem:[#allocation4 + $0x522] sm:$0xff]  ;;  %v6272_v38 = vld [vmem:[#allocation4 + $0x52a] sm:$0xff] }
 0x6d0   : > { %20575 = vmatmul.mubr.msk.bf16.vlgmr.msra.gmra.mrb[32].mxu0 %vm309_vm0, %v5578_v48  ;;  %v5571_v48 = vld [vmem:[#allocation4 + $0x5e0] sm:$0xff] }
 0x6d1   : > { %20578 = vmatprep.mubr.msk.bf16.mxu0 %vm309_vm0, %v5579_v22  ;;  %20607 = vmatpush3.bf16.msra.mxu0 %v5840_v29  ;;  %v5590_v29 = vpack.c.bf16 %v5564_v55, %v5563_v47  ;;  %v5838_v34 = vpack.c.bf16 %v5572_v45, %v5571_v48  ;;  %v6264_v55 = vld [vmem:[#allocation4 + $0x46a] sm:$0xff]  ;;  %v6266_v47 = vld [vmem:[#allocation4 + $0x49a] sm:$0xff]  ;;  %v6298_v48 = vpack.c.bf16 %v6272_v38, %v6271_v24 }
 0x6d2   : > { %20608 = vmatprep.subr.bf16.mxu0 %v5841_v23  ;;  %v6295_v54 = vpack.c.bf16 %v6266_v47, %v6265_v62  ;;  %v6274_v45 = vld [vmem:[#allocation4 + $0x55a] sm:$0xff] }
 0x6d5   : > { %20609 = vmatpush3.bf16.msra.mxu0 %v5841_v23  ;;  %v5575_v23 = vld [vmem:[#allocation4 + $0x640] sm:$0xff] }
 0x6d6   : > { %20642 = vmatprep.subr.bf16.mxu0 %v6044_v53  ;;  %v6042_v46 = vpack.c.bf16 %v5576_v40, %v5575_v23  ;;  %v7130_v40 = vld [vmem:[#allocation2 + $0x1e0] sm:$0xff] }
 0x6d7   : > { %20786 = vmatprep.subr.bf16.mxu1 %v7130_v40 }
 0x6d8   : > { %20579 = vmatmul.mubr.msk.bf16.gmra.mrb[36].mxu0 %vm309_vm0, %v5580_v57  ;;  %20787 = vmatpush3.bf16.msra.mxu1 %v7130_v40  ;;  %v7124_v40 = vld [vmem:[#allocation2 + $0x1b8] sm:$0xff] }
 0x6d9   : > { %20582 = vmatprep.mubr.msk.bf16.mxu0 %vm309_vm0, %v26340_v20 }
 0x6e0   : > { %20583 = vmatmul.mubr.msk.bf16.gmra.mrb[40].mxu0 %vm309_vm0, %v26345_v35 }
 0x6e1   : > { %20586 = vmatprep.mubr.msk.bf16.mxu0 %vm309_vm0, %v26347_v37 }
 0x6e8   : > { %20587 = vmatmul.mubr.msk.bf16.gmra.mrb[44].mxu0 %vm309_vm0, %v26353_v28 }
 0x6e9   : > { %20590 = vmatprep.mubr.msk.bf16.mxu0 %vm309_vm0, %v26355_v14 }
 0x6f0   : > { %20591 = vmatmul.mubr.msk.bf16.gmra.mrb[48].mxu0 %vm309_vm0, %v26361_v32 }
 0x6f1   : > { %20594 = vmatprep.mubr.msk.bf16.mxu0 %vm309_vm0, %v26363_v36 }
 0x6f8   : > { %20595 = vmatmul.mubr.msk.bf16.gmra.mrb[52].mxu0 %vm309_vm0, %v5588_v49 }
 0x6f9   : > { %20598 = vmatprep.mubr.msk.bf16.mxu0 %vm309_vm0, %v5589_v0 }
 0x700   : > { %20599 = vmatmul.mubr.msk.bf16.gmra.mrb[56].mxu0 %vm309_vm0, %v5590_v29 }
 0x701   : > { %20602 = vmatprep.mubr.msk.bf16.mxu0 %vm309_vm0, %v5591_v58 }
 0x708   : > { %20603 = vmatmul.mubr.msk.bf16.gmra.mrb[60].mxu0 %vm309_vm0, %v5592_v33 }
 0x709   : > { %20610 = vmatprep.mubr.msk.bf16.mxu0 %vm309_vm0, %v5579_v22  ;;  %v6548_v22 = vld [vmem:[#allocation2 + $0x170] sm:$0xff] }
 0x710   : > { %20611 = vmatmul.mubr.msk.bf16.vlgmr.msra.gmra.mrb[32].mxu0 %vm309_vm0, %v5580_v57 }
 0x711   : > { %20614 = vmatprep.mubr.msk.bf16.mxu0 %vm309_vm0, %v26340_v20  ;;  %20643 = vmatpush3.bf16.msra.mxu0 %v6044_v53  ;;  %v6245_v53 = vld [vmem:[#allocation4 + $0x2b2] sm:$0xff] }
 0x712   : > { %20644 = vmatprep.subr.bf16.mxu0 %v6045_v41  ;;  %v6285_v57 = vpack.c.bf16 %v6246_v51, %v6245_v53  ;;  %v7131_v53 = vld [vmem:[#allocation2 + $0x1e8] sm:$0xff] }
 0x713   : > { %20788 = vmatprep.subr.bf16.mxu1 %v7131_v53  ;;  %v6753_v51 = vld [vmem:[#allocation2 + $0x1a8] sm:$0xff] }
 0x714   : > { %20789 = vmatpush3.bf16.msra.mxu1 %v7131_v53 }
 0x715   : > { %20645 = vmatpush3.bf16.msra.mxu0 %v6045_v41  ;;  %20822 = vmatprep.subr.bf16.mxu1 %v7123_v43 }
 0x716   : > { %20678 = vmatprep.subr.bf16.mxu0 %v6302_v44 }
 0x718   : > { %20615 = vmatmul.mubr.msk.bf16.gmra.mrb[36].mxu0 %vm309_vm0, %v26345_v35 }
 0x719   : > { %20618 = vmatprep.mubr.msk.bf16.mxu0 %vm309_vm0, %v26347_v37 }
 0x720   : > { %20619 = vmatmul.mubr.msk.bf16.gmra.mrb[40].mxu0 %vm309_vm0, %v26353_v28 }
 0x721   : > { %20622 = vmatprep.mubr.msk.bf16.mxu0 %vm309_vm0, %v26355_v14 }
 0x728   : > { %20623 = vmatmul.mubr.msk.bf16.gmra.mrb[44].mxu0 %vm309_vm0, %v26361_v32 }
 0x729   : > { %20626 = vmatprep.mubr.msk.bf16.mxu0 %vm309_vm0, %v26363_v36 }
 0x730   : > { %20627 = vmatmul.mubr.msk.bf16.gmra.mrb[48].mxu0 %vm309_vm0, %v5588_v49 }
 0x731   : > { %20630 = vmatprep.mubr.msk.bf16.mxu0 %vm309_vm0, %v5589_v0 }
 0x738   : > { %20631 = vmatmul.mubr.msk.bf16.gmra.mrb[52].mxu0 %vm309_vm0, %v5590_v29 }
 0x739   : > { %20634 = vmatprep.mubr.msk.bf16.mxu0 %vm309_vm0, %v5591_v58 }
 0x740   : > { %20635 = vmatmul.mubr.msk.bf16.gmra.mrb[56].mxu0 %vm309_vm0, %v5592_v33 }
 0x741   : > { %20638 = vmatprep.mubr.msk.bf16.mxu0 %vm309_vm0, %v5837_v26 }
 0x748   : > { %20639 = vmatmul.mubr.msk.bf16.gmra.mrb[60].mxu0 %vm309_vm0, %v5838_v34 }
 0x749   : > { %20646 = vmatprep.mubr.msk.bf16.mxu0 %vm309_vm0, %v26340_v20  ;;  %v6248_v20 = vld [vmem:[#allocation4 + $0x2ea] sm:$0xff] }
 0x74a   : > { %v6286_v15 = vpack.c.bf16 %v6248_v20, %v6247_v56  ;;  %v6279_v20 = vld [vmem:[#allocation4 + $0x5e2] sm:$0xff] }
 0x750   : > { %20647 = vmatmul.mubr.msk.bf16.vlgmr.msra.gmra.mrb[32].mxu0 %vm309_vm0, %v26345_v35  ;;  %v26422_v35 = vpack.c.bf16 %v6250_v27, %v6249_v59  ;;  %v6281_v27 = vld [vmem:[#allocation4 + $0x612] sm:$0xff] }
 0x751   : > { %20650 = vmatprep.mubr.msk.bf16.mxu0 %vm309_vm0, %v26347_v37  ;;  %20679 = vmatpush3.bf16.msra.mxu0 %v6302_v44  ;;  %v6252_v37 = vld [vmem:[#allocation4 + $0x34a] sm:$0xff] }
 0x752   : > { %20680 = vmatprep.subr.bf16.mxu0 %v6303_v25 }
 0x755   : > { %20681 = vmatpush3.bf16.msra.mxu0 %v6303_v25  ;;  %v6275_v25 = vld [vmem:[#allocation4 + $0x582] sm:$0xff] }
 0x756   : > { %20714 = vmatprep.subr.bf16.mxu0 %v6548_v22 }
 0x758   : > { %20651 = vmatmul.mubr.msk.bf16.gmra.mrb[36].mxu0 %vm309_vm0, %v26353_v28 }
 0x759   : > { %20654 = vmatprep.mubr.msk.bf16.mxu0 %vm309_vm0, %v26355_v14  ;;  %v6255_v14 = vld [vmem:[#allocation4 + $0x3a2] sm:$0xff] }
 0x760   : > { %20655 = vmatmul.mubr.msk.bf16.gmra.mrb[40].mxu0 %vm309_vm0, %v26361_v32  ;;  %v26435_v32 = vpack.c.bf16 %v6256_v30, %v6255_v14 }
 0x761   : > { %20658 = vmatprep.mubr.msk.bf16.mxu0 %vm309_vm0, %v26363_v36  ;;  %v6259_v36 = vld [vmem:[#allocation4 + $0x402] sm:$0xff] }
 0x768   : > { %20659 = vmatmul.mubr.msk.bf16.gmra.mrb[44].mxu0 %vm309_vm0, %v5588_v49  ;;  %v26443_v49 = vpack.c.bf16 %v6260_v50, %v6259_v36 }
 0x769   : > { %20662 = vmatprep.mubr.msk.bf16.mxu0 %vm309_vm0, %v5589_v0  ;;  %v6263_v0 = vld [vmem:[#allocation4 + $0x462] sm:$0xff] }
 0x770   : > { %20663 = vmatmul.mubr.msk.bf16.gmra.mrb[48].mxu0 %vm309_vm0, %v5590_v29  ;;  %v6294_v29 = vpack.c.bf16 %v6264_v55, %v6263_v0 }
 0x771   : > { %20666 = vmatprep.mubr.msk.bf16.mxu0 %vm309_vm0, %v5591_v58  ;;  %v6267_v58 = vld [vmem:[#allocation4 + $0x4c2] sm:$0xff] }
 0x772   : > { %v6296_v41 = vpack.c.bf16 %v6268_v19, %v6267_v58 }
 0x778   : > { %20667 = vmatmul.mubr.msk.bf16.gmra.mrb[52].mxu0 %vm309_vm0, %v5592_v33  ;;  %v6270_v33 = vld [vmem:[#allocation4 + $0x4fa] sm:$0xff] }
 0x779   : > { %20670 = vmatprep.mubr.msk.bf16.mxu0 %vm309_vm0, %v5837_v26  ;;  %v6297_v44 = vpack.c.bf16 %v6270_v33, %v6269_v42  ;;  %v6273_v26 = vld [vmem:[#allocation4 + $0x552] sm:$0xff] }
 0x780   : > { %20671 = vmatmul.mubr.msk.bf16.gmra.mrb[56].mxu0 %vm309_vm0, %v5838_v34  ;;  %v6299_v34 = vpack.c.bf16 %v6274_v45, %v6273_v26 }
 0x781   : > { %20674 = vmatprep.mubr.msk.bf16.mxu0 %vm309_vm0, %v26066_v17  ;;  %v6251_v17 = vld [vmem:[#allocation4 + $0x342] sm:$0xff] }
 0x782   : > { %v6288_v28 = vpack.c.bf16 %v6252_v37, %v6251_v17  ;;  %v6283_v17 = vld [vmem:[#allocation4 + $0x642] sm:$0xff]  ;;  %v6284_v37 = vld [vmem:[#allocation4 + $0x64a] sm:$0xff] }
 0x788   : > { %20675 = vmatmul.mubr.msk.bf16.gmra.mrb[60].mxu0 %vm309_vm0, %v6042_v46  ;;  %v6277_v46 = vld [vmem:[#allocation4 + $0x5b2] sm:$0xff] }
 0x789   : > { %20682 = vmatprep.mubr.msk.bf16.mxu0 %vm309_vm0, %v6285_v57  ;;  %v6278_v57 = vld [vmem:[#allocation4 + $0x5ba] sm:$0xff] }
 0x78a   : > { %v6545_v56 = vpack.c.bf16 %v6278_v57, %v6277_v46 }
 0x790   : > { %20683 = vmatmul.mubr.msk.bf16.vlgmr.msra.gmra.mrb[32].mxu0 %vm309_vm0, %v6286_v15  ;;  %v6280_v15 = vld [vmem:[#allocation4 + $0x5ea] sm:$0xff] }
 0x791   : > { %20686 = vmatprep.mubr.msk.bf16.mxu0 %vm309_vm0, %v26422_v35  ;;  %20715 = vmatpush3.bf16.msra.mxu0 %v6548_v22  ;;  %v6276_v22 = vld [vmem:[#allocation4 + $0x58a] sm:$0xff]  ;;  %v6546_v59 = vpack.c.bf16 %v6280_v15, %v6279_v20 }
 0x792   : > { %20716 = vmatprep.subr.bf16.mxu0 %v6549_v39  ;;  %v6300_v23 = vpack.c.bf16 %v6276_v22, %v6275_v25 }
 0x795   : > { %20717 = vmatpush3.bf16.msra.mxu0 %v6549_v39 }
 0x796   : > { %20750 = vmatprep.subr.bf16.mxu0 %v26427_v52 }
 0x798   : > { %20687 = vmatmul.mubr.msk.bf16.gmra.mrb[36].mxu0 %vm309_vm0, %v6288_v28 }
 0x799   : > { %20690 = vmatprep.mubr.msk.bf16.mxu0 %vm309_vm0, %v26430_v63 }
 0x7a0   : > { %20691 = vmatmul.mubr.msk.bf16.gmra.mrb[40].mxu0 %vm309_vm0, %v26435_v32 }
 0x7a1   : > { %20694 = vmatprep.mubr.msk.bf16.mxu0 %vm309_vm0, %v26437_v13 }
 0x7a8   : > { %20695 = vmatmul.mubr.msk.bf16.gmra.mrb[44].mxu0 %vm309_vm0, %v26443_v49 }
 0x7a9   : > { %20698 = vmatprep.mubr.msk.bf16.mxu0 %vm309_vm0, %v26445_v61 }
 0x7b0   : > { %20699 = vmatmul.mubr.msk.bf16.gmra.mrb[48].mxu0 %vm309_vm0, %v6294_v29 }
 0x7b1   : > { %20702 = vmatprep.mubr.msk.bf16.mxu0 %vm309_vm0, %v6295_v54 }
 0x7b8   : > { %20703 = vmatmul.mubr.msk.bf16.gmra.mrb[52].mxu0 %vm309_vm0, %v6296_v41 }
 0x7b9   : > { %20706 = vmatprep.mubr.msk.bf16.mxu0 %vm309_vm0, %v6297_v44 }
 0x7c0   : > { %20707 = vmatmul.mubr.msk.bf16.gmra.mrb[56].mxu0 %vm309_vm0, %v6298_v48 }
 0x7c1   : > { %20710 = vmatprep.mubr.msk.bf16.mxu0 %vm309_vm0, %v6299_v34 }
 0x7c8   : > { %20711 = vmatmul.mubr.msk.bf16.gmra.mrb[60].mxu0 %vm309_vm0, %v6300_v23 }
 0x7c9   : > { %20718 = vmatprep.mubr.msk.bf16.mxu0 %vm309_vm0, %v26422_v35  ;;  %v6282_v35 = vld [vmem:[#allocation4 + $0x61a] sm:$0xff] }
 0x7ca   : > { %v6749_v39 = vpack.c.bf16 %v6282_v35, %v6281_v27  ;;  %v26542_v27 = vld [vmem:[#allocation2 + $0x210] sm:$0xff] }
 0x7d0   : > { %20719 = vmatmul.mubr.msk.bf16.vlgmr.msra.gmra.mrb[32].mxu0 %vm309_vm0, %v6288_v28 }
 0x7d1   : > { %20722 = vmatprep.mubr.msk.bf16.mxu0 %vm309_vm0, %v26430_v63  ;;  %20751 = vmatpush3.bf16.msra.mxu0 %v26427_v52  ;;  %v6750_v52 = vpack.c.bf16 %v6284_v37, %v6283_v17 }
 0x7d2   : > { %20752 = vmatprep.subr.bf16.mxu0 %v6753_v51 }
 0x7d5   : > { %20753 = vmatpush3.bf16.msra.mxu0 %v6753_v51 }
 0x7d8   : > { %20723 = vmatmul.mubr.msk.bf16.gmra.mrb[36].mxu0 %vm309_vm0, %v26435_v32 }
 0x7d9   : > { %20726 = vmatprep.mubr.msk.bf16.mxu0 %vm309_vm0, %v26437_v13 }
 0x7e0   : > { %20727 = vmatmul.mubr.msk.bf16.gmra.mrb[40].mxu0 %vm309_vm0, %v26443_v49 }
 0x7e1   : > { %20730 = vmatprep.mubr.msk.bf16.mxu0 %vm309_vm0, %v26445_v61 }
 0x7e8   : > { %20731 = vmatmul.mubr.msk.bf16.gmra.mrb[44].mxu0 %vm309_vm0, %v6294_v29 }
 0x7e9   : > { %20734 = vmatprep.mubr.msk.bf16.mxu0 %vm309_vm0, %v6295_v54 }
 0x7f0   : > { %20735 = vmatmul.mubr.msk.bf16.gmra.mrb[48].mxu0 %vm309_vm0, %v6296_v41 }
 0x7f1   : > { %20738 = vmatprep.mubr.msk.bf16.mxu0 %vm309_vm0, %v6297_v44 }
 0x7f8   : > { %20739 = vmatmul.mubr.msk.bf16.gmra.mrb[52].mxu0 %vm309_vm0, %v6298_v48 }
 0x7f9   : > { %20742 = vmatprep.mubr.msk.bf16.mxu0 %vm309_vm0, %v6299_v34 }
 0x800   : > { %20743 = vmatmul.mubr.msk.bf16.gmra.mrb[56].mxu0 %vm309_vm0, %v6300_v23 }
 0x801   : > { %20746 = vmatprep.mubr.msk.bf16.mxu0 %vm309_vm0, %v6545_v56 }
 0x808   : > { %20747 = vmatmul.mubr.msk.bf16.gmra.mrb[60].mxu0 %vm309_vm0, %v6546_v59 }
 0x809   : > { %20754 = vmatprep.mubr.msk.bf16.mxu0 %vm309_vm0, %v26430_v63 }
 0x810   : > { %20755 = vmatmul.mubr.msk.bf16.vlgmr.msra.gmra.mrb[32].mxu0 %vm309_vm0, %v26435_v32 }
 0x811   : > { %20758 = vmatprep.mubr.msk.bf16.mxu0 %vm309_vm0, %v26437_v13 }
 0x818   : > { %20759 = vmatmul.mubr.msk.bf16.gmra.mrb[36].mxu0 %vm309_vm0, %v26443_v49 }
 0x819   : > { %20762 = vmatprep.mubr.msk.bf16.mxu0 %vm309_vm0, %v26445_v61 }
 0x820   : > { %20763 = vmatmul.mubr.msk.bf16.gmra.mrb[40].mxu0 %vm309_vm0, %v6294_v29 }
 0x821   : > { %20766 = vmatprep.mubr.msk.bf16.mxu0 %vm309_vm0, %v6295_v54 }
 0x828   : > { %20767 = vmatmul.mubr.msk.bf16.gmra.mrb[44].mxu0 %vm309_vm0, %v6296_v41 }
 0x829   : > { %20770 = vmatprep.mubr.msk.bf16.mxu0 %vm309_vm0, %v6297_v44 }
 0x830   : > { %20771 = vmatmul.mubr.msk.bf16.gmra.mrb[48].mxu0 %vm309_vm0, %v6298_v48 }
 0x831   : > { %20774 = vmatprep.mubr.msk.bf16.mxu0 %vm309_vm0, %v6299_v34 }
 0x838   : > { %20775 = vmatmul.mubr.msk.bf16.gmra.mrb[52].mxu0 %vm309_vm0, %v6300_v23 }
 0x839   : > { %20778 = vmatprep.mubr.msk.bf16.mxu0 %vm309_vm0, %v6545_v56 }
 0x840   : > { %20779 = vmatmul.mubr.msk.bf16.gmra.mrb[56].mxu0 %vm309_vm0, %v6546_v59 }
 0x841   : > { %20782 = vmatprep.mubr.msk.bf16.mxu0 %vm309_vm0, %v6749_v39 }
 0x848   : > { %20783 = vmatmul.mubr.msk.bf16.gmra.mrb[60].mxu0 %vm309_vm0, %v6750_v52 }
 0x8e3   : > { %v20756_v28 = vpop.f32.mrb[32].mxu0 }
 0x8e4   : > { %v6963_v63 = vadd.f32 %v20756_v28, %v26502_v18  ;;  %v6794_v14 = vpop.f32.mrb[33].mxu0 }
 0x8e5   : > { %v6961_v30 = vadd.f32 %v26502_v18, %v6794_v14  ;;  %v20757_v60 = vpop.f32.mrb[34].mxu0 }
 0x8e6   : > { %v6995_v16 = vmax.f32 %v6963_v63, 0.0  ;;  %v6964_v32 = vadd.f32 %v20757_v60, %v26502_v18  ;;  %v6797_v13 = vpop.f32.mrb[35].mxu0 }
 0x8e7   : > { %v6993_v36 = vmax.f32 %v6961_v30, 0.0  ;;  %v6962_v50 = vadd.f32 %v26502_v18, %v6797_v13 }
 0x8e8   : > { %7027 = vst.msk [vmem:[#allocation4 + $0x340] sm:$0xff] %vm309_vm0, %v6995_v16  ;;  %v6996_v31 = vmax.f32 %v6964_v32, 0.0 }
 0x8e9   : > { %7025 = vst.msk [vmem:[#allocation4 + $0x310] sm:$0xff] %vm309_vm0, %v6993_v36  ;;  %v6994_v21 = vmax.f32 %v6962_v50, 0.0 }
 0x8ea   : > { %7028 = vst.msk [vmem:[#allocation4 + $0x348] sm:$0xff] %vm309_vm0, %v6996_v31 }
 0x8eb   : > { %7026 = vst.msk [vmem:[#allocation4 + $0x318] sm:$0xff] %vm309_vm0, %v6994_v21  ;;  %v20760_v49 = vpop.f32.mrb[36].mxu0 }
 0x8ec   : > { %v6967_v61 = vadd.f32 %v20760_v49, %v26502_v18  ;;  %v6810_v0 = vpop.f32.mrb[37].mxu0 }
 0x8ed   : > { %v6965_v55 = vadd.f32 %v26502_v18, %v6810_v0  ;;  %v20761_v62 = vpop.f32.mrb[38].mxu0 }
 0x8ee   : > { %v6999_v47 = vmax.f32 %v6967_v61, 0.0  ;;  %v6968_v29 = vadd.f32 %v20761_v62, %v26502_v18  ;;  %v6813_v54 = vpop.f32.mrb[39].mxu0 }
 0x8ef   : > { %v6997_v58 = vmax.f32 %v6965_v55, 0.0  ;;  %v6966_v19 = vadd.f32 %v26502_v18, %v6813_v54  ;;  %v7068_v45 = vld [vmem:[#allocation4 + $0x33c] sm:$0xff] }
 0x8f0   : > { %7031 = vst.msk [vmem:[#allocation4 + $0x3a0] sm:$0xff] %vm309_vm0, %v6999_v47  ;;  %v7000_v42 = vmax.f32 %v6968_v29, 0.0  ;;  %v7066_v44 = vld [vmem:[#allocation4 + $0x30c] sm:$0xff] }
 0x8f1   : > { %7029 = vst.msk [vmem:[#allocation4 + $0x370] sm:$0xff] %vm309_vm0, %v6997_v58  ;;  %v6998_v33 = vmax.f32 %v6966_v19, 0.0  ;;  %v26518_v41 = vld [vmem:[#allocation4 + $0x344] sm:$0xff] }
 0x8f2   : > { %7032 = vst.msk [vmem:[#allocation4 + $0x3a8] sm:$0xff] %vm309_vm0, %v7000_v42  ;;  %v26521_v24 = vld [vmem:[#allocation4 + $0x314] sm:$0xff]  ;;  %v26529_v25 = vpack.c.bf16 %v26518_v41, %v7068_v45 }
 0x8f3   : > { %7030 = vst.msk [vmem:[#allocation4 + $0x378] sm:$0xff] %vm309_vm0, %v6998_v33  ;;  %v20764_v38 = vpop.f32.mrb[40].mxu0  ;;  %v26525_v26 = vpack.c.bf16 %v26521_v24, %v7066_v44 }
 0x8f4   : > { %v6971_v48 = vadd.f32 %v20764_v38, %v26502_v18  ;;  %v6826_v34 = vpop.f32.mrb[41].mxu0 }
 0x8f5   : > { %v6969_v22 = vadd.f32 %v26502_v18, %v6826_v34  ;;  %v20765_v23 = vpop.f32.mrb[42].mxu0  ;;  %20790 = vmatprep.mubr.msk.bf16.mxu1 %vm309_vm0, %v26525_v26 }
 0x8f6   : > { %v7003_v53 = vmax.f32 %v6971_v48, 0.0  ;;  %v6972_v51 = vadd.f32 %v20765_v23, %v26502_v18  ;;  %v6829_v46 = vpop.f32.mrb[43].mxu0  ;;  %20791 = vmatmul.mubr.msk.bf16.vlgmr.msra.gmra.mrb[64].mxu1 %vm309_vm0, %v26529_v25 }
 0x8f7   : > { %v7001_v57 = vmax.f32 %v6969_v22, 0.0  ;;  %v6970_v56 = vadd.f32 %v26502_v18, %v6829_v46  ;;  %20823 = vmatpush3.bf16.msra.mxu1 %v7123_v43  ;;  %v7072_v52 = vld [vmem:[#allocation4 + $0x39c] sm:$0xff] }
 0x8f8   : > { %7035 = vst.msk [vmem:[#allocation4 + $0x400] sm:$0xff] %vm309_vm0, %v7003_v53  ;;  %v7004_v20 = vmax.f32 %v6972_v51, 0.0  ;;  %20824 = vmatprep.subr.bf16.mxu1 %v7124_v40  ;;  %v7070_v35 = vld [vmem:[#allocation4 + $0x36c] sm:$0xff] }
 0x8f9   : > { %7033 = vst.msk [vmem:[#allocation4 + $0x3d0] sm:$0xff] %vm309_vm0, %v7001_v57  ;;  %v7002_v15 = vmax.f32 %v6970_v56, 0.0  ;;  %v26540_v59 = vld [vmem:[#allocation4 + $0x3a4] sm:$0xff] }
 0x8fa   : > { %7036 = vst.msk [vmem:[#allocation4 + $0x408] sm:$0xff] %vm309_vm0, %v7004_v20  ;;  %v26545_v39 = vld [vmem:[#allocation4 + $0x374] sm:$0xff]  ;;  %v26553_v63 = vpack.c.bf16 %v26540_v59, %v7072_v52 }
 0x8fb   : > { %7034 = vst.msk [vmem:[#allocation4 + $0x3d8] sm:$0xff] %vm309_vm0, %v7002_v15  ;;  %v20768_v17 = vpop.f32.mrb[44].mxu0  ;;  %v26549_v37 = vpack.c.bf16 %v26545_v39, %v7070_v35  ;;  %20825 = vmatpush3.bf16.msra.mxu1 %v7124_v40 }
 0x8fc   : > { %v6975_v43 = vadd.f32 %v20768_v17, %v26502_v18  ;;  %v6842_v28 = vpop.f32.mrb[45].mxu0  ;;  %20858 = vmatprep.subr.bf16.mxu1 %v26542_v27 }
 0x8fd   : > { %v6973_v14 = vadd.f32 %v26502_v18, %v6842_v28  ;;  %v20769_v30 = vpop.f32.mrb[46].mxu0  ;;  %20794 = vmatprep.mubr.msk.bf16.mxu1 %vm309_vm0, %v26549_v37 }
 0x8fe   : > { %v7007_v60 = vmax.f32 %v6975_v43, 0.0  ;;  %v6976_v16 = vadd.f32 %v20769_v30, %v26502_v18  ;;  %v6845_v32 = vpop.f32.mrb[47].mxu0  ;;  %20795 = vmatmul.mubr.msk.bf16.gmra.mrb[68].mxu1 %vm309_vm0, %v26553_v63 }
 0x8ff   : > { %v7005_v13 = vmax.f32 %v6973_v14, 0.0  ;;  %v6974_v36 = vadd.f32 %v26502_v18, %v6845_v32  ;;  %v7076_v62 = vld [vmem:[#allocation4 + $0x3fc] sm:$0xff] }
 0x900   : > { %7039 = vst.msk [vmem:[#allocation4 + $0x460] sm:$0xff] %vm309_vm0, %v7007_v60  ;;  %v7008_v50 = vmax.f32 %v6976_v16, 0.0  ;;  %v7074_v49 = vld [vmem:[#allocation4 + $0x3cc] sm:$0xff] }
 0x901   : > { %7037 = vst.msk [vmem:[#allocation4 + $0x430] sm:$0xff] %vm309_vm0, %v7005_v13  ;;  %v7006_v31 = vmax.f32 %v6974_v36, 0.0  ;;  %v26565_v21 = vld [vmem:[#allocation4 + $0x404] sm:$0xff] }
 0x902   : > { %7040 = vst.msk [vmem:[#allocation4 + $0x468] sm:$0xff] %vm309_vm0, %v7008_v50  ;;  %v26568_v61 = vld [vmem:[#allocation4 + $0x3d4] sm:$0xff]  ;;  %v26576_v54 = vpack.c.bf16 %v26565_v21, %v7076_v62 }
 0x903   : > { %7038 = vst.msk [vmem:[#allocation4 + $0x438] sm:$0xff] %vm309_vm0, %v7006_v31  ;;  %v20772_v0 = vpop.f32.mrb[48].mxu0  ;;  %v26572_v55 = vpack.c.bf16 %v26568_v61, %v7074_v49 }
 0x904   : > { %v6979_v47 = vadd.f32 %v20772_v0, %v26502_v18  ;;  %v6858_v29 = vpop.f32.mrb[49].mxu0 }
 0x905   : > { %v6977_v58 = vadd.f32 %v26502_v18, %v6858_v29  ;;  %v20773_v19 = vpop.f32.mrb[50].mxu0  ;;  %20798 = vmatprep.mubr.msk.bf16.mxu1 %vm309_vm0, %v26572_v55 }
 0x906   : > { %v7011_v42 = vmax.f32 %v6979_v47, 0.0  ;;  %v6980_v33 = vadd.f32 %v20773_v19, %v26502_v18  ;;  %v6861_v44 = vpop.f32.mrb[51].mxu0  ;;  %20799 = vmatmul.mubr.msk.bf16.gmra.mrb[72].mxu1 %vm309_vm0, %v26576_v54 }
 0x907   : > { %v7009_v38 = vmax.f32 %v6977_v58, 0.0  ;;  %v6978_v45 = vadd.f32 %v26502_v18, %v6861_v44  ;;  %v7080_v46 = vld [vmem:[#allocation4 + $0x45c] sm:$0xff] }
 0x908   : > { %7043 = vst.msk [vmem:[#allocation4 + $0x4c0] sm:$0xff] %vm309_vm0, %v7011_v42  ;;  %v7012_v48 = vmax.f32 %v6980_v33, 0.0  ;;  %v7078_v23 = vld [vmem:[#allocation4 + $0x42c] sm:$0xff] }
 0x909   : > { %7041 = vst.msk [vmem:[#allocation4 + $0x490] sm:$0xff] %vm309_vm0, %v7009_v38  ;;  %v7010_v34 = vmax.f32 %v6978_v45, 0.0  ;;  %v26587_v22 = vld [vmem:[#allocation4 + $0x464] sm:$0xff] }
 0x90a   : > { %7044 = vst.msk [vmem:[#allocation4 + $0x4c8] sm:$0xff] %vm309_vm0, %v7012_v48  ;;  %v26590_v40 = vld [vmem:[#allocation4 + $0x434] sm:$0xff]  ;;  %v26598_v20 = vpack.c.bf16 %v26587_v22, %v7080_v46 }
 0x90b   : > { %7042 = vst.msk [vmem:[#allocation4 + $0x498] sm:$0xff] %vm309_vm0, %v7010_v34  ;;  %v20776_v53 = vpop.f32.mrb[52].mxu0  ;;  %v26594_v51 = vpack.c.bf16 %v26590_v40, %v7078_v23 }
 0x90c   : > { %v6983_v57 = vadd.f32 %v20776_v53, %v26502_v18  ;;  %v6874_v56 = vpop.f32.mrb[53].mxu0 }
 0x90d   : > { %v6981_v15 = vadd.f32 %v26502_v18, %v6874_v56  ;;  %v20777_v35 = vpop.f32.mrb[54].mxu0  ;;  %20802 = vmatprep.mubr.msk.bf16.mxu1 %vm309_vm0, %v26594_v51 }
 0x90e   : > { %v7015_v17 = vmax.f32 %v6983_v57, 0.0  ;;  %v6984_v52 = vadd.f32 %v20777_v35, %v26502_v18  ;;  %v6877_v43 = vpop.f32.mrb[55].mxu0  ;;  %20803 = vmatmul.mubr.msk.bf16.gmra.mrb[76].mxu1 %vm309_vm0, %v26598_v20 }
 0x90f   : > { %v7013_v28 = vmax.f32 %v6981_v15, 0.0  ;;  %v6982_v14 = vadd.f32 %v26502_v18, %v6877_v43  ;;  %v7084_v31 = vld [vmem:[#allocation4 + $0x4bc] sm:$0xff] }
 0x910   : > { %7047 = vst.msk [vmem:[#allocation4 + $0x520] sm:$0xff] %vm309_vm0, %v7015_v17  ;;  %v7016_v30 = vmax.f32 %v6984_v52, 0.0  ;;  %v7082_v32 = vld [vmem:[#allocation4 + $0x48c] sm:$0xff] }
 0x911   : > { %7045 = vst.msk [vmem:[#allocation4 + $0x4f0] sm:$0xff] %vm309_vm0, %v7013_v28  ;;  %v7014_v60 = vmax.f32 %v6982_v14, 0.0  ;;  %v26609_v16 = vld [vmem:[#allocation4 + $0x4c4] sm:$0xff] }
 0x912   : > { %7048 = vst.msk [vmem:[#allocation4 + $0x528] sm:$0xff] %vm309_vm0, %v7016_v30  ;;  %v26612_v13 = vld [vmem:[#allocation4 + $0x494] sm:$0xff]  ;;  %v26620_v62 = vpack.c.bf16 %v26609_v16, %v7084_v31 }
 0x913   : > { %7046 = vst.msk [vmem:[#allocation4 + $0x4f8] sm:$0xff] %vm309_vm0, %v7014_v60  ;;  %v20780_v36 = vpop.f32.mrb[56].mxu0  ;;  %v26616_v50 = vpack.c.bf16 %v26612_v13, %v7082_v32 }
 0x914   : > { %v6987_v49 = vadd.f32 %v20780_v36, %v26502_v18  ;;  %v6890_v0 = vpop.f32.mrb[57].mxu0 }
 0x915   : > { %v6985_v47 = vadd.f32 %v26502_v18, %v6890_v0  ;;  %v20781_v29 = vpop.f32.mrb[58].mxu0  ;;  %20806 = vmatprep.mubr.msk.bf16.mxu1 %vm309_vm0, %v26616_v50 }
 0x916   : > { %v7019_v58 = vmax.f32 %v6987_v49, 0.0  ;;  %v6988_v19 = vadd.f32 %v20781_v29, %v26502_v18  ;;  %v6893_v42 = vpop.f32.mrb[59].mxu0  ;;  %20807 = vmatmul.mubr.msk.bf16.gmra.mrb[80].mxu1 %vm309_vm0, %v26620_v62 }
 0x917   : > { %v7017_v33 = vmax.f32 %v6985_v47, 0.0  ;;  %v6986_v44 = vadd.f32 %v26502_v18, %v6893_v42  ;;  %v7088_v57 = vld [vmem:[#allocation4 + $0x51c] sm:$0xff] }
 0x918   : > { %7051 = vst.msk [vmem:[#allocation4 + $0x580] sm:$0xff] %vm309_vm0, %v7019_v58  ;;  %v7020_v38 = vmax.f32 %v6988_v19, 0.0  ;;  %v7086_v34 = vld [vmem:[#allocation4 + $0x4ec] sm:$0xff]  ;;  %v26663_v19 = vld [vmem:[#allocation4 + $0x254] sm:$0xff] }
 0x919   : > { %7049 = vst.msk [vmem:[#allocation4 + $0x550] sm:$0xff] %vm309_vm0, %v7017_v33  ;;  %v7018_v45 = vmax.f32 %v6986_v44, 0.0  ;;  %v26631_v48 = vld [vmem:[#allocation4 + $0x524] sm:$0xff]  ;;  %v7058_v58 = vld [vmem:[#allocation4 + $0x24c] sm:$0xff] }
 0x91a   : > { %7052 = vst.msk [vmem:[#allocation4 + $0x588] sm:$0xff] %vm309_vm0, %v7020_v38  ;;  %v26634_v23 = vld [vmem:[#allocation4 + $0x4f4] sm:$0xff]  ;;  %v26642_v35 = vpack.c.bf16 %v26631_v48, %v7088_v57  ;;  %v7060_v57 = vld [vmem:[#allocation4 + $0x27c] sm:$0xff] }
 0x91b   : > { %7050 = vst.msk [vmem:[#allocation4 + $0x558] sm:$0xff] %vm309_vm0, %v7018_v45  ;;  %v20784_v53 = vpop.f32.mrb[60].mxu0  ;;  %v26638_v46 = vpack.c.bf16 %v26634_v23, %v7086_v34  ;;  %v7106_v34 = vpack.c.bf16 %v26663_v19, %v7058_v58  ;;  %v7729_v58 = vld [vmem:[#allocation4 + $0x288] sm:$0xff] }
 0x91c   : > { %v6991_v56 = vadd.f32 %v20784_v53, %v26502_v18  ;;  %v6906_v15 = vpop.f32.mrb[61].mxu0 }
 0x91d   : > { %v6989_v17 = vadd.f32 %v26502_v18, %v6906_v15  ;;  %v20785_v52 = vpop.f32.mrb[62].mxu0  ;;  %20810 = vmatprep.mubr.msk.bf16.mxu1 %vm309_vm0, %v26638_v46  ;;  %v7062_v15 = vld [vmem:[#allocation4 + $0x2ac] sm:$0xff] }
 0x91e   : > { %v7023_v43 = vmax.f32 %v6991_v56, 0.0  ;;  %v6992_v28 = vadd.f32 %v20785_v52, %v26502_v18  ;;  %v6909_v14 = vpop.f32.mrb[63].mxu0  ;;  %20811 = vmatmul.mubr.msk.bf16.gmra.mrb[84].mxu1 %vm309_vm0, %v26642_v35  ;;  %v26675_v56 = vld [vmem:[#allocation4 + $0x284] sm:$0xff] }
 0x91f   : > { %v7021_v30 = vmax.f32 %v6989_v17, 0.0  ;;  %v6990_v60 = vadd.f32 %v26502_v18, %v6909_v14  ;;  %v7092_v29 = vld [vmem:[#allocation4 + $0x57c] sm:$0xff]  ;;  %v26677_v17 = vld [vmem:[#allocation4 + $0x2b4] sm:$0xff]  ;;  %v7107_v52 = vpack.c.bf16 %v26675_v56, %v7060_v57 }
 0x920   : > { %7055 = vst.msk [vmem:[#allocation4 + $0x5e0] sm:$0xff] %vm309_vm0, %v7023_v43  ;;  %v7024_v32 = vmax.f32 %v6992_v28, 0.0  ;;  %v7090_v49 = vld [vmem:[#allocation4 + $0x54c] sm:$0xff]  ;;  %v7108_v43 = vpack.c.bf16 %v26677_v17, %v7062_v15  ;;  %v7064_v14 = vld [vmem:[#allocation4 + $0x2dc] sm:$0xff] }
 0x921   : > { %7053 = vst.msk [vmem:[#allocation4 + $0x5b0] sm:$0xff] %vm309_vm0, %v7021_v30  ;;  %v7022_v36 = vmax.f32 %v6990_v60, 0.0  ;;  %v26653_v31 = vld [vmem:[#allocation4 + $0x584] sm:$0xff]  ;;  %v7791_v60 = vld [vmem:[#allocation2 + $0x1c0] sm:$0xff] }
 0x922   : > { %7056 = vst.msk [vmem:[#allocation4 + $0x5e8] sm:$0xff] %vm309_vm0, %v7024_v32  ;;  %v26656_v0 = vld [vmem:[#allocation4 + $0x554] sm:$0xff]  ;;  %v7126_v18 = vpack.c.bf16 %v26653_v31, %v7092_v29  ;;  %v7520_v28 = vld [vmem:[#allocation2 + $0x218] sm:$0xff]  ;;  %v26760_v57 = vld [vmem:[#allocation4 + $0x2e0] sm:$0xff] }
 0x923   : > { %7054 = vst.msk [vmem:[#allocation4 + $0x5b8] sm:$0xff] %vm309_vm0, %v7022_v36  ;;  %v7125_v47 = vpack.c.bf16 %v26656_v0, %v7090_v49  ;;  %v26684_v30 = vld [vmem:[#allocation4 + $0x2e4] sm:$0xff]  ;;  %v26746_v36 = vld [vmem:[#allocation4 + $0x250] sm:$0xff]  ;;  %v7727_v49 = vld [vmem:[#allocation4 + $0x258] sm:$0xff] }
 0x924   : > { %v7109_v32 = vpack.c.bf16 %v26684_v30, %v7064_v14  ;;  %v7774_v29 = vpack.c.bf16 %v7727_v49, %v26746_v36  ;;  %v7733_v15 = vld [vmem:[#allocation4 + $0x2e8] sm:$0xff]  ;;  %v7734_v14 = vld [vmem:[#allocation4 + $0x310] sm:$0xff] }
 0x925   : > { %20814 = vmatprep.mubr.msk.bf16.mxu1 %vm309_vm0, %v7125_v47  ;;  %v7742_v49 = vld [vmem:[#allocation4 + $0x3d0] sm:$0xff] }
 0x926   : > { %20815 = vmatmul.mubr.msk.bf16.gmra.mrb[88].mxu1 %vm309_vm0, %v7126_v18 }
 0x927   : > { %v7096_v45 = vld [vmem:[#allocation4 + $0x5dc] sm:$0xff] }
 0x928   : > { %v7094_v33 = vld [vmem:[#allocation4 + $0x5ac] sm:$0xff] }
 0x929   : > { %v26665_v42 = vld [vmem:[#allocation4 + $0x5e4] sm:$0xff] }
 0x92a   : > { %v26667_v44 = vld [vmem:[#allocation4 + $0x5b4] sm:$0xff]  ;;  %v7128_v53 = vpack.c.bf16 %v26665_v42, %v7096_v45 }
 0x92b   : > { %v7127_v38 = vpack.c.bf16 %v26667_v44, %v7094_v33  ;;  %v26754_v33 = vld [vmem:[#allocation4 + $0x2b0] sm:$0xff] }
 0x92d   : > { %20818 = vmatprep.mubr.msk.bf16.mxu1 %vm309_vm0, %v7127_v38 }
 0x92e   : > { %20819 = vmatmul.mubr.msk.bf16.gmra.mrb[92].mxu1 %vm309_vm0, %v7128_v53 }
 0x92f   : > { %20826 = vmatprep.mubr.msk.bf16.mxu1 %vm309_vm0, %v7106_v34 }
 0x936   : > { %20827 = vmatmul.mubr.msk.bf16.vlgmr.msra.gmra.mrb[64].mxu1 %vm309_vm0, %v7107_v52  ;;  %v8251_v52 = vld [vmem:[#allocation2 + $0x220] sm:$0xff] }
 0x937   : > { %20859 = vmatpush3.bf16.msra.mxu1 %v26542_v27  ;;  %20830 = vmatprep.mubr.msk.bf16.mxu1 %vm309_vm0, %v7108_v43  ;;  %v7098_v27 = vld [vmem:[#allocation4 + $0x60c] sm:$0xff]  ;;  %v7777_v43 = vpack.c.bf16 %v7733_v15, %v26760_v57 }
 0x938   : > { %20860 = vmatprep.subr.bf16.mxu1 %v7520_v28  ;;  %v7749_v15 = vld [vmem:[#allocation4 + $0x468] sm:$0xff] }
 0x93b   : > { %20861 = vmatpush3.bf16.msra.mxu1 %v7520_v28  ;;  %v7735_v28 = vld [vmem:[#allocation4 + $0x318] sm:$0xff] }
 0x93c   : > { %20894 = vmatprep.subr.bf16.mxu1 %v7791_v60 }
 0x93e   : > { %20831 = vmatmul.mubr.msk.bf16.gmra.mrb[68].mxu1 %vm309_vm0, %v7109_v32  ;;  %v7737_v32 = vld [vmem:[#allocation4 + $0x348] sm:$0xff] }
 0x93f   : > { %20834 = vmatprep.mubr.msk.bf16.mxu1 %vm309_vm0, %v26525_v26  ;;  %v7792_v26 = vld [vmem:[#allocation2 + $0x1c8] sm:$0xff] }
 0x946   : > { %20835 = vmatmul.mubr.msk.bf16.gmra.mrb[72].mxu1 %vm309_vm0, %v26529_v25  ;;  %v8039_v25 = vld [vmem:[#allocation2 + $0x1f0] sm:$0xff] }
 0x947   : > { %20838 = vmatprep.mubr.msk.bf16.mxu1 %vm309_vm0, %v26549_v37  ;;  %v26731_v37 = vld [vmem:[#allocation4 + $0x614] sm:$0xff] }
 0x94e   : > { %20839 = vmatmul.mubr.msk.bf16.gmra.mrb[76].mxu1 %vm309_vm0, %v26553_v63  ;;  %v7514_v63 = vpack.c.bf16 %v26731_v37, %v7098_v27 }
 0x94f   : > { %20842 = vmatprep.mubr.msk.bf16.mxu1 %vm309_vm0, %v26572_v55 }
 0x956   : > { %20843 = vmatmul.mubr.msk.bf16.gmra.mrb[80].mxu1 %vm309_vm0, %v26576_v54 }
 0x957   : > { %20846 = vmatprep.mubr.msk.bf16.mxu1 %vm309_vm0, %v26594_v51 }
 0x95e   : > { %20847 = vmatmul.mubr.msk.bf16.gmra.mrb[84].mxu1 %vm309_vm0, %v26598_v20 }
 0x95f   : > { %20850 = vmatprep.mubr.msk.bf16.mxu1 %vm309_vm0, %v26616_v50 }
 0x966   : > { %20851 = vmatmul.mubr.msk.bf16.gmra.mrb[88].mxu1 %vm309_vm0, %v26620_v62 }
 0x967   : > { %20854 = vmatprep.mubr.msk.bf16.mxu1 %vm309_vm0, %v26638_v46 }
 0x96e   : > { %20855 = vmatmul.mubr.msk.bf16.gmra.mrb[92].mxu1 %vm309_vm0, %v26642_v35 }
 0x96f   : > { %20862 = vmatprep.mubr.msk.bf16.mxu1 %vm309_vm0, %v26572_v55  ;;  %v7100_v55 = vld [vmem:[#allocation4 + $0x63c] sm:$0xff] }
 0x976   : > { %20863 = vmatmul.mubr.msk.bf16.vlgmr.msra.gmra.mrb[64].mxu1 %vm309_vm0, %v26576_v54  ;;  %v26736_v54 = vld [vmem:[#allocation4 + $0x644] sm:$0xff] }
 0x977   : > { %20866 = vmatprep.mubr.msk.bf16.mxu1 %vm309_vm0, %v26594_v51  ;;  %20895 = vmatpush3.bf16.msra.mxu1 %v7791_v60  ;;  %v7102_v51 = vld [vmem:[#allocation4 + $0x66c] sm:$0xff]  ;;  %v7778_v60 = vpack.c.bf16 %v7735_v28, %v7734_v14  ;;  %v7748_v28 = vld [vmem:[#allocation4 + $0x460] sm:$0xff] }
 0x978   : > { %20896 = vmatprep.subr.bf16.mxu1 %v7792_v26  ;;  %v7785_v14 = vpack.c.bf16 %v7749_v15, %v7748_v28  ;;  %v8523_v15 = vld [vmem:[#allocation2 + $0x1d0] sm:$0xff] }
 0x97b   : > { %20897 = vmatpush3.bf16.msra.mxu1 %v7792_v26  ;;  %v7739_v26 = vld [vmem:[#allocation4 + $0x378] sm:$0xff] }
 0x97c   : > { %20930 = vmatprep.subr.bf16.mxu1 %v8039_v25 }
 0x97e   : > { %20867 = vmatmul.mubr.msk.bf16.gmra.mrb[68].mxu1 %vm309_vm0, %v26598_v20  ;;  %v26738_v20 = vld [vmem:[#allocation4 + $0x674] sm:$0xff] }
 0x97f   : > { %20870 = vmatprep.mubr.msk.bf16.mxu1 %vm309_vm0, %v26616_v50  ;;  %v7515_v50 = vpack.c.bf16 %v26736_v54, %v7100_v55 }
 0x986   : > { %20871 = vmatmul.mubr.msk.bf16.gmra.mrb[72].mxu1 %vm309_vm0, %v26620_v62  ;;  %v7516_v62 = vpack.c.bf16 %v26738_v20, %v7102_v51  ;;  %v7741_v51 = vld [vmem:[#allocation4 + $0x3a8] sm:$0xff] }
 0x987   : > { %20874 = vmatprep.mubr.msk.bf16.mxu1 %vm309_vm0, %v26638_v46  ;;  %v7104_v46 = vld [vmem:[#allocation4 + $0x69c] sm:$0xff] }
 0x98e   : > { %20875 = vmatmul.mubr.msk.bf16.gmra.mrb[76].mxu1 %vm309_vm0, %v26642_v35  ;;  %v26744_v35 = vld [vmem:[#allocation4 + $0x6a4] sm:$0xff] }
 0x98f   : > { %20878 = vmatprep.mubr.msk.bf16.mxu1 %vm309_vm0, %v7125_v47  ;;  %v7517_v47 = vpack.c.bf16 %v26744_v35, %v7104_v46 }
 0x996   : > { %20879 = vmatmul.mubr.msk.bf16.gmra.mrb[80].mxu1 %vm309_vm0, %v7126_v18  ;;  %v26752_v18 = vld [vmem:[#allocation4 + $0x280] sm:$0xff] }
 0x997   : > { %20882 = vmatprep.mubr.msk.bf16.mxu1 %vm309_vm0, %v7127_v38  ;;  %v7731_v38 = vld [vmem:[#allocation4 + $0x2b8] sm:$0xff]  ;;  %v7775_v45 = vpack.c.bf16 %v7729_v58, %v26752_v18 }
 0x998   : > { %v7776_v34 = vpack.c.bf16 %v7731_v38, %v26754_v33  ;;  %v7747_v58 = vld [vmem:[#allocation4 + $0x438] sm:$0xff]  ;;  %v7744_v38 = vld [vmem:[#allocation4 + $0x400] sm:$0xff] }
 0x99e   : > { %20883 = vmatmul.mubr.msk.bf16.gmra.mrb[84].mxu1 %vm309_vm0, %v7128_v53  ;;  %v8040_v53 = vld [vmem:[#allocation2 + $0x1f8] sm:$0xff] }
 0x99f   : > { %20886 = vmatprep.mubr.msk.bf16.mxu1 %vm309_vm0, %v7514_v63  ;;  %v7738_v63 = vld [vmem:[#allocation4 + $0x370] sm:$0xff] }
 0x9a0   : > { %v7780_v55 = vpack.c.bf16 %v7739_v26, %v7738_v63  ;;  %v7755_v63 = vld [vmem:[#allocation4 + $0x4f8] sm:$0xff] }
 0x9a6   : > { %20887 = vmatmul.mubr.msk.bf16.gmra.mrb[88].mxu1 %vm309_vm0, %v7515_v50  ;;  %v7743_v50 = vld [vmem:[#allocation4 + $0x3d8] sm:$0xff] }
 0x9a7   : > { %20890 = vmatprep.mubr.msk.bf16.mxu1 %vm309_vm0, %v7516_v62  ;;  %v7740_v62 = vld [vmem:[#allocation4 + $0x3a0] sm:$0xff] }
 0x9a8   : > { %v7781_v46 = vpack.c.bf16 %v7741_v51, %v7740_v62  ;;  %v7752_v51 = vld [vmem:[#allocation4 + $0x4c0] sm:$0xff]  ;;  %v7754_v62 = vld [vmem:[#allocation4 + $0x4f0] sm:$0xff] }
 0x9ae   : > { %20891 = vmatmul.mubr.msk.bf16.gmra.mrb[92].mxu1 %vm309_vm0, %v7517_v47  ;;  %v26767_v47 = vpack.c.bf16 %v7743_v50, %v7742_v49  ;;  %v7788_v49 = vpack.c.bf16 %v7755_v63, %v7754_v62  ;;  %v7765_v63 = vld [vmem:[#allocation4 + $0x5e8] sm:$0xff] }
 0x9af   : > { %20898 = vmatprep.mubr.msk.bf16.mxu1 %vm309_vm0, %v7774_v29  ;;  %v7745_v29 = vld [vmem:[#allocation4 + $0x408] sm:$0xff] }
 0x9b6   : > { %20899 = vmatmul.mubr.msk.bf16.vlgmr.msra.gmra.mrb[64].mxu1 %vm309_vm0, %v7775_v45  ;;  %v7783_v45 = vpack.c.bf16 %v7745_v29, %v7744_v38  ;;  %v7757_v29 = vld [vmem:[#allocation4 + $0x528] sm:$0xff] }
 0x9b7   : > { %20931 = vmatpush3.bf16.msra.mxu1 %v8039_v25  ;;  %20902 = vmatprep.mubr.msk.bf16.mxu1 %vm309_vm0, %v7776_v34  ;;  %v7736_v25 = vld [vmem:[#allocation4 + $0x340] sm:$0xff]  ;;  %v7746_v34 = vld [vmem:[#allocation4 + $0x430] sm:$0xff] }
 0x9b8   : > { %20932 = vmatprep.subr.bf16.mxu1 %v8040_v53  ;;  %v7779_v27 = vpack.c.bf16 %v7737_v32, %v7736_v25  ;;  %v7750_v32 = vld [vmem:[#allocation4 + $0x490] sm:$0xff]  ;;  %v7753_v25 = vld [vmem:[#allocation4 + $0x4c8] sm:$0xff] }
 0x9b9   : > { %v7787_v50 = vpack.c.bf16 %v7753_v25, %v7752_v51  ;;  %v7764_v51 = vld [vmem:[#allocation4 + $0x5e0] sm:$0xff] }
 0x9ba   : > { %v8037_v62 = vpack.c.bf16 %v7765_v63, %v7764_v51  ;;  %v8465_v63 = vld [vmem:[#allocation4 + $0x2ec] sm:$0xff]  ;;  %v8983_v51 = vld [vmem:[#allocation2 + $0x230] sm:$0xff] }
 0x9bb   : > { %20933 = vmatpush3.bf16.msra.mxu1 %v8040_v53  ;;  %v7784_v53 = vpack.c.bf16 %v7747_v58, %v7746_v34  ;;  %v7756_v58 = vld [vmem:[#allocation4 + $0x520] sm:$0xff]  ;;  %v8252_v34 = vld [vmem:[#allocation2 + $0x228] sm:$0xff] }
 0x9bc   : > { %20966 = vmatprep.subr.bf16.mxu1 %v8251_v52  ;;  %v7789_v38 = vpack.c.bf16 %v7757_v29, %v7756_v58  ;;  %v8524_v29 = vld [vmem:[#allocation2 + $0x1d8] sm:$0xff]  ;;  %v8771_v58 = vld [vmem:[#allocation2 + $0x200] sm:$0xff] }
 0x9be   : > { %20903 = vmatmul.mubr.msk.bf16.gmra.mrb[68].mxu1 %vm309_vm0, %v7777_v43  ;;  %v7751_v43 = vld [vmem:[#allocation4 + $0x498] sm:$0xff] }
 0x9bf   : > { %20906 = vmatprep.mubr.msk.bf16.mxu1 %vm309_vm0, %v7778_v60  ;;  %v7786_v26 = vpack.c.bf16 %v7751_v43, %v7750_v32  ;;  %v7760_v43 = vld [vmem:[#allocation4 + $0x580] sm:$0xff]  ;;  %v7762_v32 = vld [vmem:[#allocation4 + $0x5b0] sm:$0xff] }
 0x9c6   : > { %20907 = vmatmul.mubr.msk.bf16.gmra.mrb[72].mxu1 %vm309_vm0, %v7779_v27 }
 0x9c7   : > { %20910 = vmatprep.mubr.msk.bf16.mxu1 %vm309_vm0, %v7780_v55 }
 0x9ce   : > { %20911 = vmatmul.mubr.msk.bf16.gmra.mrb[76].mxu1 %vm309_vm0, %v7781_v46 }
 0x9cf   : > { %20914 = vmatprep.mubr.msk.bf16.mxu1 %vm309_vm0, %v26767_v47 }
 0x9d6   : > { %20915 = vmatmul.mubr.msk.bf16.gmra.mrb[80].mxu1 %vm309_vm0, %v7783_v45 }
 0x9d7   : > { %20918 = vmatprep.mubr.msk.bf16.mxu1 %vm309_vm0, %v7784_v53 }
 0x9de   : > { %20919 = vmatmul.mubr.msk.bf16.gmra.mrb[84].mxu1 %vm309_vm0, %v7785_v14 }
 0x9df   : > { %20922 = vmatprep.mubr.msk.bf16.mxu1 %vm309_vm0, %v7786_v26 }
 0x9e6   : > { %20923 = vmatmul.mubr.msk.bf16.gmra.mrb[88].mxu1 %vm309_vm0, %v7787_v50 }
 0x9e7   : > { %20926 = vmatprep.mubr.msk.bf16.mxu1 %vm309_vm0, %v7788_v49 }
 0x9ee   : > { %20927 = vmatmul.mubr.msk.bf16.gmra.mrb[92].mxu1 %vm309_vm0, %v7789_v38 }
 0x9ef   : > { %20934 = vmatprep.mubr.msk.bf16.mxu1 %vm309_vm0, %v7778_v60  ;;  %v7758_v60 = vld [vmem:[#allocation4 + $0x550] sm:$0xff] }
 0x9f6   : > { %20935 = vmatmul.mubr.msk.bf16.vlgmr.msra.gmra.mrb[64].mxu1 %vm309_vm0, %v7779_v27 }
 0x9f7   : > { %20938 = vmatprep.mubr.msk.bf16.mxu1 %vm309_vm0, %v7780_v55  ;;  %20967 = vmatpush3.bf16.msra.mxu1 %v8251_v52  ;;  %v7759_v52 = vld [vmem:[#allocation4 + $0x558] sm:$0xff]  ;;  %v7761_v55 = vld [vmem:[#allocation4 + $0x588] sm:$0xff] }
 0x9f8   : > { %20968 = vmatprep.subr.bf16.mxu1 %v8252_v34  ;;  %v8034_v27 = vpack.c.bf16 %v7759_v52, %v7758_v60  ;;  %v8035_v28 = vpack.c.bf16 %v7761_v55, %v7760_v43  ;;  %v7773_v52 = vld [vmem:[#allocation4 + $0x6a8] sm:$0xff]  ;;  %v8459_v60 = vld [vmem:[#allocation4 + $0x25c] sm:$0xff] }
 0x9f9   : > { %v8506_v55 = vpack.c.bf16 %v8459_v60, %v26663_v19  ;;  %v8463_v43 = vld [vmem:[#allocation4 + $0x2bc] sm:$0xff]  ;;  %v8509_v19 = vpack.c.bf16 %v8465_v63, %v26684_v30  ;;  %v8473_v30 = vld [vmem:[#allocation4 + $0x3ac] sm:$0xff] }
 0x9fa   : > { %v8485_v60 = vld [vmem:[#allocation4 + $0x4cc] sm:$0xff] }
 0x9fb   : > { %20969 = vmatpush3.bf16.msra.mxu1 %v8252_v34  ;;  %v8497_v63 = vld [vmem:[#allocation4 + $0x5ec] sm:$0xff] }
 0x9fc   : > { %21002 = vmatprep.subr.bf16.mxu1 %v8523_v15 }
 0x9fe   : > { %20939 = vmatmul.mubr.msk.bf16.gmra.mrb[68].mxu1 %vm309_vm0, %v7781_v46  ;;  %v7763_v46 = vld [vmem:[#allocation4 + $0x5b8] sm:$0xff] }
 0x9ff   : > { %20942 = vmatprep.mubr.msk.bf16.mxu1 %vm309_vm0, %v26767_v47  ;;  %v8036_v25 = vpack.c.bf16 %v7763_v46, %v7762_v32  ;;  %v8461_v46 = vld [vmem:[#allocation4 + $0x28c] sm:$0xff]  ;;  %v8508_v32 = vpack.c.bf16 %v8463_v43, %v26677_v17  ;;  %v8471_v17 = vld [vmem:[#allocation4 + $0x37c] sm:$0xff] }
 0xa00   : > { %v8493_v43 = vld [vmem:[#allocation4 + $0x58c] sm:$0xff] }
 0xa06   : > { %20943 = vmatmul.mubr.msk.bf16.gmra.mrb[72].mxu1 %vm309_vm0, %v7783_v45 }
 0xa07   : > { %20946 = vmatprep.mubr.msk.bf16.mxu1 %vm309_vm0, %v7784_v53 }
 0xa0e   : > { %20947 = vmatmul.mubr.msk.bf16.gmra.mrb[76].mxu1 %vm309_vm0, %v7785_v14 }
 0xa0f   : > { %20950 = vmatprep.mubr.msk.bf16.mxu1 %vm309_vm0, %v7786_v26 }
 0xa16   : > { %20951 = vmatmul.mubr.msk.bf16.gmra.mrb[80].mxu1 %vm309_vm0, %v7787_v50 }
 0xa17   : > { %20954 = vmatprep.mubr.msk.bf16.mxu1 %vm309_vm0, %v7788_v49 }
 0xa1e   : > { %20955 = vmatmul.mubr.msk.bf16.gmra.mrb[84].mxu1 %vm309_vm0, %v7789_v38 }
 0xa1f   : > { %20958 = vmatprep.mubr.msk.bf16.mxu1 %vm309_vm0, %v8034_v27 }
 0xa26   : > { %20959 = vmatmul.mubr.msk.bf16.gmra.mrb[88].mxu1 %vm309_vm0, %v8035_v28 }
 0xa27   : > { %20962 = vmatprep.mubr.msk.bf16.mxu1 %vm309_vm0, %v8036_v25 }
 0xa2e   : > { %20963 = vmatmul.mubr.msk.bf16.gmra.mrb[92].mxu1 %vm309_vm0, %v8037_v62 }
 0xa2f   : > { %20970 = vmatprep.mubr.msk.bf16.mxu1 %vm309_vm0, %v26767_v47  ;;  %v26808_v47 = vld [vmem:[#allocation4 + $0x610] sm:$0xff] }
 0xa36   : > { %20971 = vmatmul.mubr.msk.bf16.vlgmr.msra.gmra.mrb[64].mxu1 %vm309_vm0, %v7783_v45  ;;  %v7767_v45 = vld [vmem:[#allocation4 + $0x618] sm:$0xff] }
 0xa37   : > { %20974 = vmatprep.mubr.msk.bf16.mxu1 %vm309_vm0, %v7784_v53  ;;  %21003 = vmatpush3.bf16.msra.mxu1 %v8523_v15  ;;  %v8246_v53 = vpack.c.bf16 %v7767_v45, %v26808_v47  ;;  %v26821_v15 = vld [vmem:[#allocation4 + $0x6a0] sm:$0xff]  ;;  %v8512_v45 = vpack.c.bf16 %v8471_v17, %v26545_v39 }
 0xa38   : > { %21004 = vmatprep.subr.bf16.mxu1 %v8524_v29  ;;  %v26897_v17 = vld [vmem:[#allocation8 + $0x3] ss:$0 sm:$0xff] }
 0xa3b   : > { %21005 = vmatpush3.bf16.msra.mxu1 %v8524_v29 }
 0xa3c   : > { %21038 = vmatprep.subr.bf16.mxu1 %v8771_v58 }
 0xa3e   : > { %20975 = vmatmul.mubr.msk.bf16.gmra.mrb[68].mxu1 %vm309_vm0, %v7785_v14  ;;  %v26813_v14 = vld [vmem:[#allocation4 + $0x640] sm:$0xff] }
 0xa3f   : > { %20978 = vmatprep.mubr.msk.bf16.mxu1 %vm309_vm0, %v7786_v26  ;;  %v7769_v26 = vld [vmem:[#allocation4 + $0x648] sm:$0xff] }
 0xa46   : > { %20979 = vmatmul.mubr.msk.bf16.gmra.mrb[72].mxu1 %vm309_vm0, %v7787_v50  ;;  %v26815_v50 = vld [vmem:[#allocation4 + $0x670] sm:$0xff] }
 0xa47   : > { %20982 = vmatprep.mubr.msk.bf16.mxu1 %vm309_vm0, %v7788_v49  ;;  %v7771_v49 = vld [vmem:[#allocation4 + $0x678] sm:$0xff] }
 0xa48   : > { %v8248_v34 = vpack.c.bf16 %v7771_v49, %v26815_v50  ;;  %v8477_v49 = vld [vmem:[#allocation4 + $0x40c] sm:$0xff] }
 0xa4e   : > { %20983 = vmatmul.mubr.msk.bf16.gmra.mrb[76].mxu1 %vm309_vm0, %v7789_v38  ;;  %v8247_v38 = vpack.c.bf16 %v7769_v26, %v26813_v14  ;;  %v8513_v26 = vpack.c.bf16 %v8473_v30, %v26540_v59 }
 0xa4f   : > { %20986 = vmatprep.mubr.msk.bf16.mxu1 %vm309_vm0, %v8034_v27  ;;  %v8249_v27 = vpack.c.bf16 %v7773_v52, %v26821_v15  ;;  %v8483_v52 = vld [vmem:[#allocation4 + $0x49c] sm:$0xff] }
 0xa56   : > { %20987 = vmatmul.mubr.msk.bf16.gmra.mrb[80].mxu1 %vm309_vm0, %v8035_v28  ;;  %v8507_v28 = vpack.c.bf16 %v8461_v46, %v26675_v56  ;;  %v8469_v56 = vld [vmem:[#allocation4 + $0x34c] sm:$0xff] }
 0xa57   : > { %20990 = vmatprep.mubr.msk.bf16.mxu1 %vm309_vm0, %v8036_v25  ;;  %v8772_v25 = vld [vmem:[#allocation2 + $0x208] sm:$0xff] }
 0xa5e   : > { %20991 = vmatmul.mubr.msk.bf16.gmra.mrb[84].mxu1 %vm309_vm0, %v8037_v62  ;;  %v8467_v62 = vld [vmem:[#allocation4 + $0x31c] sm:$0xff] }
 0xa5f   : > { %20994 = vmatprep.mubr.msk.bf16.mxu1 %vm309_vm0, %v8246_v53  ;;  %v8510_v29 = vpack.c.bf16 %v8467_v62, %v26521_v24  ;;  %v8475_v53 = vld [vmem:[#allocation4 + $0x3dc] sm:$0xff] }
 0xa60   : > { %v8514_v24 = vpack.c.bf16 %v8475_v53, %v26568_v61  ;;  %v8518_v61 = vpack.c.bf16 %v8483_v52, %v26612_v13  ;;  %v9396_v13 = vld [vmem:[#allocation2 + $0x278] sm:$0xff] }
 0xa66   : > { %20995 = vmatmul.mubr.msk.bf16.gmra.mrb[88].mxu1 %vm309_vm0, %v8247_v38  ;;  %v8479_v38 = vld [vmem:[#allocation4 + $0x43c] sm:$0xff] }
 0xa67   : > { %20998 = vmatprep.mubr.msk.bf16.mxu1 %vm309_vm0, %v8248_v34  ;;  %v8516_v39 = vpack.c.bf16 %v8479_v38, %v26590_v40  ;;  %v8481_v34 = vld [vmem:[#allocation4 + $0x46c] sm:$0xff] }
 0xa68   : > { %v8517_v59 = vpack.c.bf16 %v8481_v34, %v26587_v22  ;;  %v9395_v22 = vld [vmem:[#allocation2 + $0x270] sm:$0xff] }
 0xa69   : > { %21110 = vmatprep.subr.bf16.mxu0 %v9395_v22 }
 0xa6a   : > { %21111 = vmatpush3.bf16.msra.mxu0 %v9395_v22  ;;  %v9348_v22 = vld [vmem:[#allocation4 + $0x338] sm:$0xff] }
 0xa6b   : > { %21112 = vmatprep.subr.bf16.mxu0 %v9396_v13 }
 0xa6e   : > { %20999 = vmatmul.mubr.msk.bf16.gmra.mrb[92].mxu1 %vm309_vm0, %v8249_v27  ;;  %v8487_v27 = vld [vmem:[#allocation4 + $0x4fc] sm:$0xff]  ;;  %21113 = vmatpush3.bf16.msra.mxu0 %v9396_v13 }
 0xa6f   : > { %21006 = vmatprep.mubr.msk.bf16.mxu1 %vm309_vm0, %v8506_v55  ;;  %v8520_v40 = vpack.c.bf16 %v8487_v27, %v26634_v23  ;;  %v8489_v55 = vld [vmem:[#allocation4 + $0x52c] sm:$0xff] }
 0xa70   : > { %v8521_v46 = vpack.c.bf16 %v8489_v55, %v26631_v48  ;;  %v8491_v48 = vld [vmem:[#allocation4 + $0x55c] sm:$0xff] }
 0xa71   : > { %v8766_v23 = vpack.c.bf16 %v8491_v48, %v26656_v0 }
 0xa76   : > { %21007 = vmatmul.mubr.msk.bf16.vlgmr.msra.gmra.mrb[64].mxu1 %vm309_vm0, %v8507_v28  ;;  %v8495_v28 = vld [vmem:[#allocation4 + $0x5bc] sm:$0xff] }
 0xa77   : > { %21039 = vmatpush3.bf16.msra.mxu1 %v8771_v58  ;;  %21010 = vmatprep.mubr.msk.bf16.mxu1 %vm309_vm0, %v8508_v32  ;;  %v8511_v58 = vpack.c.bf16 %v8469_v56, %v26518_v41  ;;  %v8515_v41 = vpack.c.bf16 %v8477_v49, %v26565_v21  ;;  %v8519_v21 = vpack.c.bf16 %v8485_v60, %v26609_v16  ;;  %v8984_v16 = vld [vmem:[#allocation2 + $0x238] sm:$0xff] }
 0xa78   : > { %21040 = vmatprep.subr.bf16.mxu1 %v8772_v25  ;;  %v8767_v32 = vpack.c.bf16 %v8493_v43, %v26653_v31  ;;  %v8499_v31 = vld [vmem:[#allocation4 + $0x61c] sm:$0xff] }
 0xa79   : > { %v8978_v0 = vpack.c.bf16 %v8499_v31, %v26731_v37  ;;  %v9344_v37 = vld [vmem:[#allocation2 + $0x240] sm:$0xff] }
 0xa7a   : > { %21146 = vmatprep.subr.bf16.mxu0 %v9344_v37 }
 0xa7b   : > { %21041 = vmatpush3.bf16.msra.mxu1 %v8772_v25  ;;  %v8768_v25 = vpack.c.bf16 %v8495_v28, %v26667_v44  ;;  %v8503_v44 = vld [vmem:[#allocation4 + $0x67c] sm:$0xff] }
 0xa7c   : > { %21074 = vmatprep.subr.bf16.mxu1 %v8983_v51  ;;  %v8980_v62 = vpack.c.bf16 %v8503_v44, %v26738_v20 }
 0xa7e   : > { %21011 = vmatmul.mubr.msk.bf16.gmra.mrb[68].mxu1 %vm309_vm0, %v8509_v19 }
 0xa7f   : > { %21014 = vmatprep.mubr.msk.bf16.mxu1 %vm309_vm0, %v8510_v29 }
 0xa86   : > { %21015 = vmatmul.mubr.msk.bf16.gmra.mrb[72].mxu1 %vm309_vm0, %v8511_v58 }
 0xa87   : > { %21018 = vmatprep.mubr.msk.bf16.mxu1 %vm309_vm0, %v8512_v45 }
 0xa8e   : > { %21019 = vmatmul.mubr.msk.bf16.gmra.mrb[76].mxu1 %vm309_vm0, %v8513_v26 }
 0xa8f   : > { %21022 = vmatprep.mubr.msk.bf16.mxu1 %vm309_vm0, %v8514_v24 }
 0xa96   : > { %21023 = vmatmul.mubr.msk.bf16.gmra.mrb[80].mxu1 %vm309_vm0, %v8515_v41 }
 0xa97   : > { %21026 = vmatprep.mubr.msk.bf16.mxu1 %vm309_vm0, %v8516_v39 }
 0xa9e   : > { %21027 = vmatmul.mubr.msk.bf16.gmra.mrb[84].mxu1 %vm309_vm0, %v8517_v59 }
 0xa9f   : > { %21030 = vmatprep.mubr.msk.bf16.mxu1 %vm309_vm0, %v8518_v61 }
 0xaa6   : > { %21031 = vmatmul.mubr.msk.bf16.gmra.mrb[88].mxu1 %vm309_vm0, %v8519_v21 }
 0xaa7   : > { %21034 = vmatprep.mubr.msk.bf16.mxu1 %vm309_vm0, %v8520_v40 }
 0xaae   : > { %21035 = vmatmul.mubr.msk.bf16.gmra.mrb[92].mxu1 %vm309_vm0, %v8521_v46 }
 0xaaf   : > { %21042 = vmatprep.mubr.msk.bf16.mxu1 %vm309_vm0, %v8510_v29  ;;  %v8505_v29 = vld [vmem:[#allocation4 + $0x6ac] sm:$0xff] }
 0xab0   : > { %v8981_v56 = vpack.c.bf16 %v8505_v29, %v26744_v35 }
 0xab6   : > { %21043 = vmatmul.mubr.msk.bf16.vlgmr.msra.gmra.mrb[64].mxu1 %vm309_vm0, %v8511_v58 }
 0xab7   : > { %21046 = vmatprep.mubr.msk.bf16.mxu1 %vm309_vm0, %v8512_v45  ;;  %21075 = vmatpush3.bf16.msra.mxu1 %v8983_v51  ;;  %v8769_v51 = vpack.c.bf16 %v8497_v63, %v26665_v42  ;;  %v8501_v42 = vld [vmem:[#allocation4 + $0x64c] sm:$0xff] }
 0xab8   : > { %21076 = vmatprep.subr.bf16.mxu1 %v8984_v16  ;;  %v8979_v19 = vpack.c.bf16 %v8501_v42, %v26736_v54 }
 0xabb   : > { %21077 = vmatpush3.bf16.msra.mxu1 %v8984_v16 }
 0xabe   : > { %21047 = vmatmul.mubr.msk.bf16.gmra.mrb[68].mxu1 %vm309_vm0, %v8513_v26 }
 0xabf   : > { %21050 = vmatprep.mubr.msk.bf16.mxu1 %vm309_vm0, %v8514_v24 }
 0xac6   : > { %21051 = vmatmul.mubr.msk.bf16.gmra.mrb[72].mxu1 %vm309_vm0, %v8515_v41 }
 0xac7   : > { %21054 = vmatprep.mubr.msk.bf16.mxu1 %vm309_vm0, %v8516_v39 }
 0xace   : > { %21055 = vmatmul.mubr.msk.bf16.gmra.mrb[76].mxu1 %vm309_vm0, %v8517_v59 }
 0xacf   : > { %21058 = vmatprep.mubr.msk.bf16.mxu1 %vm309_vm0, %v8518_v61 }
 0xad6   : > { %21059 = vmatmul.mubr.msk.bf16.gmra.mrb[80].mxu1 %vm309_vm0, %v8519_v21 }
 0xad7   : > { %21062 = vmatprep.mubr.msk.bf16.mxu1 %vm309_vm0, %v8520_v40 }
 0xade   : > { %21063 = vmatmul.mubr.msk.bf16.gmra.mrb[84].mxu1 %vm309_vm0, %v8521_v46 }
 0xadf   : > { %21066 = vmatprep.mubr.msk.bf16.mxu1 %vm309_vm0, %v8766_v23 }
 0xae6   : > { %21067 = vmatmul.mubr.msk.bf16.gmra.mrb[88].mxu1 %vm309_vm0, %v8767_v32 }
 0xae7   : > { %21070 = vmatprep.mubr.msk.bf16.mxu1 %vm309_vm0, %v8768_v25 }
 0xaee   : > { %21071 = vmatmul.mubr.msk.bf16.gmra.mrb[92].mxu1 %vm309_vm0, %v8769_v51 }
 0xaef   : > { %21078 = vmatprep.mubr.msk.bf16.mxu1 %vm309_vm0, %v8514_v24 }
 0xaf6   : > { %21079 = vmatmul.mubr.msk.bf16.vlgmr.msra.gmra.mrb[64].mxu1 %vm309_vm0, %v8515_v41 }
 0xaf7   : > { %21082 = vmatprep.mubr.msk.bf16.mxu1 %vm309_vm0, %v8516_v39 }
 0xafe   : > { %21083 = vmatmul.mubr.msk.bf16.gmra.mrb[68].mxu1 %vm309_vm0, %v8517_v59 }
 0xaff   : > { %21086 = vmatprep.mubr.msk.bf16.mxu1 %vm309_vm0, %v8518_v61 }
 0xb06   : > { %21087 = vmatmul.mubr.msk.bf16.gmra.mrb[72].mxu1 %vm309_vm0, %v8519_v21 }
 0xb07   : > { %21090 = vmatprep.mubr.msk.bf16.mxu1 %vm309_vm0, %v8520_v40  ;;  %v9346_v40 = vld [vmem:[#allocation4 + $0x308] sm:$0xff] }
 0xb0e   : > { %21091 = vmatmul.mubr.msk.bf16.gmra.mrb[76].mxu1 %vm309_vm0, %v8521_v46 }
 0xb0f   : > { %21094 = vmatprep.mubr.msk.bf16.mxu1 %vm309_vm0, %v8766_v23 }
 0xb16   : > { %21095 = vmatmul.mubr.msk.bf16.gmra.mrb[80].mxu1 %vm309_vm0, %v8767_v32 }
 0xb17   : > { %21098 = vmatprep.mubr.msk.bf16.mxu1 %vm309_vm0, %v8768_v25  ;;  %v9345_v25 = vld [vmem:[#allocation2 + $0x248] sm:$0xff] }
 0xb1e   : > { %21099 = vmatmul.mubr.msk.bf16.gmra.mrb[84].mxu1 %vm309_vm0, %v8769_v51 }
 0xb1f   : > { %21102 = vmatprep.mubr.msk.bf16.mxu1 %vm309_vm0, %v8978_v0 }
 0xb26   : > { %21103 = vmatmul.mubr.msk.bf16.gmra.mrb[88].mxu1 %vm309_vm0, %v8979_v19 }
 0xb27   : > { %21106 = vmatprep.mubr.msk.bf16.mxu1 %vm309_vm0, %v8980_v62  ;;  %v9350_v62 = vld [vmem:[#allocation4 + $0x368] sm:$0xff] }
 0xb2e   : > { %21107 = vmatmul.mubr.msk.bf16.gmra.mrb[92].mxu1 %vm309_vm0, %v8981_v56 }
 0xbc9   : > { %v21080_v58 = vpop.f32.mrb[64].mxu1 }
 0xbca   : > { %v9200_v45 = vadd.f32 %v21080_v58, %v26897_v17  ;;  %v9031_v30 = vpop.f32.mrb[65].mxu1  ;;  %v9352_v58 = vld [vmem:[#allocation4 + $0x398] sm:$0xff] }
 0xbcb   : > { %v9198_v54 = vadd.f32 %v26897_v17, %v9031_v30  ;;  %v21081_v20 = vpop.f32.mrb[66].mxu1  ;;  %v26935_v30 = vld [vmem:[#allocation2 + $0x2a0] sm:$0xff] }
 0xbcc   : > { %v9232_v53 = vmax.f32 %v9200_v45, 0.0  ;;  %v9201_v26 = vadd.f32 %v21081_v20, %v26897_v17  ;;  %v9034_v24 = vpop.f32.mrb[67].mxu1 }
 0xbcd   : > { %v9230_v49 = vmax.f32 %v9198_v54, 0.0  ;;  %v9199_v35 = vadd.f32 %v26897_v17, %v9034_v24 }
 0xbce   : > { %9264 = vst.msk [vmem:[#allocation4 + $0x340] sm:$0xff] %vm309_vm0, %v9232_v53  ;;  %v9233_v38 = vmax.f32 %v9201_v26, 0.0 }
 0xbcf   : > { %9262 = vst.msk [vmem:[#allocation4 + $0x310] sm:$0xff] %vm309_vm0, %v9230_v49  ;;  %v9231_v41 = vmax.f32 %v9199_v35, 0.0 }
 0xbd0   : > { %9265 = vst.msk [vmem:[#allocation4 + $0x348] sm:$0xff] %vm309_vm0, %v9233_v38 }
 0xbd1   : > { %9263 = vst.msk [vmem:[#allocation4 + $0x318] sm:$0xff] %vm309_vm0, %v9231_v41  ;;  %v21084_v39 = vpop.f32.mrb[68].mxu1 }
 0xbd2   : > { %v9204_v34 = vadd.f32 %v21084_v39, %v26897_v17  ;;  %v9047_v52 = vpop.f32.mrb[69].mxu1 }
 0xbd3   : > { %v9202_v59 = vadd.f32 %v26897_v17, %v9047_v52  ;;  %v21085_v61 = vpop.f32.mrb[70].mxu1 }
 0xbd4   : > { %v9236_v60 = vmax.f32 %v9204_v34, 0.0  ;;  %v9205_v27 = vadd.f32 %v21085_v61, %v26897_v17  ;;  %v9050_v21 = vpop.f32.mrb[71].mxu1 }
 0xbd5   : > { %v9234_v55 = vmax.f32 %v9202_v59, 0.0  ;;  %v9203_v46 = vadd.f32 %v26897_v17, %v9050_v21  ;;  %v26911_v13 = vld [vmem:[#allocation4 + $0x340] sm:$0xff]  ;;  %v9354_v59 = vld [vmem:[#allocation4 + $0x3c8] sm:$0xff] }
 0xbd6   : > { %9268 = vst.msk [vmem:[#allocation4 + $0x3a0] sm:$0xff] %vm309_vm0, %v9236_v60  ;;  %v9237_v16 = vmax.f32 %v9205_v27, 0.0  ;;  %v26914_v48 = vld [vmem:[#allocation4 + $0x310] sm:$0xff]  ;;  %v26922_v28 = vpack.c.bf16 %v26911_v13, %v9348_v22  ;;  %v9356_v27 = vld [vmem:[#allocation4 + $0x3f8] sm:$0xff] }
 0xbd7   : > { %9266 = vst.msk [vmem:[#allocation4 + $0x370] sm:$0xff] %vm309_vm0, %v9234_v55  ;;  %v9235_v23 = vmax.f32 %v9203_v46, 0.0  ;;  %v26918_v43 = vpack.c.bf16 %v26914_v48, %v9346_v40 }
 0xbd8   : > { %9269 = vst.msk [vmem:[#allocation4 + $0x3a8] sm:$0xff] %vm309_vm0, %v9237_v16 }
 0xbd9   : > { %9267 = vst.msk [vmem:[#allocation4 + $0x378] sm:$0xff] %vm309_vm0, %v9235_v23  ;;  %v21088_v32 = vpop.f32.mrb[72].mxu1  ;;  %21114 = vmatprep.mubr.msk.bf16.mxu0 %vm309_vm0, %v26918_v43 }
 0xbda   : > { %v9208_v63 = vadd.f32 %v21088_v32, %v26897_v17  ;;  %v9063_v51 = vpop.f32.mrb[73].mxu1  ;;  %21115 = vmatmul.mubr.msk.bf16.vlgmr.msra.gmra.mrb[64].mxu0 %vm309_vm0, %v26922_v28 }
 0xbdb   : > { %v9206_v31 = vadd.f32 %v26897_v17, %v9063_v51  ;;  %v21089_v0 = vpop.f32.mrb[74].mxu1  ;;  %21147 = vmatpush3.bf16.msra.mxu0 %v9344_v37 }
 0xbdc   : > { %v9240_v42 = vmax.f32 %v9208_v63, 0.0  ;;  %v9209_v44 = vadd.f32 %v21089_v0, %v26897_v17  ;;  %v9066_v19 = vpop.f32.mrb[75].mxu1  ;;  %21148 = vmatprep.subr.bf16.mxu0 %v9345_v25 }
 0xbdd   : > { %v9238_v29 = vmax.f32 %v9206_v31, 0.0  ;;  %v9207_v56 = vadd.f32 %v26897_v17, %v9066_v19  ;;  %v26933_v45 = vld [vmem:[#allocation4 + $0x3a0] sm:$0xff] }
 0xbde   : > { %9272 = vst.msk [vmem:[#allocation4 + $0x400] sm:$0xff] %vm309_vm0, %v9240_v42  ;;  %v9241_v54 = vmax.f32 %v9209_v44, 0.0  ;;  %v26938_v20 = vld [vmem:[#allocation4 + $0x370] sm:$0xff]  ;;  %v26946_v26 = vpack.c.bf16 %v26933_v45, %v9352_v58  ;;  %v9358_v44 = vld [vmem:[#allocation4 + $0x428] sm:$0xff] }
 0xbdf   : > { %9270 = vst.msk [vmem:[#allocation4 + $0x3d0] sm:$0xff] %vm309_vm0, %v9238_v29  ;;  %v9239_v37 = vmax.f32 %v9207_v56, 0.0  ;;  %v26942_v53 = vpack.c.bf16 %v26938_v20, %v9350_v62  ;;  %21149 = vmatpush3.bf16.msra.mxu0 %v9345_v25  ;;  %v9360_v29 = vld [vmem:[#allocation4 + $0x458] sm:$0xff] }
 0xbe0   : > { %9273 = vst.msk [vmem:[#allocation4 + $0x408] sm:$0xff] %vm309_vm0, %v9241_v54  ;;  %21182 = vmatprep.subr.bf16.mxu0 %v26935_v30 }
 0xbe1   : > { %9271 = vst.msk [vmem:[#allocation4 + $0x3d8] sm:$0xff] %vm309_vm0, %v9239_v37  ;;  %v21092_v24 = vpop.f32.mrb[76].mxu1  ;;  %21118 = vmatprep.mubr.msk.bf16.mxu0 %vm309_vm0, %v26942_v53 }
 0xbe2   : > { %v9212_v49 = vadd.f32 %v21092_v24, %v26897_v17  ;;  %v9079_v35 = vpop.f32.mrb[77].mxu1  ;;  %21119 = vmatmul.mubr.msk.bf16.gmra.mrb[68].mxu0 %vm309_vm0, %v26946_v26 }
 0xbe3   : > { %v9210_v38 = vadd.f32 %v26897_v17, %v9079_v35  ;;  %v21093_v41 = vpop.f32.mrb[78].mxu1 }
 0xbe4   : > { %v9244_v39 = vmax.f32 %v9212_v49, 0.0  ;;  %v9213_v34 = vadd.f32 %v21093_v41, %v26897_v17  ;;  %v9082_v52 = vpop.f32.mrb[79].mxu1 }
 0xbe5   : > { %v9242_v61 = vmax.f32 %v9210_v38, 0.0  ;;  %v9211_v60 = vadd.f32 %v26897_v17, %v9082_v52  ;;  %v26958_v21 = vld [vmem:[#allocation4 + $0x400] sm:$0xff] }
 0xbe6   : > { %9276 = vst.msk [vmem:[#allocation4 + $0x460] sm:$0xff] %vm309_vm0, %v9244_v39  ;;  %v9245_v40 = vmax.f32 %v9213_v34, 0.0  ;;  %v26961_v55 = vld [vmem:[#allocation4 + $0x3d0] sm:$0xff]  ;;  %v26969_v16 = vpack.c.bf16 %v26958_v21, %v9356_v27 }
 0xbe7   : > { %9274 = vst.msk [vmem:[#allocation4 + $0x430] sm:$0xff] %vm309_vm0, %v9242_v61  ;;  %v9243_v46 = vmax.f32 %v9211_v60, 0.0  ;;  %v26965_v22 = vpack.c.bf16 %v26961_v55, %v9354_v59  ;;  %v9362_v60 = vld [vmem:[#allocation4 + $0x488] sm:$0xff] }
 0xbe8   : > { %9277 = vst.msk [vmem:[#allocation4 + $0x468] sm:$0xff] %vm309_vm0, %v9245_v40 }
 0xbe9   : > { %9275 = vst.msk [vmem:[#allocation4 + $0x438] sm:$0xff] %vm309_vm0, %v9243_v46  ;;  %v21096_v23 = vpop.f32.mrb[80].mxu1  ;;  %21122 = vmatprep.mubr.msk.bf16.mxu0 %vm309_vm0, %v26965_v22  ;;  %v9364_v46 = vld [vmem:[#allocation4 + $0x4b8] sm:$0xff] }
 0xbea   : > { %v9216_v32 = vadd.f32 %v21096_v23, %v26897_v17  ;;  %v9095_v25 = vpop.f32.mrb[81].mxu1  ;;  %21123 = vmatmul.mubr.msk.bf16.gmra.mrb[72].mxu0 %vm309_vm0, %v26969_v16 }
 0xbeb   : > { %v9214_v63 = vadd.f32 %v26897_v17, %v9095_v25  ;;  %v21097_v51 = vpop.f32.mrb[82].mxu1 }
 0xbec   : > { %v9248_v31 = vmax.f32 %v9216_v32, 0.0  ;;  %v9217_v0 = vadd.f32 %v21097_v51, %v26897_v17  ;;  %v9098_v42 = vpop.f32.mrb[83].mxu1 }
 0xbed   : > { %v9246_v19 = vmax.f32 %v9214_v63, 0.0  ;;  %v9215_v62 = vadd.f32 %v26897_v17, %v9098_v42  ;;  %v26980_v56 = vld [vmem:[#allocation4 + $0x460] sm:$0xff] }
 0xbee   : > { %9280 = vst.msk [vmem:[#allocation4 + $0x4c0] sm:$0xff] %vm309_vm0, %v9248_v31  ;;  %v9249_v58 = vmax.f32 %v9217_v0, 0.0  ;;  %v26983_v54 = vld [vmem:[#allocation4 + $0x430] sm:$0xff]  ;;  %v26991_v49 = vpack.c.bf16 %v26980_v56, %v9360_v29 }
 0xbef   : > { %9278 = vst.msk [vmem:[#allocation4 + $0x490] sm:$0xff] %vm309_vm0, %v9246_v19  ;;  %v9247_v37 = vmax.f32 %v9215_v62, 0.0  ;;  %v26987_v24 = vpack.c.bf16 %v26983_v54, %v9358_v44 }
 0xbf0   : > { %9281 = vst.msk [vmem:[#allocation4 + $0x4c8] sm:$0xff] %vm309_vm0, %v9249_v58 }
 0xbf1   : > { %9279 = vst.msk [vmem:[#allocation4 + $0x498] sm:$0xff] %vm309_vm0, %v9247_v37  ;;  %v21100_v35 = vpop.f32.mrb[84].mxu1  ;;  %21126 = vmatprep.mubr.msk.bf16.mxu0 %vm309_vm0, %v26987_v24 }
 0xbf2   : > { %v9220_v38 = vadd.f32 %v21100_v35, %v26897_v17  ;;  %v9111_v41 = vpop.f32.mrb[85].mxu1  ;;  %21127 = vmatmul.mubr.msk.bf16.gmra.mrb[76].mxu0 %vm309_vm0, %v26991_v49  ;;  %v9366_v35 = vld [vmem:[#allocation4 + $0x4e8] sm:$0xff] }
 0xbf3   : > { %v9218_v39 = vadd.f32 %v26897_v17, %v9111_v41  ;;  %v21101_v34 = vpop.f32.mrb[86].mxu1 }
 0xbf4   : > { %v9252_v52 = vmax.f32 %v9220_v38, 0.0  ;;  %v9221_v59 = vadd.f32 %v21101_v34, %v26897_v17  ;;  %v9114_v61 = vpop.f32.mrb[87].mxu1 }
 0xbf5   : > { %v9250_v27 = vmax.f32 %v9218_v39, 0.0  ;;  %v9219_v40 = vadd.f32 %v26897_v17, %v9114_v61  ;;  %v27002_v23 = vld [vmem:[#allocation4 + $0x4c0] sm:$0xff]  ;;  %v9368_v39 = vld [vmem:[#allocation4 + $0x518] sm:$0xff] }
 0xbf6   : > { %9284 = vst.msk [vmem:[#allocation4 + $0x520] sm:$0xff] %vm309_vm0, %v9252_v52  ;;  %v9253_v32 = vmax.f32 %v9221_v59, 0.0  ;;  %v27005_v25 = vld [vmem:[#allocation4 + $0x490] sm:$0xff]  ;;  %v27013_v31 = vpack.c.bf16 %v27002_v23, %v9364_v46 }
 0xbf7   : > { %9282 = vst.msk [vmem:[#allocation4 + $0x4f0] sm:$0xff] %vm309_vm0, %v9250_v27  ;;  %v9251_v63 = vmax.f32 %v9219_v40, 0.0  ;;  %v27009_v51 = vpack.c.bf16 %v27005_v25, %v9362_v60 }
 0xbf8   : > { %9285 = vst.msk [vmem:[#allocation4 + $0x528] sm:$0xff] %vm309_vm0, %v9253_v32 }
 0xbf9   : > { %9283 = vst.msk [vmem:[#allocation4 + $0x4f8] sm:$0xff] %vm309_vm0, %v9251_v63  ;;  %v21104_v0 = vpop.f32.mrb[88].mxu1  ;;  %21130 = vmatprep.mubr.msk.bf16.mxu0 %vm309_vm0, %v27009_v51 }
 0xbfa   : > { %v9224_v42 = vadd.f32 %v21104_v0, %v26897_v17  ;;  %v9127_v44 = vpop.f32.mrb[89].mxu1  ;;  %21131 = vmatmul.mubr.msk.bf16.gmra.mrb[80].mxu0 %vm309_vm0, %v27013_v31 }
 0xbfb   : > { %v9222_v19 = vadd.f32 %v26897_v17, %v9127_v44  ;;  %v21105_v62 = vpop.f32.mrb[90].mxu1 }
 0xbfc   : > { %v9256_v29 = vmax.f32 %v9224_v42, 0.0  ;;  %v9225_v58 = vadd.f32 %v21105_v62, %v26897_v17  ;;  %v9130_v37 = vpop.f32.mrb[91].mxu1  ;;  %v9370_v62 = vld [vmem:[#allocation4 + $0x548] sm:$0xff] }
 0xbfd   : > { %v9254_v38 = vmax.f32 %v9222_v19, 0.0  ;;  %v9223_v41 = vadd.f32 %v26897_v17, %v9130_v37  ;;  %v27024_v34 = vld [vmem:[#allocation4 + $0x520] sm:$0xff]  ;;  %v9372_v37 = vld [vmem:[#allocation4 + $0x578] sm:$0xff] }
 0xbfe   : > { %9288 = vst.msk [vmem:[#allocation4 + $0x580] sm:$0xff] %vm309_vm0, %v9256_v29  ;;  %v9257_v52 = vmax.f32 %v9225_v58, 0.0  ;;  %v27027_v59 = vld [vmem:[#allocation4 + $0x4f0] sm:$0xff]  ;;  %v27035_v27 = vpack.c.bf16 %v27024_v34, %v9368_v39 }
 0xbff   : > { %9286 = vst.msk [vmem:[#allocation4 + $0x550] sm:$0xff] %vm309_vm0, %v9254_v38  ;;  %v9255_v61 = vmax.f32 %v9223_v41, 0.0  ;;  %v27031_v60 = vpack.c.bf16 %v27027_v59, %v9366_v35 }
 0xc00   : > { %9289 = vst.msk [vmem:[#allocation4 + $0x588] sm:$0xff] %vm309_vm0, %v9257_v52 }
 0xc01   : > { %9287 = vst.msk [vmem:[#allocation4 + $0x558] sm:$0xff] %vm309_vm0, %v9255_v61  ;;  %v21108_v40 = vpop.f32.mrb[92].mxu1  ;;  %21134 = vmatprep.mubr.msk.bf16.mxu0 %vm309_vm0, %v27031_v60 }
 0xc02   : > { %v9228_v46 = vadd.f32 %v21108_v40, %v26897_v17  ;;  %v9143_v32 = vpop.f32.mrb[93].mxu1  ;;  %21135 = vmatmul.mubr.msk.bf16.gmra.mrb[84].mxu0 %vm309_vm0, %v27035_v27  ;;  %v9295_v40 = vld [vmem:[#allocation4 + $0x188] sm:$0xff] }
 0xc03   : > { %v9226_v63 = vadd.f32 %v26897_v17, %v9143_v32  ;;  %v21109_v0 = vpop.f32.mrb[94].mxu1  ;;  %v9376_v32 = vld [vmem:[#allocation4 + $0x5d8] sm:$0xff] }
 0xc04   : > { %v9260_v42 = vmax.f32 %v9228_v46, 0.0  ;;  %v9229_v44 = vadd.f32 %v21109_v0, %v26897_v17  ;;  %v9146_v19 = vpop.f32.mrb[95].mxu1  ;;  %v27064_v46 = vld [vmem:[#allocation4 + $0x190] sm:$0xff] }
 0xc05   : > { %v9258_v29 = vmax.f32 %v9226_v63, 0.0  ;;  %v9227_v58 = vadd.f32 %v26897_v17, %v9146_v19  ;;  %v27046_v35 = vld [vmem:[#allocation4 + $0x580] sm:$0xff]  ;;  %v9374_v17 = vld [vmem:[#allocation4 + $0x5a8] sm:$0xff] }
 0xc06   : > { %9292 = vst.msk [vmem:[#allocation4 + $0x5e0] sm:$0xff] %vm309_vm0, %v9260_v42  ;;  %v9261_v38 = vmax.f32 %v9229_v44, 0.0  ;;  %v27049_v41 = vld [vmem:[#allocation4 + $0x550] sm:$0xff]  ;;  %v27057_v61 = vpack.c.bf16 %v27046_v35, %v9372_v37  ;;  %v9327_v44 = vpack.c.bf16 %v27064_v46, %v9295_v40  ;;  %v9301_v40 = vld [vmem:[#allocation4 + $0x218] sm:$0xff] }
 0xc07   : > { %9290 = vst.msk [vmem:[#allocation4 + $0x5b0] sm:$0xff] %vm309_vm0, %v9258_v29  ;;  %v9259_v39 = vmax.f32 %v9227_v58, 0.0  ;;  %v27053_v52 = vpack.c.bf16 %v27049_v41, %v9370_v62  ;;  %v9297_v62 = vld [vmem:[#allocation4 + $0x1b8] sm:$0xff]  ;;  %v27076_v29 = vld [vmem:[#allocation4 + $0x1c0] sm:$0xff]  ;;  %v9299_v58 = vld [vmem:[#allocation4 + $0x1e8] sm:$0xff] }
 0xc08   : > { %9293 = vst.msk [vmem:[#allocation4 + $0x5e8] sm:$0xff] %vm309_vm0, %v9261_v38  ;;  %v27078_v37 = vld [vmem:[#allocation4 + $0x1f0] sm:$0xff]  ;;  %v9328_v38 = vpack.c.bf16 %v27076_v29, %v9297_v62  ;;  %v9305_v62 = vld [vmem:[#allocation4 + $0x278] sm:$0xff] }
 0xc09   : > { %9291 = vst.msk [vmem:[#allocation4 + $0x5b8] sm:$0xff] %vm309_vm0, %v9259_v39  ;;  %21138 = vmatprep.mubr.msk.bf16.mxu0 %vm309_vm0, %v27053_v52  ;;  %v9329_v39 = vpack.c.bf16 %v27078_v37, %v9299_v58  ;;  %v9332_v58 = vpack.c.bf16 %v26752_v18, %v9305_v62  ;;  %v10116_v62 = vld [vmem:[#allocation4 + $0x250] sm:$0xff] }
 0xc0a   : > { %21139 = vmatmul.mubr.msk.bf16.gmra.mrb[88].mxu0 %vm309_vm0, %v27057_v61 }
 0xc0d   : > { %v27066_v63 = vld [vmem:[#allocation4 + $0x5e0] sm:$0xff] }
 0xc0e   : > { %v27068_v0 = vld [vmem:[#allocation4 + $0x5b0] sm:$0xff]  ;;  %v9393_v19 = vpack.c.bf16 %v27066_v63, %v9376_v32  ;;  %v27085_v32 = vld [vmem:[#allocation4 + $0x220] sm:$0xff] }
 0xc0f   : > { %v9392_v42 = vpack.c.bf16 %v27068_v0, %v9374_v17  ;;  %v9866_v17 = vld [vmem:[#allocation2 + $0x2a8] sm:$0xff]  ;;  %v9330_v12 = vpack.c.bf16 %v27085_v32, %v9301_v40 }
 0xc11   : > { %21142 = vmatprep.mubr.msk.bf16.mxu0 %vm309_vm0, %v9392_v42 }
 0xc12   : > { %21143 = vmatmul.mubr.msk.bf16.gmra.mrb[92].mxu0 %vm309_vm0, %v9393_v19 }
 0xc13   : > { %21150 = vmatprep.mubr.msk.bf16.mxu0 %vm309_vm0, %v9327_v44  ;;  %v9303_v44 = vld [vmem:[#allocation4 + $0x248] sm:$0xff] }
 0xc14   : > { %v9331_v9 = vpack.c.bf16 %v26746_v36, %v9303_v44  ;;  %v9832_v36 = vld [vmem:[#allocation4 + $0x608] sm:$0xff]  ;;  %v10450_v44 = vld [vmem:[#allocation2 + $0x288] sm:$0xff] }
 0xc15   : > { %v9856_v18 = vpack.c.bf16 %v26808_v47, %v9832_v36 }
 0xc1a   : > { %21151 = vmatmul.mubr.msk.bf16.vlgmr.msra.gmra.mrb[64].mxu0 %vm309_vm0, %v9328_v38 }
 0xc1b   : > { %21183 = vmatpush3.bf16.msra.mxu0 %v26935_v30  ;;  %21154 = vmatprep.mubr.msk.bf16.mxu0 %vm309_vm0, %v9329_v39  ;;  %v9307_v30 = vld [vmem:[#allocation4 + $0x2a8] sm:$0xff]  ;;  %v9309_v39 = vld [vmem:[#allocation4 + $0x2d8] sm:$0xff] }
 0xc1c   : > { %21184 = vmatprep.subr.bf16.mxu0 %v9866_v17  ;;  %v9333_v38 = vpack.c.bf16 %v26754_v33, %v9307_v30  ;;  %v9334_v40 = vpack.c.bf16 %v26760_v57, %v9309_v39  ;;  %v9836_v33 = vld [vmem:[#allocation4 + $0x668] sm:$0xff]  ;;  %v27168_v30 = vld [vmem:[#allocation4 + $0x258] sm:$0xff] }
 0xc1d   : > { %v27175_v39 = vld [vmem:[#allocation4 + $0x288] sm:$0xff] }
 0xc1f   : > { %21185 = vmatpush3.bf16.msra.mxu0 %v9866_v17 }
 0xc20   : > { %21218 = vmatprep.subr.bf16.mxu0 %v10157_v10 }
 0xc22   : > { %21155 = vmatmul.mubr.msk.bf16.gmra.mrb[68].mxu0 %vm309_vm0, %v9330_v12  ;;  %v10449_v12 = vld [vmem:[#allocation2 + $0x280] sm:$0xff] }
 0xc23   : > { %21158 = vmatprep.mubr.msk.bf16.mxu0 %vm309_vm0, %v9331_v9  ;;  %v10158_v9 = vld [vmem:[#allocation2 + $0x258] sm:$0xff] }
 0xc2a   : > { %21159 = vmatmul.mubr.msk.bf16.gmra.mrb[72].mxu0 %vm309_vm0, %v9332_v58  ;;  %v10741_v58 = vld [vmem:[#allocation2 + $0x2b0] sm:$0xff] }
 0xc2b   : > { %21162 = vmatprep.mubr.msk.bf16.mxu0 %vm309_vm0, %v9333_v38 }
 0xc32   : > { %21163 = vmatmul.mubr.msk.bf16.gmra.mrb[76].mxu0 %vm309_vm0, %v9334_v40  ;;  %v10120_v40 = vld [vmem:[#allocation4 + $0x2b0] sm:$0xff] }
 0xc33   : > { %21166 = vmatprep.mubr.msk.bf16.mxu0 %vm309_vm0, %v26918_v43  ;;  %v9858_v43 = vpack.c.bf16 %v26815_v50, %v9836_v33  ;;  %v9844_v50 = vld [vmem:[#allocation4 + $0x728] sm:$0xff]  ;;  %v27186_v33 = vld [vmem:[#allocation4 + $0x318] sm:$0xff] }
 0xc3a   : > { %21167 = vmatmul.mubr.msk.bf16.gmra.mrb[80].mxu0 %vm309_vm0, %v26922_v28  ;;  %v9838_v28 = vld [vmem:[#allocation4 + $0x698] sm:$0xff] }
 0xc3b   : > { %21170 = vmatprep.mubr.msk.bf16.mxu0 %vm309_vm0, %v26942_v53  ;;  %v9840_v53 = vld [vmem:[#allocation4 + $0x6c8] sm:$0xff]  ;;  %v9859_v47 = vpack.c.bf16 %v26821_v15, %v9838_v28  ;;  %v9846_v15 = vld [vmem:[#allocation4 + $0x758] sm:$0xff] }
 0xc3c   : > { %v27194_v28 = vld [vmem:[#allocation4 + $0x378] sm:$0xff] }
 0xc42   : > { %21171 = vmatmul.mubr.msk.bf16.gmra.mrb[84].mxu0 %vm309_vm0, %v26946_v26  ;;  %v27133_v26 = vld [vmem:[#allocation4 + $0x6d0] sm:$0xff] }
 0xc43   : > { %21174 = vmatprep.mubr.msk.bf16.mxu0 %vm309_vm0, %v26965_v22  ;;  %v9860_v22 = vpack.c.bf16 %v27133_v26, %v9840_v53 }
 0xc4a   : > { %21175 = vmatmul.mubr.msk.bf16.gmra.mrb[88].mxu0 %vm309_vm0, %v26969_v16  ;;  %v9842_v16 = vld [vmem:[#allocation4 + $0x6f8] sm:$0xff] }
 0xc4b   : > { %21178 = vmatprep.mubr.msk.bf16.mxu0 %vm309_vm0, %v26987_v24  ;;  %v27141_v24 = vld [vmem:[#allocation4 + $0x730] sm:$0xff] }
 0xc52   : > { %21179 = vmatmul.mubr.msk.bf16.gmra.mrb[92].mxu0 %vm309_vm0, %v26991_v49 }
 0xc53   : > { %21186 = vmatprep.mubr.msk.bf16.mxu0 %vm309_vm0, %v27009_v51  ;;  %v9862_v51 = vpack.c.bf16 %v27141_v24, %v9844_v50 }
 0xc5a   : > { %21187 = vmatmul.mubr.msk.bf16.vlgmr.msra.gmra.mrb[64].mxu0 %vm309_vm0, %v27013_v31  ;;  %v27147_v31 = vld [vmem:[#allocation4 + $0x760] sm:$0xff] }
 0xc5b   : > { %21190 = vmatprep.mubr.msk.bf16.mxu0 %vm309_vm0, %v27031_v60  ;;  %21219 = vmatpush3.bf16.msra.mxu0 %v10157_v10  ;;  %v9834_v10 = vld [vmem:[#allocation4 + $0x638] sm:$0xff] }
 0xc5c   : > { %21220 = vmatprep.subr.bf16.mxu0 %v10158_v9  ;;  %v9857_v57 = vpack.c.bf16 %v26813_v14, %v9834_v10  ;;  %v27139_v14 = vld [vmem:[#allocation4 + $0x700] sm:$0xff]  ;;  %v27149_v60 = vld [vmem:[#allocation4 + $0x198] sm:$0xff] }
 0xc5d   : > { %v9861_v49 = vpack.c.bf16 %v27139_v14, %v9842_v16 }
 0xc5f   : > { %21221 = vmatpush3.bf16.msra.mxu0 %v10158_v9  ;;  %v27177_v9 = vld [vmem:[#allocation4 + $0x2b8] sm:$0xff] }
 0xc60   : > { %21254 = vmatprep.subr.bf16.mxu0 %v10449_v12  ;;  %v10146_v36 = vpack.c.bf16 %v27177_v9, %v10120_v40  ;;  %v11034_v40 = vld [vmem:[#allocation2 + $0x268] sm:$0xff] }
 0xc62   : > { %21191 = vmatmul.mubr.msk.bf16.gmra.mrb[68].mxu0 %vm309_vm0, %v27035_v27  ;;  %v9863_v27 = vpack.c.bf16 %v27147_v31, %v9846_v15  ;;  %v10742_v15 = vld [vmem:[#allocation2 + $0x2b8] sm:$0xff] }
 0xc63   : > { %21194 = vmatprep.mubr.msk.bf16.mxu0 %vm309_vm0, %v27053_v52  ;;  %v10140_v52 = vpack.c.bf16 %v27149_v60, %v27064_v46  ;;  %v27166_v46 = vld [vmem:[#allocation4 + $0x228] sm:$0xff] }
 0xc64   : > { %v10143_v38 = vpack.c.bf16 %v27166_v46, %v27085_v32  ;;  %v10122_v32 = vld [vmem:[#allocation4 + $0x2e0] sm:$0xff] }
 0xc6a   : > { %21195 = vmatmul.mubr.msk.bf16.gmra.mrb[72].mxu0 %vm309_vm0, %v27057_v61  ;;  %v27156_v61 = vld [vmem:[#allocation4 + $0x1c8] sm:$0xff] }
 0xc6b   : > { %21198 = vmatprep.mubr.msk.bf16.mxu0 %vm309_vm0, %v9392_v42  ;;  %v27158_v42 = vld [vmem:[#allocation4 + $0x1f8] sm:$0xff] }
 0xc6c   : > { %v10142_v17 = vpack.c.bf16 %v27158_v42, %v27078_v37  ;;  %v10118_v37 = vld [vmem:[#allocation4 + $0x280] sm:$0xff] }
 0xc72   : > { %21199 = vmatmul.mubr.msk.bf16.gmra.mrb[76].mxu0 %vm309_vm0, %v9393_v19  ;;  %v10141_v19 = vpack.c.bf16 %v27156_v61, %v27076_v29  ;;  %v10144_v29 = vpack.c.bf16 %v27168_v30, %v10116_v62  ;;  %v27252_v62 = vld [vmem:[#allocation4 + $0x558] sm:$0xff] }
 0xc73   : > { %21202 = vmatprep.mubr.msk.bf16.mxu0 %vm309_vm0, %v9856_v18  ;;  %v27183_v18 = vld [vmem:[#allocation4 + $0x2e8] sm:$0xff] }
 0xc74   : > { %v10147_v10 = vpack.c.bf16 %v27183_v18, %v10122_v32  ;;  %v10710_v32 = vld [vmem:[#allocation4 + $0x640] sm:$0xff] }
 0xc7a   : > { %21203 = vmatmul.mubr.msk.bf16.gmra.mrb[80].mxu0 %vm309_vm0, %v9857_v57  ;;  %v10148_v57 = vpack.c.bf16 %v27186_v33, %v26914_v48  ;;  %v27204_v48 = vld [vmem:[#allocation4 + $0x3d8] sm:$0xff] }
 0xc7b   : > { %21206 = vmatprep.mubr.msk.bf16.mxu0 %vm309_vm0, %v9858_v43  ;;  %v27192_v43 = vld [vmem:[#allocation4 + $0x348] sm:$0xff]  ;;  %v10152_v50 = vpack.c.bf16 %v27204_v48, %v26961_v55 }
 0xc7c   : > { %v10149_v53 = vpack.c.bf16 %v27192_v43, %v26911_v13  ;;  %v27212_v13 = vld [vmem:[#allocation4 + $0x408] sm:$0xff] }
 0xc82   : > { %21207 = vmatmul.mubr.msk.bf16.gmra.mrb[84].mxu0 %vm309_vm0, %v9859_v47  ;;  %v10150_v47 = vpack.c.bf16 %v27194_v28, %v26938_v20  ;;  %v27214_v20 = vld [vmem:[#allocation4 + $0x438] sm:$0xff] }
 0xc83   : > { %21210 = vmatprep.mubr.msk.bf16.mxu0 %vm309_vm0, %v9860_v22  ;;  %v27202_v22 = vld [vmem:[#allocation4 + $0x3a8] sm:$0xff] }
 0xc84   : > { %v10151_v16 = vpack.c.bf16 %v27202_v22, %v26933_v45  ;;  %v27222_v45 = vld [vmem:[#allocation4 + $0x468] sm:$0xff] }
 0xc85   : > { %v10155_v55 = vpack.c.bf16 %v27222_v45, %v26980_v56  ;;  %v27234_v56 = vld [vmem:[#allocation4 + $0x498] sm:$0xff] }
 0xc8a   : > { %21211 = vmatmul.mubr.msk.bf16.gmra.mrb[88].mxu0 %vm309_vm0, %v9861_v49  ;;  %v10153_v49 = vpack.c.bf16 %v27212_v13, %v26958_v21  ;;  %v11033_v21 = vld [vmem:[#allocation2 + $0x260] sm:$0xff] }
 0xc8b   : > { %21214 = vmatprep.mubr.msk.bf16.mxu0 %vm309_vm0, %v9862_v51  ;;  %v10154_v51 = vpack.c.bf16 %v27214_v20, %v26983_v54  ;;  %v10440_v54 = vpack.c.bf16 %v27234_v56, %v27005_v25  ;;  %v27250_v25 = vld [vmem:[#allocation4 + $0x528] sm:$0xff] }
 0xc92   : > { %21215 = vmatmul.mubr.msk.bf16.gmra.mrb[92].mxu0 %vm309_vm0, %v9863_v27  ;;  %v27240_v27 = vld [vmem:[#allocation4 + $0x4c8] sm:$0xff] }
 0xc93   : > { %21222 = vmatprep.mubr.msk.bf16.mxu0 %vm309_vm0, %v10140_v52  ;;  %v27242_v52 = vld [vmem:[#allocation4 + $0x4f8] sm:$0xff] }
 0xc9a   : > { %21223 = vmatmul.mubr.msk.bf16.vlgmr.msra.gmra.mrb[64].mxu0 %vm309_vm0, %v10141_v19  ;;  %v10441_v19 = vpack.c.bf16 %v27240_v27, %v27002_v23  ;;  %v10444_v23 = vpack.c.bf16 %v27252_v62, %v27049_v41 }
 0xc9b   : > { %21255 = vmatpush3.bf16.msra.mxu0 %v10449_v12  ;;  %21226 = vmatprep.mubr.msk.bf16.mxu0 %vm309_vm0, %v10142_v17  ;;  %v10145_v12 = vpack.c.bf16 %v27175_v39, %v10118_v37  ;;  %v10442_v17 = vpack.c.bf16 %v27242_v52, %v27027_v59  ;;  %v27260_v59 = vld [vmem:[#allocation4 + $0x588] sm:$0xff] }
 0xc9c   : > { %21256 = vmatprep.subr.bf16.mxu0 %v10450_v44 }
 0xc9f   : > { %21257 = vmatpush3.bf16.msra.mxu0 %v10450_v44  ;;  %v12064_v44 = vld [vmem:[#allocation2 + $0x300] sm:$0xff] }
 0xca0   : > { %21290 = vmatprep.subr.bf16.mxu0 %v10741_v58  ;;  %21434 = vmatprep.subr.bf16.mxu1 %v12064_v44 }
 0xca1   : > { %21435 = vmatpush3.bf16.msra.mxu1 %v12064_v44 }
 0xca2   : > { %21227 = vmatmul.mubr.msk.bf16.gmra.mrb[68].mxu0 %vm309_vm0, %v10143_v38  ;;  %v27262_v38 = vld [vmem:[#allocation4 + $0x5b8] sm:$0xff] }
 0xca3   : > { %21230 = vmatprep.mubr.msk.bf16.mxu0 %vm309_vm0, %v10144_v29  ;;  %v10445_v29 = vpack.c.bf16 %v27260_v59, %v27046_v35  ;;  %v10446_v37 = vpack.c.bf16 %v27262_v38, %v27068_v0  ;;  %v12065_v35 = vld [vmem:[#allocation2 + $0x308] sm:$0xff]  ;;  %v27278_v0 = vld [vmem:[#allocation2 + $0x290] sm:$0xff] }
 0xca4   : > { %21436 = vmatprep.subr.bf16.mxu1 %v12065_v35 }
 0xca5   : > { %21437 = vmatpush3.bf16.msra.mxu1 %v12065_v35  ;;  %v27311_v35 = vld [vmem:[#allocation4 + $0x738] sm:$0xff] }
 0xcaa   : > { %21231 = vmatmul.mubr.msk.bf16.gmra.mrb[72].mxu0 %vm309_vm0, %v10145_v12  ;;  %v27285_v12 = vld [vmem:[#allocation4 + $0x618] sm:$0xff] }
 0xcab   : > { %21234 = vmatprep.mubr.msk.bf16.mxu0 %vm309_vm0, %v10146_v36 }
 0xcb2   : > { %21235 = vmatmul.mubr.msk.bf16.gmra.mrb[76].mxu0 %vm309_vm0, %v10147_v10  ;;  %v27290_v10 = vld [vmem:[#allocation4 + $0x648] sm:$0xff] }
 0xcb3   : > { %21238 = vmatprep.mubr.msk.bf16.mxu0 %vm309_vm0, %v10148_v57 }
 0xcba   : > { %21239 = vmatmul.mubr.msk.bf16.gmra.mrb[80].mxu0 %vm309_vm0, %v10149_v53 }
 0xcbb   : > { %21242 = vmatprep.mubr.msk.bf16.mxu0 %vm309_vm0, %v10150_v47 }
 0xcc2   : > { %21243 = vmatmul.mubr.msk.bf16.gmra.mrb[84].mxu0 %vm309_vm0, %v10151_v16 }
 0xcc3   : > { %21246 = vmatprep.mubr.msk.bf16.mxu0 %vm309_vm0, %v10152_v50 }
 0xcca   : > { %21247 = vmatmul.mubr.msk.bf16.gmra.mrb[88].mxu0 %vm309_vm0, %v10153_v49 }
 0xccb   : > { %21250 = vmatprep.mubr.msk.bf16.mxu0 %vm309_vm0, %v10154_v51 }
 0xcd2   : > { %21251 = vmatmul.mubr.msk.bf16.gmra.mrb[92].mxu0 %vm309_vm0, %v10155_v55 }
 0xcd3   : > { %21258 = vmatprep.mubr.msk.bf16.mxu0 %vm309_vm0, %v10148_v57  ;;  %v10712_v57 = vld [vmem:[#allocation4 + $0x670] sm:$0xff] }
 0xcda   : > { %21259 = vmatmul.mubr.msk.bf16.vlgmr.msra.gmra.mrb[64].mxu0 %vm309_vm0, %v10149_v53  ;;  %v27292_v53 = vld [vmem:[#allocation4 + $0x678] sm:$0xff] }
 0xcdb   : > { %21262 = vmatprep.mubr.msk.bf16.mxu0 %vm309_vm0, %v10150_v47  ;;  %21291 = vmatpush3.bf16.msra.mxu0 %v10741_v58  ;;  %v10443_v58 = vpack.c.bf16 %v27250_v25, %v27024_v34  ;;  %v27270_v34 = vld [vmem:[#allocation4 + $0x5e8] sm:$0xff]  ;;  %v10733_v47 = vpack.c.bf16 %v27290_v10, %v10710_v32 }
 0xcdc   : > { %21292 = vmatprep.subr.bf16.mxu0 %v10742_v15  ;;  %v10447_v41 = vpack.c.bf16 %v27270_v34, %v27066_v63  ;;  %v10708_v63 = vld [vmem:[#allocation4 + $0x610] sm:$0xff] }
 0xcdd   : > { %v10732_v36 = vpack.c.bf16 %v27285_v12, %v10708_v63 }
 0xcdf   : > { %21293 = vmatpush3.bf16.msra.mxu0 %v10742_v15  ;;  %v12017_v15 = vld [vmem:[#allocation4 + $0x330] sm:$0xff] }
 0xce0   : > { %21326 = vmatprep.subr.bf16.mxu0 %v11033_v21 }
 0xce2   : > { %21263 = vmatmul.mubr.msk.bf16.gmra.mrb[68].mxu0 %vm309_vm0, %v10151_v16  ;;  %v10734_v16 = vpack.c.bf16 %v27292_v53, %v10712_v57  ;;  %v10738_v57 = vpack.c.bf16 %v27311_v35, %v27141_v24 }
 0xce3   : > { %21266 = vmatprep.mubr.msk.bf16.mxu0 %vm309_vm0, %v10152_v50  ;;  %v10714_v50 = vld [vmem:[#allocation4 + $0x6a0] sm:$0xff] }
 0xcea   : > { %21267 = vmatmul.mubr.msk.bf16.gmra.mrb[72].mxu0 %vm309_vm0, %v10153_v49  ;;  %v27297_v49 = vld [vmem:[#allocation4 + $0x6a8] sm:$0xff] }
 0xceb   : > { %21270 = vmatprep.mubr.msk.bf16.mxu0 %vm309_vm0, %v10154_v51  ;;  %v12015_v51 = vld [vmem:[#allocation4 + $0x300] sm:$0xff] }
 0xcf2   : > { %21271 = vmatmul.mubr.msk.bf16.gmra.mrb[76].mxu0 %vm309_vm0, %v10155_v55  ;;  %v12016_v55 = vld [vmem:[#allocation4 + $0x308] sm:$0xff] }
 0xcf3   : > { %21274 = vmatprep.mubr.msk.bf16.mxu0 %vm309_vm0, %v10440_v54 }
 0xcfa   : > { %21275 = vmatmul.mubr.msk.bf16.gmra.mrb[80].mxu0 %vm309_vm0, %v10441_v19 }
 0xcfb   : > { %21278 = vmatprep.mubr.msk.bf16.mxu0 %vm309_vm0, %v10442_v17 }
 0xd02   : > { %21279 = vmatmul.mubr.msk.bf16.gmra.mrb[84].mxu0 %vm309_vm0, %v10443_v58 }
 0xd03   : > { %21282 = vmatprep.mubr.msk.bf16.mxu0 %vm309_vm0, %v10444_v23 }
 0xd0a   : > { %21283 = vmatmul.mubr.msk.bf16.gmra.mrb[88].mxu0 %vm309_vm0, %v10445_v29 }
 0xd0b   : > { %21286 = vmatprep.mubr.msk.bf16.mxu0 %vm309_vm0, %v10446_v37 }
 0xd12   : > { %21287 = vmatmul.mubr.msk.bf16.gmra.mrb[92].mxu0 %vm309_vm0, %v10447_v41 }
 0xd13   : > { %21294 = vmatprep.mubr.msk.bf16.mxu0 %vm309_vm0, %v10440_v54  ;;  %v12047_v54 = vpack.c.bf16 %v12016_v55, %v12015_v51  ;;  %v12025_v51 = vld [vmem:[#allocation4 + $0x3f0] sm:$0xff]  ;;  %v10985_v55 = vld [vmem:[#allocation4 + $0x1a0] sm:$0xff] }
 0xd14   : > { %v11016_v24 = vpack.c.bf16 %v10985_v55, %v27149_v60  ;;  %v12014_v55 = vld [vmem:[#allocation2 + $0x2d8] sm:$0xff] }
 0xd15   : > { %21438 = vmatprep.mubr.msk.bf16.mxu1 %vm309_vm0, %v12047_v54  ;;  %v12026_v54 = vld [vmem:[#allocation4 + $0x3f8] sm:$0xff] }
 0xd1a   : > { %21295 = vmatmul.mubr.msk.bf16.vlgmr.msra.gmra.mrb[64].mxu0 %vm309_vm0, %v10441_v19  ;;  %v12018_v19 = vld [vmem:[#allocation4 + $0x338] sm:$0xff] }
 0xd1b   : > { %21298 = vmatprep.mubr.msk.bf16.mxu0 %vm309_vm0, %v10442_v17  ;;  %21327 = vmatpush3.bf16.msra.mxu0 %v11033_v21  ;;  %v27300_v21 = vld [vmem:[#allocation4 + $0x6d8] sm:$0xff]  ;;  %v12013_v17 = vld [vmem:[#allocation2 + $0x2d0] sm:$0xff]  ;;  %v12048_v44 = vpack.c.bf16 %v12018_v19, %v12017_v15 }
 0xd1c   : > { %21328 = vmatprep.subr.bf16.mxu0 %v11034_v40  ;;  %21470 = vmatprep.subr.bf16.mxu1 %v12013_v17 }
 0xd1d   : > { %21439 = vmatmul.mubr.msk.bf16.vlgmr.msra.gmra.mrb[96].mxu1 %vm309_vm0, %v12048_v44  ;;  %v12027_v44 = vld [vmem:[#allocation4 + $0x420] sm:$0xff] }
 0xd1e   : > { %21471 = vmatpush3.bf16.msra.mxu1 %v12013_v17  ;;  %v10987_v17 = vld [vmem:[#allocation4 + $0x1d0] sm:$0xff] }
 0xd1f   : > { %21329 = vmatpush3.bf16.msra.mxu0 %v11034_v40  ;;  %v12021_v40 = vld [vmem:[#allocation4 + $0x390] sm:$0xff]  ;;  %21472 = vmatprep.subr.bf16.mxu1 %v12014_v55 }
 0xd20   : > { %21362 = vmatprep.subr.bf16.mxu0 %v27278_v0 }
 0xd22   : > { %21299 = vmatmul.mubr.msk.bf16.gmra.mrb[68].mxu0 %vm309_vm0, %v10443_v58  ;;  %v10735_v58 = vpack.c.bf16 %v27297_v49, %v10714_v50  ;;  %v12024_v50 = vld [vmem:[#allocation4 + $0x3c8] sm:$0xff]  ;;  %21473 = vmatpush3.bf16.msra.mxu1 %v12014_v55 }
 0xd23   : > { %21302 = vmatprep.mubr.msk.bf16.mxu0 %vm309_vm0, %v10444_v23  ;;  %v10736_v23 = vpack.c.bf16 %v27300_v21, %v27133_v26 }
 0xd2a   : > { %21303 = vmatmul.mubr.msk.bf16.gmra.mrb[72].mxu0 %vm309_vm0, %v10445_v29  ;;  %v27308_v29 = vld [vmem:[#allocation4 + $0x708] sm:$0xff] }
 0xd2b   : > { %21306 = vmatprep.mubr.msk.bf16.mxu0 %vm309_vm0, %v10446_v37  ;;  %v12019_v37 = vld [vmem:[#allocation4 + $0x360] sm:$0xff]  ;;  %v10737_v26 = vpack.c.bf16 %v27308_v29, %v27139_v14  ;;  %v12052_v14 = vpack.c.bf16 %v12026_v54, %v12025_v51  ;;  %v12034_v51 = vld [vmem:[#allocation4 + $0x4b8] sm:$0xff] }
 0xd32   : > { %21307 = vmatmul.mubr.msk.bf16.gmra.mrb[76].mxu0 %vm309_vm0, %v10447_v41  ;;  %v12020_v41 = vld [vmem:[#allocation4 + $0x368] sm:$0xff] }
 0xd33   : > { %21310 = vmatprep.mubr.msk.bf16.mxu0 %vm309_vm0, %v10732_v36  ;;  %v12049_v63 = vpack.c.bf16 %v12020_v41, %v12019_v37  ;;  %v12022_v36 = vld [vmem:[#allocation4 + $0x398] sm:$0xff]  ;;  %v10989_v37 = vld [vmem:[#allocation4 + $0x200] sm:$0xff] }
 0xd34   : > { %v12050_v32 = vpack.c.bf16 %v12022_v36, %v12021_v40  ;;  %v12030_v40 = vld [vmem:[#allocation4 + $0x458] sm:$0xff]  ;;  %v11018_v60 = vpack.c.bf16 %v10989_v37, %v27158_v42  ;;  %v11326_v36 = vld [vmem:[#allocation2 + $0x298] sm:$0xff] }
 0xd35   : > { %21442 = vmatprep.mubr.msk.bf16.mxu1 %vm309_vm0, %v12049_v63 }
 0xd36   : > { %21443 = vmatmul.mubr.msk.bf16.gmra.mrb[100].mxu1 %vm309_vm0, %v12050_v32  ;;  %v10991_v32 = vld [vmem:[#allocation4 + $0x230] sm:$0xff] }
 0xd37   : > { %v11019_v54 = vpack.c.bf16 %v10991_v32, %v27166_v46 }
 0xd3a   : > { %21311 = vmatmul.mubr.msk.bf16.gmra.mrb[80].mxu0 %vm309_vm0, %v10733_v47  ;;  %v27320_v47 = vld [vmem:[#allocation4 + $0x768] sm:$0xff] }
 0xd3b   : > { %21314 = vmatprep.mubr.msk.bf16.mxu0 %vm309_vm0, %v10734_v16  ;;  %v12023_v16 = vld [vmem:[#allocation4 + $0x3c0] sm:$0xff]  ;;  %v10739_v19 = vpack.c.bf16 %v27320_v47, %v27147_v31  ;;  %v11017_v31 = vpack.c.bf16 %v10987_v17, %v27156_v61  ;;  %v12037_v17 = vld [vmem:[#allocation4 + $0x510] sm:$0xff] }
 0xd3c   : > { %v12051_v15 = vpack.c.bf16 %v12024_v50, %v12023_v16  ;;  %v12033_v16 = vld [vmem:[#allocation4 + $0x4b0] sm:$0xff]  ;;  %v10993_v50 = vld [vmem:[#allocation4 + $0x260] sm:$0xff] }
 0xd3d   : > { %v12056_v42 = vpack.c.bf16 %v12034_v51, %v12033_v16  ;;  %v12044_v16 = vld [vmem:[#allocation4 + $0x5a8] sm:$0xff]  ;;  %v12046_v51 = vld [vmem:[#allocation4 + $0x5d8] sm:$0xff] }
 0xd3e   : > { %21446 = vmatprep.mubr.msk.bf16.mxu1 %vm309_vm0, %v12051_v15  ;;  %v27337_v15 = vld [vmem:[#allocation2 + $0x2c0] sm:$0xff] }
 0xd3f   : > { %21447 = vmatmul.mubr.msk.bf16.gmra.mrb[104].mxu1 %vm309_vm0, %v12052_v14  ;;  %v10995_v14 = vld [vmem:[#allocation4 + $0x290] sm:$0xff] }
 0xd40   : > { %v11021_v37 = vpack.c.bf16 %v10995_v14, %v27175_v39  ;;  %v11001_v39 = vld [vmem:[#allocation4 + $0x320] sm:$0xff]  ;;  %v11965_v14 = vld [vmem:[#allocation4 + $0x8] sm:$0xff] }
 0xd42   : > { %21315 = vmatmul.mubr.msk.bf16.gmra.mrb[84].mxu0 %vm309_vm0, %v10735_v58  ;;  %v12028_v58 = vld [vmem:[#allocation4 + $0x428] sm:$0xff] }
 0xd43   : > { %21318 = vmatprep.mubr.msk.bf16.mxu0 %vm309_vm0, %v10736_v23  ;;  %v12029_v23 = vld [vmem:[#allocation4 + $0x450] sm:$0xff]  ;;  %v12053_v41 = vpack.c.bf16 %v12028_v58, %v12027_v44  ;;  %v10997_v44 = vld [vmem:[#allocation4 + $0x2c0] sm:$0xff]  ;;  %v12038_v58 = vld [vmem:[#allocation4 + $0x518] sm:$0xff] }
 0xd44   : > { %v12054_v63 = vpack.c.bf16 %v12030_v40, %v12029_v23  ;;  %v12058_v23 = vpack.c.bf16 %v12038_v58, %v12037_v17  ;;  %v12039_v40 = vld [vmem:[#allocation4 + $0x540] sm:$0xff]  ;;  %v11967_v17 = vld [vmem:[#allocation4 + $0x38] sm:$0xff]  ;;  %v11007_v58 = vld [vmem:[#allocation4 + $0x3b0] sm:$0xff] }
 0xd45   : > { %21450 = vmatprep.mubr.msk.bf16.mxu1 %vm309_vm0, %v12053_v41  ;;  %v10999_v41 = vld [vmem:[#allocation4 + $0x2f0] sm:$0xff] }
 0xd47   : > { %21451 = vmatmul.mubr.msk.bf16.gmra.mrb[108].mxu1 %vm309_vm0, %v12054_v63  ;;  %v12040_v63 = vld [vmem:[#allocation4 + $0x548] sm:$0xff] }
 0xd4a   : > { %21319 = vmatmul.mubr.msk.bf16.gmra.mrb[88].mxu0 %vm309_vm0, %v10737_v26  ;;  %v12031_v26 = vld [vmem:[#allocation4 + $0x480] sm:$0xff] }
 0xd4b   : > { %21322 = vmatprep.mubr.msk.bf16.mxu0 %vm309_vm0, %v10738_v57  ;;  %v12032_v57 = vld [vmem:[#allocation4 + $0x488] sm:$0xff] }
 0xd4c   : > { %v12055_v61 = vpack.c.bf16 %v12032_v57, %v12031_v26  ;;  %v11023_v26 = vpack.c.bf16 %v10999_v41, %v27183_v18  ;;  %v12043_v57 = vld [vmem:[#allocation4 + $0x5a0] sm:$0xff]  ;;  %v11970_v41 = vld [vmem:[#allocation4 + $0x90] sm:$0xff] }
 0xd4d   : > { %v11005_v18 = vld [vmem:[#allocation4 + $0x380] sm:$0xff] }
 0xd4e   : > { %21454 = vmatprep.mubr.msk.bf16.mxu1 %vm309_vm0, %v12055_v61  ;;  %v12061_v61 = vpack.c.bf16 %v12044_v16, %v12043_v57  ;;  %v11975_v16 = vld [vmem:[#allocation4 + $0xf8] sm:$0xff] }
 0xd4f   : > { %21455 = vmatmul.mubr.msk.bf16.gmra.mrb[112].mxu1 %vm309_vm0, %v12056_v42  ;;  %v11003_v42 = vld [vmem:[#allocation4 + $0x350] sm:$0xff] }
 0xd52   : > { %21323 = vmatmul.mubr.msk.bf16.gmra.mrb[92].mxu0 %vm309_vm0, %v10739_v19  ;;  %v12035_v19 = vld [vmem:[#allocation4 + $0x4e0] sm:$0xff] }
 0xd53   : > { %21330 = vmatprep.mubr.msk.bf16.mxu0 %vm309_vm0, %v11016_v24  ;;  %v12036_v24 = vld [vmem:[#allocation4 + $0x4e8] sm:$0xff] }
 0xd54   : > { %v12057_v46 = vpack.c.bf16 %v12036_v24, %v12035_v19  ;;  %v11966_v19 = vld [vmem:[#allocation4 + $0x30] sm:$0xff] }
 0xd56   : > { %21458 = vmatprep.mubr.msk.bf16.mxu1 %vm309_vm0, %v12057_v46  ;;  %v11997_v46 = vpack.c.bf16 %v11967_v17, %v11966_v19  ;;  %v12534_v17 = vld [vmem:[#allocation2 + $0x338] sm:$0xff] }
 0xd57   : > { %21459 = vmatmul.mubr.msk.bf16.gmra.mrb[116].mxu1 %vm309_vm0, %v12058_v23 }
 0xd5a   : > { %21331 = vmatmul.mubr.msk.bf16.vlgmr.msra.gmra.mrb[64].mxu0 %vm309_vm0, %v11017_v31  ;;  %v12041_v31 = vld [vmem:[#allocation4 + $0x570] sm:$0xff] }
 0xd5b   : > { %21363 = vmatpush3.bf16.msra.mxu0 %v27278_v0  ;;  %21334 = vmatprep.mubr.msk.bf16.mxu0 %vm309_vm0, %v11018_v60  ;;  %v11020_v0 = vpack.c.bf16 %v10993_v50, %v27168_v30  ;;  %v11022_v30 = vpack.c.bf16 %v10997_v44, %v27177_v9  ;;  %v12059_v60 = vpack.c.bf16 %v12040_v63, %v12039_v40  ;;  %v12045_v50 = vld [vmem:[#allocation4 + $0x5d0] sm:$0xff]  ;;  %v12533_v44 = vld [vmem:[#allocation2 + $0x330] sm:$0xff]  ;;  %v11971_v63 = vld [vmem:[#allocation4 + $0x98] sm:$0xff] }
 0xd5c   : > { %21364 = vmatprep.subr.bf16.mxu0 %v11326_v36  ;;  %v11024_v9 = vpack.c.bf16 %v11001_v39, %v27186_v33  ;;  %v12062_v55 = vpack.c.bf16 %v12046_v51, %v12045_v50  ;;  %v27364_v33 = vpack.c.bf16 %v11005_v18, %v27194_v28  ;;  %21506 = vmatprep.subr.bf16.mxu1 %v12533_v44  ;;  %v11974_v39 = vld [vmem:[#allocation4 + $0xf0] sm:$0xff]  ;;  %v11979_v18 = vld [vmem:[#allocation4 + $0x158] sm:$0xff] }
 0xd5d   : > { %21462 = vmatprep.mubr.msk.bf16.mxu1 %vm309_vm0, %v12059_v60  ;;  %v27373_v28 = vpack.c.bf16 %v11007_v58, %v27202_v22  ;;  %v11011_v60 = vld [vmem:[#allocation4 + $0x410] sm:$0xff]  ;;  %v11013_v22 = vld [vmem:[#allocation4 + $0x440] sm:$0xff]  ;;  %v12001_v50 = vpack.c.bf16 %v11975_v16, %v11974_v39 }
 0xd5e   : > { %v11984_v58 = vld [vmem:[#allocation4 + $0x1e0] sm:$0xff] }
 0xd5f   : > { %21365 = vmatpush3.bf16.msra.mxu0 %v11326_v36  ;;  %v12042_v36 = vld [vmem:[#allocation4 + $0x578] sm:$0xff] }
 0xd60   : > { %21398 = vmatprep.subr.bf16.mxu0 %v27337_v15  ;;  %v12060_v32 = vpack.c.bf16 %v12042_v36, %v12041_v31  ;;  %v11999_v31 = vpack.c.bf16 %v11971_v63, %v11970_v41  ;;  %v11030_v36 = vpack.c.bf16 %v11013_v22, %v27214_v20  ;;  %v11977_v20 = vld [vmem:[#allocation4 + $0x128] sm:$0xff]  ;;  %v11986_v41 = vld [vmem:[#allocation4 + $0x210] sm:$0xff]  ;;  %v11988_v63 = vld [vmem:[#allocation4 + $0x240] sm:$0xff] }
 0xd61   : > { %v11992_v22 = vld [vmem:[#allocation4 + $0x2a0] sm:$0xff] }
 0xd62   : > { %21335 = vmatmul.mubr.msk.bf16.gmra.mrb[68].mxu0 %vm309_vm0, %v11019_v54  ;;  %21463 = vmatmul.mubr.msk.bf16.gmra.mrb[120].mxu1 %vm309_vm0, %v12060_v32  ;;  %v27361_v54 = vpack.c.bf16 %v11003_v42, %v27192_v43  ;;  %v11009_v43 = vld [vmem:[#allocation4 + $0x3e0] sm:$0xff] }
 0xd63   : > { %21338 = vmatprep.mubr.msk.bf16.mxu0 %vm309_vm0, %v11020_v0  ;;  %21466 = vmatprep.mubr.msk.bf16.mxu1 %vm309_vm0, %v12061_v61  ;;  %v11964_v0 = vld [vmem:[#allocation4] sm:$0xff]  ;;  %v27376_v23 = vpack.c.bf16 %v11009_v43, %v27204_v48  ;;  %v11029_v48 = vpack.c.bf16 %v11011_v60, %v27212_v13  ;;  %v11015_v61 = vld [vmem:[#allocation4 + $0x470] sm:$0xff]  ;;  %v11991_v60 = vld [vmem:[#allocation4 + $0x278] sm:$0xff] }
 0xd64   : > { %v11996_v24 = vpack.c.bf16 %v11965_v14, %v11964_v0  ;;  %v11972_v32 = vld [vmem:[#allocation4 + $0xc0] sm:$0xff]  ;;  %v11031_v51 = vpack.c.bf16 %v11015_v61, %v27222_v45  ;;  %v11981_v14 = vld [vmem:[#allocation4 + $0x188] sm:$0xff]  ;;  %v11982_v45 = vld [vmem:[#allocation4 + $0x1b0] sm:$0xff] }
 0xd65   : > { %v11976_v13 = vld [vmem:[#allocation4 + $0x120] sm:$0xff]  ;;  %v12825_v43 = vld [vmem:[#allocation2 + $0x2e0] sm:$0xff]  ;;  %v12485_v61 = vld [vmem:[#allocation4 + $0x608] sm:$0xff] }
 0xd66   : > { %v12002_v42 = vpack.c.bf16 %v11977_v20, %v11976_v13  ;;  %v11980_v0 = vld [vmem:[#allocation4 + $0x180] sm:$0xff]  ;;  %v11295_v13 = vld [vmem:[#allocation4 + $0x4d0] sm:$0xff] }
 0xd67   : > { %v11297_v20 = vld [vmem:[#allocation4 + $0x500] sm:$0xff] }
 0xd6a   : > { %21339 = vmatmul.mubr.msk.bf16.gmra.mrb[72].mxu0 %vm309_vm0, %v11021_v37  ;;  %21467 = vmatmul.mubr.msk.bf16.gmra.mrb[124].mxu1 %vm309_vm0, %v12062_v55  ;;  %v11968_v37 = vld [vmem:[#allocation4 + $0x60] sm:$0xff]  ;;  %v11978_v55 = vld [vmem:[#allocation4 + $0x150] sm:$0xff] }
 0xd6b   : > { %21342 = vmatprep.mubr.msk.bf16.mxu0 %vm309_vm0, %v11022_v30  ;;  %21474 = vmatprep.mubr.msk.bf16.mxu1 %vm309_vm0, %v11996_v24  ;;  %v11969_v30 = vld [vmem:[#allocation4 + $0x68] sm:$0xff]  ;;  %v12003_v19 = vpack.c.bf16 %v11979_v18, %v11978_v55  ;;  %v12004_v24 = vpack.c.bf16 %v11981_v14, %v11980_v0  ;;  %v27421_v55 = vpack.c.bf16 %v11295_v13, %v27240_v27  ;;  %v12488_v0 = vld [vmem:[#allocation4 + $0x660] sm:$0xff]  ;;  %v12507_v13 = vld [vmem:[#allocation4 + $0x818] sm:$0xff] }
 0xd6c   : > { %v11998_v40 = vpack.c.bf16 %v11969_v30, %v11968_v37  ;;  %v11318_v18 = vpack.c.bf16 %v11297_v20, %v27242_v52  ;;  %v12490_v52 = vld [vmem:[#allocation4 + $0x690] sm:$0xff]  ;;  %v12508_v20 = vld [vmem:[#allocation4 + $0x840] sm:$0xff] }
 0xd72   : > { %21343 = vmatmul.mubr.msk.bf16.gmra.mrb[76].mxu0 %vm309_vm0, %v11023_v26  ;;  %21475 = vmatmul.mubr.msk.bf16.vlgmr.msra.gmra.mrb[96].mxu1 %vm309_vm0, %v11997_v46  ;;  %v11973_v26 = vld [vmem:[#allocation4 + $0xc8] sm:$0xff]  ;;  %v11618_v46 = vld [vmem:[#allocation2 + $0x2c8] sm:$0xff] }
 0xd73   : > { %21346 = vmatprep.mubr.msk.bf16.mxu0 %vm309_vm0, %v11024_v9  ;;  %21507 = vmatpush3.bf16.msra.mxu1 %v12533_v44  ;;  %v12000_v57 = vpack.c.bf16 %v11973_v26, %v11972_v32  ;;  %v11983_v44 = vld [vmem:[#allocation4 + $0x1b8] sm:$0xff]  ;;  %v11993_v32 = vld [vmem:[#allocation4 + $0x2a8] sm:$0xff] }
 0xd74   : > { %21478 = vmatprep.mubr.msk.bf16.mxu1 %vm309_vm0, %v11998_v40  ;;  %21508 = vmatprep.subr.bf16.mxu1 %v12534_v17  ;;  %v12005_v37 = vpack.c.bf16 %v11983_v44, %v11982_v45  ;;  %v11987_v40 = vld [vmem:[#allocation4 + $0x218] sm:$0xff]  ;;  %v12010_v39 = vpack.c.bf16 %v11993_v32, %v11992_v22  ;;  %v11307_v22 = vld [vmem:[#allocation4 + $0x5f0] sm:$0xff] }
 0xd75   : > { %v12826_v45 = vld [vmem:[#allocation2 + $0x2e8] sm:$0xff]  ;;  %v11323_v32 = vpack.c.bf16 %v11307_v22, %v27270_v34  ;;  %v12504_v34 = vld [vmem:[#allocation4 + $0x7e0] sm:$0xff] }
 0xd76   : > { %v12491_v44 = vld [vmem:[#allocation4 + $0x698] sm:$0xff]  ;;  %v12782_v22 = vld [vmem:[#allocation4 + $0xa0] sm:$0xff] }
 0xd77   : > { %21509 = vmatpush3.bf16.msra.mxu1 %v12534_v17  ;;  %v11301_v17 = vld [vmem:[#allocation4 + $0x560] sm:$0xff] }
 0xd78   : > { %21542 = vmatprep.subr.bf16.mxu1 %v12825_v43 }
 0xd7a   : > { %21347 = vmatmul.mubr.msk.bf16.gmra.mrb[80].mxu0 %vm309_vm0, %v27361_v54  ;;  %21479 = vmatmul.mubr.msk.bf16.gmra.mrb[100].mxu1 %vm309_vm0, %v11999_v31  ;;  %v11989_v31 = vld [vmem:[#allocation4 + $0x248] sm:$0xff] }
 0xd7b   : > { %21350 = vmatprep.mubr.msk.bf16.mxu0 %vm309_vm0, %v27364_v33  ;;  %21482 = vmatprep.mubr.msk.bf16.mxu1 %vm309_vm0, %v12000_v57  ;;  %v11995_v57 = vld [vmem:[#allocation4 + $0x2d8] sm:$0xff] }
 0xd82   : > { %21351 = vmatmul.mubr.msk.bf16.gmra.mrb[84].mxu0 %vm309_vm0, %v27373_v28  ;;  %21483 = vmatmul.mubr.msk.bf16.gmra.mrb[104].mxu1 %vm309_vm0, %v12001_v50  ;;  %v12484_v50 = vld [vmem:[#allocation4 + $0x600] sm:$0xff] }
 0xd83   : > { %21354 = vmatprep.mubr.msk.bf16.mxu0 %vm309_vm0, %v27376_v23  ;;  %21486 = vmatprep.mubr.msk.bf16.mxu1 %vm309_vm0, %v12002_v42  ;;  %v12487_v42 = vld [vmem:[#allocation4 + $0x638] sm:$0xff] }
 0xd8a   : > { %21355 = vmatmul.mubr.msk.bf16.gmra.mrb[88].mxu0 %vm309_vm0, %v11029_v48  ;;  %21487 = vmatmul.mubr.msk.bf16.gmra.mrb[108].mxu1 %vm309_vm0, %v12003_v19 }
 0xd8b   : > { %21358 = vmatprep.mubr.msk.bf16.mxu0 %vm309_vm0, %v11030_v36  ;;  %21490 = vmatprep.mubr.msk.bf16.mxu1 %vm309_vm0, %v12004_v24  ;;  %v11299_v24 = vld [vmem:[#allocation4 + $0x530] sm:$0xff] }
 0xd8c   : > { %v11319_v27 = vpack.c.bf16 %v11299_v24, %v27250_v25  ;;  %v11303_v25 = vld [vmem:[#allocation4 + $0x590] sm:$0xff]  ;;  %v11585_v24 = vld [vmem:[#allocation4 + $0x620] sm:$0xff] }
 0xd92   : > { %21359 = vmatmul.mubr.msk.bf16.gmra.mrb[92].mxu0 %vm309_vm0, %v11031_v51  ;;  %21491 = vmatmul.mubr.msk.bf16.gmra.mrb[112].mxu1 %vm309_vm0, %v12005_v37  ;;  %v27433_v37 = vld [vmem:[#allocation2 + $0x310] sm:$0xff] }
 0xd93   : > { %21366 = vmatprep.mubr.msk.bf16.mxu0 %vm309_vm0, %v11024_v9  ;;  %v11985_v9 = vld [vmem:[#allocation4 + $0x1e8] sm:$0xff] }
 0xd94   : > { %v12006_v30 = vpack.c.bf16 %v11985_v9, %v11984_v58  ;;  %v12492_v58 = vld [vmem:[#allocation4 + $0x6c0] sm:$0xff]  ;;  %v12493_v9 = vld [vmem:[#allocation4 + $0x6c8] sm:$0xff] }
 0xd96   : > { %21494 = vmatprep.mubr.msk.bf16.mxu1 %vm309_vm0, %v12006_v30  ;;  %v12519_v30 = vpack.c.bf16 %v12491_v44, %v12490_v52  ;;  %v12515_v52 = vld [vmem:[#allocation4 + $0x8d8] sm:$0xff]  ;;  %v12776_v44 = vld [vmem:[#allocation4 + $0x10] sm:$0xff] }
 0xd9a   : > { %21367 = vmatmul.mubr.msk.bf16.vlgmr.msra.gmra.mrb[64].mxu0 %vm309_vm0, %v27361_v54  ;;  %v12008_v54 = vpack.c.bf16 %v11989_v31, %v11988_v63  ;;  %v12495_v63 = vld [vmem:[#allocation4 + $0x6f8] sm:$0xff] }
 0xd9b   : > { %21370 = vmatprep.mubr.msk.bf16.mxu0 %vm309_vm0, %v27364_v33  ;;  %21399 = vmatpush3.bf16.msra.mxu0 %v27337_v15  ;;  %v12007_v15 = vpack.c.bf16 %v11987_v40, %v11986_v41  ;;  %v11990_v33 = vld [vmem:[#allocation4 + $0x270] sm:$0xff]  ;;  %v12520_v41 = vpack.c.bf16 %v12493_v9, %v12492_v58 }
 0xd9c   : > { %21400 = vmatprep.subr.bf16.mxu0 %v11618_v46  ;;  %v12009_v26 = vpack.c.bf16 %v11991_v60, %v11990_v33  ;;  %v12494_v40 = vld [vmem:[#allocation4 + $0x6f0] sm:$0xff] }
 0xd9d   : > { %21495 = vmatmul.mubr.msk.bf16.gmra.mrb[116].mxu1 %vm309_vm0, %v12007_v15  ;;  %v12496_v15 = vld [vmem:[#allocation4 + $0x720] sm:$0xff]  ;;  %v12521_v33 = vpack.c.bf16 %v12495_v63, %v12494_v40  ;;  %v11587_v58 = vld [vmem:[#allocation4 + $0x650] sm:$0xff]  ;;  %v12781_v63 = vld [vmem:[#allocation4 + $0x78] sm:$0xff] }
 0xd9e   : > { %21498 = vmatprep.mubr.msk.bf16.mxu1 %vm309_vm0, %v12008_v54  ;;  %v12497_v54 = vld [vmem:[#allocation4 + $0x728] sm:$0xff]  ;;  %v12780_v40 = vld [vmem:[#allocation4 + $0x70] sm:$0xff] }
 0xd9f   : > { %21401 = vmatpush3.bf16.msra.mxu0 %v11618_v46  ;;  %v11320_v46 = vpack.c.bf16 %v11301_v17, %v27252_v62  ;;  %v11321_v62 = vpack.c.bf16 %v11303_v25, %v27260_v59  ;;  %v12522_v60 = vpack.c.bf16 %v12497_v54, %v12496_v15  ;;  %v12498_v59 = vld [vmem:[#allocation4 + $0x750] sm:$0xff]  ;;  %v11609_v25 = vpack.c.bf16 %v11587_v58, %v27290_v10  ;;  %v11593_v54 = vld [vmem:[#allocation4 + $0x6e0] sm:$0xff] }
 0xda2   : > { %21371 = vmatmul.mubr.msk.bf16.gmra.mrb[68].mxu0 %vm309_vm0, %v27373_v28  ;;  %v11293_v28 = vld [vmem:[#allocation4 + $0x4a0] sm:$0xff] }
 0xda3   : > { %21374 = vmatprep.mubr.msk.bf16.mxu0 %vm309_vm0, %v27376_v23  ;;  %v11994_v23 = vld [vmem:[#allocation4 + $0x2d0] sm:$0xff]  ;;  %v27414_v16 = vpack.c.bf16 %v11293_v28, %v27234_v56  ;;  %v12501_v28 = vld [vmem:[#allocation4 + $0x788] sm:$0xff] }
 0xda4   : > { %v12486_v56 = vld [vmem:[#allocation4 + $0x630] sm:$0xff] }
 0xda5   : > { %21499 = vmatmul.mubr.msk.bf16.gmra.mrb[120].mxu1 %vm309_vm0, %v12009_v26  ;;  %v12517_v14 = vpack.c.bf16 %v12487_v42, %v12486_v56  ;;  %v12499_v26 = vld [vmem:[#allocation4 + $0x758] sm:$0xff]  ;;  %v12509_v56 = vld [vmem:[#allocation4 + $0x848] sm:$0xff] }
 0xda6   : > { %21502 = vmatprep.mubr.msk.bf16.mxu1 %vm309_vm0, %v12010_v39  ;;  %v12500_v39 = vld [vmem:[#allocation4 + $0x780] sm:$0xff] }
 0xdaa   : > { %21375 = vmatmul.mubr.msk.bf16.gmra.mrb[72].mxu0 %vm309_vm0, %v11029_v48  ;;  %v12011_v48 = vpack.c.bf16 %v11995_v57, %v11994_v23  ;;  %v12524_v23 = vpack.c.bf16 %v12501_v28, %v12500_v39  ;;  %v12502_v57 = vld [vmem:[#allocation4 + $0x7b0] sm:$0xff]  ;;  %v11597_v28 = vld [vmem:[#allocation4 + $0x740] sm:$0xff] }
 0xdab   : > { %21378 = vmatprep.mubr.msk.bf16.mxu0 %vm309_vm0, %v11030_v36  ;;  %v12516_v36 = vpack.c.bf16 %v12485_v61, %v12484_v50  ;;  %v12503_v50 = vld [vmem:[#allocation4 + $0x7b8] sm:$0xff]  ;;  %v12505_v61 = vld [vmem:[#allocation4 + $0x7e8] sm:$0xff]  ;;  %v11595_v39 = vld [vmem:[#allocation4 + $0x710] sm:$0xff] }
 0xdad   : > { %21503 = vmatmul.mubr.msk.bf16.gmra.mrb[124].mxu1 %vm309_vm0, %v12011_v48  ;;  %v12525_v48 = vpack.c.bf16 %v12503_v50, %v12502_v57  ;;  %v12787_v57 = vld [vmem:[#allocation4 + $0x108] sm:$0xff]  ;;  %v12788_v50 = vld [vmem:[#allocation4 + $0x130] sm:$0xff] }
 0xdae   : > { %21510 = vmatprep.mubr.msk.bf16.mxu1 %vm309_vm0, %v12516_v36  ;;  %v12526_v36 = vpack.c.bf16 %v12505_v61, %v12504_v34  ;;  %v12789_v34 = vld [vmem:[#allocation4 + $0x138] sm:$0xff]  ;;  %v11599_v61 = vld [vmem:[#allocation4 + $0x770] sm:$0xff] }
 0xdb2   : > { %21379 = vmatmul.mubr.msk.bf16.gmra.mrb[76].mxu0 %vm309_vm0, %v11031_v51  ;;  %v12489_v51 = vld [vmem:[#allocation4 + $0x668] sm:$0xff] }
 0xdb3   : > { %21382 = vmatprep.mubr.msk.bf16.mxu0 %vm309_vm0, %v27414_v16  ;;  %v12518_v19 = vpack.c.bf16 %v12489_v51, %v12488_v0  ;;  %v12528_v0 = vpack.c.bf16 %v12509_v56, %v12508_v20  ;;  %v12512_v51 = vld [vmem:[#allocation4 + $0x8a0] sm:$0xff]  ;;  %v12793_v20 = vld [vmem:[#allocation4 + $0x198] sm:$0xff] }
 0xdb5   : > { %21511 = vmatmul.mubr.msk.bf16.vlgmr.msra.gmra.mrb[96].mxu1 %vm309_vm0, %v12517_v14  ;;  %v12513_v14 = vld [vmem:[#allocation4 + $0x8a8] sm:$0xff] }
 0xdb6   : > { %21543 = vmatpush3.bf16.msra.mxu1 %v12825_v43  ;;  %21514 = vmatprep.mubr.msk.bf16.mxu1 %vm309_vm0, %v12518_v19  ;;  %v11305_v43 = vld [vmem:[#allocation4 + $0x5c0] sm:$0xff]  ;;  %v12530_v17 = vpack.c.bf16 %v12513_v14, %v12512_v51 }
 0xdb7   : > { %21544 = vmatprep.subr.bf16.mxu1 %v12826_v45  ;;  %v11322_v31 = vpack.c.bf16 %v11305_v43, %v27262_v38  ;;  %v12523_v38 = vpack.c.bf16 %v12499_v26, %v12498_v59  ;;  %v12778_v43 = vld [vmem:[#allocation4 + $0x40] sm:$0xff]  ;;  %v12784_v59 = vld [vmem:[#allocation4 + $0xd0] sm:$0xff]  ;;  %v12785_v26 = vld [vmem:[#allocation4 + $0xd8] sm:$0xff] }
 0xdba   : > { %21383 = vmatmul.mubr.msk.bf16.gmra.mrb[80].mxu0 %vm309_vm0, %v27421_v55  ;;  %21545 = vmatpush3.bf16.msra.mxu1 %v12826_v45  ;;  %v11608_v45 = vpack.c.bf16 %v11585_v24, %v27285_v12  ;;  %v12799_v24 = vld [vmem:[#allocation4 + $0x228] sm:$0xff] }
 0xdbb   : > { %21386 = vmatprep.mubr.msk.bf16.mxu0 %vm309_vm0, %v11318_v18  ;;  %21578 = vmatprep.subr.bf16.mxu1 %v27433_v37 }
 0xdbd   : > { %21515 = vmatmul.mubr.msk.bf16.gmra.mrb[100].mxu1 %vm309_vm0, %v12519_v30  ;;  %v11589_v30 = vld [vmem:[#allocation4 + $0x680] sm:$0xff] }
 0xdbe   : > { %21518 = vmatprep.mubr.msk.bf16.mxu1 %vm309_vm0, %v12520_v41  ;;  %v11610_v12 = vpack.c.bf16 %v11589_v30, %v27292_v53  ;;  %v11612_v53 = vpack.c.bf16 %v11593_v54, %v27300_v21  ;;  %v11613_v21 = vpack.c.bf16 %v11595_v39, %v27308_v29  ;;  %v12790_v29 = vld [vmem:[#allocation4 + $0x160] sm:$0xff]  ;;  %v12805_v30 = vld [vmem:[#allocation4 + $0x2b8] sm:$0xff] }
 0xdc2   : > { %21387 = vmatmul.mubr.msk.bf16.gmra.mrb[84].mxu0 %vm309_vm0, %v11319_v27 }
 0xdc3   : > { %21390 = vmatprep.mubr.msk.bf16.mxu0 %vm309_vm0, %v11320_v46 }
 0xdc5   : > { %21519 = vmatmul.mubr.msk.bf16.gmra.mrb[104].mxu1 %vm309_vm0, %v12521_v33  ;;  %v12810_v33 = vpack.c.bf16 %v12781_v63, %v12780_v40  ;;  %v27499_v40 = vld [vmem:[#allocation8 + $0x4] ss:$0 sm:$0xff] }
 0xdc6   : > { %21522 = vmatprep.mubr.msk.bf16.mxu1 %vm309_vm0, %v12522_v60  ;;  %v13118_v60 = vld [vmem:[#allocation2 + $0x318] sm:$0xff] }
 0xdca   : > { %21391 = vmatmul.mubr.msk.bf16.gmra.mrb[88].mxu0 %vm309_vm0, %v11321_v62 }
 0xdcb   : > { %21394 = vmatprep.mubr.msk.bf16.mxu0 %vm309_vm0, %v11322_v31 }
 0xdcd   : > { %21523 = vmatmul.mubr.msk.bf16.gmra.mrb[108].mxu1 %vm309_vm0, %v12523_v38  ;;  %v12812_v38 = vpack.c.bf16 %v12785_v26, %v12784_v59 }
 0xdce   : > { %21526 = vmatprep.mubr.msk.bf16.mxu1 %vm309_vm0, %v12524_v23  ;;  %v12786_v23 = vld [vmem:[#allocation4 + $0x100] sm:$0xff] }
 0xdd2   : > { %21395 = vmatmul.mubr.msk.bf16.gmra.mrb[92].mxu0 %vm309_vm0, %v11323_v32 }
 0xdd3   : > { %21402 = vmatprep.mubr.msk.bf16.mxu0 %vm309_vm0, %v27414_v16  ;;  %v12506_v16 = vld [vmem:[#allocation4 + $0x810] sm:$0xff] }
 0xdd4   : > { %v12527_v42 = vpack.c.bf16 %v12507_v13, %v12506_v16  ;;  %v11615_v16 = vpack.c.bf16 %v11599_v61, %v27320_v47  ;;  %v12792_v13 = vld [vmem:[#allocation4 + $0x190] sm:$0xff]  ;;  %v12797_v47 = vld [vmem:[#allocation4 + $0x1f8] sm:$0xff] }
 0xdd5   : > { %21527 = vmatmul.mubr.msk.bf16.gmra.mrb[112].mxu1 %vm309_vm0, %v12525_v48  ;;  %v12813_v48 = vpack.c.bf16 %v12787_v57, %v12786_v23 }
 0xdd6   : > { %21530 = vmatprep.mubr.msk.bf16.mxu1 %vm309_vm0, %v12526_v36  ;;  %v12814_v36 = vpack.c.bf16 %v12789_v34, %v12788_v50 }
 0xdda   : > { %21403 = vmatmul.mubr.msk.bf16.vlgmr.msra.gmra.mrb[64].mxu0 %vm309_vm0, %v27421_v55  ;;  %v12510_v55 = vld [vmem:[#allocation4 + $0x870] sm:$0xff] }
 0xddb   : > { %21406 = vmatprep.mubr.msk.bf16.mxu0 %vm309_vm0, %v11318_v18  ;;  %v12511_v18 = vld [vmem:[#allocation4 + $0x878] sm:$0xff] }
 0xddc   : > { %v12529_v19 = vpack.c.bf16 %v12511_v18, %v12510_v55  ;;  %v12795_v55 = vld [vmem:[#allocation4 + $0x1c8] sm:$0xff]  ;;  %v12796_v18 = vld [vmem:[#allocation4 + $0x1f0] sm:$0xff] }
 0xddd   : > { %21531 = vmatmul.mubr.msk.bf16.gmra.mrb[116].mxu1 %vm309_vm0, %v12527_v42  ;;  %v12816_v42 = vpack.c.bf16 %v12793_v20, %v12792_v13  ;;  %v12818_v14 = vpack.c.bf16 %v12797_v47, %v12796_v18  ;;  %v13410_v47 = vld [vmem:[#allocation2 + $0x348] sm:$0xff] }
 0xdde   : > { %21534 = vmatprep.mubr.msk.bf16.mxu1 %vm309_vm0, %v12528_v0  ;;  %v12794_v0 = vld [vmem:[#allocation4 + $0x1c0] sm:$0xff] }
 0xddf   : > { %v12817_v51 = vpack.c.bf16 %v12795_v55, %v12794_v0 }
 0xde2   : > { %21407 = vmatmul.mubr.msk.bf16.gmra.mrb[68].mxu0 %vm309_vm0, %v11319_v27  ;;  %v12514_v27 = vld [vmem:[#allocation4 + $0x8d0] sm:$0xff] }
 0xde3   : > { %21410 = vmatprep.mubr.msk.bf16.mxu0 %vm309_vm0, %v11320_v46  ;;  %v12777_v46 = vld [vmem:[#allocation4 + $0x18] sm:$0xff]  ;;  %v12531_v9 = vpack.c.bf16 %v12515_v52, %v12514_v27 }
 0xde4   : > { %v12808_v41 = vpack.c.bf16 %v12777_v46, %v12776_v44  ;;  %v12801_v27 = vld [vmem:[#allocation4 + $0x258] sm:$0xff]  ;;  %v12802_v44 = vld [vmem:[#allocation4 + $0x280] sm:$0xff]  ;;  %v12803_v46 = vld [vmem:[#allocation4 + $0x288] sm:$0xff] }
 0xde5   : > { %21535 = vmatmul.mubr.msk.bf16.gmra.mrb[120].mxu1 %vm309_vm0, %v12529_v19  ;;  %v12798_v19 = vld [vmem:[#allocation4 + $0x220] sm:$0xff]  ;;  %v12821_v58 = vpack.c.bf16 %v12803_v46, %v12802_v44 }
 0xde6   : > { %21538 = vmatprep.mubr.msk.bf16.mxu1 %vm309_vm0, %v12530_v17  ;;  %v12819_v17 = vpack.c.bf16 %v12799_v24, %v12798_v19  ;;  %v27525_v44 = vld [vmem:[#allocation2 + $0x2f0] sm:$0xff] }
 0xdea   : > { %21411 = vmatmul.mubr.msk.bf16.gmra.mrb[72].mxu0 %vm309_vm0, %v11321_v62  ;;  %v12779_v62 = vld [vmem:[#allocation4 + $0x48] sm:$0xff] }
 0xdeb   : > { %21414 = vmatprep.mubr.msk.bf16.mxu0 %vm309_vm0, %v11322_v31  ;;  %v11591_v31 = vld [vmem:[#allocation4 + $0x6b0] sm:$0xff]  ;;  %v12809_v15 = vpack.c.bf16 %v12779_v62, %v12778_v43 }
 0xdec   : > { %v11611_v10 = vpack.c.bf16 %v11591_v31, %v27297_v49  ;;  %v13409_v62 = vld [vmem:[#allocation2 + $0x340] sm:$0xff] }
 0xded   : > { %21539 = vmatmul.mubr.msk.bf16.gmra.mrb[124].mxu1 %vm309_vm0, %v12531_v9  ;;  %v12804_v9 = vld [vmem:[#allocation4 + $0x2b0] sm:$0xff] }
 0xdee   : > { %21546 = vmatprep.mubr.msk.bf16.mxu1 %vm309_vm0, %v12808_v41  ;;  %v12822_v41 = vpack.c.bf16 %v12805_v30, %v12804_v9 }
 0xdf2   : > { %21415 = vmatmul.mubr.msk.bf16.gmra.mrb[76].mxu0 %vm309_vm0, %v11323_v32  ;;  %v12783_v32 = vld [vmem:[#allocation4 + $0xa8] sm:$0xff] }
 0xdf3   : > { %21418 = vmatprep.mubr.msk.bf16.mxu0 %vm309_vm0, %v11608_v45  ;;  %v12811_v49 = vpack.c.bf16 %v12783_v32, %v12782_v22  ;;  %v12800_v45 = vld [vmem:[#allocation4 + $0x250] sm:$0xff] }
 0xdf4   : > { %v12820_v52 = vpack.c.bf16 %v12801_v27, %v12800_v45 }
 0xdf5   : > { %21547 = vmatmul.mubr.msk.bf16.vlgmr.msra.gmra.mrb[96].mxu1 %vm309_vm0, %v12809_v15 }
 0xdf6   : > { %21579 = vmatpush3.bf16.msra.mxu1 %v27433_v37  ;;  %21550 = vmatprep.mubr.msk.bf16.mxu1 %vm309_vm0, %v12810_v33  ;;  %v11614_v37 = vpack.c.bf16 %v11597_v28, %v27311_v35  ;;  %v12791_v35 = vld [vmem:[#allocation4 + $0x168] sm:$0xff] }
 0xdf7   : > { %21580 = vmatprep.subr.bf16.mxu1 %v13118_v60  ;;  %v12815_v56 = vpack.c.bf16 %v12791_v35, %v12790_v29 }
 0xdfa   : > { %21419 = vmatmul.mubr.msk.bf16.gmra.mrb[80].mxu0 %vm309_vm0, %v11609_v25  ;;  %21581 = vmatpush3.bf16.msra.mxu1 %v13118_v60  ;;  %v12806_v25 = vld [vmem:[#allocation4 + $0x2e0] sm:$0xff] }
 0xdfb   : > { %21422 = vmatprep.mubr.msk.bf16.mxu0 %vm309_vm0, %v11610_v12  ;;  %v12807_v12 = vld [vmem:[#allocation4 + $0x2e8] sm:$0xff]  ;;  %21614 = vmatprep.subr.bf16.mxu1 %v13409_v62 }
 0xdfc   : > { %v12823_v43 = vpack.c.bf16 %v12807_v12, %v12806_v25 }
 0xdfd   : > { %21551 = vmatmul.mubr.msk.bf16.gmra.mrb[100].mxu1 %vm309_vm0, %v12811_v49 }
 0xdfe   : > { %21554 = vmatprep.mubr.msk.bf16.mxu1 %vm309_vm0, %v12812_v38 }
 0xe02   : > { %21423 = vmatmul.mubr.msk.bf16.gmra.mrb[84].mxu0 %vm309_vm0, %v11611_v10 }
 0xe03   : > { %21426 = vmatprep.mubr.msk.bf16.mxu0 %vm309_vm0, %v11612_v53 }
 0xe05   : > { %21555 = vmatmul.mubr.msk.bf16.gmra.mrb[104].mxu1 %vm309_vm0, %v12813_v48 }
 0xe06   : > { %21558 = vmatprep.mubr.msk.bf16.mxu1 %vm309_vm0, %v12814_v36 }
 0xe0a   : > { %21427 = vmatmul.mubr.msk.bf16.gmra.mrb[88].mxu0 %vm309_vm0, %v11613_v21 }
 0xe0b   : > { %21430 = vmatprep.mubr.msk.bf16.mxu0 %vm309_vm0, %v11614_v37 }
 0xe0d   : > { %21559 = vmatmul.mubr.msk.bf16.gmra.mrb[108].mxu1 %vm309_vm0, %v12815_v56 }
 0xe0e   : > { %21562 = vmatprep.mubr.msk.bf16.mxu1 %vm309_vm0, %v12816_v42 }
 0xe12   : > { %21431 = vmatmul.mubr.msk.bf16.gmra.mrb[92].mxu0 %vm309_vm0, %v11615_v16 }
 0xe15   : > { %21563 = vmatmul.mubr.msk.bf16.gmra.mrb[112].mxu1 %vm309_vm0, %v12817_v51 }
 0xe16   : > { %21566 = vmatprep.mubr.msk.bf16.mxu1 %vm309_vm0, %v12818_v14 }
 0xe1d   : > { %21567 = vmatmul.mubr.msk.bf16.gmra.mrb[116].mxu1 %vm309_vm0, %v12819_v17 }
 0xe1e   : > { %21570 = vmatprep.mubr.msk.bf16.mxu1 %vm309_vm0, %v12820_v52 }
 0xe25   : > { %21571 = vmatmul.mubr.msk.bf16.gmra.mrb[120].mxu1 %vm309_vm0, %v12821_v58 }
 0xe26   : > { %21574 = vmatprep.mubr.msk.bf16.mxu1 %vm309_vm0, %v12822_v41 }
 0xe2d   : > { %21575 = vmatmul.mubr.msk.bf16.gmra.mrb[124].mxu1 %vm309_vm0, %v12823_v43 }
 0xead   : > { %v21404_v63 = vpop.f32.mrb[64].mxu0 }
 0xeae   : > { %v11870_v31 = vadd.f32 %v21404_v63, %v27499_v40  ;;  %v11701_v15 = vpop.f32.mrb[65].mxu0 }
 0xeaf   : > { %v11868_v54 = vadd.f32 %v27499_v40, %v11701_v15  ;;  %v21405_v33 = vpop.f32.mrb[66].mxu0 }
 0xeb0   : > { %v11902_v10 = vmax.f32 %v11870_v31, 0.0  ;;  %v11871_v60 = vadd.f32 %v21405_v33, %v27499_v40  ;;  %v11704_v53 = vpop.f32.mrb[67].mxu0 }
 0xeb1   : > { %v11900_v22 = vmax.f32 %v11868_v54, 0.0  ;;  %v11869_v32 = vadd.f32 %v27499_v40, %v11704_v53 }
 0xeb2   : > { %11934 = vst.msk [vmem:[#allocation4 + $0x340] sm:$0xff] %vm309_vm0, %v11902_v10  ;;  %v11903_v59 = vmax.f32 %v11871_v60, 0.0 }
 0xeb3   : > { %11932 = vst.msk [vmem:[#allocation4 + $0x310] sm:$0xff] %vm309_vm0, %v11900_v22  ;;  %v11901_v26 = vmax.f32 %v11869_v32, 0.0 }
 0xeb4   : > { %11935 = vst.msk [vmem:[#allocation4 + $0x348] sm:$0xff] %vm309_vm0, %v11903_v59 }
 0xeb5   : > { %11933 = vst.msk [vmem:[#allocation4 + $0x318] sm:$0xff] %vm309_vm0, %v11901_v26  ;;  %v21408_v39 = vpop.f32.mrb[68].mxu0 }
 0xeb6   : > { %v11874_v49 = vadd.f32 %v21408_v39, %v27499_v40  ;;  %v11717_v28 = vpop.f32.mrb[69].mxu0 }
 0xeb7   : > { %v11872_v38 = vadd.f32 %v27499_v40, %v11717_v28  ;;  %v21409_v21 = vpop.f32.mrb[70].mxu0 }
 0xeb8   : > { %v11906_v37 = vmax.f32 %v11874_v49, 0.0  ;;  %v11875_v23 = vadd.f32 %v21409_v21, %v27499_v40  ;;  %v11720_v57 = vpop.f32.mrb[71].mxu0 }
 0xeb9   : > { %v11904_v50 = vmax.f32 %v11872_v38, 0.0  ;;  %v11873_v34 = vadd.f32 %v27499_v40, %v11720_v57  ;;  %v13070_v20 = vld [vmem:[#allocation4 + $0x340] sm:$0xff] }
 0xeba   : > { %11938 = vst.msk [vmem:[#allocation4 + $0x3a0] sm:$0xff] %vm309_vm0, %v11906_v37  ;;  %v11907_v61 = vmax.f32 %v11875_v23, 0.0  ;;  %v13068_v16 = vld [vmem:[#allocation4 + $0x310] sm:$0xff] }
 0xebb   : > { %11936 = vst.msk [vmem:[#allocation4 + $0x370] sm:$0xff] %vm309_vm0, %v11904_v50  ;;  %v11905_v48 = vmax.f32 %v11873_v34, 0.0  ;;  %v13071_v36 = vld [vmem:[#allocation4 + $0x348] sm:$0xff] }
 0xebc   : > { %11939 = vst.msk [vmem:[#allocation4 + $0x3a8] sm:$0xff] %vm309_vm0, %v11907_v61  ;;  %v13069_v29 = vld [vmem:[#allocation4 + $0x318] sm:$0xff]  ;;  %v13101_v0 = vpack.c.bf16 %v13071_v36, %v13070_v20 }
 0xebd   : > { %11937 = vst.msk [vmem:[#allocation4 + $0x378] sm:$0xff] %vm309_vm0, %v11905_v48  ;;  %v21412_v35 = vpop.f32.mrb[72].mxu0  ;;  %v13100_v13 = vpack.c.bf16 %v13069_v29, %v13068_v16 }
 0xebe   : > { %v11878_v56 = vadd.f32 %v21412_v35, %v27499_v40  ;;  %v11733_v42 = vpop.f32.mrb[73].mxu0 }
 0xebf   : > { %v11876_v55 = vadd.f32 %v27499_v40, %v11733_v42  ;;  %v21413_v18 = vpop.f32.mrb[74].mxu0  ;;  %21582 = vmatprep.mubr.msk.bf16.mxu1 %vm309_vm0, %v13100_v13 }
 0xec0   : > { %v11910_v51 = vmax.f32 %v11878_v56, 0.0  ;;  %v11879_v14 = vadd.f32 %v21413_v18, %v27499_v40  ;;  %v11736_v19 = vpop.f32.mrb[75].mxu0  ;;  %21583 = vmatmul.mubr.msk.bf16.vlgmr.msra.gmra.mrb[96].mxu1 %vm309_vm0, %v13101_v0 }
 0xec1   : > { %v11908_v24 = vmax.f32 %v11876_v55, 0.0  ;;  %v11877_v17 = vadd.f32 %v27499_v40, %v11736_v19  ;;  %21615 = vmatpush3.bf16.msra.mxu1 %v13409_v62  ;;  %v13074_v41 = vld [vmem:[#allocation4 + $0x3a0] sm:$0xff] }
 0xec2   : > { %11942 = vst.msk [vmem:[#allocation4 + $0x400] sm:$0xff] %vm309_vm0, %v11910_v51  ;;  %v11911_v45 = vmax.f32 %v11879_v14, 0.0  ;;  %21616 = vmatprep.subr.bf16.mxu1 %v13410_v47  ;;  %v13072_v46 = vld [vmem:[#allocation4 + $0x370] sm:$0xff] }
 0xec3   : > { %11940 = vst.msk [vmem:[#allocation4 + $0x3d0] sm:$0xff] %vm309_vm0, %v11908_v24  ;;  %v11909_v27 = vmax.f32 %v11877_v17, 0.0  ;;  %v13075_v52 = vld [vmem:[#allocation4 + $0x3a8] sm:$0xff] }
 0xec4   : > { %11943 = vst.msk [vmem:[#allocation4 + $0x408] sm:$0xff] %vm309_vm0, %v11911_v45  ;;  %v13073_v58 = vld [vmem:[#allocation4 + $0x378] sm:$0xff]  ;;  %v13103_v43 = vpack.c.bf16 %v13075_v52, %v13074_v41 }
 0xec5   : > { %11941 = vst.msk [vmem:[#allocation4 + $0x3d8] sm:$0xff] %vm309_vm0, %v11909_v27  ;;  %v21416_v9 = vpop.f32.mrb[76].mxu0  ;;  %v13102_v30 = vpack.c.bf16 %v13073_v58, %v13072_v46  ;;  %21617 = vmatpush3.bf16.msra.mxu1 %v13410_v47 }
 0xec6   : > { %v11882_v25 = vadd.f32 %v21416_v9, %v27499_v40  ;;  %v11749_v12 = vpop.f32.mrb[77].mxu0  ;;  %21650 = vmatprep.subr.bf16.mxu1 %v27525_v44 }
 0xec7   : > { %v11880_v62 = vadd.f32 %v27499_v40, %v11749_v12  ;;  %v21417_v63 = vpop.f32.mrb[78].mxu0  ;;  %21586 = vmatprep.mubr.msk.bf16.mxu1 %vm309_vm0, %v13102_v30 }
 0xec8   : > { %v11914_v31 = vmax.f32 %v11882_v25, 0.0  ;;  %v11883_v15 = vadd.f32 %v21417_v63, %v27499_v40  ;;  %v11752_v54 = vpop.f32.mrb[79].mxu0  ;;  %21587 = vmatmul.mubr.msk.bf16.gmra.mrb[100].mxu1 %vm309_vm0, %v13103_v43 }
 0xec9   : > { %v11912_v33 = vmax.f32 %v11880_v62, 0.0  ;;  %v11881_v10 = vadd.f32 %v27499_v40, %v11752_v54  ;;  %v13078_v49 = vld [vmem:[#allocation4 + $0x400] sm:$0xff] }
 0xeca   : > { %11946 = vst.msk [vmem:[#allocation4 + $0x460] sm:$0xff] %vm309_vm0, %v11914_v31  ;;  %v11915_v60 = vmax.f32 %v11883_v15, 0.0  ;;  %v13076_v32 = vld [vmem:[#allocation4 + $0x3d0] sm:$0xff] }
 0xecb   : > { %11944 = vst.msk [vmem:[#allocation4 + $0x430] sm:$0xff] %vm309_vm0, %v11912_v33  ;;  %v11913_v53 = vmax.f32 %v11881_v10, 0.0  ;;  %v13079_v22 = vld [vmem:[#allocation4 + $0x408] sm:$0xff] }
 0xecc   : > { %11947 = vst.msk [vmem:[#allocation4 + $0x468] sm:$0xff] %vm309_vm0, %v11915_v60  ;;  %v13077_v59 = vld [vmem:[#allocation4 + $0x3d8] sm:$0xff]  ;;  %v13105_v21 = vpack.c.bf16 %v13079_v22, %v13078_v49 }
 0xecd   : > { %11945 = vst.msk [vmem:[#allocation4 + $0x438] sm:$0xff] %vm309_vm0, %v11913_v53  ;;  %v21420_v26 = vpop.f32.mrb[80].mxu0  ;;  %v13104_v39 = vpack.c.bf16 %v13077_v59, %v13076_v32 }
 0xece   : > { %v11886_v28 = vadd.f32 %v21420_v26, %v27499_v40  ;;  %v11765_v38 = vpop.f32.mrb[81].mxu0 }
 0xecf   : > { %v11884_v37 = vadd.f32 %v27499_v40, %v11765_v38  ;;  %v21421_v23 = vpop.f32.mrb[82].mxu0  ;;  %21590 = vmatprep.mubr.msk.bf16.mxu1 %vm309_vm0, %v13104_v39 }
 0xed0   : > { %v11918_v57 = vmax.f32 %v11886_v28, 0.0  ;;  %v11887_v50 = vadd.f32 %v21421_v23, %v27499_v40  ;;  %v11768_v34 = vpop.f32.mrb[83].mxu0  ;;  %21591 = vmatmul.mubr.msk.bf16.gmra.mrb[104].mxu1 %vm309_vm0, %v13105_v21 }
 0xed1   : > { %v11916_v61 = vmax.f32 %v11884_v37, 0.0  ;;  %v11885_v48 = vadd.f32 %v27499_v40, %v11768_v34  ;;  %v13082_v42 = vld [vmem:[#allocation4 + $0x460] sm:$0xff] }
 0xed2   : > { %11950 = vst.msk [vmem:[#allocation4 + $0x4c0] sm:$0xff] %vm309_vm0, %v11918_v57  ;;  %v11919_v36 = vmax.f32 %v11887_v50, 0.0  ;;  %v13080_v35 = vld [vmem:[#allocation4 + $0x430] sm:$0xff] }
 0xed3   : > { %11948 = vst.msk [vmem:[#allocation4 + $0x490] sm:$0xff] %vm309_vm0, %v11916_v61  ;;  %v11917_v16 = vmax.f32 %v11885_v48, 0.0  ;;  %v13083_v29 = vld [vmem:[#allocation4 + $0x468] sm:$0xff] }
 0xed4   : > { %11951 = vst.msk [vmem:[#allocation4 + $0x4c8] sm:$0xff] %vm309_vm0, %v11919_v36  ;;  %v13081_v13 = vld [vmem:[#allocation4 + $0x438] sm:$0xff]  ;;  %v13107_v18 = vpack.c.bf16 %v13083_v29, %v13082_v42 }
 0xed5   : > { %11949 = vst.msk [vmem:[#allocation4 + $0x498] sm:$0xff] %vm309_vm0, %v11917_v16  ;;  %v21424_v20 = vpop.f32.mrb[84].mxu0  ;;  %v13106_v56 = vpack.c.bf16 %v13081_v13, %v13080_v35 }
 0xed6   : > { %v11890_v0 = vadd.f32 %v21424_v20, %v27499_v40  ;;  %v11781_v55 = vpop.f32.mrb[85].mxu0 }
 0xed7   : > { %v11888_v47 = vadd.f32 %v27499_v40, %v11781_v55  ;;  %v21425_v51 = vpop.f32.mrb[86].mxu0  ;;  %21594 = vmatprep.mubr.msk.bf16.mxu1 %vm309_vm0, %v13106_v56  ;;  %v13361_v55 = vld [vmem:[#allocation4 + $0x618] sm:$0xff] }
 0xed8   : > { %v11922_v14 = vmax.f32 %v11890_v0, 0.0  ;;  %v11891_v19 = vadd.f32 %v21425_v51, %v27499_v40  ;;  %v11784_v24 = vpop.f32.mrb[87].mxu0  ;;  %21595 = vmatmul.mubr.msk.bf16.gmra.mrb[108].mxu1 %vm309_vm0, %v13107_v18 }
 0xed9   : > { %v11920_v17 = vmax.f32 %v11888_v47, 0.0  ;;  %v11889_v45 = vadd.f32 %v27499_v40, %v11784_v24  ;;  %v13086_v25 = vld [vmem:[#allocation4 + $0x4c0] sm:$0xff] }
 0xeda   : > { %11954 = vst.msk [vmem:[#allocation4 + $0x520] sm:$0xff] %vm309_vm0, %v11922_v14  ;;  %v11923_v27 = vmax.f32 %v11891_v19, 0.0  ;;  %v13084_v58 = vld [vmem:[#allocation4 + $0x490] sm:$0xff] }
 0xedb   : > { %11952 = vst.msk [vmem:[#allocation4 + $0x4f0] sm:$0xff] %vm309_vm0, %v11920_v17  ;;  %v11921_v52 = vmax.f32 %v11889_v45, 0.0  ;;  %v13087_v46 = vld [vmem:[#allocation4 + $0x4c8] sm:$0xff]  ;;  %v13362_v45 = vld [vmem:[#allocation4 + $0x640] sm:$0xff] }
 0xedc   : > { %11955 = vst.msk [vmem:[#allocation4 + $0x528] sm:$0xff] %vm309_vm0, %v11923_v27  ;;  %v13085_v9 = vld [vmem:[#allocation4 + $0x498] sm:$0xff]  ;;  %v13109_v62 = vpack.c.bf16 %v13087_v46, %v13086_v25  ;;  %v13363_v27 = vld [vmem:[#allocation4 + $0x648] sm:$0xff] }
 0xedd   : > { %11953 = vst.msk [vmem:[#allocation4 + $0x4f8] sm:$0xff] %vm309_vm0, %v11921_v52  ;;  %v21428_v30 = vpop.f32.mrb[88].mxu0  ;;  %v13108_v41 = vpack.c.bf16 %v13085_v9, %v13084_v58  ;;  %v13364_v52 = vld [vmem:[#allocation4 + $0x670] sm:$0xff]  ;;  %v13365_v46 = vld [vmem:[#allocation4 + $0x678] sm:$0xff]  ;;  %v13393_v58 = vpack.c.bf16 %v13363_v27, %v13362_v45  ;;  %v13367_v25 = vld [vmem:[#allocation4 + $0x6a8] sm:$0xff] }
 0xede   : > { %v11894_v12 = vadd.f32 %v21428_v30, %v27499_v40  ;;  %v11797_v43 = vpop.f32.mrb[89].mxu0  ;;  %v13394_v9 = vpack.c.bf16 %v13365_v46, %v13364_v52  ;;  %v13702_v30 = vld [vmem:[#allocation2 + $0x2f8] sm:$0xff]  ;;  %v13994_v27 = vld [vmem:[#allocation2 + $0x328] sm:$0xff]  ;;  %v13658_v52 = vld [vmem:[#allocation4 + $0xb0] sm:$0xff] }
 0xedf   : > { %v11892_v63 = vadd.f32 %v27499_v40, %v11797_v43  ;;  %v21429_v31 = vpop.f32.mrb[90].mxu0  ;;  %21598 = vmatprep.mubr.msk.bf16.mxu1 %vm309_vm0, %v13108_v41  ;;  %v13366_v41 = vld [vmem:[#allocation4 + $0x6a0] sm:$0xff]  ;;  %v13369_v43 = vld [vmem:[#allocation4 + $0x6d8] sm:$0xff] }
 0xee0   : > { %v11926_v15 = vmax.f32 %v11894_v12, 0.0  ;;  %v11895_v54 = vadd.f32 %v21429_v31, %v27499_v40  ;;  %v11800_v33 = vpop.f32.mrb[91].mxu0  ;;  %21599 = vmatmul.mubr.msk.bf16.gmra.mrb[112].mxu1 %vm309_vm0, %v13109_v62  ;;  %v13368_v12 = vld [vmem:[#allocation4 + $0x6d0] sm:$0xff]  ;;  %v13659_v46 = vld [vmem:[#allocation4 + $0xb8] sm:$0xff] }
 0xee1   : > { %v11924_v10 = vmax.f32 %v11892_v63, 0.0  ;;  %v11893_v60 = vadd.f32 %v27499_v40, %v11800_v33  ;;  %v13090_v28 = vld [vmem:[#allocation4 + $0x520] sm:$0xff]  ;;  %v27588_v62 = vld [vmem:[#allocation2 + $0x320] sm:$0xff]  ;;  %v13395_v63 = vpack.c.bf16 %v13367_v25, %v13366_v41  ;;  %v13396_v31 = vpack.c.bf16 %v13369_v43, %v13368_v12  ;;  %v13373_v33 = vld [vmem:[#allocation4 + $0x738] sm:$0xff] }
 0xee2   : > { %11958 = vst.msk [vmem:[#allocation4 + $0x580] sm:$0xff] %vm309_vm0, %v11926_v15  ;;  %v11927_v53 = vmax.f32 %v11895_v54, 0.0  ;;  %v13088_v59 = vld [vmem:[#allocation4 + $0x4f0] sm:$0xff]  ;;  %v13370_v15 = vld [vmem:[#allocation4 + $0x700] sm:$0xff]  ;;  %v13687_v41 = vpack.c.bf16 %v13659_v46, %v13658_v52  ;;  %v13663_v43 = vld [vmem:[#allocation4 + $0x118] sm:$0xff] }
 0xee3   : > { %11956 = vst.msk [vmem:[#allocation4 + $0x550] sm:$0xff] %vm309_vm0, %v11924_v10  ;;  %v11925_v22 = vmax.f32 %v11893_v60, 0.0  ;;  %v13091_v32 = vld [vmem:[#allocation4 + $0x528] sm:$0xff]  ;;  %v13372_v54 = vld [vmem:[#allocation4 + $0x730] sm:$0xff] }
 0xee4   : > { %11959 = vst.msk [vmem:[#allocation4 + $0x588] sm:$0xff] %vm309_vm0, %v11927_v53  ;;  %v13089_v26 = vld [vmem:[#allocation4 + $0x4f8] sm:$0xff]  ;;  %v13111_v37 = vpack.c.bf16 %v13091_v32, %v13090_v28  ;;  %v13398_v60 = vpack.c.bf16 %v13373_v33, %v13372_v54  ;;  %v13374_v53 = vld [vmem:[#allocation4 + $0x760] sm:$0xff]  ;;  %v13376_v32 = vld [vmem:[#allocation4 + $0x790] sm:$0xff] }
 0xee5   : > { %11957 = vst.msk [vmem:[#allocation4 + $0x558] sm:$0xff] %vm309_vm0, %v11925_v22  ;;  %v21432_v39 = vpop.f32.mrb[92].mxu0  ;;  %v13110_v49 = vpack.c.bf16 %v13089_v26, %v13088_v59  ;;  %v13375_v22 = vld [vmem:[#allocation4 + $0x768] sm:$0xff]  ;;  %v13377_v59 = vld [vmem:[#allocation4 + $0x798] sm:$0xff]  ;;  %v13662_v12 = vld [vmem:[#allocation4 + $0x110] sm:$0xff] }
 0xee6   : > { %v11898_v38 = vadd.f32 %v21432_v39, %v27499_v40  ;;  %v11813_v21 = vpop.f32.mrb[93].mxu0  ;;  %v13399_v26 = vpack.c.bf16 %v13375_v22, %v13374_v53  ;;  %v13400_v39 = vpack.c.bf16 %v13377_v59, %v13376_v32  ;;  %v13379_v28 = vld [vmem:[#allocation4 + $0x7c8] sm:$0xff]  ;;  %v13667_v54 = vld [vmem:[#allocation4 + $0x178] sm:$0xff]  ;;  %v13668_v33 = vld [vmem:[#allocation4 + $0x1a0] sm:$0xff] }
 0xee7   : > { %v11896_v23 = vadd.f32 %v27499_v40, %v11813_v21  ;;  %v21433_v57 = vpop.f32.mrb[94].mxu0  ;;  %21602 = vmatprep.mubr.msk.bf16.mxu1 %vm309_vm0, %v13110_v49  ;;  %v13378_v49 = vld [vmem:[#allocation4 + $0x7c0] sm:$0xff]  ;;  %v13381_v21 = vld [vmem:[#allocation4 + $0x7f8] sm:$0xff]  ;;  %v13670_v22 = vld [vmem:[#allocation4 + $0x1d0] sm:$0xff] }
 0xee8   : > { %v11930_v50 = vmax.f32 %v11898_v38, 0.0  ;;  %v11899_v34 = vadd.f32 %v21433_v57, %v27499_v40  ;;  %v11816_v61 = vpop.f32.mrb[95].mxu0  ;;  %21603 = vmatmul.mubr.msk.bf16.gmra.mrb[116].mxu1 %vm309_vm0, %v13111_v37  ;;  %v13380_v38 = vld [vmem:[#allocation4 + $0x7f0] sm:$0xff]  ;;  %v13401_v37 = vpack.c.bf16 %v13379_v28, %v13378_v49  ;;  %v13382_v57 = vld [vmem:[#allocation4 + $0x820] sm:$0xff]  ;;  %v13671_v32 = vld [vmem:[#allocation4 + $0x1d8] sm:$0xff] }
 0xee9   : > { %v11928_v48 = vmax.f32 %v11896_v23, 0.0  ;;  %v11897_v36 = vadd.f32 %v27499_v40, %v11816_v61  ;;  %v13094_v42 = vld [vmem:[#allocation4 + $0x580] sm:$0xff]  ;;  %v13360_v40 = vld [vmem:[#allocation4 + $0x610] sm:$0xff]  ;;  %v13402_v23 = vpack.c.bf16 %v13381_v21, %v13380_v38  ;;  %v13385_v61 = vld [vmem:[#allocation4 + $0x858] sm:$0xff] }
 0xeea   : > { %11962 = vst.msk [vmem:[#allocation4 + $0x5e0] sm:$0xff] %vm309_vm0, %v11930_v50  ;;  %v11931_v16 = vmax.f32 %v11899_v34, 0.0  ;;  %v13092_v13 = vld [vmem:[#allocation4 + $0x550] sm:$0xff]  ;;  %v13392_v24 = vpack.c.bf16 %v13361_v55, %v13360_v40  ;;  %v13383_v50 = vld [vmem:[#allocation4 + $0x828] sm:$0xff]  ;;  %v13652_v40 = vld [vmem:[#allocation4 + $0x20] sm:$0xff] }
 0xeeb   : > { %11960 = vst.msk [vmem:[#allocation4 + $0x5b0] sm:$0xff] %vm309_vm0, %v11928_v48  ;;  %v11929_v29 = vmax.f32 %v11897_v36, 0.0  ;;  %v13095_v35 = vld [vmem:[#allocation4 + $0x588] sm:$0xff]  ;;  %v13384_v34 = vld [vmem:[#allocation4 + $0x850] sm:$0xff]  ;;  %v13403_v48 = vpack.c.bf16 %v13383_v50, %v13382_v57  ;;  %v13672_v59 = vld [vmem:[#allocation4 + $0x200] sm:$0xff] }
 0xeec   : > { %11963 = vst.msk [vmem:[#allocation4 + $0x5e8] sm:$0xff] %vm309_vm0, %v11931_v16  ;;  %v13093_v20 = vld [vmem:[#allocation4 + $0x558] sm:$0xff]  ;;  %v13113_v0 = vpack.c.bf16 %v13095_v35, %v13094_v42  ;;  %v13404_v36 = vpack.c.bf16 %v13385_v61, %v13384_v34  ;;  %v13386_v16 = vld [vmem:[#allocation4 + $0x880] sm:$0xff]  ;;  %v13388_v35 = vld [vmem:[#allocation4 + $0x8b0] sm:$0xff] }
 0xeed   : > { %11961 = vst.msk [vmem:[#allocation4 + $0x5b8] sm:$0xff] %vm309_vm0, %v11929_v29  ;;  %v13112_v56 = vpack.c.bf16 %v13093_v20, %v13092_v13  ;;  %v13387_v29 = vld [vmem:[#allocation4 + $0x888] sm:$0xff]  ;;  %v13389_v13 = vld [vmem:[#allocation4 + $0x8b8] sm:$0xff]  ;;  %v13390_v42 = vld [vmem:[#allocation4 + $0x8e0] sm:$0xff] }
 0xeee   : > { %v13405_v20 = vpack.c.bf16 %v13387_v29, %v13386_v16  ;;  %v13653_v55 = vld [vmem:[#allocation4 + $0x28] sm:$0xff]  ;;  %v13674_v28 = vld [vmem:[#allocation4 + $0x230] sm:$0xff]  ;;  %v13675_v38 = vld [vmem:[#allocation4 + $0x238] sm:$0xff] }
 0xeef   : > { %21606 = vmatprep.mubr.msk.bf16.mxu1 %vm309_vm0, %v13112_v56  ;;  %v13406_v56 = vpack.c.bf16 %v13389_v13, %v13388_v35  ;;  %v13676_v21 = vld [vmem:[#allocation4 + $0x260] sm:$0xff]  ;;  %v13678_v50 = vld [vmem:[#allocation4 + $0x290] sm:$0xff]  ;;  %v13679_v34 = vld [vmem:[#allocation4 + $0x298] sm:$0xff] }
 0xef0   : > { %21607 = vmatmul.mubr.msk.bf16.gmra.mrb[120].mxu1 %vm309_vm0, %v13113_v0  ;;  %v13391_v0 = vld [vmem:[#allocation4 + $0x8e8] sm:$0xff]  ;;  %v13680_v61 = vld [vmem:[#allocation4 + $0x2c0] sm:$0xff]  ;;  %v13682_v29 = vld [vmem:[#allocation4 + $0x2f0] sm:$0xff] }
 0xef1   : > { %v13098_v19 = vld [vmem:[#allocation4 + $0x5e0] sm:$0xff]  ;;  %v13683_v35 = vld [vmem:[#allocation4 + $0x2f8] sm:$0xff]  ;;  %v13953_v52 = vld [vmem:[#allocation4 + $0x3e8] sm:$0xff] }
 0xef2   : > { %v13096_v47 = vld [vmem:[#allocation4 + $0x5b0] sm:$0xff]  ;;  %v13944_v13 = vld [vmem:[#allocation4 + $0x320] sm:$0xff] }
 0xef3   : > { %v13099_v18 = vld [vmem:[#allocation4 + $0x5e8] sm:$0xff] }
 0xef4   : > { %v13097_v51 = vld [vmem:[#allocation4 + $0x5b8] sm:$0xff]  ;;  %v13115_v17 = vpack.c.bf16 %v13099_v18, %v13098_v19  ;;  %v13407_v18 = vpack.c.bf16 %v13391_v0, %v13390_v42  ;;  %v13656_v19 = vld [vmem:[#allocation4 + $0x80] sm:$0xff] }
 0xef5   : > { %v13114_v14 = vpack.c.bf16 %v13097_v51, %v13096_v47  ;;  %v13684_v47 = vpack.c.bf16 %v13653_v55, %v13652_v40  ;;  %v13654_v51 = vld [vmem:[#allocation4 + $0x50] sm:$0xff]  ;;  %v14689_v0 = vld [vmem:[#allocation2 + $0x390] sm:$0xff]  ;;  %v14690_v40 = vld [vmem:[#allocation2 + $0x398] sm:$0xff] }
 0xef6   : > { %v13946_v55 = vld [vmem:[#allocation4 + $0x350] sm:$0xff]  ;;  %21758 = vmatprep.subr.bf16.mxu0 %v14689_v0 }
 0xef7   : > { %21610 = vmatprep.mubr.msk.bf16.mxu1 %vm309_vm0, %v13114_v14  ;;  %v13655_v14 = vld [vmem:[#allocation4 + $0x58] sm:$0xff]  ;;  %21759 = vmatpush3.bf16.msra.mxu0 %v14689_v0 }
 0xef8   : > { %21611 = vmatmul.mubr.msk.bf16.gmra.mrb[124].mxu1 %vm309_vm0, %v13115_v17  ;;  %v13685_v17 = vpack.c.bf16 %v13655_v14, %v13654_v51  ;;  %v13949_v51 = vld [vmem:[#allocation4 + $0x388] sm:$0xff]  ;;  %21760 = vmatprep.subr.bf16.mxu0 %v14690_v40 }
 0xef9   : > { %21618 = vmatprep.mubr.msk.bf16.mxu1 %vm309_vm0, %v13392_v24  ;;  %v13657_v24 = vld [vmem:[#allocation4 + $0x88] sm:$0xff] }
 0xefa   : > { %v13686_v45 = vpack.c.bf16 %v13657_v24, %v13656_v19  ;;  %v14286_v24 = vld [vmem:[#allocation2 + $0x358] sm:$0xff] }
 0xefb   : > { %21761 = vmatpush3.bf16.msra.mxu0 %v14690_v40 }
 0xf00   : > { %21619 = vmatmul.mubr.msk.bf16.vlgmr.msra.gmra.mrb[96].mxu1 %vm309_vm0, %v13393_v58  ;;  %v13660_v58 = vld [vmem:[#allocation4 + $0xe0] sm:$0xff] }
 0xf01   : > { %21651 = vmatpush3.bf16.msra.mxu1 %v27525_v44  ;;  %21622 = vmatprep.mubr.msk.bf16.mxu1 %vm309_vm0, %v13394_v9  ;;  %v13371_v44 = vld [vmem:[#allocation4 + $0x708] sm:$0xff] }
 0xf02   : > { %21652 = vmatprep.subr.bf16.mxu1 %v13702_v30  ;;  %v13397_v10 = vpack.c.bf16 %v13371_v44, %v13370_v15  ;;  %v13661_v9 = vld [vmem:[#allocation4 + $0xe8] sm:$0xff]  ;;  %v13666_v44 = vld [vmem:[#allocation4 + $0x170] sm:$0xff] }
 0xf03   : > { %v13688_v25 = vpack.c.bf16 %v13661_v9, %v13660_v58  ;;  %v13954_v9 = vld [vmem:[#allocation4 + $0x410] sm:$0xff] }
 0xf05   : > { %21653 = vmatpush3.bf16.msra.mxu1 %v13702_v30  ;;  %v27608_v30 = vld [vmem:[#allocation2 + $0x350] sm:$0xff] }
 0xf06   : > { %21686 = vmatprep.subr.bf16.mxu1 %v27588_v62 }
 0xf08   : > { %21623 = vmatmul.mubr.msk.bf16.gmra.mrb[100].mxu1 %vm309_vm0, %v13395_v63  ;;  %v13665_v63 = vld [vmem:[#allocation4 + $0x148] sm:$0xff] }
 0xf09   : > { %21626 = vmatprep.mubr.msk.bf16.mxu1 %vm309_vm0, %v13396_v31  ;;  %v13689_v31 = vpack.c.bf16 %v13663_v43, %v13662_v12  ;;  %v13957_v12 = vld [vmem:[#allocation4 + $0x448] sm:$0xff] }
 0xf10   : > { %21627 = vmatmul.mubr.msk.bf16.gmra.mrb[104].mxu1 %vm309_vm0, %v13397_v10  ;;  %v13669_v10 = vld [vmem:[#allocation4 + $0x1a8] sm:$0xff] }
 0xf11   : > { %21630 = vmatprep.mubr.msk.bf16.mxu1 %vm309_vm0, %v13398_v60  ;;  %v13691_v60 = vpack.c.bf16 %v13667_v54, %v13666_v44  ;;  %v13692_v53 = vpack.c.bf16 %v13669_v10, %v13668_v33  ;;  %v13962_v33 = vld [vmem:[#allocation4 + $0x4d0] sm:$0xff]  ;;  %v13963_v10 = vld [vmem:[#allocation4 + $0x4d8] sm:$0xff] }
 0xf18   : > { %21631 = vmatmul.mubr.msk.bf16.gmra.mrb[108].mxu1 %vm309_vm0, %v13399_v26  ;;  %v13673_v26 = vld [vmem:[#allocation4 + $0x208] sm:$0xff] }
 0xf19   : > { %21634 = vmatprep.mubr.msk.bf16.mxu1 %vm309_vm0, %v13400_v39  ;;  %v13693_v39 = vpack.c.bf16 %v13671_v32, %v13670_v22  ;;  %v13694_v49 = vpack.c.bf16 %v13673_v26, %v13672_v59  ;;  %v13985_v22 = vpack.c.bf16 %v13963_v10, %v13962_v33  ;;  %v13966_v59 = vld [vmem:[#allocation4 + $0x530] sm:$0xff]  ;;  %v13967_v26 = vld [vmem:[#allocation4 + $0x538] sm:$0xff]  ;;  %v14260_v10 = vld [vmem:[#allocation4 + $0x860] sm:$0xff] }
 0xf1a   : > { %v14259_v33 = vld [vmem:[#allocation4 + $0x838] sm:$0xff] }
 0xf20   : > { %21635 = vmatmul.mubr.msk.bf16.gmra.mrb[112].mxu1 %vm309_vm0, %v13401_v37  ;;  %v13677_v37 = vld [vmem:[#allocation4 + $0x268] sm:$0xff] }
 0xf21   : > { %21638 = vmatprep.mubr.msk.bf16.mxu1 %vm309_vm0, %v13402_v23  ;;  %v13695_v23 = vpack.c.bf16 %v13675_v38, %v13674_v28  ;;  %v13696_v57 = vpack.c.bf16 %v13677_v37, %v13676_v21  ;;  %v13987_v28 = vpack.c.bf16 %v13967_v26, %v13966_v59  ;;  %v13970_v21 = vld [vmem:[#allocation4 + $0x590] sm:$0xff]  ;;  %v13971_v37 = vld [vmem:[#allocation4 + $0x598] sm:$0xff]  ;;  %v14264_v26 = vld [vmem:[#allocation4 + $0x8c0] sm:$0xff] }
 0xf22   : > { %v14263_v59 = vld [vmem:[#allocation4 + $0x898] sm:$0xff] }
 0xf28   : > { %21639 = vmatmul.mubr.msk.bf16.gmra.mrb[116].mxu1 %vm309_vm0, %v13403_v48  ;;  %v13681_v48 = vld [vmem:[#allocation4 + $0x2c8] sm:$0xff] }
 0xf29   : > { %21642 = vmatprep.mubr.msk.bf16.mxu1 %vm309_vm0, %v13404_v36  ;;  %v13697_v36 = vpack.c.bf16 %v13679_v34, %v13678_v50  ;;  %v13698_v16 = vpack.c.bf16 %v13681_v48, %v13680_v61  ;;  %v13989_v50 = vpack.c.bf16 %v13971_v37, %v13970_v21  ;;  %v13974_v61 = vld [vmem:[#allocation4 + $0x5f0] sm:$0xff]  ;;  %v13975_v48 = vld [vmem:[#allocation4 + $0x5f8] sm:$0xff] }
 0xf2a   : > { %v14267_v21 = vld [vmem:[#allocation4 + $0x8f8] sm:$0xff] }
 0xf30   : > { %21643 = vmatmul.mubr.msk.bf16.gmra.mrb[120].mxu1 %vm309_vm0, %v13405_v20  ;;  %v13945_v20 = vld [vmem:[#allocation4 + $0x328] sm:$0xff] }
 0xf31   : > { %21646 = vmatprep.mubr.msk.bf16.mxu1 %vm309_vm0, %v13406_v56  ;;  %v13699_v56 = vpack.c.bf16 %v13683_v35, %v13682_v29  ;;  %v13976_v42 = vpack.c.bf16 %v13945_v20, %v13944_v13  ;;  %v13991_v29 = vpack.c.bf16 %v13975_v48, %v13974_v61  ;;  %v14238_v13 = vld [vmem:[#allocation4 + $0x650] sm:$0xff]  ;;  %v14239_v20 = vld [vmem:[#allocation4 + $0x658] sm:$0xff] }
 0xf32   : > { %v14269_v0 = vpack.c.bf16 %v14239_v20, %v14238_v13 }
 0xf38   : > { %21647 = vmatmul.mubr.msk.bf16.gmra.mrb[124].mxu1 %vm309_vm0, %v13407_v18  ;;  %v13947_v18 = vld [vmem:[#allocation4 + $0x358] sm:$0xff] }
 0xf39   : > { %21654 = vmatprep.mubr.msk.bf16.mxu1 %vm309_vm0, %v13684_v47  ;;  %v13948_v47 = vld [vmem:[#allocation4 + $0x380] sm:$0xff]  ;;  %v13977_v14 = vpack.c.bf16 %v13947_v18, %v13946_v55  ;;  %v14242_v55 = vld [vmem:[#allocation4 + $0x6b0] sm:$0xff]  ;;  %v14243_v18 = vld [vmem:[#allocation4 + $0x6b8] sm:$0xff] }
 0xf3a   : > { %v13978_v19 = vpack.c.bf16 %v13949_v51, %v13948_v47  ;;  %v14244_v47 = vld [vmem:[#allocation4 + $0x6e0] sm:$0xff]  ;;  %v14245_v51 = vld [vmem:[#allocation4 + $0x6e8] sm:$0xff] }
 0xf40   : > { %21655 = vmatmul.mubr.msk.bf16.vlgmr.msra.gmra.mrb[96].mxu1 %vm309_vm0, %v13685_v17  ;;  %v13950_v17 = vld [vmem:[#allocation4 + $0x3b0] sm:$0xff] }
 0xf41   : > { %21687 = vmatpush3.bf16.msra.mxu1 %v27588_v62  ;;  %21658 = vmatprep.mubr.msk.bf16.mxu1 %vm309_vm0, %v13686_v45  ;;  %v13664_v62 = vld [vmem:[#allocation4 + $0x140] sm:$0xff]  ;;  %v13951_v45 = vld [vmem:[#allocation4 + $0x3b8] sm:$0xff] }
 0xf42   : > { %21688 = vmatprep.subr.bf16.mxu1 %v13994_v27  ;;  %v13690_v15 = vpack.c.bf16 %v13665_v63, %v13664_v62  ;;  %v13979_v46 = vpack.c.bf16 %v13951_v45, %v13950_v17  ;;  %v13958_v62 = vld [vmem:[#allocation4 + $0x470] sm:$0xff]  ;;  %v13959_v63 = vld [vmem:[#allocation4 + $0x478] sm:$0xff]  ;;  %v14248_v45 = vld [vmem:[#allocation4 + $0x740] sm:$0xff] }
 0xf43   : > { %v13983_v44 = vpack.c.bf16 %v13959_v63, %v13958_v62  ;;  %v14247_v17 = vld [vmem:[#allocation4 + $0x718] sm:$0xff]  ;;  %v14256_v63 = vld [vmem:[#allocation4 + $0x800] sm:$0xff] }
 0xf44   : > { %v14255_v62 = vld [vmem:[#allocation4 + $0x7d8] sm:$0xff] }
 0xf45   : > { %21689 = vmatpush3.bf16.msra.mxu1 %v13994_v27  ;;  %v13952_v27 = vld [vmem:[#allocation4 + $0x3e0] sm:$0xff] }
 0xf46   : > { %21722 = vmatprep.subr.bf16.mxu1 %v27608_v30  ;;  %v13980_v58 = vpack.c.bf16 %v13953_v52, %v13952_v27  ;;  %v14249_v27 = vld [vmem:[#allocation4 + $0x748] sm:$0xff] }
 0xf48   : > { %21659 = vmatmul.mubr.msk.bf16.gmra.mrb[100].mxu1 %vm309_vm0, %v13687_v41  ;;  %v13955_v41 = vld [vmem:[#allocation4 + $0x418] sm:$0xff] }
 0xf49   : > { %21662 = vmatprep.mubr.msk.bf16.mxu1 %vm309_vm0, %v13688_v25  ;;  %v13956_v25 = vld [vmem:[#allocation4 + $0x440] sm:$0xff]  ;;  %v13981_v43 = vpack.c.bf16 %v13955_v41, %v13954_v9  ;;  %v14251_v9 = vld [vmem:[#allocation4 + $0x778] sm:$0xff] }
 0xf4a   : > { %v14252_v41 = vld [vmem:[#allocation4 + $0x7a0] sm:$0xff] }
 0xf50   : > { %21663 = vmatmul.mubr.msk.bf16.gmra.mrb[104].mxu1 %vm309_vm0, %v13689_v31  ;;  %v13960_v31 = vld [vmem:[#allocation4 + $0x4a0] sm:$0xff] }
 0xf51   : > { %21666 = vmatprep.mubr.msk.bf16.mxu1 %vm309_vm0, %v13690_v15  ;;  %v13961_v15 = vld [vmem:[#allocation4 + $0x4a8] sm:$0xff] }
 0xf52   : > { %v13984_v54 = vpack.c.bf16 %v13961_v15, %v13960_v31  ;;  %v14257_v31 = vld [vmem:[#allocation4 + $0x808] sm:$0xff] }
 0xf58   : > { %21667 = vmatmul.mubr.msk.bf16.gmra.mrb[108].mxu1 %vm309_vm0, %v13691_v60  ;;  %v13964_v60 = vld [vmem:[#allocation4 + $0x500] sm:$0xff] }
 0xf59   : > { %21670 = vmatprep.mubr.msk.bf16.mxu1 %vm309_vm0, %v13692_v53  ;;  %v13965_v53 = vld [vmem:[#allocation4 + $0x508] sm:$0xff] }
 0xf5a   : > { %v13986_v32 = vpack.c.bf16 %v13965_v53, %v13964_v60  ;;  %v14261_v60 = vld [vmem:[#allocation4 + $0x868] sm:$0xff] }
 0xf60   : > { %21671 = vmatmul.mubr.msk.bf16.gmra.mrb[112].mxu1 %vm309_vm0, %v13693_v39  ;;  %v13968_v39 = vld [vmem:[#allocation4 + $0x560] sm:$0xff] }
 0xf61   : > { %21674 = vmatprep.mubr.msk.bf16.mxu1 %vm309_vm0, %v13694_v49  ;;  %v13969_v49 = vld [vmem:[#allocation4 + $0x568] sm:$0xff] }
 0xf62   : > { %v13988_v38 = vpack.c.bf16 %v13969_v49, %v13968_v39  ;;  %v14265_v39 = vld [vmem:[#allocation4 + $0x8c8] sm:$0xff] }
 0xf68   : > { %21675 = vmatmul.mubr.msk.bf16.gmra.mrb[116].mxu1 %vm309_vm0, %v13695_v23  ;;  %v13972_v23 = vld [vmem:[#allocation4 + $0x5c0] sm:$0xff] }
 0xf69   : > { %21678 = vmatprep.mubr.msk.bf16.mxu1 %vm309_vm0, %v13696_v57  ;;  %v13973_v57 = vld [vmem:[#allocation4 + $0x5c8] sm:$0xff] }
 0xf6a   : > { %v13990_v34 = vpack.c.bf16 %v13973_v57, %v13972_v23  ;;  %v14685_v23 = vld [vmem:[#allocation2 + $0x360] sm:$0xff]  ;;  %v27657_v57 = vld [vmem:[#allocation8 + $0x5] ss:$0 sm:$0xff] }
 0xf6b   : > { %21794 = vmatprep.subr.bf16.mxu0 %v14685_v23 }
 0xf70   : > { %21679 = vmatmul.mubr.msk.bf16.gmra.mrb[120].mxu1 %vm309_vm0, %v13697_v36  ;;  %v14236_v36 = vld [vmem:[#allocation4 + $0x620] sm:$0xff] }
 0xf71   : > { %21682 = vmatprep.mubr.msk.bf16.mxu1 %vm309_vm0, %v13698_v16  ;;  %v14237_v16 = vld [vmem:[#allocation4 + $0x628] sm:$0xff] }
 0xf72   : > { %v14268_v35 = vpack.c.bf16 %v14237_v16, %v14236_v36 }
 0xf78   : > { %21683 = vmatmul.mubr.msk.bf16.gmra.mrb[124].mxu1 %vm309_vm0, %v13699_v56  ;;  %v14240_v56 = vld [vmem:[#allocation4 + $0x680] sm:$0xff] }
 0xf79   : > { %21690 = vmatprep.mubr.msk.bf16.mxu1 %vm309_vm0, %v13976_v42  ;;  %v14241_v42 = vld [vmem:[#allocation4 + $0x688] sm:$0xff] }
 0xf7a   : > { %v14270_v40 = vpack.c.bf16 %v14241_v42, %v14240_v56 }
 0xf80   : > { %21691 = vmatmul.mubr.msk.bf16.vlgmr.msra.gmra.mrb[96].mxu1 %vm309_vm0, %v13977_v14  ;;  %v14271_v14 = vpack.c.bf16 %v14243_v18, %v14242_v55 }
 0xf81   : > { %21723 = vmatpush3.bf16.msra.mxu1 %v27608_v30  ;;  %21694 = vmatprep.mubr.msk.bf16.mxu1 %vm309_vm0, %v13978_v19  ;;  %v13982_v30 = vpack.c.bf16 %v13957_v12, %v13956_v25  ;;  %v14272_v19 = vpack.c.bf16 %v14245_v51, %v14244_v47  ;;  %v14253_v25 = vld [vmem:[#allocation4 + $0x7a8] sm:$0xff] }
 0xf82   : > { %21724 = vmatprep.subr.bf16.mxu1 %v14286_v24 }
 0xf85   : > { %21725 = vmatpush3.bf16.msra.mxu1 %v14286_v24  ;;  %v14246_v24 = vld [vmem:[#allocation4 + $0x710] sm:$0xff] }
 0xf86   : > { %v14273_v52 = vpack.c.bf16 %v14247_v17, %v14246_v24 }
 0xf88   : > { %21695 = vmatmul.mubr.msk.bf16.gmra.mrb[100].mxu1 %vm309_vm0, %v13979_v46  ;;  %v14274_v46 = vpack.c.bf16 %v14249_v27, %v14248_v45 }
 0xf89   : > { %21698 = vmatprep.mubr.msk.bf16.mxu1 %vm309_vm0, %v13980_v58  ;;  %v14250_v58 = vld [vmem:[#allocation4 + $0x770] sm:$0xff] }
 0xf8a   : > { %v14275_v12 = vpack.c.bf16 %v14251_v9, %v14250_v58 }
 0xf90   : > { %21699 = vmatmul.mubr.msk.bf16.gmra.mrb[104].mxu1 %vm309_vm0, %v13981_v43  ;;  %v14276_v43 = vpack.c.bf16 %v14253_v25, %v14252_v41 }
 0xf91   : > { %21702 = vmatprep.mubr.msk.bf16.mxu1 %vm309_vm0, %v13982_v30  ;;  %v14254_v30 = vld [vmem:[#allocation4 + $0x7d0] sm:$0xff] }
 0xf92   : > { %v14277_v15 = vpack.c.bf16 %v14255_v62, %v14254_v30 }
 0xf98   : > { %21703 = vmatmul.mubr.msk.bf16.gmra.mrb[108].mxu1 %vm309_vm0, %v13983_v44  ;;  %v14278_v44 = vpack.c.bf16 %v14257_v31, %v14256_v63  ;;  %v14686_v31 = vld [vmem:[#allocation2 + $0x368] sm:$0xff] }
 0xf99   : > { %21706 = vmatprep.mubr.msk.bf16.mxu1 %vm309_vm0, %v13984_v54  ;;  %v14258_v54 = vld [vmem:[#allocation4 + $0x830] sm:$0xff] }
 0xf9a   : > { %v14279_v53 = vpack.c.bf16 %v14259_v33, %v14258_v54 }
 0xfa0   : > { %21707 = vmatmul.mubr.msk.bf16.gmra.mrb[112].mxu1 %vm309_vm0, %v13985_v22  ;;  %v14280_v22 = vpack.c.bf16 %v14261_v60, %v14260_v10 }
 0xfa1   : > { %21710 = vmatprep.mubr.msk.bf16.mxu1 %vm309_vm0, %v13986_v32  ;;  %v14262_v32 = vld [vmem:[#allocation4 + $0x890] sm:$0xff] }
 0xfa2   : > { %v14281_v49 = vpack.c.bf16 %v14263_v59, %v14262_v32  ;;  %v27689_v32 = vld [vmem:[#allocation2 + $0x3c0] sm:$0xff] }
 0xfa8   : > { %21711 = vmatmul.mubr.msk.bf16.gmra.mrb[116].mxu1 %vm309_vm0, %v13987_v28  ;;  %v14282_v28 = vpack.c.bf16 %v14265_v39, %v14264_v26 }
 0xfa9   : > { %21714 = vmatprep.mubr.msk.bf16.mxu1 %vm309_vm0, %v13988_v38  ;;  %v14266_v38 = vld [vmem:[#allocation4 + $0x8f0] sm:$0xff] }
 0xfaa   : > { %v14283_v37 = vpack.c.bf16 %v14267_v21, %v14266_v38 }
 0xfb0   : > { %21715 = vmatmul.mubr.msk.bf16.gmra.mrb[120].mxu1 %vm309_vm0, %v13989_v50 }
 0xfb1   : > { %21718 = vmatprep.mubr.msk.bf16.mxu1 %vm309_vm0, %v13990_v34 }
 0xfb8   : > { %21719 = vmatmul.mubr.msk.bf16.gmra.mrb[124].mxu1 %vm309_vm0, %v13991_v29 }
 0xfb9   : > { %21726 = vmatprep.mubr.msk.bf16.mxu1 %vm309_vm0, %v14268_v35 }
 0xfc0   : > { %21727 = vmatmul.mubr.msk.bf16.vlgmr.msra.gmra.mrb[96].mxu1 %vm309_vm0, %v14269_v0 }
 0xfc1   : > { %21730 = vmatprep.mubr.msk.bf16.mxu1 %vm309_vm0, %v14270_v40 }
 0xfc8   : > { %21731 = vmatmul.mubr.msk.bf16.gmra.mrb[100].mxu1 %vm309_vm0, %v14271_v14 }
 0xfc9   : > { %21734 = vmatprep.mubr.msk.bf16.mxu1 %vm309_vm0, %v14272_v19 }
 0xfd0   : > { %21735 = vmatmul.mubr.msk.bf16.gmra.mrb[104].mxu1 %vm309_vm0, %v14273_v52 }
 0xfd1   : > { %21738 = vmatprep.mubr.msk.bf16.mxu1 %vm309_vm0, %v14274_v46 }
 0xfd8   : > { %21739 = vmatmul.mubr.msk.bf16.gmra.mrb[108].mxu1 %vm309_vm0, %v14275_v12 }
 0xfd9   : > { %21742 = vmatprep.mubr.msk.bf16.mxu1 %vm309_vm0, %v14276_v43 }
 0xfe0   : > { %21743 = vmatmul.mubr.msk.bf16.gmra.mrb[112].mxu1 %vm309_vm0, %v14277_v15 }
 0xfe1   : > { %21746 = vmatprep.mubr.msk.bf16.mxu1 %vm309_vm0, %v14278_v44 }
 0xfe8   : > { %21747 = vmatmul.mubr.msk.bf16.gmra.mrb[116].mxu1 %vm309_vm0, %v14279_v53 }
 0xfe9   : > { %21750 = vmatprep.mubr.msk.bf16.mxu1 %vm309_vm0, %v14280_v22 }
 0xff0   : > { %21751 = vmatmul.mubr.msk.bf16.gmra.mrb[120].mxu1 %vm309_vm0, %v14281_v49 }
 0xff1   : > { %21754 = vmatprep.mubr.msk.bf16.mxu1 %vm309_vm0, %v14282_v28 }
 0xff8   : > { %21755 = vmatmul.mubr.msk.bf16.gmra.mrb[124].mxu1 %vm309_vm0, %v14283_v37 }
0x1093   : > { %v21728_v50 = vpop.f32.mrb[96].mxu1 }
0x1094   : > { %v14538_v34 = vadd.f32 %v21728_v50, %v27657_v57  ;;  %v14369_v61 = vpop.f32.mrb[97].mxu1 }
0x1095   : > { %v14536_v48 = vadd.f32 %v27657_v57, %v14369_v61  ;;  %v21729_v36 = vpop.f32.mrb[98].mxu1 }
0x1096   : > { %v14570_v16 = vmax.f32 %v14538_v34, 0.0  ;;  %v14539_v29 = vadd.f32 %v21729_v36, %v27657_v57  ;;  %v14372_v35 = vpop.f32.mrb[99].mxu1 }
0x1097   : > { %v14568_v13 = vmax.f32 %v14536_v48, 0.0  ;;  %v14537_v20 = vadd.f32 %v27657_v57, %v14372_v35 }
0x1098   : > { %14602 = vst.msk [vmem:[#allocation4 + $0x340] sm:$0xff] %vm309_vm0, %v14570_v16  ;;  %v14571_v56 = vmax.f32 %v14539_v29, 0.0 }
0x1099   : > { %14600 = vst.msk [vmem:[#allocation4 + $0x310] sm:$0xff] %vm309_vm0, %v14568_v13  ;;  %v14569_v42 = vmax.f32 %v14537_v20, 0.0 }
0x109a   : > { %14603 = vst.msk [vmem:[#allocation4 + $0x348] sm:$0xff] %vm309_vm0, %v14571_v56 }
0x109b   : > { %14601 = vst.msk [vmem:[#allocation4 + $0x318] sm:$0xff] %vm309_vm0, %v14569_v42  ;;  %v21732_v0 = vpop.f32.mrb[100].mxu1 }
0x109c   : > { %v14542_v40 = vadd.f32 %v21732_v0, %v27657_v57  ;;  %v14385_v55 = vpop.f32.mrb[101].mxu1 }
0x109d   : > { %v14540_v18 = vadd.f32 %v27657_v57, %v14385_v55  ;;  %v21733_v47 = vpop.f32.mrb[102].mxu1 }
0x109e   : > { %v14574_v51 = vmax.f32 %v14542_v40, 0.0  ;;  %v14543_v14 = vadd.f32 %v21733_v47, %v27657_v57  ;;  %v14388_v19 = vpop.f32.mrb[103].mxu1 }
0x109f   : > { %v14572_v24 = vmax.f32 %v14540_v18, 0.0  ;;  %v14541_v17 = vadd.f32 %v27657_v57, %v14388_v19  ;;  %v14636_v25 = vld [vmem:[#allocation4 + $0x33f] sm:$0xff] }
0x10a0   : > { %14606 = vst.msk [vmem:[#allocation4 + $0x3a0] sm:$0xff] %vm309_vm0, %v14574_v51  ;;  %v14575_v45 = vmax.f32 %v14543_v14, 0.0  ;;  %v14634_v46 = vld [vmem:[#allocation4 + $0x30f] sm:$0xff] }
0x10a1   : > { %14604 = vst.msk [vmem:[#allocation4 + $0x370] sm:$0xff] %vm309_vm0, %v14572_v24  ;;  %v14573_v27 = vmax.f32 %v14541_v17, 0.0  ;;  %v14637_v52 = vld [vmem:[#allocation4 + $0x347] sm:$0xff] }
0x10a2   : > { %14607 = vst.msk [vmem:[#allocation4 + $0x3a8] sm:$0xff] %vm309_vm0, %v14575_v45  ;;  %v14635_v58 = vld [vmem:[#allocation4 + $0x317] sm:$0xff]  ;;  %v27678_v30 = vpack.c.bf16 %v14637_v52, %v14636_v25 }
0x10a3   : > { %14605 = vst.msk [vmem:[#allocation4 + $0x378] sm:$0xff] %vm309_vm0, %v14573_v27  ;;  %v21736_v9 = vpop.f32.mrb[104].mxu1  ;;  %v27675_v41 = vpack.c.bf16 %v14635_v58, %v14634_v46 }
0x10a4   : > { %v14546_v12 = vadd.f32 %v21736_v9, %v27657_v57  ;;  %v14401_v43 = vpop.f32.mrb[105].mxu1 }
0x10a5   : > { %v14544_v62 = vadd.f32 %v27657_v57, %v14401_v43  ;;  %v21737_v63 = vpop.f32.mrb[106].mxu1  ;;  %21762 = vmatprep.mubr.msk.bf16.mxu0 %vm309_vm0, %v27675_v41 }
0x10a6   : > { %v14578_v15 = vmax.f32 %v14546_v12, 0.0  ;;  %v14547_v44 = vadd.f32 %v21737_v63, %v27657_v57  ;;  %v14404_v54 = vpop.f32.mrb[107].mxu1  ;;  %21763 = vmatmul.mubr.msk.bf16.vlgmr.msra.gmra.mrb[96].mxu0 %vm309_vm0, %v27678_v30 }
0x10a7   : > { %v14576_v33 = vmax.f32 %v14544_v62, 0.0  ;;  %v14545_v10 = vadd.f32 %v27657_v57, %v14404_v54  ;;  %21795 = vmatpush3.bf16.msra.mxu0 %v14685_v23  ;;  %v14640_v28 = vld [vmem:[#allocation4 + $0x39f] sm:$0xff] }
0x10a8   : > { %14610 = vst.msk [vmem:[#allocation4 + $0x400] sm:$0xff] %vm309_vm0, %v14578_v15  ;;  %v14579_v60 = vmax.f32 %v14547_v44, 0.0  ;;  %21796 = vmatprep.subr.bf16.mxu0 %v14686_v31  ;;  %v14638_v59 = vld [vmem:[#allocation4 + $0x36f] sm:$0xff] }
0x10a9   : > { %14608 = vst.msk [vmem:[#allocation4 + $0x3d0] sm:$0xff] %vm309_vm0, %v14576_v33  ;;  %v14577_v53 = vmax.f32 %v14545_v10, 0.0  ;;  %v14641_v22 = vld [vmem:[#allocation4 + $0x3a7] sm:$0xff] }
0x10aa   : > { %14611 = vst.msk [vmem:[#allocation4 + $0x408] sm:$0xff] %vm309_vm0, %v14579_v60  ;;  %v14639_v26 = vld [vmem:[#allocation4 + $0x377] sm:$0xff]  ;;  %v27696_v37 = vpack.c.bf16 %v14641_v22, %v14640_v28 }
0x10ab   : > { %14609 = vst.msk [vmem:[#allocation4 + $0x3d8] sm:$0xff] %vm309_vm0, %v14577_v53  ;;  %v21740_v39 = vpop.f32.mrb[108].mxu1  ;;  %v27693_v49 = vpack.c.bf16 %v14639_v26, %v14638_v59  ;;  %21797 = vmatpush3.bf16.msra.mxu0 %v14686_v31 }
0x10ac   : > { %v14550_v38 = vadd.f32 %v21740_v39, %v27657_v57  ;;  %v14417_v21 = vpop.f32.mrb[109].mxu1  ;;  %21830 = vmatprep.subr.bf16.mxu0 %v27689_v32 }
0x10ad   : > { %v14548_v23 = vadd.f32 %v27657_v57, %v14417_v21  ;;  %v21741_v50 = vpop.f32.mrb[110].mxu1  ;;  %21766 = vmatprep.mubr.msk.bf16.mxu0 %vm309_vm0, %v27693_v49 }
0x10ae   : > { %v14582_v34 = vmax.f32 %v14550_v38, 0.0  ;;  %v14551_v61 = vadd.f32 %v21741_v50, %v27657_v57  ;;  %v14420_v48 = vpop.f32.mrb[111].mxu1  ;;  %21767 = vmatmul.mubr.msk.bf16.gmra.mrb[100].mxu0 %vm309_vm0, %v27696_v37 }
0x10af   : > { %v14580_v36 = vmax.f32 %v14548_v23, 0.0  ;;  %v14549_v16 = vadd.f32 %v27657_v57, %v14420_v48  ;;  %v14644_v40 = vld [vmem:[#allocation4 + $0x3ff] sm:$0xff] }
0x10b0   : > { %14614 = vst.msk [vmem:[#allocation4 + $0x460] sm:$0xff] %vm309_vm0, %v14582_v34  ;;  %v14583_v29 = vmax.f32 %v14551_v61, 0.0  ;;  %v14642_v20 = vld [vmem:[#allocation4 + $0x3cf] sm:$0xff] }
0x10b1   : > { %14612 = vst.msk [vmem:[#allocation4 + $0x430] sm:$0xff] %vm309_vm0, %v14580_v36  ;;  %v14581_v35 = vmax.f32 %v14549_v16, 0.0  ;;  %v14645_v13 = vld [vmem:[#allocation4 + $0x407] sm:$0xff] }
0x10b2   : > { %14615 = vst.msk [vmem:[#allocation4 + $0x468] sm:$0xff] %vm309_vm0, %v14583_v29  ;;  %v14643_v56 = vld [vmem:[#allocation4 + $0x3d7] sm:$0xff]  ;;  %v27713_v47 = vpack.c.bf16 %v14645_v13, %v14644_v40 }
0x10b3   : > { %14613 = vst.msk [vmem:[#allocation4 + $0x438] sm:$0xff] %vm309_vm0, %v14581_v35  ;;  %v21744_v42 = vpop.f32.mrb[112].mxu1  ;;  %v27710_v0 = vpack.c.bf16 %v14643_v56, %v14642_v20 }
0x10b4   : > { %v14554_v55 = vadd.f32 %v21744_v42, %v27657_v57  ;;  %v14433_v18 = vpop.f32.mrb[113].mxu1 }
0x10b5   : > { %v14552_v51 = vadd.f32 %v27657_v57, %v14433_v18  ;;  %v21745_v14 = vpop.f32.mrb[114].mxu1  ;;  %21770 = vmatprep.mubr.msk.bf16.mxu0 %vm309_vm0, %v27710_v0 }
0x10b6   : > { %v14586_v19 = vmax.f32 %v14554_v55, 0.0  ;;  %v14555_v24 = vadd.f32 %v21745_v14, %v27657_v57  ;;  %v14436_v17 = vpop.f32.mrb[115].mxu1  ;;  %21771 = vmatmul.mubr.msk.bf16.gmra.mrb[104].mxu0 %vm309_vm0, %v27713_v47 }
0x10b7   : > { %v14584_v45 = vmax.f32 %v14552_v51, 0.0  ;;  %v14553_v27 = vadd.f32 %v27657_v57, %v14436_v17  ;;  %v14648_v62 = vld [vmem:[#allocation4 + $0x45f] sm:$0xff] }
0x10b8   : > { %14618 = vst.msk [vmem:[#allocation4 + $0x4c0] sm:$0xff] %vm309_vm0, %v14586_v19  ;;  %v14587_v52 = vmax.f32 %v14555_v24, 0.0  ;;  %v14646_v9 = vld [vmem:[#allocation4 + $0x42f] sm:$0xff] }
0x10b9   : > { %14616 = vst.msk [vmem:[#allocation4 + $0x490] sm:$0xff] %vm309_vm0, %v14584_v45  ;;  %v14585_v46 = vmax.f32 %v14553_v27, 0.0  ;;  %v14649_v58 = vld [vmem:[#allocation4 + $0x467] sm:$0xff] }
0x10ba   : > { %14619 = vst.msk [vmem:[#allocation4 + $0x4c8] sm:$0xff] %vm309_vm0, %v14587_v52  ;;  %v14647_v25 = vld [vmem:[#allocation4 + $0x437] sm:$0xff]  ;;  %v27729_v15 = vpack.c.bf16 %v14649_v58, %v14648_v62 }
0x10bb   : > { %14617 = vst.msk [vmem:[#allocation4 + $0x498] sm:$0xff] %vm309_vm0, %v14585_v46  ;;  %v21748_v12 = vpop.f32.mrb[116].mxu1  ;;  %v27726_v43 = vpack.c.bf16 %v14647_v25, %v14646_v9 }
0x10bc   : > { %v14558_v63 = vadd.f32 %v21748_v12, %v27657_v57  ;;  %v14449_v31 = vpop.f32.mrb[117].mxu1 }
0x10bd   : > { %v14556_v44 = vadd.f32 %v27657_v57, %v14449_v31  ;;  %v21749_v54 = vpop.f32.mrb[118].mxu1  ;;  %21774 = vmatprep.mubr.msk.bf16.mxu0 %vm309_vm0, %v27726_v43 }
0x10be   : > { %v14590_v33 = vmax.f32 %v14558_v63, 0.0  ;;  %v14559_v10 = vadd.f32 %v21749_v54, %v27657_v57  ;;  %v14452_v60 = vpop.f32.mrb[119].mxu1  ;;  %21775 = vmatmul.mubr.msk.bf16.gmra.mrb[108].mxu0 %vm309_vm0, %v27729_v15 }
0x10bf   : > { %v14588_v53 = vmax.f32 %v14556_v44, 0.0  ;;  %v14557_v22 = vadd.f32 %v27657_v57, %v14452_v60  ;;  %v14652_v50 = vld [vmem:[#allocation4 + $0x4bf] sm:$0xff] }
0x10c0   : > { %14622 = vst.msk [vmem:[#allocation4 + $0x520] sm:$0xff] %vm309_vm0, %v14590_v33  ;;  %v14591_v59 = vmax.f32 %v14559_v10, 0.0  ;;  %v14650_v28 = vld [vmem:[#allocation4 + $0x48f] sm:$0xff] }
0x10c1   : > { %14620 = vst.msk [vmem:[#allocation4 + $0x4f0] sm:$0xff] %vm309_vm0, %v14588_v53  ;;  %v14589_v26 = vmax.f32 %v14557_v22, 0.0  ;;  %v14653_v39 = vld [vmem:[#allocation4 + $0x4c7] sm:$0xff] }
0x10c2   : > { %14623 = vst.msk [vmem:[#allocation4 + $0x528] sm:$0xff] %vm309_vm0, %v14591_v59  ;;  %v14651_v38 = vld [vmem:[#allocation4 + $0x497] sm:$0xff]  ;;  %v27745_v48 = vpack.c.bf16 %v14653_v39, %v14652_v50  ;;  %v14633_v22 = vld [vmem:[#allocation4 + $0x2e7] sm:$0xff] }
0x10c3   : > { %14621 = vst.msk [vmem:[#allocation4 + $0x4f8] sm:$0xff] %vm309_vm0, %v14589_v26  ;;  %v21752_v21 = vpop.f32.mrb[120].mxu1  ;;  %v27742_v23 = vpack.c.bf16 %v14651_v38, %v14650_v28 }
0x10c4   : > { %v14562_v34 = vadd.f32 %v21752_v21, %v27657_v57  ;;  %v14465_v61 = vpop.f32.mrb[121].mxu1 }
0x10c5   : > { %v14560_v36 = vadd.f32 %v27657_v57, %v14465_v61  ;;  %v21753_v16 = vpop.f32.mrb[122].mxu1  ;;  %21778 = vmatprep.mubr.msk.bf16.mxu0 %vm309_vm0, %v27742_v23  ;;  %v15317_v61 = vld [vmem:[#allocation2 + $0x370] sm:$0xff] }
0x10c6   : > { %v14594_v29 = vmax.f32 %v14562_v34, 0.0  ;;  %v14563_v35 = vadd.f32 %v21753_v16, %v27657_v57  ;;  %v14468_v13 = vpop.f32.mrb[123].mxu1  ;;  %21779 = vmatmul.mubr.msk.bf16.gmra.mrb[112].mxu0 %vm309_vm0, %v27745_v48  ;;  %v15067_v34 = vld [vmem:[#allocation2 + $0x3c8] sm:$0xff]  ;;  %v15268_v16 = vld [vmem:[#allocation4 + $0x340] sm:$0xff] }
0x10c7   : > { %v14592_v20 = vmax.f32 %v14560_v36, 0.0  ;;  %v14561_v56 = vadd.f32 %v27657_v57, %v14468_v13  ;;  %v14656_v24 = vld [vmem:[#allocation4 + $0x51f] sm:$0xff] }
0x10c8   : > { %14626 = vst.msk [vmem:[#allocation4 + $0x580] sm:$0xff] %vm309_vm0, %v14594_v29  ;;  %v14595_v42 = vmax.f32 %v14563_v35, 0.0  ;;  %v14654_v18 = vld [vmem:[#allocation4 + $0x4ef] sm:$0xff]  ;;  %v15563_v35 = vld [vmem:[#allocation2 + $0x3a8] sm:$0xff] }
0x10c9   : > { %14624 = vst.msk [vmem:[#allocation4 + $0x550] sm:$0xff] %vm309_vm0, %v14592_v20  ;;  %v14593_v40 = vmax.f32 %v14561_v56, 0.0  ;;  %v14657_v55 = vld [vmem:[#allocation4 + $0x527] sm:$0xff]  ;;  %v15271_v13 = vld [vmem:[#allocation4 + $0x378] sm:$0xff] }
0x10ca   : > { %14627 = vst.msk [vmem:[#allocation4 + $0x588] sm:$0xff] %vm309_vm0, %v14595_v42  ;;  %v14655_v51 = vld [vmem:[#allocation4 + $0x4f7] sm:$0xff]  ;;  %v27761_v27 = vpack.c.bf16 %v14657_v55, %v14656_v24  ;;  %v15762_v20 = vld [vmem:[#allocation2 + $0x3d0] sm:$0xff]  ;;  %v15273_v56 = vld [vmem:[#allocation4 + $0x3a8] sm:$0xff] }
0x10cb   : > { %14625 = vst.msk [vmem:[#allocation4 + $0x558] sm:$0xff] %vm309_vm0, %v14593_v40  ;;  %v21756_v14 = vpop.f32.mrb[124].mxu1  ;;  %v27758_v19 = vpack.c.bf16 %v14655_v51, %v14654_v18  ;;  %v15270_v42 = vld [vmem:[#allocation4 + $0x370] sm:$0xff]  ;;  %v15272_v55 = vld [vmem:[#allocation4 + $0x3a0] sm:$0xff]  ;;  %v15275_v51 = vld [vmem:[#allocation4 + $0x3d8] sm:$0xff] }
0x10cc   : > { %v14566_v17 = vadd.f32 %v21756_v14, %v27657_v57  ;;  %v14481_v45 = vpop.f32.mrb[125].mxu1  ;;  %v27843_v40 = vpack.c.bf16 %v15271_v13, %v15270_v42  ;;  %v27845_v18 = vpack.c.bf16 %v15273_v56, %v15272_v55  ;;  %v15277_v14 = vld [vmem:[#allocation4 + $0x408] sm:$0xff]  ;;  %v15966_v55 = vld [vmem:[#allocation4 + $0x371] sm:$0xff] }
0x10cd   : > { %v14564_v52 = vadd.f32 %v27657_v57, %v14481_v45  ;;  %v21757_v46 = vpop.f32.mrb[126].mxu1  ;;  %21782 = vmatprep.mubr.msk.bf16.mxu0 %vm309_vm0, %v27758_v19  ;;  %v15964_v13 = vld [vmem:[#allocation4 + $0x341] sm:$0xff] }
0x10ce   : > { %v14598_v58 = vmax.f32 %v14566_v17, 0.0  ;;  %v14567_v9 = vadd.f32 %v21757_v46, %v27657_v57  ;;  %v14484_v25 = vpop.f32.mrb[127].mxu1  ;;  %21783 = vmatmul.mubr.msk.bf16.gmra.mrb[116].mxu0 %vm309_vm0, %v27761_v27  ;;  %v15276_v17 = vld [vmem:[#allocation4 + $0x400] sm:$0xff]  ;;  %v15278_v46 = vld [vmem:[#allocation4 + $0x430] sm:$0xff] }
0x10cf   : > { %v14596_v12 = vmax.f32 %v14564_v52, 0.0  ;;  %v14565_v62 = vadd.f32 %v27657_v57, %v14484_v25  ;;  %v14660_v60 = vld [vmem:[#allocation4 + $0x57f] sm:$0xff]  ;;  %v27853_v45 = vpack.c.bf16 %v15277_v14, %v15276_v17  ;;  %v15281_v52 = vld [vmem:[#allocation4 + $0x468] sm:$0xff] }
0x10d0   : > { %14630 = vst.msk [vmem:[#allocation4 + $0x5e0] sm:$0xff] %vm309_vm0, %v14598_v58  ;;  %v14599_v63 = vmax.f32 %v14567_v9, 0.0  ;;  %v14658_v54 = vld [vmem:[#allocation4 + $0x54f] sm:$0xff]  ;;  %v14632_v57 = vld [vmem:[#allocation4 + $0x2df] sm:$0xff] }
0x10d1   : > { %14628 = vst.msk [vmem:[#allocation4 + $0x5b0] sm:$0xff] %vm309_vm0, %v14596_v12  ;;  %v14597_v31 = vmax.f32 %v14565_v62, 0.0  ;;  %v14661_v44 = vld [vmem:[#allocation4 + $0x587] sm:$0xff]  ;;  %v14668_v21 = vpack.c.bf16 %v14633_v22, %v14632_v57  ;;  %v15283_v12 = vld [vmem:[#allocation4 + $0x498] sm:$0xff] }
0x10d2   : > { %14631 = vst.msk [vmem:[#allocation4 + $0x5e8] sm:$0xff] %vm309_vm0, %v14599_v63  ;;  %v14659_v33 = vld [vmem:[#allocation4 + $0x557] sm:$0xff]  ;;  %v14682_v53 = vpack.c.bf16 %v14661_v44, %v14660_v60  ;;  %v15280_v9 = vld [vmem:[#allocation4 + $0x460] sm:$0xff]  ;;  %v15285_v62 = vld [vmem:[#allocation4 + $0x4c8] sm:$0xff] }
0x10d3   : > { %14629 = vst.msk [vmem:[#allocation4 + $0x5b8] sm:$0xff] %vm309_vm0, %v14597_v31  ;;  %v14681_v10 = vpack.c.bf16 %v14659_v33, %v14658_v54  ;;  %v27861_v25 = vpack.c.bf16 %v15281_v52, %v15280_v9  ;;  %v15282_v63 = vld [vmem:[#allocation4 + $0x490] sm:$0xff]  ;;  %v15284_v44 = vld [vmem:[#allocation4 + $0x4c0] sm:$0xff]  ;;  %v15287_v33 = vld [vmem:[#allocation4 + $0x4f8] sm:$0xff] }
0x10d4   : > { %v27867_v31 = vpack.c.bf16 %v15283_v12, %v15282_v63  ;;  %v15310_v54 = vpack.c.bf16 %v15285_v62, %v15284_v44  ;;  %v15286_v60 = vld [vmem:[#allocation4 + $0x4f0] sm:$0xff]  ;;  %v15288_v57 = vld [vmem:[#allocation4 + $0x520] sm:$0xff] }
0x10d5   : > { %21786 = vmatprep.mubr.msk.bf16.mxu0 %vm309_vm0, %v14681_v10  ;;  %v15968_v14 = vld [vmem:[#allocation4 + $0x3a1] sm:$0xff]  ;;  %v15975_v12 = vld [vmem:[#allocation4 + $0x439] sm:$0xff]  ;;  %v15977_v63 = vld [vmem:[#allocation4 + $0x469] sm:$0xff] }
0x10d6   : > { %21787 = vmatmul.mubr.msk.bf16.gmra.mrb[120].mxu0 %vm309_vm0, %v14682_v53  ;;  %v15972_v52 = vld [vmem:[#allocation4 + $0x401] sm:$0xff] }
0x10d7   : > { %v14664_v38 = vld [vmem:[#allocation4 + $0x5df] sm:$0xff] }
0x10d8   : > { %v14662_v26 = vld [vmem:[#allocation4 + $0x5af] sm:$0xff]  ;;  %v15976_v62 = vld [vmem:[#allocation4 + $0x461] sm:$0xff] }
0x10d9   : > { %v14665_v59 = vld [vmem:[#allocation4 + $0x5e7] sm:$0xff]  ;;  %v27956_v44 = vpack.c.bf16 %v15977_v63, %v15976_v62 }
0x10da   : > { %v14663_v39 = vld [vmem:[#allocation4 + $0x5b7] sm:$0xff]  ;;  %v14687_v50 = vpack.c.bf16 %v14665_v59, %v14664_v38  ;;  %v15292_v38 = vld [vmem:[#allocation4 + $0x580] sm:$0xff] }
0x10db   : > { %v14683_v28 = vpack.c.bf16 %v14663_v39, %v14662_v26  ;;  %v15291_v59 = vld [vmem:[#allocation4 + $0x558] sm:$0xff]  ;;  %v15293_v26 = vld [vmem:[#allocation4 + $0x588] sm:$0xff]  ;;  %v15290_v39 = vld [vmem:[#allocation4 + $0x550] sm:$0xff] }
0x10dd   : > { %21790 = vmatprep.mubr.msk.bf16.mxu0 %vm309_vm0, %v14683_v28 }
0x10de   : > { %21791 = vmatmul.mubr.msk.bf16.gmra.mrb[124].mxu0 %vm309_vm0, %v14687_v50 }
0x10df   : > { %21798 = vmatprep.mubr.msk.bf16.mxu0 %vm309_vm0, %v14668_v21  ;;  %v15314_v21 = vpack.c.bf16 %v15293_v26, %v15292_v38  ;;  %v15984_v26 = vld [vmem:[#allocation4 + $0x521] sm:$0xff] }
0x10e6   : > { %21799 = vmatmul.mubr.msk.bf16.vlgmr.msra.gmra.mrb[96].mxu0 %vm309_vm0, %v27675_v41  ;;  %v15318_v41 = vld [vmem:[#allocation2 + $0x378] sm:$0xff] }
0x10e7   : > { %21802 = vmatprep.mubr.msk.bf16.mxu0 %vm309_vm0, %v27678_v30  ;;  %21831 = vmatpush3.bf16.msra.mxu0 %v27689_v32  ;;  %v15562_v32 = vld [vmem:[#allocation2 + $0x3a0] sm:$0xff] }
0x10e8   : > { %21832 = vmatprep.subr.bf16.mxu0 %v15067_v34 }
0x10eb   : > { %21833 = vmatpush3.bf16.msra.mxu0 %v15067_v34  ;;  %v15294_v34 = vld [vmem:[#allocation4 + $0x5b0] sm:$0xff] }
0x10ec   : > { %21866 = vmatprep.subr.bf16.mxu0 %v15317_v61 }
0x10ee   : > { %21803 = vmatmul.mubr.msk.bf16.gmra.mrb[100].mxu0 %vm309_vm0, %v27693_v49 }
0x10ef   : > { %21806 = vmatprep.mubr.msk.bf16.mxu0 %vm309_vm0, %v27696_v37 }
0x10f6   : > { %21807 = vmatmul.mubr.msk.bf16.gmra.mrb[104].mxu0 %vm309_vm0, %v27710_v0 }
0x10f7   : > { %21810 = vmatprep.mubr.msk.bf16.mxu0 %vm309_vm0, %v27713_v47 }
0x10fe   : > { %21811 = vmatmul.mubr.msk.bf16.gmra.mrb[108].mxu0 %vm309_vm0, %v27726_v43 }
0x10ff   : > { %21814 = vmatprep.mubr.msk.bf16.mxu0 %vm309_vm0, %v27729_v15 }
0x1106   : > { %21815 = vmatmul.mubr.msk.bf16.gmra.mrb[112].mxu0 %vm309_vm0, %v27742_v23 }
0x1107   : > { %21818 = vmatprep.mubr.msk.bf16.mxu0 %vm309_vm0, %v27745_v48 }
0x110e   : > { %21819 = vmatmul.mubr.msk.bf16.gmra.mrb[116].mxu0 %vm309_vm0, %v27758_v19 }
0x110f   : > { %21822 = vmatprep.mubr.msk.bf16.mxu0 %vm309_vm0, %v27761_v27 }
0x1116   : > { %21823 = vmatmul.mubr.msk.bf16.gmra.mrb[120].mxu0 %vm309_vm0, %v14681_v10 }
0x1117   : > { %21826 = vmatprep.mubr.msk.bf16.mxu0 %vm309_vm0, %v14682_v53 }
0x111e   : > { %21827 = vmatmul.mubr.msk.bf16.gmra.mrb[124].mxu0 %vm309_vm0, %v14683_v28 }
0x111f   : > { %21834 = vmatprep.mubr.msk.bf16.mxu0 %vm309_vm0, %v27678_v30  ;;  %v14666_v30 = vld [vmem:[#allocation4 + $0x60f] sm:$0xff] }
0x1126   : > { %21835 = vmatmul.mubr.msk.bf16.vlgmr.msra.gmra.mrb[96].mxu0 %vm309_vm0, %v27693_v49  ;;  %v14667_v49 = vld [vmem:[#allocation4 + $0x617] sm:$0xff] }
0x1127   : > { %21838 = vmatprep.mubr.msk.bf16.mxu0 %vm309_vm0, %v27696_v37  ;;  %21867 = vmatpush3.bf16.msra.mxu0 %v15317_v61  ;;  %v15264_v37 = vld [vmem:[#allocation4 + $0x2e0] sm:$0xff] }
0x1128   : > { %21868 = vmatprep.subr.bf16.mxu0 %v15318_v41 }
0x112b   : > { %21869 = vmatpush3.bf16.msra.mxu0 %v15318_v41  ;;  %v15763_v41 = vld [vmem:[#allocation2 + $0x3d8] sm:$0xff] }
0x112c   : > { %21902 = vmatprep.subr.bf16.mxu0 %v15562_v32 }
0x112e   : > { %21839 = vmatmul.mubr.msk.bf16.gmra.mrb[100].mxu0 %vm309_vm0, %v27710_v0  ;;  %v15265_v0 = vld [vmem:[#allocation4 + $0x2e8] sm:$0xff] }
0x112f   : > { %21842 = vmatprep.mubr.msk.bf16.mxu0 %vm309_vm0, %v27713_v47  ;;  %v15064_v47 = vpack.c.bf16 %v14667_v49, %v14666_v30  ;;  %v15297_v30 = vld [vmem:[#allocation4 + $0x5e8] sm:$0xff]  ;;  %v15296_v49 = vld [vmem:[#allocation4 + $0x5e0] sm:$0xff] }
0x1136   : > { %21843 = vmatmul.mubr.msk.bf16.gmra.mrb[104].mxu0 %vm309_vm0, %v27726_v43  ;;  %v15300_v43 = vpack.c.bf16 %v15265_v0, %v15264_v37  ;;  %v15560_v37 = vpack.c.bf16 %v15297_v30, %v15296_v49  ;;  %v16014_v0 = vld [vmem:[#allocation2 + $0x388] sm:$0xff] }
0x1137   : > { %21846 = vmatprep.mubr.msk.bf16.mxu0 %vm309_vm0, %v27729_v15  ;;  %v15267_v15 = vld [vmem:[#allocation4 + $0x318] sm:$0xff] }
0x1138   : > { %v15990_v30 = vld [vmem:[#allocation4 + $0x5b1] sm:$0xff]  ;;  %v15991_v49 = vld [vmem:[#allocation4 + $0x5b9] sm:$0xff] }
0x113e   : > { %21847 = vmatmul.mubr.msk.bf16.gmra.mrb[108].mxu0 %vm309_vm0, %v27742_v23  ;;  %v15269_v23 = vld [vmem:[#allocation4 + $0x348] sm:$0xff] }
0x113f   : > { %21850 = vmatprep.mubr.msk.bf16.mxu0 %vm309_vm0, %v27745_v48  ;;  %v15266_v48 = vld [vmem:[#allocation4 + $0x310] sm:$0xff]  ;;  %v27837_v29 = vpack.c.bf16 %v15269_v23, %v15268_v16  ;;  %v15960_v23 = vld [vmem:[#allocation4 + $0x2e1] sm:$0xff] }
0x1140   : > { %v27835_v36 = vpack.c.bf16 %v15267_v15, %v15266_v48  ;;  %v15299_v15 = vld [vmem:[#allocation4 + $0x618] sm:$0xff]  ;;  %v15961_v48 = vld [vmem:[#allocation4 + $0x2e9] sm:$0xff] }
0x1141   : > { %v15996_v16 = vpack.c.bf16 %v15961_v48, %v15960_v23  ;;  %v15993_v23 = vld [vmem:[#allocation4 + $0x5e9] sm:$0xff] }
0x1146   : > { %21851 = vmatmul.mubr.msk.bf16.gmra.mrb[112].mxu0 %vm309_vm0, %v27758_v19  ;;  %v15274_v19 = vld [vmem:[#allocation4 + $0x3d0] sm:$0xff] }
0x1147   : > { %21854 = vmatprep.mubr.msk.bf16.mxu0 %vm309_vm0, %v27761_v27  ;;  %v27851_v24 = vpack.c.bf16 %v15275_v51, %v15274_v19  ;;  %v15279_v27 = vld [vmem:[#allocation4 + $0x438] sm:$0xff]  ;;  %v27935_v51 = vld [vmem:[#allocation2 + $0x3e0] sm:$0xff] }
0x1148   : > { %v27859_v58 = vpack.c.bf16 %v15279_v27, %v15278_v46  ;;  %v15969_v19 = vld [vmem:[#allocation4 + $0x3a9] sm:$0xff]  ;;  %v15971_v27 = vld [vmem:[#allocation4 + $0x3d9] sm:$0xff] }
0x1149   : > { %v27940_v17 = vpack.c.bf16 %v15969_v19, %v15968_v14  ;;  %v15973_v46 = vld [vmem:[#allocation4 + $0x409] sm:$0xff] }
0x114a   : > { %v27948_v9 = vpack.c.bf16 %v15973_v46, %v15972_v52 }
0x114e   : > { %21855 = vmatmul.mubr.msk.bf16.gmra.mrb[116].mxu0 %vm309_vm0, %v14681_v10  ;;  %v15289_v10 = vld [vmem:[#allocation4 + $0x528] sm:$0xff] }
0x114f   : > { %21858 = vmatprep.mubr.msk.bf16.mxu0 %vm309_vm0, %v14682_v53  ;;  %v15311_v53 = vpack.c.bf16 %v15287_v33, %v15286_v60  ;;  %v15312_v22 = vpack.c.bf16 %v15289_v10, %v15288_v57  ;;  %v15979_v33 = vld [vmem:[#allocation4 + $0x499] sm:$0xff]  ;;  %v15980_v10 = vld [vmem:[#allocation4 + $0x4c1] sm:$0xff]  ;;  %v15981_v60 = vld [vmem:[#allocation4 + $0x4c9] sm:$0xff] }
0x1150   : > { %v16006_v57 = vpack.c.bf16 %v15981_v60, %v15980_v10 }
0x1156   : > { %21859 = vmatmul.mubr.msk.bf16.gmra.mrb[120].mxu0 %vm309_vm0, %v14683_v28  ;;  %v15313_v28 = vpack.c.bf16 %v15291_v59, %v15290_v39  ;;  %v15983_v59 = vld [vmem:[#allocation4 + $0x4f9] sm:$0xff]  ;;  %v15985_v39 = vld [vmem:[#allocation4 + $0x529] sm:$0xff] }
0x1157   : > { %21862 = vmatprep.mubr.msk.bf16.mxu0 %vm309_vm0, %v14687_v50  ;;  %v15295_v50 = vld [vmem:[#allocation4 + $0x5b8] sm:$0xff]  ;;  %v16008_v38 = vpack.c.bf16 %v15985_v39, %v15984_v26 }
0x1158   : > { %v15315_v61 = vpack.c.bf16 %v15295_v50, %v15294_v34  ;;  %v15987_v50 = vld [vmem:[#allocation4 + $0x559] sm:$0xff]  ;;  %v15988_v34 = vld [vmem:[#allocation4 + $0x581] sm:$0xff] }
0x115e   : > { %21863 = vmatmul.mubr.msk.bf16.gmra.mrb[124].mxu0 %vm309_vm0, %v15064_v47  ;;  %v16258_v47 = vld [vmem:[#allocation2 + $0x3b0] sm:$0xff] }
0x115f   : > { %21870 = vmatprep.mubr.msk.bf16.mxu0 %vm309_vm0, %v15300_v43  ;;  %v15298_v43 = vld [vmem:[#allocation4 + $0x610] sm:$0xff] }
0x1166   : > { %21871 = vmatmul.mubr.msk.bf16.vlgmr.msra.gmra.mrb[96].mxu0 %vm309_vm0, %v27835_v36 }
0x1167   : > { %21874 = vmatprep.mubr.msk.bf16.mxu0 %vm309_vm0, %v27837_v29  ;;  %21903 = vmatpush3.bf16.msra.mxu0 %v15562_v32  ;;  %v16013_v32 = vld [vmem:[#allocation2 + $0x380] sm:$0xff] }
0x1168   : > { %21904 = vmatprep.subr.bf16.mxu0 %v15563_v35 }
0x116b   : > { %21905 = vmatpush3.bf16.msra.mxu0 %v15563_v35  ;;  %v15963_v35 = vld [vmem:[#allocation4 + $0x319] sm:$0xff] }
0x116c   : > { %21938 = vmatprep.subr.bf16.mxu0 %v15762_v20 }
0x116e   : > { %21875 = vmatmul.mubr.msk.bf16.gmra.mrb[100].mxu0 %vm309_vm0, %v27843_v40 }
0x116f   : > { %21878 = vmatprep.mubr.msk.bf16.mxu0 %vm309_vm0, %v27845_v18 }
0x1176   : > { %21879 = vmatmul.mubr.msk.bf16.gmra.mrb[104].mxu0 %vm309_vm0, %v27851_v24 }
0x1177   : > { %21882 = vmatprep.mubr.msk.bf16.mxu0 %vm309_vm0, %v27853_v45 }
0x117e   : > { %21883 = vmatmul.mubr.msk.bf16.gmra.mrb[108].mxu0 %vm309_vm0, %v27859_v58 }
0x117f   : > { %21886 = vmatprep.mubr.msk.bf16.mxu0 %vm309_vm0, %v27861_v25 }
0x1186   : > { %21887 = vmatmul.mubr.msk.bf16.gmra.mrb[112].mxu0 %vm309_vm0, %v27867_v31 }
0x1187   : > { %21890 = vmatprep.mubr.msk.bf16.mxu0 %vm309_vm0, %v15310_v54 }
0x118e   : > { %21891 = vmatmul.mubr.msk.bf16.gmra.mrb[116].mxu0 %vm309_vm0, %v15311_v53 }
0x118f   : > { %21894 = vmatprep.mubr.msk.bf16.mxu0 %vm309_vm0, %v15312_v22 }
0x1196   : > { %21895 = vmatmul.mubr.msk.bf16.gmra.mrb[120].mxu0 %vm309_vm0, %v15313_v28 }
0x1197   : > { %21898 = vmatprep.mubr.msk.bf16.mxu0 %vm309_vm0, %v15314_v21 }
0x119e   : > { %21899 = vmatmul.mubr.msk.bf16.gmra.mrb[124].mxu0 %vm309_vm0, %v15315_v61 }
0x119f   : > { %21906 = vmatprep.mubr.msk.bf16.mxu0 %vm309_vm0, %v27835_v36  ;;  %v15760_v36 = vpack.c.bf16 %v15299_v15, %v15298_v43  ;;  %v16459_v43 = vld [vmem:[#allocation2 + $0x3e8] sm:$0xff]  ;;  %v15992_v15 = vld [vmem:[#allocation4 + $0x5e1] sm:$0xff] }
0x11a0   : > { %v16256_v48 = vpack.c.bf16 %v15993_v23, %v15992_v15 }
0x11a6   : > { %21907 = vmatmul.mubr.msk.bf16.vlgmr.msra.gmra.mrb[96].mxu0 %vm309_vm0, %v27837_v29 }
0x11a7   : > { %21910 = vmatprep.mubr.msk.bf16.mxu0 %vm309_vm0, %v27843_v40  ;;  %21939 = vmatpush3.bf16.msra.mxu0 %v15762_v20  ;;  %v15965_v20 = vld [vmem:[#allocation4 + $0x349] sm:$0xff] }
0x11a8   : > { %21940 = vmatprep.subr.bf16.mxu0 %v15763_v41  ;;  %v27929_v42 = vpack.c.bf16 %v15965_v20, %v15964_v13 }
0x11ab   : > { %21941 = vmatpush3.bf16.msra.mxu0 %v15763_v41 }
0x11ac   : > { %21974 = vmatprep.subr.bf16.mxu0 %v16013_v32 }
0x11ae   : > { %21911 = vmatmul.mubr.msk.bf16.gmra.mrb[100].mxu0 %vm309_vm0, %v27845_v18 }
0x11af   : > { %21914 = vmatprep.mubr.msk.bf16.mxu0 %vm309_vm0, %v27851_v24 }
0x11b6   : > { %21915 = vmatmul.mubr.msk.bf16.gmra.mrb[104].mxu0 %vm309_vm0, %v27853_v45 }
0x11b7   : > { %21918 = vmatprep.mubr.msk.bf16.mxu0 %vm309_vm0, %v27859_v58 }
0x11be   : > { %21919 = vmatmul.mubr.msk.bf16.gmra.mrb[108].mxu0 %vm309_vm0, %v27861_v25 }
0x11bf   : > { %21922 = vmatprep.mubr.msk.bf16.mxu0 %vm309_vm0, %v27867_v31 }
0x11c6   : > { %21923 = vmatmul.mubr.msk.bf16.gmra.mrb[112].mxu0 %vm309_vm0, %v15310_v54 }
0x11c7   : > { %21926 = vmatprep.mubr.msk.bf16.mxu0 %vm309_vm0, %v15311_v53 }
0x11ce   : > { %21927 = vmatmul.mubr.msk.bf16.gmra.mrb[116].mxu0 %vm309_vm0, %v15312_v22 }
0x11cf   : > { %21930 = vmatprep.mubr.msk.bf16.mxu0 %vm309_vm0, %v15313_v28 }
0x11d6   : > { %21931 = vmatmul.mubr.msk.bf16.gmra.mrb[120].mxu0 %vm309_vm0, %v15314_v21 }
0x11d7   : > { %21934 = vmatprep.mubr.msk.bf16.mxu0 %vm309_vm0, %v15315_v61 }
0x11de   : > { %21935 = vmatmul.mubr.msk.bf16.gmra.mrb[124].mxu0 %vm309_vm0, %v15560_v37 }
0x11df   : > { %21942 = vmatprep.mubr.msk.bf16.mxu0 %vm309_vm0, %v27837_v29  ;;  %v15962_v29 = vld [vmem:[#allocation4 + $0x311] sm:$0xff] }
0x11e0   : > { %v27927_v56 = vpack.c.bf16 %v15963_v35, %v15962_v29  ;;  %v28017_v35 = vld [vmem:[#allocation8 + $0x6] ss:$0 sm:$0xff] }
0x11e6   : > { %21943 = vmatmul.mubr.msk.bf16.vlgmr.msra.gmra.mrb[96].mxu0 %vm309_vm0, %v27843_v40  ;;  %v16259_v40 = vld [vmem:[#allocation2 + $0x3b8] sm:$0xff] }
0x11e7   : > { %21946 = vmatprep.mubr.msk.bf16.mxu0 %vm309_vm0, %v27845_v18  ;;  %21975 = vmatpush3.bf16.msra.mxu0 %v16013_v32  ;;  %v15967_v18 = vld [vmem:[#allocation4 + $0x379] sm:$0xff] }
0x11e8   : > { %21976 = vmatprep.subr.bf16.mxu0 %v16014_v0 }
0x11eb   : > { %21977 = vmatpush3.bf16.msra.mxu0 %v16014_v0  ;;  %v24003_v0 = vld [vmem:[#allocation10] sm:$0xff]  }
0x11ec   : > { %22010 = vmatprep.subr.bf16.mxu0 %v16258_v47  ;;  %22082 = vmatprep.subr.bf16.mxu1 %v24003_v0 }
0x11ed   : > { %22083 = vmatpush3.bf16.msra.mxu1 %v24003_v0 }
0x11ee   : > { %21947 = vmatmul.mubr.msk.bf16.gmra.mrb[100].mxu0 %vm309_vm0, %v27851_v24  ;;  %v27937_v24 = vpack.c.bf16 %v15967_v18, %v15966_v55 }
0x11ef   : > { %21950 = vmatprep.mubr.msk.bf16.mxu0 %vm309_vm0, %v27853_v45  ;;  %v15970_v45 = vld [vmem:[#allocation4 + $0x3d1] sm:$0xff] }
0x11f6   : > { %21951 = vmatmul.mubr.msk.bf16.gmra.mrb[104].mxu0 %vm309_vm0, %v27859_v58  ;;  %v27946_v58 = vpack.c.bf16 %v15971_v27, %v15970_v45 }
0x11f7   : > { %21954 = vmatprep.mubr.msk.bf16.mxu0 %vm309_vm0, %v27861_v25  ;;  %v15974_v25 = vld [vmem:[#allocation4 + $0x431] sm:$0xff] }
0x11fe   : > { %21955 = vmatmul.mubr.msk.bf16.gmra.mrb[108].mxu0 %vm309_vm0, %v27867_v31  ;;  %v27954_v31 = vpack.c.bf16 %v15975_v12, %v15974_v25 }
0x11ff   : > { %21958 = vmatprep.mubr.msk.bf16.mxu0 %vm309_vm0, %v15310_v54  ;;  %v15978_v54 = vld [vmem:[#allocation4 + $0x491] sm:$0xff] }
0x1206   : > { %21959 = vmatmul.mubr.msk.bf16.gmra.mrb[112].mxu0 %vm309_vm0, %v15311_v53  ;;  %v16005_v53 = vpack.c.bf16 %v15979_v33, %v15978_v54 }
0x1207   : > { %21962 = vmatprep.mubr.msk.bf16.mxu0 %vm309_vm0, %v15312_v22  ;;  %v15982_v22 = vld [vmem:[#allocation4 + $0x4f1] sm:$0xff] }
0x120e   : > { %21963 = vmatmul.mubr.msk.bf16.gmra.mrb[116].mxu0 %vm309_vm0, %v15313_v28  ;;  %v16007_v28 = vpack.c.bf16 %v15983_v59, %v15982_v22 }
0x120f   : > { %21966 = vmatprep.mubr.msk.bf16.mxu0 %vm309_vm0, %v15314_v21  ;;  %v15986_v21 = vld [vmem:[#allocation4 + $0x551] sm:$0xff] }
0x1210   : > { %v16009_v41 = vpack.c.bf16 %v15987_v50, %v15986_v21 }
0x1216   : > { %21967 = vmatmul.mubr.msk.bf16.gmra.mrb[120].mxu0 %vm309_vm0, %v15315_v61  ;;  %v15989_v61 = vld [vmem:[#allocation4 + $0x589] sm:$0xff] }
0x1217   : > { %21970 = vmatprep.mubr.msk.bf16.mxu0 %vm309_vm0, %v15560_v37  ;;  %v16010_v32 = vpack.c.bf16 %v15989_v61, %v15988_v34  ;;  %v16011_v37 = vpack.c.bf16 %v15991_v49, %v15990_v30 }
0x121e   : > { %21971 = vmatmul.mubr.msk.bf16.gmra.mrb[124].mxu0 %vm309_vm0, %v15760_v36  ;;  %v15994_v36 = vld [vmem:[#allocation4 + $0x611] sm:$0xff] }
0x121f   : > { %21978 = vmatprep.mubr.msk.bf16.mxu0 %vm309_vm0, %v15996_v16  ;;  %v15995_v16 = vld [vmem:[#allocation4 + $0x619] sm:$0xff] }
0x1220   : > { %v16456_v29 = vpack.c.bf16 %v15995_v16, %v15994_v36 }
0x1226   : > { %21979 = vmatmul.mubr.msk.bf16.vlgmr.msra.gmra.mrb[96].mxu0 %vm309_vm0, %v27927_v56 }
0x1227   : > { %21982 = vmatprep.mubr.msk.bf16.mxu0 %vm309_vm0, %v27929_v42  ;;  %22011 = vmatpush3.bf16.msra.mxu0 %v16258_v47  ;;  %v24004_v47 = vld [vmem:[#allocation10 + $0x8] sm:$0xff]  }
0x1228   : > { %22012 = vmatprep.subr.bf16.mxu0 %v16259_v40  ;;  %22084 = vmatprep.subr.bf16.mxu1 %v24004_v47 }
0x1229   : > { %22085 = vmatpush3.bf16.msra.mxu1 %v24004_v47 }
0x122b   : > { %22013 = vmatpush3.bf16.msra.mxu0 %v16259_v40 }
0x122c   : > { %22046 = vmatprep.subr.bf16.mxu0 %v27935_v51 }
0x122e   : > { %21983 = vmatmul.mubr.msk.bf16.gmra.mrb[100].mxu0 %vm309_vm0, %v27937_v24 }
0x122f   : > { %21986 = vmatprep.mubr.msk.bf16.mxu0 %vm309_vm0, %v27940_v17 }
0x1236   : > { %21987 = vmatmul.mubr.msk.bf16.gmra.mrb[104].mxu0 %vm309_vm0, %v27946_v58 }
0x1237   : > { %21990 = vmatprep.mubr.msk.bf16.mxu0 %vm309_vm0, %v27948_v9 }
0x123e   : > { %21991 = vmatmul.mubr.msk.bf16.gmra.mrb[108].mxu0 %vm309_vm0, %v27954_v31 }
0x123f   : > { %21994 = vmatprep.mubr.msk.bf16.mxu0 %vm309_vm0, %v27956_v44 }
0x1246   : > { %21995 = vmatmul.mubr.msk.bf16.gmra.mrb[112].mxu0 %vm309_vm0, %v16005_v53 }
0x1247   : > { %21998 = vmatprep.mubr.msk.bf16.mxu0 %vm309_vm0, %v16006_v57 }
0x124e   : > { %21999 = vmatmul.mubr.msk.bf16.gmra.mrb[116].mxu0 %vm309_vm0, %v16007_v28 }
0x124f   : > { %22002 = vmatprep.mubr.msk.bf16.mxu0 %vm309_vm0, %v16008_v38 }
0x1256   : > { %22003 = vmatmul.mubr.msk.bf16.gmra.mrb[120].mxu0 %vm309_vm0, %v16009_v41 }
0x1257   : > { %22006 = vmatprep.mubr.msk.bf16.mxu0 %vm309_vm0, %v16010_v32 }
0x125e   : > { %22007 = vmatmul.mubr.msk.bf16.gmra.mrb[124].mxu0 %vm309_vm0, %v16011_v37 }
0x125f   : > { %22014 = vmatprep.mubr.msk.bf16.mxu0 %vm309_vm0, %v27927_v56 }
0x1266   : > { %22015 = vmatmul.mubr.msk.bf16.vlgmr.msra.gmra.mrb[96].mxu0 %vm309_vm0, %v27929_v42 }
0x1267   : > { %22018 = vmatprep.mubr.msk.bf16.mxu0 %vm309_vm0, %v27937_v24  ;;  %22047 = vmatpush3.bf16.msra.mxu0 %v27935_v51 }
0x1268   : > { %22048 = vmatprep.subr.bf16.mxu0 %v16459_v43 }
0x126b   : > { %22049 = vmatpush3.bf16.msra.mxu0 %v16459_v43 }
0x126e   : > { %22019 = vmatmul.mubr.msk.bf16.gmra.mrb[100].mxu0 %vm309_vm0, %v27940_v17 }
0x126f   : > { %22022 = vmatprep.mubr.msk.bf16.mxu0 %vm309_vm0, %v27946_v58 }
0x1276   : > { %22023 = vmatmul.mubr.msk.bf16.gmra.mrb[104].mxu0 %vm309_vm0, %v27948_v9 }
0x1277   : > { %22026 = vmatprep.mubr.msk.bf16.mxu0 %vm309_vm0, %v27954_v31 }
0x127e   : > { %22027 = vmatmul.mubr.msk.bf16.gmra.mrb[108].mxu0 %vm309_vm0, %v27956_v44 }
0x127f   : > { %22030 = vmatprep.mubr.msk.bf16.mxu0 %vm309_vm0, %v16005_v53 }
0x1286   : > { %22031 = vmatmul.mubr.msk.bf16.gmra.mrb[112].mxu0 %vm309_vm0, %v16006_v57 }
0x1287   : > { %22034 = vmatprep.mubr.msk.bf16.mxu0 %vm309_vm0, %v16007_v28 }
0x128e   : > { %22035 = vmatmul.mubr.msk.bf16.gmra.mrb[116].mxu0 %vm309_vm0, %v16008_v38 }
0x128f   : > { %22038 = vmatprep.mubr.msk.bf16.mxu0 %vm309_vm0, %v16009_v41 }
0x1296   : > { %22039 = vmatmul.mubr.msk.bf16.gmra.mrb[120].mxu0 %vm309_vm0, %v16010_v32 }
0x1297   : > { %22042 = vmatprep.mubr.msk.bf16.mxu0 %vm309_vm0, %v16011_v37 }
0x129e   : > { %22043 = vmatmul.mubr.msk.bf16.gmra.mrb[124].mxu0 %vm309_vm0, %v16256_v48 }
0x129f   : > { %22050 = vmatprep.mubr.msk.bf16.mxu0 %vm309_vm0, %v27929_v42 }
0x12a6   : > { %22051 = vmatmul.mubr.msk.bf16.vlgmr.msra.gmra.mrb[96].mxu0 %vm309_vm0, %v27937_v24 }
0x12a7   : > { %22054 = vmatprep.mubr.msk.bf16.mxu0 %vm309_vm0, %v27940_v17 }
0x12ae   : > { %22055 = vmatmul.mubr.msk.bf16.gmra.mrb[100].mxu0 %vm309_vm0, %v27946_v58 }
0x12af   : > { %22058 = vmatprep.mubr.msk.bf16.mxu0 %vm309_vm0, %v27948_v9 }
0x12b6   : > { %22059 = vmatmul.mubr.msk.bf16.gmra.mrb[104].mxu0 %vm309_vm0, %v27954_v31 }
0x12b7   : > { %22062 = vmatprep.mubr.msk.bf16.mxu0 %vm309_vm0, %v27956_v44 }
0x12be   : > { %22063 = vmatmul.mubr.msk.bf16.gmra.mrb[108].mxu0 %vm309_vm0, %v16005_v53 }
0x12bf   : > { %22066 = vmatprep.mubr.msk.bf16.mxu0 %vm309_vm0, %v16006_v57 }
0x12c6   : > { %22067 = vmatmul.mubr.msk.bf16.gmra.mrb[112].mxu0 %vm309_vm0, %v16007_v28 }
0x12c7   : > { %22070 = vmatprep.mubr.msk.bf16.mxu0 %vm309_vm0, %v16008_v38 }
0x12ce   : > { %22071 = vmatmul.mubr.msk.bf16.gmra.mrb[116].mxu0 %vm309_vm0, %v16009_v41 }
0x12cf   : > { %22074 = vmatprep.mubr.msk.bf16.mxu0 %vm309_vm0, %v16010_v32 }
0x12d6   : > { %22075 = vmatmul.mubr.msk.bf16.gmra.mrb[120].mxu0 %vm309_vm0, %v16011_v37 }
0x12d7   : > { %22078 = vmatprep.mubr.msk.bf16.mxu0 %vm309_vm0, %v16256_v48 }
0x12de   : > { %22079 = vmatmul.mubr.msk.bf16.gmra.mrb[124].mxu0 %vm309_vm0, %v16456_v29 }
0x1379   : > { %v22052_v13 = vpop.f32.mrb[96].mxu0 }
0x137a   : > { %v16666_v20 = vadd.f32 %v22052_v13, %v28017_v35  ;;  %v16497_v56 = vpop.f32.mrb[97].mxu0 }
0x137b   : > { %v16664_v42 = vadd.f32 %v28017_v35, %v16497_v56  ;;  %v22053_v40 = vpop.f32.mrb[98].mxu0 }
0x137c   : > { %v16667_v55 = vadd.f32 %v22053_v40, %v28017_v35  ;;  %v16500_v18 = vpop.f32.mrb[99].mxu0  ;;  %v16698_v14 = vmax.f32 %v16666_v20, 0.0 }
0x137d   : > { %v16665_v51 = vadd.f32 %v28017_v35, %v16500_v18  ;;  %v16696_v24 = vmax.f32 %v16664_v42, 0.0 }
0x137e   : > { %v16699_v19 = vmax.f32 %v16667_v55, 0.0 }
0x137f   : > { %v16697_v17 = vmax.f32 %v16665_v51, 0.0 }
0x1380   : > { %v16729_v45 = vpack.c.bf16 %v16699_v19, %v16698_v14 }
0x1381   : > { %v16728_v27 = vpack.c.bf16 %v16697_v17, %v16696_v24  ;;  %v22056_v52 = vpop.f32.mrb[100].mxu0 }
0x1382   : > { %v16670_v46 = vadd.f32 %v22056_v52, %v28017_v35  ;;  %v16513_v58 = vpop.f32.mrb[101].mxu0 }
0x1383   : > { %v16668_v9 = vadd.f32 %v28017_v35, %v16513_v58  ;;  %v22057_v25 = vpop.f32.mrb[102].mxu0  ;;  %22086 = vmatprep.mubr.msk.bf16.mxu1 %vm309_vm0, %v16728_v27 }
0x1384   : > { %v16671_v12 = vadd.f32 %v22057_v25, %v28017_v35  ;;  %v16516_v62 = vpop.f32.mrb[103].mxu0  ;;  %22087 = vmatmul.mubr.msk.bf16.vlgmr.msra.gmra.mrb[128].mxu1 %vm309_vm0, %v16729_v45  ;;  %v16702_v31 = vmax.f32 %v16670_v46, 0.0 }
0x1385   : > { %v16669_v63 = vadd.f32 %v28017_v35, %v16516_v62  ;;  %v16700_v54 = vmax.f32 %v16668_v9, 0.0 }
0x1386   : > { %v16703_v44 = vmax.f32 %v16671_v12, 0.0 }
0x1387   : > { %v16701_v33 = vmax.f32 %v16669_v63, 0.0 }
0x1388   : > { %v16731_v10 = vpack.c.bf16 %v16703_v44, %v16702_v31 }
0x1389   : > { %v16730_v60 = vpack.c.bf16 %v16701_v33, %v16700_v54  ;;  %v22060_v53 = vpop.f32.mrb[104].mxu0 }
0x138a   : > { %v16674_v57 = vadd.f32 %v22060_v53, %v28017_v35  ;;  %v16529_v22 = vpop.f32.mrb[105].mxu0 }
0x138b   : > { %v16672_v59 = vadd.f32 %v28017_v35, %v16529_v22  ;;  %v22061_v26 = vpop.f32.mrb[106].mxu0  ;;  %22090 = vmatprep.mubr.msk.bf16.mxu1 %vm309_vm0, %v16730_v60 }
0x138c   : > { %v16675_v39 = vadd.f32 %v22061_v26, %v28017_v35  ;;  %v16532_v28 = vpop.f32.mrb[107].mxu0  ;;  %22091 = vmatmul.mubr.msk.bf16.gmra.mrb[132].mxu1 %vm309_vm0, %v16731_v10  ;;  %v16706_v21 = vmax.f32 %v16674_v57, 0.0 }
0x138d   : > { %v16673_v38 = vadd.f32 %v28017_v35, %v16532_v28  ;;  %v16704_v34 = vmax.f32 %v16672_v59, 0.0 }
0x138e   : > { %v16707_v50 = vmax.f32 %v16675_v39, 0.0 }
0x138f   : > { %v16705_v61 = vmax.f32 %v16673_v38, 0.0 }
0x1390   : > { %v16733_v41 = vpack.c.bf16 %v16707_v50, %v16706_v21 }
0x1391   : > { %v16732_v32 = vpack.c.bf16 %v16705_v61, %v16704_v34  ;;  %v22064_v30 = vpop.f32.mrb[108].mxu0 }
0x1392   : > { %v16678_v49 = vadd.f32 %v22064_v30, %v28017_v35  ;;  %v16545_v37 = vpop.f32.mrb[109].mxu0 }
0x1393   : > { %v16676_v0 = vadd.f32 %v28017_v35, %v16545_v37  ;;  %v22065_v47 = vpop.f32.mrb[110].mxu0  ;;  %22094 = vmatprep.mubr.msk.bf16.mxu1 %vm309_vm0, %v16732_v32 }
0x1394   : > { %v16679_v43 = vadd.f32 %v22065_v47, %v28017_v35  ;;  %v16548_v15 = vpop.f32.mrb[111].mxu0  ;;  %22095 = vmatmul.mubr.msk.bf16.gmra.mrb[136].mxu1 %vm309_vm0, %v16733_v41  ;;  %v16710_v48 = vmax.f32 %v16678_v49, 0.0 }
0x1395   : > { %v16677_v23 = vadd.f32 %v28017_v35, %v16548_v15  ;;  %v16708_v16 = vmax.f32 %v16676_v0, 0.0 }
0x1396   : > { %v16711_v36 = vmax.f32 %v16679_v43, 0.0 }
0x1397   : > { %v16709_v29 = vmax.f32 %v16677_v23, 0.0 }
0x1398   : > { %v16735_v13 = vpack.c.bf16 %v16711_v36, %v16710_v48 }
0x1399   : > { %v16734_v20 = vpack.c.bf16 %v16709_v29, %v16708_v16  ;;  %v22068_v56 = vpop.f32.mrb[112].mxu0 }
0x139a   : > { %v16682_v42 = vadd.f32 %v22068_v56, %v28017_v35  ;;  %v16561_v40 = vpop.f32.mrb[113].mxu0 }
0x139b   : > { %v16680_v55 = vadd.f32 %v28017_v35, %v16561_v40  ;;  %v22069_v18 = vpop.f32.mrb[114].mxu0  ;;  %22098 = vmatprep.mubr.msk.bf16.mxu1 %vm309_vm0, %v16734_v20  ;;  %v28067_v40 = vld [vmem:[#allocation11] ss:$0 sm:$0xff] }
0x139c   : > { %v16683_v51 = vadd.f32 %v22069_v18, %v28017_v35  ;;  %v16564_v14 = vpop.f32.mrb[115].mxu0  ;;  %22099 = vmatmul.mubr.msk.bf16.gmra.mrb[140].mxu1 %vm309_vm0, %v16735_v13  ;;  %v16714_v24 = vmax.f32 %v16682_v42, 0.0 }
0x139d   : > { %v16681_v19 = vadd.f32 %v28017_v35, %v16564_v14  ;;  %v16712_v45 = vmax.f32 %v16680_v55, 0.0 }
0x139e   : > { %v16715_v17 = vmax.f32 %v16683_v51, 0.0 }
0x139f   : > { %v16713_v27 = vmax.f32 %v16681_v19, 0.0 }
0x13a0   : > { %v16737_v52 = vpack.c.bf16 %v16715_v17, %v16714_v24 }
0x13a1   : > { %v16736_v46 = vpack.c.bf16 %v16713_v27, %v16712_v45  ;;  %v22072_v58 = vpop.f32.mrb[116].mxu0 }
0x13a2   : > { %v16686_v9 = vadd.f32 %v22072_v58, %v28017_v35  ;;  %v16577_v25 = vpop.f32.mrb[117].mxu0 }
0x13a3   : > { %v16684_v12 = vadd.f32 %v28017_v35, %v16577_v25  ;;  %v22073_v62 = vpop.f32.mrb[118].mxu0  ;;  %22102 = vmatprep.mubr.msk.bf16.mxu1 %vm309_vm0, %v16736_v46 }
0x13a4   : > { %v16687_v63 = vadd.f32 %v22073_v62, %v28017_v35  ;;  %v16580_v31 = vpop.f32.mrb[119].mxu0  ;;  %22103 = vmatmul.mubr.msk.bf16.gmra.mrb[144].mxu1 %vm309_vm0, %v16737_v52  ;;  %v16718_v54 = vmax.f32 %v16686_v9, 0.0 }
0x13a5   : > { %v16685_v44 = vadd.f32 %v28017_v35, %v16580_v31  ;;  %v16716_v10 = vmax.f32 %v16684_v12, 0.0 }
0x13a6   : > { %v16719_v33 = vmax.f32 %v16687_v63, 0.0 }
0x13a7   : > { %v16717_v60 = vmax.f32 %v16685_v44, 0.0 }
0x13a8   : > { %v16739_v53 = vpack.c.bf16 %v16719_v33, %v16718_v54 }
0x13a9   : > { %v16738_v57 = vpack.c.bf16 %v16717_v60, %v16716_v10  ;;  %v22076_v22 = vpop.f32.mrb[120].mxu0 }
0x13aa   : > { %v16690_v59 = vadd.f32 %v22076_v22, %v28017_v35  ;;  %v16593_v26 = vpop.f32.mrb[121].mxu0 }
0x13ab   : > { %v16688_v39 = vadd.f32 %v28017_v35, %v16593_v26  ;;  %v22077_v28 = vpop.f32.mrb[122].mxu0  ;;  %22106 = vmatprep.mubr.msk.bf16.mxu1 %vm309_vm0, %v16738_v57 }
0x13ac   : > { %v16691_v38 = vadd.f32 %v22077_v28, %v28017_v35  ;;  %v16596_v21 = vpop.f32.mrb[123].mxu0  ;;  %22107 = vmatmul.mubr.msk.bf16.gmra.mrb[148].mxu1 %vm309_vm0, %v16739_v53  ;;  %v16722_v34 = vmax.f32 %v16690_v59, 0.0 }
0x13ad   : > { %v16689_v50 = vadd.f32 %v28017_v35, %v16596_v21  ;;  %v16720_v41 = vmax.f32 %v16688_v39, 0.0 }
0x13ae   : > { %v16723_v61 = vmax.f32 %v16691_v38, 0.0 }
0x13af   : > { %v16721_v32 = vmax.f32 %v16689_v50, 0.0 }
0x13b0   : > { %v16741_v30 = vpack.c.bf16 %v16723_v61, %v16722_v34 }
0x13b1   : > { %v16740_v49 = vpack.c.bf16 %v16721_v32, %v16720_v41  ;;  %v22080_v37 = vpop.f32.mrb[124].mxu0 }
0x13b2   : > { %v16694_v0 = vadd.f32 %v22080_v37, %v28017_v35  ;;  %v16609_v47 = vpop.f32.mrb[125].mxu0 }
0x13b3   : > { %v16692_v43 = vadd.f32 %v28017_v35, %v16609_v47  ;;  %v22081_v15 = vpop.f32.mrb[126].mxu0  ;;  %22110 = vmatprep.mubr.msk.bf16.mxu1 %vm309_vm0, %v16740_v49 }
0x13b4   : > { %v16695_v23 = vadd.f32 %v22081_v15, %v28017_v35  ;;  %v16612_v48 = vpop.f32.mrb[127].mxu0  ;;  %22111 = vmatmul.mubr.msk.bf16.gmra.mrb[152].mxu1 %vm309_vm0, %v16741_v30  ;;  %v16726_v16 = vmax.f32 %v16694_v0, 0.0 }
0x13b5   : > { %v16693_v36 = vadd.f32 %v28017_v35, %v16612_v48  ;;  %v16724_v13 = vmax.f32 %v16692_v43, 0.0 }
0x13b6   : > { %v16727_v29 = vmax.f32 %v16695_v23, 0.0 }
0x13b7   : > { %v16725_v20 = vmax.f32 %v16693_v36, 0.0 }
0x13b8   : > { %v16743_v56 = vpack.c.bf16 %v16727_v29, %v16726_v16 }
0x13b9   : > { %v16742_v42 = vpack.c.bf16 %v16725_v20, %v16724_v13 }
0x13bb   : > { %22114 = vmatprep.mubr.msk.bf16.mxu1 %vm309_vm0, %v16742_v42 }
0x13bc   : > { %22115 = vmatmul.mubr.msk.bf16.gmra.mrb[156].mxu1 %vm309_vm0, %v16743_v56 }
0x1457   : > { %v22088_v55 = vpop.f32.mrb[128].mxu1 }
0x1458   : > { %v16858_v18 = vadd.f32 %v22088_v55, %v28067_v40  ;;  %v16849_v51 = vpop.f32.mrb[129].mxu1 }
0x1459   : > { %v16850_v14 = vadd.f32 %v28067_v40, %v16849_v51  ;;  %v22089_v19 = vpop.f32.mrb[130].mxu1 }
0x145a   : > { %v18620_v35 = vmul.f32 -1.442695, %v16858_v18  ;;  %v16861_v24 = vadd.f32 %v22089_v19, %v28067_v40  ;;  %17268 = vrot.lane.b32.xlu1 %v16858_v18, %s24391_s16  ;;  %v16852_v17 = vpop.f32.mrb[131].mxu1 }
0x145b   : > { %v18618_v45 = vmul.f32 -1.442695, %v16850_v14  ;;  %v16853_v27 = vadd.f32 %v28067_v40, %v16852_v17  ;;  %17264 = vrot.lane.b32.xlu0 %v16850_v14, %s24391_s16 }
0x145c   : > { %24005 = vpow2.f32 %v18620_v35  ;;  %v18621_v52 = vmul.f32 -1.442695, %v16861_v24 }
0x145d   : > { %24007 = vpow2.f32 %v18618_v45  ;;  %v18619_v46 = vmul.f32 -1.442695, %v16853_v27 }
0x145e   : > { %24009 = vpow2.f32 %v18621_v52  ;;  %17270 = vrot.lane.b32.xlu1 %v16861_v24, %s24391_s16 }
0x145f   : > { %24011 = vpow2.f32 %v18619_v46  ;;  %17266 = vrot.lane.b32.xlu0 %v16853_v27, %s24391_s16  ;;  %v22092_v58 = vpop.f32.mrb[132].mxu1 }
0x1460   : > { %v16874_v9 = vadd.f32 %v22092_v58, %v28067_v40  ;;  %v16865_v25 = vpop.f32.mrb[133].mxu1 }
0x1461   : > { %v16866_v12 = vadd.f32 %v28067_v40, %v16865_v25  ;;  %v22093_v62 = vpop.f32.mrb[134].mxu1 }
0x1462   : > { %v18624_v63 = vmul.f32 -1.442695, %v16874_v9  ;;  %v16877_v31 = vadd.f32 %v22093_v62, %v28067_v40  ;;  %v16868_v44 = vpop.f32.mrb[135].mxu1 }
0x1463   : > { %v18622_v54 = vmul.f32 -1.442695, %v16866_v12  ;;  %v16869_v33 = vadd.f32 %v28067_v40, %v16868_v44  ;;  %17276 = vrot.lane.b32.xlu0 %v16874_v9, %s24391_s16 }
0x1464   : > { %24013 = vpow2.f32 %v18624_v63  ;;  %v18625_v10 = vmul.f32 -1.442695, %v16877_v31  ;;  %17278 = vrot.lane.b32.xlu1 %v16877_v31, %s24391_s16 }
0x1465   : > { %24015 = vpow2.f32 %v18622_v54  ;;  %v18623_v60 = vmul.f32 -1.442695, %v16869_v33 }
0x1466   : > { %v24006_v53 = vpop.eup %24005  ;;  %24017 = vpow2.f32 %v18625_v10 }
0x1467   : > { %v24008_v57 = vpop.eup %24007  ;;  %v17074_v22 = vadd.f32 1.0, %v24006_v53  ;;  %24019 = vpow2.f32 %v18623_v60  ;;  %17272 = vrot.lane.b32.xlu0 %v16866_v12, %s24391_s16  ;;  %v22096_v59 = vpop.f32.mrb[136].mxu1 }
0x1468   : > { %v24010_v26 = vpop.eup %24009  ;;  %v17072_v39 = vadd.f32 1.0, %v24008_v57  ;;  %v16890_v28 = vadd.f32 %v22096_v59, %v28067_v40  ;;  %17274 = vrot.lane.b32.xlu1 %v16869_v33, %s24391_s16  ;;  %v16881_v38 = vpop.f32.mrb[137].mxu1 }
0x1469   : > { %v24012_v21 = vpop.eup %24011  ;;  %24021 = vrcp.f32 %v17074_v22  ;;  %v17075_v50 = vadd.f32 1.0, %v24010_v26  ;;  %v16882_v34 = vadd.f32 %v28067_v40, %v16881_v38  ;;  %v22097_v61 = vpop.f32.mrb[138].mxu1 }
0x146a   : > { %24023 = vrcp.f32 %v17072_v39  ;;  %v17073_v41 = vadd.f32 1.0, %v24012_v21  ;;  %v18628_v32 = vmul.f32 -1.442695, %v16890_v28  ;;  %v16893_v30 = vadd.f32 %v22097_v61, %v28067_v40  ;;  %v16884_v49 = vpop.f32.mrb[139].mxu1 }
0x146b   : > { %24025 = vrcp.f32 %v17075_v50  ;;  %v18626_v37 = vmul.f32 -1.442695, %v16882_v34  ;;  %v16885_v0 = vadd.f32 %v28067_v40, %v16884_v49  ;;  %17284 = vrot.lane.b32.xlu0 %v16890_v28, %s24391_s16 }
0x146c   : > { %24027 = vrcp.f32 %v17073_v41  ;;  %v18629_v47 = vmul.f32 -1.442695, %v16893_v30  ;;  %17286 = vrot.lane.b32.xlu1 %v16893_v30, %s24391_s16 }
0x146d   : > { %24029 = vpow2.f32 %v18628_v32  ;;  %v18627_v43 = vmul.f32 -1.442695, %v16885_v0 }
0x146e   : > { %v24014_v15 = vpop.eup %24013  ;;  %24031 = vpow2.f32 %v18626_v37 }
0x146f   : > { %v24016_v23 = vpop.eup %24015  ;;  %v17078_v48 = vadd.f32 1.0, %v24014_v15  ;;  %24033 = vpow2.f32 %v18629_v47  ;;  %17280 = vrot.lane.b32.xlu0 %v16882_v34, %s24391_s16  ;;  %v22100_v36 = vpop.f32.mrb[140].mxu1 }
0x1470   : > { %v24018_v16 = vpop.eup %24017  ;;  %v17076_v29 = vadd.f32 1.0, %v24016_v23  ;;  %24035 = vpow2.f32 %v18627_v43  ;;  %v16906_v13 = vadd.f32 %v22100_v36, %v28067_v40  ;;  %17282 = vrot.lane.b32.xlu1 %v16885_v0, %s24391_s16  ;;  %v16897_v20 = vpop.f32.mrb[141].mxu1 }
0x1471   : > { %v24020_v56 = vpop.eup %24019  ;;  %24037 = vrcp.f32 %v17078_v48  ;;  %v17079_v42 = vadd.f32 1.0, %v24018_v16  ;;  %v16898_v55 = vadd.f32 %v28067_v40, %v16897_v20  ;;  %v22101_v18 = vpop.f32.mrb[142].mxu1 }
0x1472   : > { %24039 = vrcp.f32 %v17076_v29  ;;  %v17077_v51 = vadd.f32 1.0, %v24020_v56  ;;  %v18632_v14 = vmul.f32 -1.442695, %v16906_v13  ;;  %v16909_v19 = vadd.f32 %v22101_v18, %v28067_v40  ;;  %v16900_v35 = vpop.f32.mrb[143].mxu1 }
0x1473   : > { %v24022_v24 = vpop.eup %24021  ;;  %24041 = vrcp.f32 %v17079_v42  ;;  %v18630_v17 = vmul.f32 -1.442695, %v16898_v55  ;;  %v16901_v45 = vadd.f32 %v28067_v40, %v16900_v35  ;;  %17292 = vrot.lane.b32.xlu0 %v16906_v13, %s24391_s16 }
0x1474   : > { %v24024_v27 = vpop.eup %24023  ;;  %v17170_v52 = vmul.f32 %v24022_v24, %v25174_v3  ;;  %24043 = vrcp.f32 %v17077_v51  ;;  %v18633_v46 = vmul.f32 -1.442695, %v16909_v19  ;;  %17294 = vrot.lane.b32.xlu1 %v16909_v19, %s24391_s16 }
0x1475   : > { %v24026_v58 = vpop.eup %24025  ;;  %v17168_v9 = vmul.f32 %v24024_v27, %v25168_v1  ;;  %24045 = vpow2.f32 %v18632_v14  ;;  %v18631_v25 = vmul.f32 -1.442695, %v16901_v45 }
0x1476   : > { %v24028_v12 = vpop.eup %24027  ;;  %17202 = vst.msk [vmem:[%s25328_s14 + $0x10] sm:$0xff] %vm309_vm0, %v17170_v52  ;;  %v17171_v62 = vmul.f32 %v24026_v58, %v25183_v4  ;;  %24047 = vpow2.f32 %v18630_v17 }
0x1477   : > { %v24030_v63 = vpop.eup %24029  ;;  %17200 = vst.msk [vmem:[%s25328_s14] sm:$0xff] %vm309_vm0, %v17168_v9  ;;  %v17169_v3 = vmul.f32 %v24028_v12, %v25171_v2  ;;  %24049 = vpow2.f32 %v18633_v46  ;;  %17288 = vrot.lane.b32.xlu0 %v16898_v55, %s24391_s16  ;;  %v22104_v31 = vpop.f32.mrb[144].mxu1  ;;  %v28459_v46 = vld [vmem:[#allocation28_spill] sm:$0xff] }
0x1478   : > { %v24032_v44 = vpop.eup %24031  ;;  %17203 = vst.msk [vmem:[%s25328_s14 + $0x18] sm:$0xff] %vm309_vm0, %v17171_v62  ;;  %v17082_v1 = vadd.f32 1.0, %v24030_v63  ;;  %24051 = vpow2.f32 %v18631_v25  ;;  %v16922_v54 = vadd.f32 %v22104_v31, %v28067_v40  ;;  %17290 = vrot.lane.b32.xlu1 %v16901_v45, %s24391_s16  ;;  %v16913_v4 = vpop.f32.mrb[145].mxu1  ;;  %v28458_v45 = vld [vmem:[#allocation26_spill] sm:$0xff] }
0x1479   : > { %v24034_v33 = vpop.eup %24033  ;;  %17201 = vst.msk [vmem:[%s25328_s14 + $0x8] sm:$0xff] %vm309_vm0, %v17169_v3  ;;  %v17080_v10 = vadd.f32 1.0, %v24032_v44  ;;  %v16914_v2 = vadd.f32 %v28067_v40, %v16913_v4  ;;  %v22105_v60 = vpop.f32.mrb[146].mxu1 }
0x147a   : > { %v24036_v53 = vpop.eup %24035  ;;  %24053 = vrcp.f32 %v17082_v1  ;;  %v17083_v57 = vadd.f32 1.0, %v24034_v33  ;;  %v18636_v22 = vmul.f32 -1.442695, %v16922_v54  ;;  %v16925_v59 = vadd.f32 %v22105_v60, %v28067_v40  ;;  %v16916_v26 = vpop.f32.mrb[147].mxu1 }
0x147b   : > { %v24038_v39 = vpop.eup %24037  ;;  %24055 = vrcp.f32 %v17080_v10  ;;  %v17081_v28 = vadd.f32 1.0, %v24036_v53  ;;  %v18634_v38 = vmul.f32 -1.442695, %v16914_v2  ;;  %v16917_v21 = vadd.f32 %v28067_v40, %v16916_v26  ;;  %17300 = vrot.lane.b32.xlu0 %v16922_v54, %s24391_s16 }
0x147c   : > { %v24040_v50 = vpop.eup %24039  ;;  %v17174_v34 = vmul.f32 %v24038_v39, %v25198_v7  ;;  %24057 = vrcp.f32 %v17083_v57  ;;  %v18637_v61 = vmul.f32 -1.442695, %v16925_v59  ;;  %17302 = vrot.lane.b32.xlu1 %v16925_v59, %s24391_s16 }
0x147d   : > { %v24042_v41 = vpop.eup %24041  ;;  %v17172_v32 = vmul.f32 %v24040_v50, %v25186_v5  ;;  %24059 = vrcp.f32 %v17081_v28  ;;  %v18635_v30 = vmul.f32 -1.442695, %v16917_v21  ;;  %v28461_v28 = vld [vmem:[#allocation31_spill] sm:$0xff] }
0x147e   : > { %v24044_v49 = vpop.eup %24043  ;;  %17206 = vst.msk [vmem:[%s25328_s14 + $0x30] sm:$0xff] %vm309_vm0, %v17174_v34  ;;  %v17175_v37 = vmul.f32 %v24042_v41, %v25201_v8  ;;  %24061 = vpow2.f32 %v18636_v22  ;;  %v28462_v34 = vld [vmem:[#allocation29_spill] sm:$0xff] }
0x147f   : > { %v24046_v0 = vpop.eup %24045  ;;  %17204 = vst.msk [vmem:[%s25328_s14 + $0x20] sm:$0xff] %vm309_vm0, %v17172_v32  ;;  %v17173_v7 = vmul.f32 %v24044_v49, %v25189_v6  ;;  %24063 = vpow2.f32 %v18634_v38  ;;  %17296 = vrot.lane.b32.xlu0 %v16914_v2, %s24391_s16  ;;  %v22108_v47 = vpop.f32.mrb[148].mxu1 }
0x1480   : > { %v24048_v43 = vpop.eup %24047  ;;  %17207 = vst.msk [vmem:[%s25328_s14 + $0x38] sm:$0xff] %vm309_vm0, %v17175_v37  ;;  %v17086_v5 = vadd.f32 1.0, %v24046_v0  ;;  %24065 = vpow2.f32 %v18637_v61  ;;  %v16938_v15 = vadd.f32 %v22108_v47, %v28067_v40  ;;  %17298 = vrot.lane.b32.xlu1 %v16917_v21, %s24391_s16  ;;  %v16929_v8 = vpop.f32.mrb[149].mxu1 }
0x1481   : > { %v24050_v23 = vpop.eup %24049  ;;  %17205 = vst.msk [vmem:[%s25328_s14 + $0x28] sm:$0xff] %vm309_vm0, %v17173_v7  ;;  %v17084_v48 = vadd.f32 1.0, %v24048_v43  ;;  %24067 = vpow2.f32 %v18635_v30  ;;  %v16930_v6 = vadd.f32 %v28067_v40, %v16929_v8  ;;  %v22109_v36 = vpop.f32.mrb[150].mxu1  ;;  %v28463_v30 = vld [vmem:[#allocation32_spill] sm:$0xff]  ;;  %v28464_v7 = vld [vmem:[#allocation30_spill] sm:$0xff] }
0x1482   : > { %v24052_v16 = vpop.eup %24051  ;;  %24069 = vrcp.f32 %v17086_v5  ;;  %v17087_v29 = vadd.f32 1.0, %v24050_v23  ;;  %v18640_v13 = vmul.f32 -1.442695, %v16938_v15  ;;  %v16941_v20 = vadd.f32 %v22109_v36, %v28067_v40  ;;  %v16932_v56 = vpop.f32.mrb[151].mxu1 }
0x1483   : > { %24071 = vrcp.f32 %v17084_v48  ;;  %v17085_v42 = vadd.f32 1.0, %v24052_v16  ;;  %v18638_v55 = vmul.f32 -1.442695, %v16930_v6  ;;  %v16933_v18 = vadd.f32 %v28067_v40, %v16932_v56  ;;  %17308 = vrot.lane.b32.xlu0 %v16938_v15, %s24391_s16 }
0x1484   : > { %v24054_v51 = vpop.eup %24053  ;;  %24073 = vrcp.f32 %v17087_v29  ;;  %v18641_v14 = vmul.f32 -1.442695, %v16941_v20  ;;  %17310 = vrot.lane.b32.xlu1 %v16941_v20, %s24391_s16 }
0x1485   : > { %v24056_v19 = vpop.eup %24055  ;;  %v17178_v35 = vmul.f32 %v24054_v51, %v25216_v11  ;;  %24075 = vrcp.f32 %v17085_v42  ;;  %v18639_v24 = vmul.f32 -1.442695, %v16933_v18  ;;  %v28460_v11 = vld [vmem:[#allocation27_spill] sm:$0xff] }
0x1486   : > { %v24058_v17 = vpop.eup %24057  ;;  %v17176_v27 = vmul.f32 %v24056_v19, %v28458_v45  ;;  %24077 = vpow2.f32 %v18640_v13 }
0x1487   : > { %v24060_v52 = vpop.eup %24059  ;;  %17210 = vst.msk [vmem:[%s25328_s14 + $0x50] sm:$0xff] %vm309_vm0, %v17178_v35  ;;  %v17179_v58 = vmul.f32 %v24058_v17, %v28459_v46  ;;  %24079 = vpow2.f32 %v18638_v55  ;;  %17304 = vrot.lane.b32.xlu0 %v16930_v6, %s24391_s16  ;;  %v22112_v9 = vpop.f32.mrb[152].mxu1  ;;  %v28465_v35 = vld [vmem:[#allocation35_spill] sm:$0xff]  ;;  %v28467_v46 = vld [vmem:[#allocation36_spill] sm:$0xff] }
0x1488   : > { %v24062_v25 = vpop.eup %24061  ;;  %17208 = vst.msk [vmem:[%s25328_s14 + $0x40] sm:$0xff] %vm309_vm0, %v17176_v27  ;;  %v17177_v12 = vmul.f32 %v24060_v52, %v28460_v11  ;;  %24081 = vpow2.f32 %v18641_v14  ;;  %v16954_v62 = vadd.f32 %v22112_v9, %v28067_v40  ;;  %17306 = vrot.lane.b32.xlu1 %v16933_v18, %s24391_s16  ;;  %v16945_v63 = vpop.f32.mrb[153].mxu1 }
0x1489   : > { %v24064_v3 = vpop.eup %24063  ;;  %17211 = vst.msk [vmem:[%s25328_s14 + $0x58] sm:$0xff] %vm309_vm0, %v17179_v58  ;;  %v17090_v31 = vadd.f32 1.0, %v24062_v25  ;;  %24083 = vpow2.f32 %v18639_v24  ;;  %v16946_v44 = vadd.f32 %v28067_v40, %v16945_v63  ;;  %v22113_v1 = vpop.f32.mrb[154].mxu1  ;;  %v28468_v25 = vld [vmem:[#allocation34_spill] sm:$0xff] }
0x148a   : > { %v24066_v54 = vpop.eup %24065  ;;  %17209 = vst.msk [vmem:[%s25328_s14 + $0x48] sm:$0xff] %vm309_vm0, %v17177_v12  ;;  %v17088_v4 = vadd.f32 1.0, %v24064_v3  ;;  %v16957_v33 = vadd.f32 %v22113_v1, %v28067_v40  ;;  %v16948_v10 = vpop.f32.mrb[155].mxu1  ;;  %v18644_v53 = vmul.f32 -1.442695, %v16954_v62 }
0x148b   : > { %v24068_v2 = vpop.eup %24067  ;;  %24085 = vrcp.f32 %v17090_v31  ;;  %v17091_v60 = vadd.f32 1.0, %v24066_v54  ;;  %v16949_v57 = vadd.f32 %v28067_v40, %v16948_v10  ;;  %17316 = vrot.lane.b32.xlu0 %v16954_v62, %s24391_s16  ;;  %v18642_v26 = vmul.f32 -1.442695, %v16946_v44 }
0x148c   : > { %v24070_v22 = vpop.eup %24069  ;;  %24087 = vrcp.f32 %v17088_v4  ;;  %v17089_v59 = vadd.f32 1.0, %v24068_v2  ;;  %17318 = vrot.lane.b32.xlu1 %v16957_v33, %s24391_s16  ;;  %v18645_v21 = vmul.f32 -1.442695, %v16957_v33  ;;  %v28469_v33 = vld [vmem:[#allocation39_spill] sm:$0xff] }
0x148d   : > { %v24072_v39 = vpop.eup %24071  ;;  %v17182_v38 = vmul.f32 %v24070_v22, %v28461_v28  ;;  %24089 = vrcp.f32 %v17091_v60  ;;  %v18643_v41 = vmul.f32 -1.442695, %v16949_v57  ;;  %v28470_v60 = vld [vmem:[#allocation37_spill] sm:$0xff]  ;;  %v28471_v22 = vld [vmem:[#allocation40_spill] sm:$0xff] }
0x148e   : > { %v24074_v50 = vpop.eup %24073  ;;  %v17180_v61 = vmul.f32 %v24072_v39, %v28462_v34  ;;  %24091 = vrcp.f32 %v17089_v59  ;;  %v28472_v39 = vld [vmem:[#allocation38_spill] sm:$0xff] }
0x148f   : > { %v24076_v32 = vpop.eup %24075  ;;  %17214 = vst.msk [vmem:[%s25328_s14 + $0x70] sm:$0xff] %vm309_vm0, %v17182_v38  ;;  %v17183_v49 = vmul.f32 %v24074_v50, %v28463_v30  ;;  %24093 = vpow2.f32 %v18644_v53  ;;  %17312 = vrot.lane.b32.xlu0 %v16946_v44, %s24391_s16  ;;  %v22116_v37 = vpop.f32.mrb[156].mxu1 }
0x1490   : > { %v24078_v0 = vpop.eup %24077  ;;  %17212 = vst.msk [vmem:[%s25328_s14 + $0x60] sm:$0xff] %vm309_vm0, %v17180_v61  ;;  %v17181_v47 = vmul.f32 %v24076_v32, %v28464_v7  ;;  %24095 = vpow2.f32 %v18642_v26  ;;  %v16970_v43 = vadd.f32 %v22116_v37, %v28067_v40  ;;  %17314 = vrot.lane.b32.xlu1 %v16949_v57, %s24391_s16  ;;  %v16961_v5 = vpop.f32.mrb[157].mxu1  ;;  %v28473_v37 = vld [vmem:[#allocation43_spill] sm:$0xff] }
0x1491   : > { %v24080_v15 = vpop.eup %24079  ;;  %17215 = vst.msk [vmem:[%s25328_s14 + $0x78] sm:$0xff] %vm309_vm0, %v17183_v49  ;;  %v17094_v8 = vadd.f32 1.0, %v24078_v0  ;;  %24097 = vpow2.f32 %v18645_v21  ;;  %v16962_v23 = vadd.f32 %v28067_v40, %v16961_v5  ;;  %v22117_v48 = vpop.f32.mrb[158].mxu1 }
0x1492   : > { %v24082_v6 = vpop.eup %24081  ;;  %17213 = vst.msk [vmem:[%s25328_s14 + $0x68] sm:$0xff] %vm309_vm0, %v17181_v47  ;;  %v17092_v36 = vadd.f32 1.0, %v24080_v15  ;;  %24099 = vpow2.f32 %v18643_v41  ;;  %v16973_v16 = vadd.f32 %v22117_v48, %v28067_v40  ;;  %v16964_v29 = vpop.f32.mrb[159].mxu1  ;;  %v18648_v56 = vmul.f32 -1.442695, %v16970_v43  ;;  %v28474_v47 = vld [vmem:[#allocation41_spill] sm:$0xff] }
0x1493   : > { %v24084_v13 = vpop.eup %24083  ;;  %24101 = vrcp.f32 %v17094_v8  ;;  %v17095_v20 = vadd.f32 1.0, %v24082_v6  ;;  %v16965_v42 = vadd.f32 %v28067_v40, %v16964_v29  ;;  %17320 = vrot.lane.b32.xlu0 %v16962_v23, %s24391_s16  ;;  %v18646_v18 = vmul.f32 -1.442695, %v16962_v23  ;;  %v28466_v40 = vld [vmem:[#allocation33_spill] sm:$0xff]  ;;  %v28475_v15 = vld [vmem:[#allocation44_spill] sm:$0xff]  ;;  %v28476_v23 = vld [vmem:[#allocation42_spill] sm:$0xff] }
0x1494   : > { %24103 = vrcp.f32 %v17092_v36  ;;  %v17093_v55 = vadd.f32 1.0, %v24084_v13  ;;  %v18649_v14 = vmul.f32 -1.442695, %v16973_v16 }
0x1495   : > { %v24086_v51 = vpop.eup %24085  ;;  %24105 = vrcp.f32 %v17095_v20  ;;  %17322 = vrot.lane.b32.xlu1 %v16965_v42, %s24391_s16  ;;  %v18647_v17 = vmul.f32 -1.442695, %v16965_v42  ;;  %v28478_v20 = vld [vmem:[#allocation45_spill] sm:$0xff] }
0x1496   : > { %v24088_v19 = vpop.eup %24087  ;;  %v17186_v24 = vmul.f32 %v24086_v51, %v28465_v35  ;;  %24107 = vrcp.f32 %v17093_v55  ;;  %v28479_v55 = vld [vmem:[#allocation48_spill] sm:$0xff]  ;;  %v28480_v51 = vld [vmem:[#allocation46_spill] sm:$0xff] }
0x1497   : > { %v24090_v45 = vpop.eup %24089  ;;  %v17184_v27 = vmul.f32 %v24088_v19, %v28466_v40  ;;  %24109 = vpow2.f32 %v18648_v56  ;;  %17324 = vrot.lane.b32.xlu0 %v16970_v43, %s24391_s16 }
0x1498   : > { %v24092_v52 = vpop.eup %24091  ;;  %17218 = vst.msk [vmem:[%s25328_s14 + $0x90] sm:$0xff] %vm309_vm0, %v17186_v24  ;;  %v17187_v58 = vmul.f32 %v24090_v45, %v28467_v46  ;;  %24111 = vpow2.f32 %v18646_v18 }
0x1499   : > { %v24094_v9 = vpop.eup %24093  ;;  %17216 = vst.msk [vmem:[%s25328_s14 + $0x80] sm:$0xff] %vm309_vm0, %v17184_v27  ;;  %v17185_v11 = vmul.f32 %v24092_v52, %v28468_v25  ;;  %24113 = vpow2.f32 %v18649_v14  ;;  %17326 = vrot.lane.b32.xlu1 %v16973_v16, %s24391_s16  ;;  %v28477_v16 = vld [vmem:[#allocation47_spill] sm:$0xff] }
0x149a   : > { %v24096_v12 = vpop.eup %24095  ;;  %17219 = vst.msk [vmem:[%s25328_s14 + $0x98] sm:$0xff] %vm309_vm0, %v17187_v58  ;;  %v17098_v62 = vadd.f32 1.0, %v24094_v9  ;;  %24115 = vpow2.f32 %v18647_v17 }
0x149b   : > { %v24098_v63 = vpop.eup %24097  ;;  %17217 = vst.msk [vmem:[%s25328_s14 + $0x88] sm:$0xff] %vm309_vm0, %v17185_v11  ;;  %v17096_v3 = vadd.f32 1.0, %v24096_v12 }
0x149c   : > { %v24100_v31 = vpop.eup %24099  ;;  %24117 = vrcp.f32 %v17098_v62  ;;  %v17099_v44 = vadd.f32 1.0, %v24098_v63 }
0x149d   : > { %v24102_v1 = vpop.eup %24101  ;;  %24119 = vrcp.f32 %v17096_v3  ;;  %v17097_v54 = vadd.f32 1.0, %v24100_v31 }
0x149e   : > { %v24104_v4 = vpop.eup %24103  ;;  %v17190_v10 = vmul.f32 %v24102_v1, %v28469_v33  ;;  %24121 = vrcp.f32 %v17099_v44 }
0x149f   : > { %v24106_v2 = vpop.eup %24105  ;;  %v17188_v53 = vmul.f32 %v24104_v4, %v28470_v60  ;;  %24123 = vrcp.f32 %v17097_v54 }
0x14a0   : > { %v24108_v57 = vpop.eup %24107  ;;  %17222 = vst.msk [vmem:[%s25328_s14 + $0xb0] sm:$0xff] %vm309_vm0, %v17190_v10  ;;  %v17191_v59 = vmul.f32 %v24106_v2, %v28471_v22 }
0x14a1   : > { %v24110_v26 = vpop.eup %24109  ;;  %17220 = vst.msk [vmem:[%s25328_s14 + $0xa0] sm:$0xff] %vm309_vm0, %v17188_v53  ;;  %v17189_v28 = vmul.f32 %v24108_v57, %v28472_v39 }
0x14a2   : > { %v24112_v38 = vpop.eup %24111  ;;  %17223 = vst.msk [vmem:[%s25328_s14 + $0xb8] sm:$0xff] %vm309_vm0, %v17191_v59  ;;  %v17102_v21 = vadd.f32 1.0, %v24110_v26 }
0x14a3   : > { %v24114_v50 = vpop.eup %24113  ;;  %17221 = vst.msk [vmem:[%s25328_s14 + $0xa8] sm:$0xff] %vm309_vm0, %v17189_v28  ;;  %v17100_v34 = vadd.f32 1.0, %v24112_v38 }
0x14a4   : > { %v24116_v61 = vpop.eup %24115  ;;  %24125 = vrcp.f32 %v17102_v21  ;;  %v17103_v41 = vadd.f32 1.0, %v24114_v50 }
0x14a5   : > { %24127 = vrcp.f32 %v17100_v34  ;;  %v17101_v32 = vadd.f32 1.0, %v24116_v61 }
0x14a6   : > { %v24118_v30 = vpop.eup %24117  ;;  %24129 = vrcp.f32 %v17103_v41 }
0x14a7   : > { %v24120_v49 = vpop.eup %24119  ;;  %v17194_v0 = vmul.f32 %v24118_v30, %v28473_v37  ;;  %24131 = vrcp.f32 %v17101_v32 }
0x14a8   : > { %v24122_v7 = vpop.eup %24121  ;;  %v17192_v43 = vmul.f32 %v24120_v49, %v28474_v47 }
0x14a9   : > { %v24124_v5 = vpop.eup %24123  ;;  %17226 = vst.msk [vmem:[%s25328_s14 + $0xd0] sm:$0xff] %vm309_vm0, %v17194_v0  ;;  %v17195_v8 = vmul.f32 %v24122_v7, %v28475_v15 }
0x14aa   : > { %17224 = vst.msk [vmem:[%s25328_s14 + $0xc0] sm:$0xff] %vm309_vm0, %v17192_v43  ;;  %v17193_v48 = vmul.f32 %v24124_v5, %v28476_v23 }
0x14ab   : > { %17227 = vst.msk [vmem:[%s25328_s14 + $0xd8] sm:$0xff] %vm309_vm0, %v17195_v8 }
0x14ac   : > { %17225 = vst.msk [vmem:[%s25328_s14 + $0xc8] sm:$0xff] %vm309_vm0, %v17193_v48 }
0x14ae   : > { %v24126_v6 = vpop.eup %24125 }
0x14af   : > { %v24128_v36 = vpop.eup %24127  ;;  %v17198_v29 = vmul.f32 %v24126_v6, %v28477_v16 }
0x14b0   : > { %v24130_v13 = vpop.eup %24129  ;;  %v17196_v56 = vmul.f32 %v24128_v36, %v28478_v20 }
0x14b1   : > { %v24132_v42 = vpop.eup %24131  ;;  %17230 = vst.msk [vmem:[%s25328_s14 + $0xf0] sm:$0xff] %vm309_vm0, %v17198_v29  ;;  %v17199_v18 = vmul.f32 %v24130_v13, %v28479_v55 }
0x14b2   : > { %17228 = vst.msk [vmem:[%s25328_s14 + $0xe0] sm:$0xff] %vm309_vm0, %v17196_v56  ;;  %v17197_v14 = vmul.f32 %v24132_v42, %v28480_v51 }
0x14b3   : > { %17231 = vst.msk [vmem:[%s25328_s14 + $0xf8] sm:$0xff] %vm309_vm0, %v17199_v18 }
0x14b4   : > { %17229 = vst.msk [vmem:[%s25328_s14 + $0xe8] sm:$0xff] %vm309_vm0, %v17197_v14 }
0x14b5   : > { %24282 = shalt.err (!%p24279_p3)
}
0x14b6   : > { %s24283_s26 = scalar_lea.hbm %s28229_s10, 4096  ;;  %s24287_s16 = scalar_lea.hbm %s28391_s5, 8192 }
0x14b7   : > { %p24284_p7 = scmp.ne.s32.totalorder %s28229_s10, %s24283_s26  ;;  %p24288_p1 = scmp.lt.u32.totalorder %s28229_s10, %s28391_s5 }
0x14b8   : > { %p24289_p4 = scmp.lt.u32.totalorder %s24287_s16, %s24283_s26  ;;  %p24291_p0 = scmp.lt.u32.totalorder %s24283_s26, %s28229_s10 }
0x14b9   : > { %p24285_p12 = pnand %p24284_p7, %p24574_p5 }
0x14ba   : > { %p24290_p9 = por %p24289_p4, %p24288_p1 }
0x14bb   : > { %p24286_p10 = pneg %p24285_p12 }
0x14bc   : > { %p24292_p11 = por %p24291_p0, %p24290_p9 }
0x14be   : > { %p24293_p8 = pnand %p24292_p11, %p24286_p10 }
0x14c0   : > { %24296 = shalt.err (!%p24293_p8)
}
0x14c1   : > { %s24393_s11 = smov 128   ;;  %s24394_s17 = smov 8   ;;  %vm17360_vm1 = vcmask 64512  }
0x14c2   : > { %23924 = dma.vmem_to_hbm [thread:$0]  (%p24574_p5), %s28231_s29, 4096, %s28229_s10, %s17394_s20, %s24393_s11, %s24393_s11, %s24394_s17  }
0x14c3   : > { %s17428_s29 = sshll.u32 %s25331_s27, 4  ;;  %s28335_s18 = scalar_lea.hbm %s28392_s6, %s18660_s15  ;;  %s28337_s29 = int_to_ptr.vmem [resolvable:$true] %s17428_s29 }
0x14c4   : > { %s17399_s19 = scalar_lea.sflag [#allocation15], %s24622_s2  ;;  %s24297_s26 = scalar_lea.vmem %s28337_s29, 4096 }
0x14c5   : > { %p24298_p13 = scmp.ne.s32.totalorder %s28337_s29, %s24297_s26  ;;  %s24395_s25 = smov [#allocation14]  }
0x14c6   : > { %s24301_s30 = sshll.u32 %s24395_s25, 4  ;;  %s24302_s30 = int_to_ptr.vmem [resolvable:$false] %s24301_s30 }
0x14c7   : > { %p24299_p2 = pnand %p24298_p13, %p24574_p5  ;;  %s24303_s14 = scalar_lea.vmem %s24302_s30, 8192 }
0x14c8   : > { %p24304_p3 = scmp.lt.s32.totalorder %s28337_s29, %s24302_s30  ;;  %p24305_p7 = scmp.lt.s32.totalorder %s24303_s14, %s24297_s26 }
0x14c9   : > { %p24300_p6 = pneg %p24299_p2 }
0x14ca   : > { %p24306_p12 = por %p24305_p7, %p24304_p3 }
0x14cc   : > { %v17269_v19 = vpop.permute.xlu1 %17268  ;;  %p24307_p10 = pnand %p24306_p12, %p24300_p6 }
0x14cd   : > { %17363 = vst.msk [vmem:[%s25331_s27 + $0x10] sm:$0xff] %vm17360_vm1, %v17269_v19  ;;  %v17265_v35 = vpop.permute.xlu0 %17264 }
0x14ce   : > { %17361 = vst.msk [vmem:[%s25331_s27] sm:$0xff] %vm17360_vm1, %v17265_v35 }
0x14d0   : > { %v17271_v24 = vpop.permute.xlu1 %17270 }
0x14d1   : > { %17364 = vst.msk [vmem:[%s25331_s27 + $0x18] sm:$0xff] %vm17360_vm1, %v17271_v24  ;;  %v17267_v17 = vpop.permute.xlu0 %17266 }
0x14d2   : > { %17362 = vst.msk [vmem:[%s25331_s27 + $0x8] sm:$0xff] %vm17360_vm1, %v17267_v17 }
0x14d5   : > { %v17277_v45 = vpop.permute.xlu0 %17276 }
0x14d6   : > { %17367 = vst.msk [vmem:[%s25331_s27 + $0x30] sm:$0xff] %vm17360_vm1, %v17277_v45  ;;  %v17279_v40 = vpop.permute.xlu1 %17278 }
0x14d7   : > { %17368 = vst.msk [vmem:[%s25331_s27 + $0x38] sm:$0xff] %vm17360_vm1, %v17279_v40 }
0x14d9   : > { %v17273_v27 = vpop.permute.xlu0 %17272 }
0x14da   : > { %17365 = vst.msk [vmem:[%s25331_s27 + $0x20] sm:$0xff] %vm17360_vm1, %v17273_v27  ;;  %v17275_v52 = vpop.permute.xlu1 %17274 }
0x14db   : > { %17366 = vst.msk [vmem:[%s25331_s27 + $0x28] sm:$0xff] %vm17360_vm1, %v17275_v52 }
0x14dd   : > { %v17285_v46 = vpop.permute.xlu0 %17284 }
0x14de   : > { %17371 = vst.msk [vmem:[%s25331_s27 + $0x50] sm:$0xff] %vm17360_vm1, %v17285_v46  ;;  %v17287_v58 = vpop.permute.xlu1 %17286 }
0x14df   : > { %17372 = vst.msk [vmem:[%s25331_s27 + $0x58] sm:$0xff] %vm17360_vm1, %v17287_v58 }
0x14e1   : > { %v17281_v9 = vpop.permute.xlu0 %17280 }
0x14e2   : > { %17369 = vst.msk [vmem:[%s25331_s27 + $0x40] sm:$0xff] %vm17360_vm1, %v17281_v9  ;;  %v17283_v25 = vpop.permute.xlu1 %17282 }
0x14e3   : > { %17370 = vst.msk [vmem:[%s25331_s27 + $0x48] sm:$0xff] %vm17360_vm1, %v17283_v25 }
0x14e5   : > { %v17293_v11 = vpop.permute.xlu0 %17292 }
0x14e6   : > { %17375 = vst.msk [vmem:[%s25331_s27 + $0x70] sm:$0xff] %vm17360_vm1, %v17293_v11  ;;  %v17295_v12 = vpop.permute.xlu1 %17294 }
0x14e7   : > { %17376 = vst.msk [vmem:[%s25331_s27 + $0x78] sm:$0xff] %vm17360_vm1, %v17295_v12 }
0x14e9   : > { %v17289_v62 = vpop.permute.xlu0 %17288 }
0x14ea   : > { %17373 = vst.msk [vmem:[%s25331_s27 + $0x60] sm:$0xff] %vm17360_vm1, %v17289_v62  ;;  %v17291_v63 = vpop.permute.xlu1 %17290 }
0x14eb   : > { %17374 = vst.msk [vmem:[%s25331_s27 + $0x68] sm:$0xff] %vm17360_vm1, %v17291_v63 }
0x14ed   : > { %v17301_v3 = vpop.permute.xlu0 %17300 }
0x14ee   : > { %17379 = vst.msk [vmem:[%s25331_s27 + $0x90] sm:$0xff] %vm17360_vm1, %v17301_v3  ;;  %v17303_v31 = vpop.permute.xlu1 %17302 }
0x14ef   : > { %17380 = vst.msk [vmem:[%s25331_s27 + $0x98] sm:$0xff] %vm17360_vm1, %v17303_v31 }
0x14f1   : > { %v17297_v44 = vpop.permute.xlu0 %17296 }
0x14f2   : > { %17377 = vst.msk [vmem:[%s25331_s27 + $0x80] sm:$0xff] %vm17360_vm1, %v17297_v44  ;;  %v17299_v1 = vpop.permute.xlu1 %17298 }
0x14f3   : > { %17378 = vst.msk [vmem:[%s25331_s27 + $0x88] sm:$0xff] %vm17360_vm1, %v17299_v1 }
0x14f5   : > { %v17309_v54 = vpop.permute.xlu0 %17308 }
0x14f6   : > { %17383 = vst.msk [vmem:[%s25331_s27 + $0xb0] sm:$0xff] %vm17360_vm1, %v17309_v54  ;;  %v17311_v4 = vpop.permute.xlu1 %17310 }
0x14f7   : > { %17384 = vst.msk [vmem:[%s25331_s27 + $0xb8] sm:$0xff] %vm17360_vm1, %v17311_v4 }
0x14f9   : > { %v17305_v33 = vpop.permute.xlu0 %17304 }
0x14fa   : > { %17381 = vst.msk [vmem:[%s25331_s27 + $0xa0] sm:$0xff] %vm17360_vm1, %v17305_v33  ;;  %v17307_v10 = vpop.permute.xlu1 %17306 }
0x14fb   : > { %17382 = vst.msk [vmem:[%s25331_s27 + $0xa8] sm:$0xff] %vm17360_vm1, %v17307_v10 }
0x14fd   : > { %v17317_v2 = vpop.permute.xlu0 %17316 }
0x14fe   : > { %17387 = vst.msk [vmem:[%s25331_s27 + $0xd0] sm:$0xff] %vm17360_vm1, %v17317_v2  ;;  %v17319_v60 = vpop.permute.xlu1 %17318 }
0x14ff   : > { %17388 = vst.msk [vmem:[%s25331_s27 + $0xd8] sm:$0xff] %vm17360_vm1, %v17319_v60 }
0x1501   : > { %v17313_v53 = vpop.permute.xlu0 %17312 }
0x1502   : > { %17385 = vst.msk [vmem:[%s25331_s27 + $0xc0] sm:$0xff] %vm17360_vm1, %v17313_v53  ;;  %v17315_v57 = vpop.permute.xlu1 %17314 }
0x1503   : > { %17386 = vst.msk [vmem:[%s25331_s27 + $0xc8] sm:$0xff] %vm17360_vm1, %v17315_v57 }
0x1505   : > { %v17321_v22 = vpop.permute.xlu0 %17320 }
0x1506   : > { %17389 = vst.msk [vmem:[%s25331_s27 + $0xe0] sm:$0xff] %vm17360_vm1, %v17321_v22 }
0x1507   : > { %v17323_v59 = vpop.permute.xlu1 %17322 }
0x1508   : > { %17390 = vst.msk [vmem:[%s25331_s27 + $0xe8] sm:$0xff] %vm17360_vm1, %v17323_v59 }
0x1509   : > { %v17325_v26 = vpop.permute.xlu0 %17324 }
0x150a   : > { %17391 = vst.msk [vmem:[%s25331_s27 + $0xf0] sm:$0xff] %vm17360_vm1, %v17325_v26 }
0x150b   : > { %v17327_v39 = vpop.permute.xlu1 %17326 }
0x150c   : > { %17392 = vst.msk [vmem:[%s25331_s27 + $0xf8] sm:$0xff] %vm17360_vm1, %v17327_v39 }
0x150d   : > { %24310 = shalt.err (!%p24307_p10)
}
0x150e   : > { %s24311_s27 = scalar_lea.hbm %s28335_s18, 4096  ;;  %s24315_s12 = scalar_lea.hbm %s28392_s6, 8192 }
0x150f   : > { %p24312_p1 = scmp.ne.s32.totalorder %s28335_s18, %s24311_s27  ;;  %p24316_p0 = scmp.lt.u32.totalorder %s28335_s18, %s28392_s6 }
0x1510   : > { %p24317_p11 = scmp.lt.u32.totalorder %s24315_s12, %s24311_s27  ;;  %p24319_p13 = scmp.lt.u32.totalorder %s24311_s27, %s28335_s18 }
0x1511   : > { %p24313_p4 = pnand %p24312_p1, %p24574_p5 }
0x1512   : > { %p24318_p8 = por %p24317_p11, %p24316_p0 }
0x1513   : > { %p24314_p9 = pneg %p24313_p4 }
0x1514   : > { %p24320_p2 = por %p24319_p13, %p24318_p8 }
0x1516   : > { %p24321_p6 = pnand %p24320_p2, %p24314_p9 }
0x1518   : > { %24324 = shalt.err (!%p24321_p6)
}
0x1519   : > { %23925 = dma.vmem_to_hbm [thread:$0]  (%p24574_p5), %s28337_s29, 4096, %s28335_s18, %s17399_s19, %s24393_s11, %s24393_s11, %s24394_s17  }
0x151a PF: > { %s17443_s20 = sand.u32 1, %s24365_s21   ;;  %p28481_p3 = scmp.ne.s32.totalorder %s28421_s28, 0 }
0x151b   : > { %p28482_p7 = scmp.ge.s32.totalorder %s24377_s24, 2  ;;  %s17444_s26 = scalar_lea.sflag [#allocation7], %s17443_s20 }
0x151d   : > { %p23943_p12 = pnand %p28482_p7, %p28481_p3 }
0x151f   : > { %24356 = dma.done.wait (!%p23943_p12), %s17444_s26, 4096  }
0x1520   : > { %24358 = vsyncadd (!%p23943_p12), %s17444_s26, 4294963200  ;;  %s17453_s9 = scalar_lea.sflag [#allocation15], %s17443_s20 }
0x1521   : > { %24360 = dma.done.wait (!%p23943_p12), %s17453_s9, 4096  }
0x1522   : > { %24362 = vsyncadd (!%p23943_p12), %s17453_s9, 4294963200  ;;  %p25_p5 = scmp.ge.s32.totalorder %s24542_s13, 4   ;;  %s28483_s21 = smov %s24369_s22 }
0x1523   : > { %s28484_s22 = smov %s24373_s23  ;;  %s28485_s23 = smov %s24570_s8 }
0x1524   : > { %s28486_s24 = smov %s24542_s13  ;;  %27 = sbr.rel (!%p25_p5) target bundleno = 11 (0xb), region = 189 }
0x152b   :  { %17458 = vsyncpa [#allocation6], 1 }
0x152c   :  { %17460 = vsyncpa [#allocation6 + $0x1], 1 }
0x152d   :  { %17461 = vsyncpa [#allocation9], 1 }
0x152e   :  { %17462 = vsyncpa [#allocation12], 1 }
0x152f   :  { %17463 = vsyncpa [#allocation7], 1 }
0x1530   :  { %17465 = vsyncpa [#allocation7 + $0x1], 1 }
0x1531   :  { %17466 = vsyncpa [#allocation15], 1 }
0x1532   :  { %17468 = vsyncpa [#allocation15 + $0x1], 1 }
0x1533   :  { %17469 = vsyncmov [#allocation3] }
0x1536   :  { %s17470_s24 = vpop.sfrf %17469 }
0x1537   :  { %p18658_p10 = scmp.ne.s32.totalorder %s17470_s24, 0 }
0x1539   :  { %17474 = shalt.err (%p18658_p10)  }

</bundles_post_ra>
